<compile_context>
chip_gen: v7x
topology: tpu7x:2x2x1
jax: 0.10.0
libtpu: 0.0.40
codegen_flags: <defaults>
</compile_context>

<pallas_src>
import jax
import jax.numpy as jnp
from jax.experimental import pallas as pl
from jax.experimental.pallas import tpu as pltpu

NZ = 16        # latent dim (options.nz) -- kept small
BATCH = 2
EPS = 1e-5     # nn.BatchNorm2d default eps

# static geometry
C2 = 128                     # layer-2 channels (lane dim everywhere)
H2 = 7                       # layer-2 spatial size
P2 = H2 * H2                 # 49 spatial positions
ROWS = BATCH * P2            # 98 compact activation rows, (n, h, w)-major
OFF = 8                      # leading zero-slack rows in the a2 scratch
A2ROWS = 120                 # 8 slack + 98 rows + >=8 trailing slack (shifts are +-8)
NCHUNK = 7                   # grid steps == w2 column chunks (one 7x128 h-row each)
CHUNK_COLS = H2 * C2         # 896

# stride-2 / k=4 / pad=1 transposed-conv phase decomposition:
#   even output rows (parity 0): taps (kh=1, dh=0), (kh=3, dh=-1)
#   odd  output rows (parity 1): taps (kh=0, dh=+1), (kh=2, dh=0)
TAPS = {0: ((1, 0), (3, -1)), 1: ((0, 1), (2, 0))}
PHASES = ((0, 0), (0, 1), (1, 0), (1, 1))


# ----------------------------------------------------------------------------
# The single fused kernel (grid=(7,): w2 column chunks, tail gated on last step)
# ----------------------------------------------------------------------------
def _netg_kernel(z_ref, w1_ref, g1_ref, b1_ref,
                 w2_ref, g2_ref, b2_ref,
                 mask_ref, w3_ref, g3_ref, b3_ref, w4_ref,
                 o_ref,
                 a1_ref, a2_ref, y3_ref):
    f32, bf16 = jnp.float32, jnp.bfloat16
    g = pl.program_id(0)

    # ---- step 0: layer 1 (1x1 deconv == matmul) + BN1 + ReLU; zero the a2 slab.
    @pl.when(g == 0)
    def _():
        a2_ref[...] = jnp.zeros_like(a2_ref)
        y1 = jnp.dot(z_ref[...].astype(bf16), w1_ref[...],
                     preferred_element_type=f32)                     # (N, 1024)
        m1 = jnp.mean(y1, axis=0, keepdims=True)
        d1 = y1 - m1
        v1 = jnp.mean(d1 * d1, axis=0, keepdims=True)
        a1 = jnp.maximum(d1 * jax.lax.rsqrt(v1 + EPS) * g1_ref[...] + b1_ref[...],
                         0.0)
        a1_ref[...] = a1.astype(bf16)

    # ---- layer 2, one h-row (7 positions, 896 columns) of w2 per grid step.
    #      The next chunk's 1.75 MiB DMA overlaps this matmul (auto pipelining).
    blk = jnp.dot(a1_ref[...], w2_ref[...], preferred_element_type=f32)   # (N, 896)
    for n in range(BATCH):
        rows = jnp.concatenate(
            [blk[n:n + 1, w * C2:(w + 1) * C2] for w in range(H2)], axis=0)  # (7,128)
        a2_ref[pl.ds(OFF + n * P2 + g * H2, H2), :] = rows

    # ---- last step: BN2+ReLU, layer 3 (phase decomposition), BN3+ReLU, layer 4.
    @pl.when(g == NCHUNK - 1)
    def _():
        # BN2: two-pass batch stats over the 98 valid rows, then one wide FMA+ReLU.
        raw = a2_ref[pl.ds(OFF, ROWS), :]                                 # (98,128)
        m2 = jnp.sum(raw, axis=0, keepdims=True) * (1.0 / ROWS)
        d2 = raw - m2
        v2 = jnp.sum(d2 * d2, axis=0, keepdims=True) * (1.0 / ROWS)
        sc2 = g2_ref[...] * jax.lax.rsqrt(v2 + EPS)
        sh2 = b2_ref[...] - m2 * sc2
        a2_ref[pl.ds(OFF, ROWS), :] = jnp.maximum(raw * sc2 + sh2, 0.0)

        # Layer 3: each output parity = sum of 4 dense (98,128)@(128,128) matmuls
        # over row-shifted, boundary-masked views of the compact activation.
        for ph, (rh, rw) in enumerate(PHASES):
            acc = jnp.zeros((ROWS, C2), f32)                  # ~12 vregs, fits
            for kh, dh in TAPS[rh]:
                for kw, dw in TAPS[rw]:
                    shift = dh * H2 + dw                      # in {-8..8}
                    x = (a2_ref[pl.ds(OFF + shift, ROWS), :]
                         * mask_ref[(dh + 1) * 3 + (dw + 1)])
                    acc = acc + jnp.dot(x.astype(bf16), w3_ref[kh * 4 + kw],
                                        preferred_element_type=f32)
            y3_ref[ph] = acc

        # BN3: two-pass batch stats over the 4*98 = 392 valid rows (no masking
        # needed: the phase slabs contain exactly the valid 14x14 positions).
        s1 = jnp.zeros((1, C2), f32)
        for ph in range(4):
            s1 = s1 + jnp.sum(y3_ref[ph], axis=0, keepdims=True)
        m3 = s1 * (1.0 / (4 * ROWS))
        s2 = jnp.zeros((1, C2), f32)
        for ph in range(4):
            d3 = y3_ref[ph] - m3
            s2 = s2 + jnp.sum(d3 * d3, axis=0, keepdims=True)
        v3 = s2 * (1.0 / (4 * ROWS))
        sc3 = g3_ref[...] * jax.lax.rsqrt(v3 + EPS)
        sh3 = b3_ref[...] - m3 * sc3

        # Layer 4: per-row contraction onto the 16 (kh,kw) taps of the final
        # 4x4 stride-2 transposed conv (single output channel).
        for ph in range(4):
            a3 = jnp.maximum(y3_ref[ph] * sc3 + sh3, 0.0)
            o_ref[ph] = jnp.dot(a3.astype(bf16), w4_ref[...],
                                preferred_element_type=f32)               # (98,16)


def _fused_netg_call(z2d, pk):
    grid_spec = pltpu.PrefetchScalarGridSpec(
        num_scalar_prefetch=0,
        grid=(NCHUNK,),
        in_specs=[
            pl.BlockSpec((BATCH, NZ), lambda g: (0, 0)),           # z
            pl.BlockSpec((NZ, 1024), lambda g: (0, 0)),            # w1
            pl.BlockSpec((1, 1024), lambda g: (0, 0)),             # bn1 gamma
            pl.BlockSpec((1, 1024), lambda g: (0, 0)),             # bn1 beta
            pl.BlockSpec((1024, CHUNK_COLS), lambda g: (0, g)),    # w2 column chunk
            pl.BlockSpec((1, C2), lambda g: (0, 0)),               # bn2 gamma
            pl.BlockSpec((1, C2), lambda g: (0, 0)),               # bn2 beta
            pl.BlockSpec((9, ROWS, C2), lambda g: (0, 0, 0)),      # shift validity masks
            pl.BlockSpec((16, C2, C2), lambda g: (0, 0, 0)),       # w3 per-tap matrices
            pl.BlockSpec((1, C2), lambda g: (0, 0)),               # bn3 gamma
            pl.BlockSpec((1, C2), lambda g: (0, 0)),               # bn3 beta
            pl.BlockSpec((C2, 16), lambda g: (0, 0)),              # w4 per-tap columns
        ],
        out_specs=pl.BlockSpec((4, ROWS, 16), lambda g: (0, 0, 0)),
        scratch_shapes=[
            pltpu.VMEM((BATCH, 1024), jnp.bfloat16),   # a1 (layer-1 activation)
            pltpu.VMEM((A2ROWS, C2), jnp.float32),     # compact a2 slab + shift slack
            pltpu.VMEM((4, ROWS, C2), jnp.float32),    # layer-3 phase outputs
        ],
    )
    return pl.pallas_call(
        _netg_kernel,
        out_shape=jax.ShapeDtypeStruct((4, ROWS, 16), jnp.float32),
        grid_spec=grid_spec,
        compiler_params=pltpu.CompilerParams(
            dimension_semantics=("arbitrary",),
            vmem_limit_bytes=24 * 1024 * 1024),
    )(z2d, pk["w1m"], pk["g1"], pk["b1"],
      pk["w2m"], pk["g2"], pk["b2"],
      pk["mask"], pk["w3s"], pk["g3"], pk["b3"], pk["w4m"])


# ----------------------------------------------------------------------------
# One-time weight packing: transpose / tap-split / channel-pad to 128 lanes,
# cast matmul weights to bf16, and precompute the 9 shift-validity masks.
# ----------------------------------------------------------------------------
def _shift_masks():
    r = jnp.arange(ROWS)
    a = (r % P2) // H2
    b = r % H2
    ms = []
    for dh in (-1, 0, 1):
        for dw in (-1, 0, 1):
            ok = ((a + dh >= 0) & (a + dh < H2) & (b + dw >= 0) & (b + dw < H2))
            ms.append(jnp.broadcast_to(ok.astype(jnp.float32)[:, None], (ROWS, C2)))
    return jnp.stack(ms)                                     # (9, 98, 128) f32


def pack_params(p):
    bf16 = jnp.bfloat16
    w1m = p["w1"][:, :, 0, 0].astype(bf16)                                    # (nz,1024)
    # layer-2 weight columns ordered (h, w, c): each 896-col chunk is one h-row.
    w2m = jnp.transpose(p["w2"], (0, 2, 3, 1)).reshape(1024, P2 * C2).astype(bf16)
    # layer-3 per-tap (Cin, Cout) matrices (NO spatial flip in this formulation),
    # Cout zero-padded 64 -> 128.
    w3s = jnp.transpose(p["w3"], (2, 3, 0, 1)).reshape(16, 128, 64)
    w3s = jnp.pad(w3s, ((0, 0), (0, 0), (0, 64))).astype(bf16)                # (16,128,128)
    # layer-4 per-tap columns, Cin zero-padded 64 -> 128.
    w4m = jnp.pad(p["w4"][:, 0].reshape(64, 16), ((0, 64), (0, 0))).astype(bf16)
    return {
        "w1m": w1m, "g1": p["g1"].reshape(1, 1024), "b1": p["b1"].reshape(1, 1024),
        "w2m": w2m, "g2": p["g2"].reshape(1, C2), "b2": p["b2"].reshape(1, C2),
        "mask": _shift_masks(),
        "w3s": w3s,
        # bias3 is dropped: it cancels exactly under BatchNorm3.
        "g3": jnp.pad(p["g3"], (0, 64)).reshape(1, C2),
        "b3": jnp.pad(p["b3"], (0, 64)).reshape(1, C2),
        "w4m": w4m,
        "bias4": p["bias4"],
    }


# ----------------------------------------------------------------------------
# Forward: one fused Pallas kernel + a tiny col2im overlap-add epilogue in XLA.
# ----------------------------------------------------------------------------
def netG_forward(z_nchw, packed):
    z2d = z_nchw.reshape(BATCH, NZ)
    taps = _fused_netg_call(z2d, packed)                     # (4, 98, 16) f32
    taps = taps.reshape(4, BATCH, H2, H2, 16)
    # interleave the 4 output parities back onto the 14x14 grid
    t_full = jnp.zeros((BATCH, 14, 14, 16), jnp.float32)
    for ph, (rh, rw) in enumerate(PHASES):
        t_full = t_full.at[:, rh::2, rw::2, :].set(taps[ph])
    # col2im overlap-add for the final stride-2 transposed conv (tiny, XLA side)
    buf = jnp.zeros((BATCH, 31, 31), jnp.float32)
    for kh in range(4):
        for kw in range(4):
            buf = buf.at[:, kh:kh + 28:2, kw:kw + 28:2].add(t_full[:, :, :, kh * 4 + kw])
    out = buf[:, 1:29, 1:29] + packed["bias4"]               # (N,28,28)
    return out[:, None, :, :]                                # NCHW (N,1,28,28)


# ----------------------------------------------------------------------------
# Parameters (PyTorch layouts) + pure-JAX reference for a correctness check
# ----------------------------------------------------------------------------
def init_params(key):
    ks = jax.random.split(key, 10)
    n = lambda k, shape, std=0.02: (std * jax.random.normal(k, shape)).astype(jnp.float32)
    return {
        "w1": n(ks[0], (NZ, 1024, 1, 1)),
        "g1": 1.0 + n(ks[1], (1024,)), "b1": jnp.zeros((1024,), jnp.float32),
        "w2": n(ks[2], (1024, 128, 7, 7)),
        "g2": 1.0 + n(ks[3], (128,)), "b2": jnp.zeros((128,), jnp.float32),
        "w3": n(ks[4], (128, 64, 4, 4)), "bias3": n(ks[5], (64,)),
        "g3": 1.0 + n(ks[6], (64,)), "b3": jnp.zeros((64,), jnp.float32),
        "w4": n(ks[7], (64, 1, 4, 4)), "bias4": n(ks[8], (1,)),
    }


def _conv_transpose_ref(x, w, stride, pad):
    # x: (N, Cin, H, W); w: (Cin, Cout, k, k)  -- PyTorch ConvTranspose2d semantics.
    N, C, H, W = x.shape
    k = w.shape[2]
    Ho = (H - 1) * stride - 2 * pad + k
    Wo = (W - 1) * stride - 2 * pad + k
    span = (H - 1) * stride + 1
    buf = jnp.zeros((N, w.shape[1], Ho + 2 * pad, Wo + 2 * pad), jnp.float32)
    for kh in range(k):
        for kw in range(k):
            contrib = jnp.einsum("nchw,cd->ndhw", x, w[:, :, kh, kw])
            buf = buf.at[:, :, kh:kh + span:stride, kw:kw + span:stride].add(contrib)
    return buf[:, :, pad:pad + Ho, pad:pad + Wo]


def _bn_relu_ref(x, g, b):
    m = x.mean(axis=(0, 2, 3), keepdims=True)
    v = ((x - m) ** 2).mean(axis=(0, 2, 3), keepdims=True)
    return jnp.maximum((x - m) * jax.lax.rsqrt(v + EPS)
                       * g.reshape(1, -1, 1, 1) + b.reshape(1, -1, 1, 1), 0.0)


def netG_reference(z, p):
    bf = lambda x: x.astype(jnp.bfloat16).astype(jnp.float32)   # match kernel precision
    x = _conv_transpose_ref(bf(z), bf(p["w1"]), 1, 0)
    x = _bn_relu_ref(x, p["g1"], p["b1"])
    x = _conv_transpose_ref(bf(x), bf(p["w2"]), 1, 0)
    x = _bn_relu_ref(x, p["g2"], p["b2"])
    x = _conv_transpose_ref(bf(x), bf(p["w3"]), 2, 1) + p["bias3"].reshape(1, -1, 1, 1)
    x = _bn_relu_ref(x, p["g3"], p["b3"])
    x = _conv_transpose_ref(bf(x), bf(p["w4"]), 2, 1) + p["bias4"].reshape(1, -1, 1, 1)
    return x


if __name__ == "__main__":
    key = jax.random.PRNGKey(0)
    k_z, k_p = jax.random.split(key)
    z = jax.random.normal(k_z, (BATCH, NZ, 1, 1), dtype=jnp.float32)   # NCHW latent
    params = init_params(k_p)
    packed = pack_params(params)              # one-time pre-pack (bf16 matmul weights)

    out = jax.jit(netG_forward)(z, packed)
    out = jax.block_until_ready(out)

    assert out.shape == (BATCH, 1, 28, 28), out.shape
    assert out.dtype == jnp.float32
    assert bool(jnp.all(jnp.isfinite(out)))

    ref = netG_reference(z, params)
    err = float(jnp.max(jnp.abs(out - ref)))
    assert err < 5e-2, f"max abs err vs reference = {err}"
    print("KERNEL_OK")
</pallas_src>

<mosaic_0001>
module attributes {stable_mosaic.version = 11 : i64} {
  func.func @_netg_kernel(%arg0: i32, %arg1: memref<2x16xf32, #tpu.memory_space<vmem>>, %arg2: memref<16x1024xbf16, #tpu.memory_space<vmem>>, %arg3: memref<1x1024xf32, #tpu.memory_space<vmem>>, %arg4: memref<1x1024xf32, #tpu.memory_space<vmem>>, %arg5: memref<1024x896xbf16, #tpu.memory_space<vmem>>, %arg6: memref<1x128xf32, #tpu.memory_space<vmem>>, %arg7: memref<1x128xf32, #tpu.memory_space<vmem>>, %arg8: memref<9x98x128xf32, #tpu.memory_space<vmem>>, %arg9: memref<16x128x128xbf16, #tpu.memory_space<vmem>>, %arg10: memref<1x128xf32, #tpu.memory_space<vmem>>, %arg11: memref<1x128xf32, #tpu.memory_space<vmem>>, %arg12: memref<128x16xbf16, #tpu.memory_space<vmem>>, %arg13: memref<4x98x16xf32, #tpu.memory_space<vmem>>, %arg14: memref<2x1024xbf16, #tpu.memory_space<vmem>>, %arg15: memref<120x128xf32, #tpu.memory_space<vmem>>, %arg16: memref<4x98x128xf32, #tpu.memory_space<vmem>>) attributes {dimension_semantics = [#tpu.dimension_semantics<arbitrary>], iteration_bounds = array<i64: 7>, scalar_prefetch = 0 : i64, scratch_operands = 3 : i64, tpu.core_type = #tpu.core_type<tc>, window_params = [{pipeline_mode = #tpu.pipeline_mode<synchronous>, transform_indices = @transform_0, window_bounds = array<i64: 2, 16>}, {pipeline_mode = #tpu.pipeline_mode<synchronous>, transform_indices = @transform_1, window_bounds = array<i64: 16, 1024>}, {pipeline_mode = #tpu.pipeline_mode<synchronous>, transform_indices = @transform_2, window_bounds = array<i64: 1, 1024>}, {pipeline_mode = #tpu.pipeline_mode<synchronous>, transform_indices = @transform_3, window_bounds = array<i64: 1, 1024>}, {transform_indices = @transform_4, window_bounds = array<i64: 1024, 896>}, {pipeline_mode = #tpu.pipeline_mode<synchronous>, transform_indices = @transform_5, window_bounds = array<i64: 1, 128>}, {pipeline_mode = #tpu.pipeline_mode<synchronous>, transform_indices = @transform_6, window_bounds = array<i64: 1, 128>}, {pipeline_mode = #tpu.pipeline_mode<synchronous>, transform_indices = @transform_7, window_bounds = array<i64: 9, 98, 128>}, {pipeline_mode = #tpu.pipeline_mode<synchronous>, transform_indices = @transform_8, window_bounds = array<i64: 16, 128, 128>}, {pipeline_mode = #tpu.pipeline_mode<synchronous>, transform_indices = @transform_9, window_bounds = array<i64: 1, 128>}, {pipeline_mode = #tpu.pipeline_mode<synchronous>, transform_indices = @transform_10, window_bounds = array<i64: 1, 128>}, {pipeline_mode = #tpu.pipeline_mode<synchronous>, transform_indices = @transform_11, window_bounds = array<i64: 128, 16>}, {pipeline_mode = #tpu.pipeline_mode<synchronous>, transform_indices = @transform_12, window_bounds = array<i64: 4, 98, 16>}]} {
    %c0_i32 = arith.constant 0 : i32
    %0 = arith.cmpi eq, %arg0, %c0_i32 : i32
    %1 = arith.extui %0 : i1 to i32
    %c0_i32_0 = arith.constant 0 : i32
    %2 = arith.cmpi ne, %1, %c0_i32_0 : i32
    scf.if %2 {
      %cst_8 = arith.constant 0.000000e+00 : f32
      %33 = vector.broadcast %cst_8 : f32 to vector<120x128xf32>
      %c0_9 = arith.constant 0 : index
      %c0_10 = arith.constant 0 : index
      %34 = vector.load %arg15[%c0_9, %c0_10] : memref<120x128xf32, #tpu.memory_space<vmem>>, vector<120x128xf32>
      tpu.vector_store %arg15[%c0_9, %c0_10], %33 {strides = array<i32>} : memref<120x128xf32, #tpu.memory_space<vmem>>, vector<120x128xf32>,
      %c0_11 = arith.constant 0 : index
      %c0_12 = arith.constant 0 : index
      %35 = vector.load %arg1[%c0_11, %c0_12] : memref<2x16xf32, #tpu.memory_space<vmem>>, vector<2x16xf32>
      %36 = arith.truncf %35 : vector<2x16xf32> to vector<2x16xbf16>
      %c0_13 = arith.constant 0 : index
      %c0_14 = arith.constant 0 : index
      %37 = vector.load %arg2[%c0_13, %c0_14] : memref<16x1024xbf16, #tpu.memory_space<vmem>>, vector<16x1024xbf16>
      %cst_15 = arith.constant dense<0.000000e+00> : vector<2x1024xf32>
      %38 = tpu.matmul %36, %37, %cst_15 {dimension_numbers = #tpu.dot_dimension_numbers<[1], [0], [0], [1], [0, 0, 1, 1], [], []>} : vector<2x16xbf16>, vector<16x1024xbf16>, vector<2x1024xf32> -> vector<2x1024xf32>
      %cst_16 = arith.constant dense<0.000000e+00> : vector<1024xf32>
      %39 = vector.multi_reduction <add>, %38, %cst_16 [0] : vector<2x1024xf32> to vector<1024xf32>
      %40 = vector.shape_cast %39 : vector<1024xf32> to vector<1x1024xf32>
      %cst_17 = arith.constant 2.000000e+00 : f32
      %41 = vector.broadcast %cst_17 : f32 to vector<1x1024xf32>
      %42 = arith.divf %40, %41 : vector<1x1024xf32>
      %43 = vector.broadcast %42 : vector<1x1024xf32> to vector<2x1024xf32>
      %44 = arith.subf %38, %43 : vector<2x1024xf32>
      %45 = arith.mulf %44, %44 : vector<2x1024xf32>
      %cst_18 = arith.constant dense<0.000000e+00> : vector<1024xf32>
      %46 = vector.multi_reduction <add>, %45, %cst_18 [0] : vector<2x1024xf32> to vector<1024xf32>
      %47 = vector.shape_cast %46 : vector<1024xf32> to vector<1x1024xf32>
      %cst_19 = arith.constant 2.000000e+00 : f32
      %48 = vector.broadcast %cst_19 : f32 to vector<1x1024xf32>
      %49 = arith.divf %47, %48 : vector<1x1024xf32>
      %cst_20 = arith.constant 9.99999974E-6 : f32
      %50 = vector.broadcast %cst_20 : f32 to vector<1x1024xf32>
      %51 = arith.addf %49, %50 : vector<1x1024xf32>
      %52 = math.rsqrt %51 : vector<1x1024xf32>
      %53 = vector.broadcast %52 : vector<1x1024xf32> to vector<2x1024xf32>
      %54 = arith.mulf %44, %53 : vector<2x1024xf32>
      %c0_21 = arith.constant 0 : index
      %c0_22 = arith.constant 0 : index
      %55 = vector.load %arg3[%c0_21, %c0_22] : memref<1x1024xf32, #tpu.memory_space<vmem>>, vector<1x1024xf32>
      %56 = vector.broadcast %55 : vector<1x1024xf32> to vector<2x1024xf32>
      %57 = arith.mulf %54, %56 : vector<2x1024xf32>
      %c0_23 = arith.constant 0 : index
      %c0_24 = arith.constant 0 : index
      %58 = vector.load %arg4[%c0_23, %c0_24] : memref<1x1024xf32, #tpu.memory_space<vmem>>, vector<1x1024xf32>
      %59 = vector.broadcast %58 : vector<1x1024xf32> to vector<2x1024xf32>
      %60 = arith.addf %57, %59 : vector<2x1024xf32>
      %cst_25 = arith.constant 0.000000e+00 : f32
      %61 = vector.broadcast %cst_25 : f32 to vector<2x1024xf32>
      %62 = arith.maximumf %60, %61 : vector<2x1024xf32>
      %63 = arith.truncf %62 : vector<2x1024xf32> to vector<2x1024xbf16>
      %c0_26 = arith.constant 0 : index
      %c0_27 = arith.constant 0 : index
      %64 = vector.load %arg14[%c0_26, %c0_27] : memref<2x1024xbf16, #tpu.memory_space<vmem>>, vector<2x1024xbf16>
      tpu.vector_store %arg14[%c0_26, %c0_27], %63 {strides = array<i32>} : memref<2x1024xbf16, #tpu.memory_space<vmem>>, vector<2x1024xbf16>,
    } else {
    }
    %c0 = arith.constant 0 : index
    %c0_1 = arith.constant 0 : index
    %3 = vector.load %arg14[%c0, %c0_1] : memref<2x1024xbf16, #tpu.memory_space<vmem>>, vector<2x1024xbf16>
    %c0_2 = arith.constant 0 : index
    %c0_3 = arith.constant 0 : index
    %4 = vector.load %arg5[%c0_2, %c0_3] : memref<1024x896xbf16, #tpu.memory_space<vmem>>, vector<1024x896xbf16>
    %cst = arith.constant dense<0.000000e+00> : vector<2x896xf32>
    %5 = tpu.matmul %3, %4, %cst {dimension_numbers = #tpu.dot_dimension_numbers<[1], [0], [0], [1], [0, 0, 1, 1], [], []>} : vector<2x1024xbf16>, vector<1024x896xbf16>, vector<2x896xf32> -> vector<2x896xf32>
    %6 = vector.extract_strided_slice %5 {offsets = [0, 0], sizes = [1, 128], strides = [1, 1]} : vector<2x896xf32> to vector<1x128xf32>
    %7 = vector.extract_strided_slice %5 {offsets = [0, 128], sizes = [1, 128], strides = [1, 1]} : vector<2x896xf32> to vector<1x128xf32>
    %8 = vector.extract_strided_slice %5 {offsets = [0, 256], sizes = [1, 128], strides = [1, 1]} : vector<2x896xf32> to vector<1x128xf32>
    %9 = vector.extract_strided_slice %5 {offsets = [0, 384], sizes = [1, 128], strides = [1, 1]} : vector<2x896xf32> to vector<1x128xf32>
    %10 = vector.extract_strided_slice %5 {offsets = [0, 512], sizes = [1, 128], strides = [1, 1]} : vector<2x896xf32> to vector<1x128xf32>
    %11 = vector.extract_strided_slice %5 {offsets = [0, 640], sizes = [1, 128], strides = [1, 1]} : vector<2x896xf32> to vector<1x128xf32>
    %12 = vector.extract_strided_slice %5 {offsets = [0, 768], sizes = [1, 128], strides = [1, 1]} : vector<2x896xf32> to vector<1x128xf32>
    %13 = tpu.concatenate %6, %7, %8, %9, %10, %11, %12 in 0 : vector<1x128xf32>, vector<1x128xf32>, vector<1x128xf32>, vector<1x128xf32>, vector<1x128xf32>, vector<1x128xf32>, vector<1x128xf32> -> vector<7x128xf32>
    %c7_i32 = arith.constant 7 : i32
    %14 = arith.muli %arg0, %c7_i32 : i32
    %c8_i32 = arith.constant 8 : i32
    %15 = arith.addi %c8_i32, %14 : i32
    %16 = arith.index_cast %15 : i32 to index
    %c0_4 = arith.constant 0 : index
    %17 = vector.load %arg15[%16, %c0_4] : memref<120x128xf32, #tpu.memory_space<vmem>>, vector<7x128xf32>
    tpu.vector_store %arg15[%16, %c0_4], %13 {strides = array<i32>} : memref<120x128xf32, #tpu.memory_space<vmem>>, vector<7x128xf32>,
    %18 = vector.extract_strided_slice %5 {offsets = [1, 0], sizes = [1, 128], strides = [1, 1]} : vector<2x896xf32> to vector<1x128xf32>
    %19 = vector.extract_strided_slice %5 {offsets = [1, 128], sizes = [1, 128], strides = [1, 1]} : vector<2x896xf32> to vector<1x128xf32>
    %20 = vector.extract_strided_slice %5 {offsets = [1, 256], sizes = [1, 128], strides = [1, 1]} : vector<2x896xf32> to vector<1x128xf32>
    %21 = vector.extract_strided_slice %5 {offsets = [1, 384], sizes = [1, 128], strides = [1, 1]} : vector<2x896xf32> to vector<1x128xf32>
    %22 = vector.extract_strided_slice %5 {offsets = [1, 512], sizes = [1, 128], strides = [1, 1]} : vector<2x896xf32> to vector<1x128xf32>
    %23 = vector.extract_strided_slice %5 {offsets = [1, 640], sizes = [1, 128], strides = [1, 1]} : vector<2x896xf32> to vector<1x128xf32>
    %24 = vector.extract_strided_slice %5 {offsets = [1, 768], sizes = [1, 128], strides = [1, 1]} : vector<2x896xf32> to vector<1x128xf32>
    %25 = tpu.concatenate %18, %19, %20, %21, %22, %23, %24 in 0 : vector<1x128xf32>, vector<1x128xf32>, vector<1x128xf32>, vector<1x128xf32>, vector<1x128xf32>, vector<1x128xf32>, vector<1x128xf32> -> vector<7x128xf32>
    %c7_i32_5 = arith.constant 7 : i32
    %26 = arith.muli %arg0, %c7_i32_5 : i32
    %c57_i32 = arith.constant 57 : i32
    %27 = arith.addi %c57_i32, %26 : i32
    %28 = arith.index_cast %27 : i32 to index
    %c0_6 = arith.constant 0 : index
    %29 = vector.load %arg15[%28, %c0_6] : memref<120x128xf32, #tpu.memory_space<vmem>>, vector<7x128xf32>
    tpu.vector_store %arg15[%28, %c0_6], %25 {strides = array<i32>} : memref<120x128xf32, #tpu.memory_space<vmem>>, vector<7x128xf32>,
    %c6_i32 = arith.constant 6 : i32
    %30 = arith.cmpi eq, %arg0, %c6_i32 : i32
    %31 = arith.extui %30 : i1 to i32
    %c0_i32_7 = arith.constant 0 : i32
    %32 = arith.cmpi ne, %31, %c0_i32_7 : i32
    scf.if %32 {
      %c8 = arith.constant 8 : index
      %c0_8 = arith.constant 0 : index
      %33 = vector.load %arg15[%c8, %c0_8] : memref<120x128xf32, #tpu.memory_space<vmem>>, vector<98x128xf32>
      %cst_9 = arith.constant dense<0.000000e+00> : vector<128xf32>
      %34 = vector.multi_reduction <add>, %33, %cst_9 [0] : vector<98x128xf32> to vector<128xf32>
      %35 = vector.shape_cast %34 : vector<128xf32> to vector<1x128xf32>
      %cst_10 = arith.constant 0.0102040814 : f32
      %36 = vector.broadcast %cst_10 : f32 to vector<1x128xf32>
      %37 = arith.mulf %35, %36 : vector<1x128xf32>
      %38 = vector.broadcast %37 : vector<1x128xf32> to vector<98x128xf32>
      %39 = arith.subf %33, %38 : vector<98x128xf32>
      %40 = arith.mulf %39, %39 : vector<98x128xf32>
      %cst_11 = arith.constant dense<0.000000e+00> : vector<128xf32>
      %41 = vector.multi_reduction <add>, %40, %cst_11 [0] : vector<98x128xf32> to vector<128xf32>
      %42 = vector.shape_cast %41 : vector<128xf32> to vector<1x128xf32>
      %cst_12 = arith.constant 0.0102040814 : f32
      %43 = vector.broadcast %cst_12 : f32 to vector<1x128xf32>
      %44 = arith.mulf %42, %43 : vector<1x128xf32>
      %c0_13 = arith.constant 0 : index
      %c0_14 = arith.constant 0 : index
      %45 = vector.load %arg6[%c0_13, %c0_14] : memref<1x128xf32, #tpu.memory_space<vmem>>, vector<1x128xf32>
      %cst_15 = arith.constant 9.99999974E-6 : f32
      %46 = vector.broadcast %cst_15 : f32 to vector<1x128xf32>
      %47 = arith.addf %44, %46 : vector<1x128xf32>
      %48 = math.rsqrt %47 : vector<1x128xf32>
      %49 = arith.mulf %45, %48 : vector<1x128xf32>
      %c0_16 = arith.constant 0 : index
      %c0_17 = arith.constant 0 : index
      %50 = vector.load %arg7[%c0_16, %c0_17] : memref<1x128xf32, #tpu.memory_space<vmem>>, vector<1x128xf32>
      %51 = arith.mulf %37, %49 : vector<1x128xf32>
      %52 = arith.subf %50, %51 : vector<1x128xf32>
      %53 = vector.broadcast %49 : vector<1x128xf32> to vector<98x128xf32>
      %54 = arith.mulf %33, %53 : vector<98x128xf32>
      %55 = vector.broadcast %52 : vector<1x128xf32> to vector<98x128xf32>
      %56 = arith.addf %54, %55 : vector<98x128xf32>
      %cst_18 = arith.constant 0.000000e+00 : f32
      %57 = vector.broadcast %cst_18 : f32 to vector<98x128xf32>
      %58 = arith.maximumf %56, %57 : vector<98x128xf32>
      %c8_19 = arith.constant 8 : index
      %c0_20 = arith.constant 0 : index
      %59 = vector.load %arg15[%c8_19, %c0_20] : memref<120x128xf32, #tpu.memory_space<vmem>>, vector<98x128xf32>
      tpu.vector_store %arg15[%c8_19, %c0_20], %58 {strides = array<i32>} : memref<120x128xf32, #tpu.memory_space<vmem>>, vector<98x128xf32>,
      %cst_21 = arith.constant 0.000000e+00 : f32
      %60 = vector.broadcast %cst_21 : f32 to vector<98x128xf32>
      %c8_22 = arith.constant 8 : index
      %c0_23 = arith.constant 0 : index
      %61 = vector.load %arg15[%c8_22, %c0_23] : memref<120x128xf32, #tpu.memory_space<vmem>>, vector<98x128xf32>
      %c4 = arith.constant 4 : index
      %c0_24 = arith.constant 0 : index
      %c0_25 = arith.constant 0 : index
      %62 = vector.load %arg8[%c4, %c0_24, %c0_25] : memref<9x98x128xf32, #tpu.memory_space<vmem>>, vector<1x98x128xf32>
      %63 = vector.shape_cast %62 : vector<1x98x128xf32> to vector<98x128xf32>
      %64 = arith.mulf %61, %63 : vector<98x128xf32>
      %65 = arith.truncf %64 : vector<98x128xf32> to vector<98x128xbf16>
      %c5 = arith.constant 5 : index
      %c0_26 = arith.constant 0 : index
      %c0_27 = arith.constant 0 : index
      %66 = vector.load %arg9[%c5, %c0_26, %c0_27] : memref<16x128x128xbf16, #tpu.memory_space<vmem>>, vector<1x128x128xbf16>
      %67 = vector.shape_cast %66 : vector<1x128x128xbf16> to vector<128x128xbf16>
      %cst_28 = arith.constant dense<0.000000e+00> : vector<98x128xf32>
      %68 = tpu.matmul %65, %67, %cst_28 {dimension_numbers = #tpu.dot_dimension_numbers<[1], [0], [0], [1], [0, 0, 1, 1], [], []>} : vector<98x128xbf16>, vector<128x128xbf16>, vector<98x128xf32> -> vector<98x128xf32>
      %69 = arith.addf %60, %68 : vector<98x128xf32>
      %c7 = arith.constant 7 : index
      %c0_29 = arith.constant 0 : index
      %70 = vector.load %arg15[%c7, %c0_29] : memref<120x128xf32, #tpu.memory_space<vmem>>, vector<98x128xf32>
      %c3 = arith.constant 3 : index
      %c0_30 = arith.constant 0 : index
      %c0_31 = arith.constant 0 : index
      %71 = vector.load %arg8[%c3, %c0_30, %c0_31] : memref<9x98x128xf32, #tpu.memory_space<vmem>>, vector<1x98x128xf32>
      %72 = vector.shape_cast %71 : vector<1x98x128xf32> to vector<98x128xf32>
      %73 = arith.mulf %70, %72 : vector<98x128xf32>
      %74 = arith.truncf %73 : vector<98x128xf32> to vector<98x128xbf16>
      %c7_32 = arith.constant 7 : index
      %c0_33 = arith.constant 0 : index
      %c0_34 = arith.constant 0 : index
      %75 = vector.load %arg9[%c7_32, %c0_33, %c0_34] : memref<16x128x128xbf16, #tpu.memory_space<vmem>>, vector<1x128x128xbf16>
      %76 = vector.shape_cast %75 : vector<1x128x128xbf16> to vector<128x128xbf16>
      %cst_35 = arith.constant dense<0.000000e+00> : vector<98x128xf32>
      %77 = tpu.matmul %74, %76, %cst_35 {dimension_numbers = #tpu.dot_dimension_numbers<[1], [0], [0], [1], [0, 0, 1, 1], [], []>} : vector<98x128xbf16>, vector<128x128xbf16>, vector<98x128xf32> -> vector<98x128xf32>
      %78 = arith.addf %69, %77 : vector<98x128xf32>
      %c1 = arith.constant 1 : index
      %c0_36 = arith.constant 0 : index
      %79 = vector.load %arg15[%c1, %c0_36] : memref<120x128xf32, #tpu.memory_space<vmem>>, vector<98x128xf32>
      %c1_37 = arith.constant 1 : index
      %c0_38 = arith.constant 0 : index
      %c0_39 = arith.constant 0 : index
      %80 = vector.load %arg8[%c1_37, %c0_38, %c0_39] : memref<9x98x128xf32, #tpu.memory_space<vmem>>, vector<1x98x128xf32>
      %81 = vector.shape_cast %80 : vector<1x98x128xf32> to vector<98x128xf32>
      %82 = arith.mulf %79, %81 : vector<98x128xf32>
      %83 = arith.truncf %82 : vector<98x128xf32> to vector<98x128xbf16>
      %c13 = arith.constant 13 : index
      %c0_40 = arith.constant 0 : index
      %c0_41 = arith.constant 0 : index
      %84 = vector.load %arg9[%c13, %c0_40, %c0_41] : memref<16x128x128xbf16, #tpu.memory_space<vmem>>, vector<1x128x128xbf16>
      %85 = vector.shape_cast %84 : vector<1x128x128xbf16> to vector<128x128xbf16>
      %cst_42 = arith.constant dense<0.000000e+00> : vector<98x128xf32>
      %86 = tpu.matmul %83, %85, %cst_42 {dimension_numbers = #tpu.dot_dimension_numbers<[1], [0], [0], [1], [0, 0, 1, 1], [], []>} : vector<98x128xbf16>, vector<128x128xbf16>, vector<98x128xf32> -> vector<98x128xf32>
      %87 = arith.addf %78, %86 : vector<98x128xf32>
      %c0_43 = arith.constant 0 : index
      %c0_44 = arith.constant 0 : index
      %88 = vector.load %arg15[%c0_43, %c0_44] : memref<120x128xf32, #tpu.memory_space<vmem>>, vector<98x128xf32>
      %c0_45 = arith.constant 0 : index
      %c0_46 = arith.constant 0 : index
      %c0_47 = arith.constant 0 : index
      %89 = vector.load %arg8[%c0_45, %c0_46, %c0_47] : memref<9x98x128xf32, #tpu.memory_space<vmem>>, vector<1x98x128xf32>
      %90 = vector.shape_cast %89 : vector<1x98x128xf32> to vector<98x128xf32>
      %91 = arith.mulf %88, %90 : vector<98x128xf32>
      %92 = arith.truncf %91 : vector<98x128xf32> to vector<98x128xbf16>
      %c15 = arith.constant 15 : index
      %c0_48 = arith.constant 0 : index
      %c0_49 = arith.constant 0 : index
      %93 = vector.load %arg9[%c15, %c0_48, %c0_49] : memref<16x128x128xbf16, #tpu.memory_space<vmem>>, vector<1x128x128xbf16>
      %94 = vector.shape_cast %93 : vector<1x128x128xbf16> to vector<128x128xbf16>
      %cst_50 = arith.constant dense<0.000000e+00> : vector<98x128xf32>
      %95 = tpu.matmul %92, %94, %cst_50 {dimension_numbers = #tpu.dot_dimension_numbers<[1], [0], [0], [1], [0, 0, 1, 1], [], []>} : vector<98x128xbf16>, vector<128x128xbf16>, vector<98x128xf32> -> vector<98x128xf32>
      %96 = arith.addf %87, %95 : vector<98x128xf32>
      %c0_51 = arith.constant 0 : index
      %c0_52 = arith.constant 0 : index
      %c0_53 = arith.constant 0 : index
      %97 = vector.load %arg16[%c0_51, %c0_52, %c0_53] : memref<4x98x128xf32, #tpu.memory_space<vmem>>, vector<1x98x128xf32>
      %98 = vector.shape_cast %97 : vector<1x98x128xf32> to vector<98x128xf32>
      %99 = vector.shape_cast %96 : vector<98x128xf32> to vector<1x98x128xf32>
      tpu.vector_store %arg16[%c0_51, %c0_52, %c0_53], %99 {strides = array<i32>} : memref<4x98x128xf32, #tpu.memory_space<vmem>>, vector<1x98x128xf32>,
      %cst_54 = arith.constant 0.000000e+00 : f32
      %100 = vector.broadcast %cst_54 : f32 to vector<98x128xf32>
      %c9 = arith.constant 9 : index
      %c0_55 = arith.constant 0 : index
      %101 = vector.load %arg15[%c9, %c0_55] : memref<120x128xf32, #tpu.memory_space<vmem>>, vector<98x128xf32>
      %c5_56 = arith.constant 5 : index
      %c0_57 = arith.constant 0 : index
      %c0_58 = arith.constant 0 : index
      %102 = vector.load %arg8[%c5_56, %c0_57, %c0_58] : memref<9x98x128xf32, #tpu.memory_space<vmem>>, vector<1x98x128xf32>
      %103 = vector.shape_cast %102 : vector<1x98x128xf32> to vector<98x128xf32>
      %104 = arith.mulf %101, %103 : vector<98x128xf32>
      %105 = arith.truncf %104 : vector<98x128xf32> to vector<98x128xbf16>
      %c4_59 = arith.constant 4 : index
      %c0_60 = arith.constant 0 : index
      %c0_61 = arith.constant 0 : index
      %106 = vector.load %arg9[%c4_59, %c0_60, %c0_61] : memref<16x128x128xbf16, #tpu.memory_space<vmem>>, vector<1x128x128xbf16>
      %107 = vector.shape_cast %106 : vector<1x128x128xbf16> to vector<128x128xbf16>
      %cst_62 = arith.constant dense<0.000000e+00> : vector<98x128xf32>
      %108 = tpu.matmul %105, %107, %cst_62 {dimension_numbers = #tpu.dot_dimension_numbers<[1], [0], [0], [1], [0, 0, 1, 1], [], []>} : vector<98x128xbf16>, vector<128x128xbf16>, vector<98x128xf32> -> vector<98x128xf32>
      %109 = arith.addf %100, %108 : vector<98x128xf32>
      %c8_63 = arith.constant 8 : index
      %c0_64 = arith.constant 0 : index
      %110 = vector.load %arg15[%c8_63, %c0_64] : memref<120x128xf32, #tpu.memory_space<vmem>>, vector<98x128xf32>
      %c4_65 = arith.constant 4 : index
      %c0_66 = arith.constant 0 : index
      %c0_67 = arith.constant 0 : index
      %111 = vector.load %arg8[%c4_65, %c0_66, %c0_67] : memref<9x98x128xf32, #tpu.memory_space<vmem>>, vector<1x98x128xf32>
      %112 = vector.shape_cast %111 : vector<1x98x128xf32> to vector<98x128xf32>
      %113 = arith.mulf %110, %112 : vector<98x128xf32>
      %114 = arith.truncf %113 : vector<98x128xf32> to vector<98x128xbf16>
      %c6 = arith.constant 6 : index
      %c0_68 = arith.constant 0 : index
      %c0_69 = arith.constant 0 : index
      %115 = vector.load %arg9[%c6, %c0_68, %c0_69] : memref<16x128x128xbf16, #tpu.memory_space<vmem>>, vector<1x128x128xbf16>
      %116 = vector.shape_cast %115 : vector<1x128x128xbf16> to vector<128x128xbf16>
      %cst_70 = arith.constant dense<0.000000e+00> : vector<98x128xf32>
      %117 = tpu.matmul %114, %116, %cst_70 {dimension_numbers = #tpu.dot_dimension_numbers<[1], [0], [0], [1], [0, 0, 1, 1], [], []>} : vector<98x128xbf16>, vector<128x128xbf16>, vector<98x128xf32> -> vector<98x128xf32>
      %118 = arith.addf %109, %117 : vector<98x128xf32>
      %c2 = arith.constant 2 : index
      %c0_71 = arith.constant 0 : index
      %119 = vector.load %arg15[%c2, %c0_71] : memref<120x128xf32, #tpu.memory_space<vmem>>, vector<98x128xf32>
      %c2_72 = arith.constant 2 : index
      %c0_73 = arith.constant 0 : index
      %c0_74 = arith.constant 0 : index
      %120 = vector.load %arg8[%c2_72, %c0_73, %c0_74] : memref<9x98x128xf32, #tpu.memory_space<vmem>>, vector<1x98x128xf32>
      %121 = vector.shape_cast %120 : vector<1x98x128xf32> to vector<98x128xf32>
      %122 = arith.mulf %119, %121 : vector<98x128xf32>
      %123 = arith.truncf %122 : vector<98x128xf32> to vector<98x128xbf16>
      %c12 = arith.constant 12 : index
      %c0_75 = arith.constant 0 : index
      %c0_76 = arith.constant 0 : index
      %124 = vector.load %arg9[%c12, %c0_75, %c0_76] : memref<16x128x128xbf16, #tpu.memory_space<vmem>>, vector<1x128x128xbf16>
      %125 = vector.shape_cast %124 : vector<1x128x128xbf16> to vector<128x128xbf16>
      %cst_77 = arith.constant dense<0.000000e+00> : vector<98x128xf32>
      %126 = tpu.matmul %123, %125, %cst_77 {dimension_numbers = #tpu.dot_dimension_numbers<[1], [0], [0], [1], [0, 0, 1, 1], [], []>} : vector<98x128xbf16>, vector<128x128xbf16>, vector<98x128xf32> -> vector<98x128xf32>
      %127 = arith.addf %118, %126 : vector<98x128xf32>
      %c1_78 = arith.constant 1 : index
      %c0_79 = arith.constant 0 : index
      %128 = vector.load %arg15[%c1_78, %c0_79] : memref<120x128xf32, #tpu.memory_space<vmem>>, vector<98x128xf32>
      %c1_80 = arith.constant 1 : index
      %c0_81 = arith.constant 0 : index
      %c0_82 = arith.constant 0 : index
      %129 = vector.load %arg8[%c1_80, %c0_81, %c0_82] : memref<9x98x128xf32, #tpu.memory_space<vmem>>, vector<1x98x128xf32>
      %130 = vector.shape_cast %129 : vector<1x98x128xf32> to vector<98x128xf32>
      %131 = arith.mulf %128, %130 : vector<98x128xf32>
      %132 = arith.truncf %131 : vector<98x128xf32> to vector<98x128xbf16>
      %c14 = arith.constant 14 : index
      %c0_83 = arith.constant 0 : index
      %c0_84 = arith.constant 0 : index
      %133 = vector.load %arg9[%c14, %c0_83, %c0_84] : memref<16x128x128xbf16, #tpu.memory_space<vmem>>, vector<1x128x128xbf16>
      %134 = vector.shape_cast %133 : vector<1x128x128xbf16> to vector<128x128xbf16>
      %cst_85 = arith.constant dense<0.000000e+00> : vector<98x128xf32>
      %135 = tpu.matmul %132, %134, %cst_85 {dimension_numbers = #tpu.dot_dimension_numbers<[1], [0], [0], [1], [0, 0, 1, 1], [], []>} : vector<98x128xbf16>, vector<128x128xbf16>, vector<98x128xf32> -> vector<98x128xf32>
      %136 = arith.addf %127, %135 : vector<98x128xf32>
      %c1_86 = arith.constant 1 : index
      %c0_87 = arith.constant 0 : index
      %c0_88 = arith.constant 0 : index
      %137 = vector.load %arg16[%c1_86, %c0_87, %c0_88] : memref<4x98x128xf32, #tpu.memory_space<vmem>>, vector<1x98x128xf32>
      %138 = vector.shape_cast %137 : vector<1x98x128xf32> to vector<98x128xf32>
      %139 = vector.shape_cast %136 : vector<98x128xf32> to vector<1x98x128xf32>
      tpu.vector_store %arg16[%c1_86, %c0_87, %c0_88], %139 {strides = array<i32>} : memref<4x98x128xf32, #tpu.memory_space<vmem>>, vector<1x98x128xf32>,
      %cst_89 = arith.constant 0.000000e+00 : f32
      %140 = vector.broadcast %cst_89 : f32 to vector<98x128xf32>
      %c15_90 = arith.constant 15 : index
      %c0_91 = arith.constant 0 : index
      %141 = vector.load %arg15[%c15_90, %c0_91] : memref<120x128xf32, #tpu.memory_space<vmem>>, vector<98x128xf32>
      %c7_92 = arith.constant 7 : index
      %c0_93 = arith.constant 0 : index
      %c0_94 = arith.constant 0 : index
      %142 = vector.load %arg8[%c7_92, %c0_93, %c0_94] : memref<9x98x128xf32, #tpu.memory_space<vmem>>, vector<1x98x128xf32>
      %143 = vector.shape_cast %142 : vector<1x98x128xf32> to vector<98x128xf32>
      %144 = arith.mulf %141, %143 : vector<98x128xf32>
      %145 = arith.truncf %144 : vector<98x128xf32> to vector<98x128xbf16>
      %c1_95 = arith.constant 1 : index
      %c0_96 = arith.constant 0 : index
      %c0_97 = arith.constant 0 : index
      %146 = vector.load %arg9[%c1_95, %c0_96, %c0_97] : memref<16x128x128xbf16, #tpu.memory_space<vmem>>, vector<1x128x128xbf16>
      %147 = vector.shape_cast %146 : vector<1x128x128xbf16> to vector<128x128xbf16>
      %cst_98 = arith.constant dense<0.000000e+00> : vector<98x128xf32>
      %148 = tpu.matmul %145, %147, %cst_98 {dimension_numbers = #tpu.dot_dimension_numbers<[1], [0], [0], [1], [0, 0, 1, 1], [], []>} : vector<98x128xbf16>, vector<128x128xbf16>, vector<98x128xf32> -> vector<98x128xf32>
      %149 = arith.addf %140, %148 : vector<98x128xf32>
      %c14_99 = arith.constant 14 : index
      %c0_100 = arith.constant 0 : index
      %150 = vector.load %arg15[%c14_99, %c0_100] : memref<120x128xf32, #tpu.memory_space<vmem>>, vector<98x128xf32>
      %c6_101 = arith.constant 6 : index
      %c0_102 = arith.constant 0 : index
      %c0_103 = arith.constant 0 : index
      %151 = vector.load %arg8[%c6_101, %c0_102, %c0_103] : memref<9x98x128xf32, #tpu.memory_space<vmem>>, vector<1x98x128xf32>
      %152 = vector.shape_cast %151 : vector<1x98x128xf32> to vector<98x128xf32>
      %153 = arith.mulf %150, %152 : vector<98x128xf32>
      %154 = arith.truncf %153 : vector<98x128xf32> to vector<98x128xbf16>
      %c3_104 = arith.constant 3 : index
      %c0_105 = arith.constant 0 : index
      %c0_106 = arith.constant 0 : index
      %155 = vector.load %arg9[%c3_104, %c0_105, %c0_106] : memref<16x128x128xbf16, #tpu.memory_space<vmem>>, vector<1x128x128xbf16>
      %156 = vector.shape_cast %155 : vector<1x128x128xbf16> to vector<128x128xbf16>
      %cst_107 = arith.constant dense<0.000000e+00> : vector<98x128xf32>
      %157 = tpu.matmul %154, %156, %cst_107 {dimension_numbers = #tpu.dot_dimension_numbers<[1], [0], [0], [1], [0, 0, 1, 1], [], []>} : vector<98x128xbf16>, vector<128x128xbf16>, vector<98x128xf32> -> vector<98x128xf32>
      %158 = arith.addf %149, %157 : vector<98x128xf32>
      %c8_108 = arith.constant 8 : index
      %c0_109 = arith.constant 0 : index
      %159 = vector.load %arg15[%c8_108, %c0_109] : memref<120x128xf32, #tpu.memory_space<vmem>>, vector<98x128xf32>
      %c4_110 = arith.constant 4 : index
      %c0_111 = arith.constant 0 : index
      %c0_112 = arith.constant 0 : index
      %160 = vector.load %arg8[%c4_110, %c0_111, %c0_112] : memref<9x98x128xf32, #tpu.memory_space<vmem>>, vector<1x98x128xf32>
      %161 = vector.shape_cast %160 : vector<1x98x128xf32> to vector<98x128xf32>
      %162 = arith.mulf %159, %161 : vector<98x128xf32>
      %163 = arith.truncf %162 : vector<98x128xf32> to vector<98x128xbf16>
      %c9_113 = arith.constant 9 : index
      %c0_114 = arith.constant 0 : index
      %c0_115 = arith.constant 0 : index
      %164 = vector.load %arg9[%c9_113, %c0_114, %c0_115] : memref<16x128x128xbf16, #tpu.memory_space<vmem>>, vector<1x128x128xbf16>
      %165 = vector.shape_cast %164 : vector<1x128x128xbf16> to vector<128x128xbf16>
      %cst_116 = arith.constant dense<0.000000e+00> : vector<98x128xf32>
      %166 = tpu.matmul %163, %165, %cst_116 {dimension_numbers = #tpu.dot_dimension_numbers<[1], [0], [0], [1], [0, 0, 1, 1], [], []>} : vector<98x128xbf16>, vector<128x128xbf16>, vector<98x128xf32> -> vector<98x128xf32>
      %167 = arith.addf %158, %166 : vector<98x128xf32>
      %c7_117 = arith.constant 7 : index
      %c0_118 = arith.constant 0 : index
      %168 = vector.load %arg15[%c7_117, %c0_118] : memref<120x128xf32, #tpu.memory_space<vmem>>, vector<98x128xf32>
      %c3_119 = arith.constant 3 : index
      %c0_120 = arith.constant 0 : index
      %c0_121 = arith.constant 0 : index
      %169 = vector.load %arg8[%c3_119, %c0_120, %c0_121] : memref<9x98x128xf32, #tpu.memory_space<vmem>>, vector<1x98x128xf32>
      %170 = vector.shape_cast %169 : vector<1x98x128xf32> to vector<98x128xf32>
      %171 = arith.mulf %168, %170 : vector<98x128xf32>
      %172 = arith.truncf %171 : vector<98x128xf32> to vector<98x128xbf16>
      %c11 = arith.constant 11 : index
      %c0_122 = arith.constant 0 : index
      %c0_123 = arith.constant 0 : index
      %173 = vector.load %arg9[%c11, %c0_122, %c0_123] : memref<16x128x128xbf16, #tpu.memory_space<vmem>>, vector<1x128x128xbf16>
      %174 = vector.shape_cast %173 : vector<1x128x128xbf16> to vector<128x128xbf16>
      %cst_124 = arith.constant dense<0.000000e+00> : vector<98x128xf32>
      %175 = tpu.matmul %172, %174, %cst_124 {dimension_numbers = #tpu.dot_dimension_numbers<[1], [0], [0], [1], [0, 0, 1, 1], [], []>} : vector<98x128xbf16>, vector<128x128xbf16>, vector<98x128xf32> -> vector<98x128xf32>
      %176 = arith.addf %167, %175 : vector<98x128xf32>
      %c2_125 = arith.constant 2 : index
      %c0_126 = arith.constant 0 : index
      %c0_127 = arith.constant 0 : index
      %177 = vector.load %arg16[%c2_125, %c0_126, %c0_127] : memref<4x98x128xf32, #tpu.memory_space<vmem>>, vector<1x98x128xf32>
      %178 = vector.shape_cast %177 : vector<1x98x128xf32> to vector<98x128xf32>
      %179 = vector.shape_cast %176 : vector<98x128xf32> to vector<1x98x128xf32>
      tpu.vector_store %arg16[%c2_125, %c0_126, %c0_127], %179 {strides = array<i32>} : memref<4x98x128xf32, #tpu.memory_space<vmem>>, vector<1x98x128xf32>,
      %cst_128 = arith.constant 0.000000e+00 : f32
      %180 = vector.broadcast %cst_128 : f32 to vector<98x128xf32>
      %c16 = arith.constant 16 : index
      %c0_129 = arith.constant 0 : index
      %181 = vector.load %arg15[%c16, %c0_129] : memref<120x128xf32, #tpu.memory_space<vmem>>, vector<98x128xf32>
      %c8_130 = arith.constant 8 : index
      %c0_131 = arith.constant 0 : index
      %c0_132 = arith.constant 0 : index
      %182 = vector.load %arg8[%c8_130, %c0_131, %c0_132] : memref<9x98x128xf32, #tpu.memory_space<vmem>>, vector<1x98x128xf32>
      %183 = vector.shape_cast %182 : vector<1x98x128xf32> to vector<98x128xf32>
      %184 = arith.mulf %181, %183 : vector<98x128xf32>
      %185 = arith.truncf %184 : vector<98x128xf32> to vector<98x128xbf16>
      %c0_133 = arith.constant 0 : index
      %c0_134 = arith.constant 0 : index
      %c0_135 = arith.constant 0 : index
      %186 = vector.load %arg9[%c0_133, %c0_134, %c0_135] : memref<16x128x128xbf16, #tpu.memory_space<vmem>>, vector<1x128x128xbf16>
      %187 = vector.shape_cast %186 : vector<1x128x128xbf16> to vector<128x128xbf16>
      %cst_136 = arith.constant dense<0.000000e+00> : vector<98x128xf32>
      %188 = tpu.matmul %185, %187, %cst_136 {dimension_numbers = #tpu.dot_dimension_numbers<[1], [0], [0], [1], [0, 0, 1, 1], [], []>} : vector<98x128xbf16>, vector<128x128xbf16>, vector<98x128xf32> -> vector<98x128xf32>
      %189 = arith.addf %180, %188 : vector<98x128xf32>
      %c15_137 = arith.constant 15 : index
      %c0_138 = arith.constant 0 : index
      %190 = vector.load %arg15[%c15_137, %c0_138] : memref<120x128xf32, #tpu.memory_space<vmem>>, vector<98x128xf32>
      %c7_139 = arith.constant 7 : index
      %c0_140 = arith.constant 0 : index
      %c0_141 = arith.constant 0 : index
      %191 = vector.load %arg8[%c7_139, %c0_140, %c0_141] : memref<9x98x128xf32, #tpu.memory_space<vmem>>, vector<1x98x128xf32>
      %192 = vector.shape_cast %191 : vector<1x98x128xf32> to vector<98x128xf32>
      %193 = arith.mulf %190, %192 : vector<98x128xf32>
      %194 = arith.truncf %193 : vector<98x128xf32> to vector<98x128xbf16>
      %c2_142 = arith.constant 2 : index
      %c0_143 = arith.constant 0 : index
      %c0_144 = arith.constant 0 : index
      %195 = vector.load %arg9[%c2_142, %c0_143, %c0_144] : memref<16x128x128xbf16, #tpu.memory_space<vmem>>, vector<1x128x128xbf16>
      %196 = vector.shape_cast %195 : vector<1x128x128xbf16> to vector<128x128xbf16>
      %cst_145 = arith.constant dense<0.000000e+00> : vector<98x128xf32>
      %197 = tpu.matmul %194, %196, %cst_145 {dimension_numbers = #tpu.dot_dimension_numbers<[1], [0], [0], [1], [0, 0, 1, 1], [], []>} : vector<98x128xbf16>, vector<128x128xbf16>, vector<98x128xf32> -> vector<98x128xf32>
      %198 = arith.addf %189, %197 : vector<98x128xf32>
      %c9_146 = arith.constant 9 : index
      %c0_147 = arith.constant 0 : index
      %199 = vector.load %arg15[%c9_146, %c0_147] : memref<120x128xf32, #tpu.memory_space<vmem>>, vector<98x128xf32>
      %c5_148 = arith.constant 5 : index
      %c0_149 = arith.constant 0 : index
      %c0_150 = arith.constant 0 : index
      %200 = vector.load %arg8[%c5_148, %c0_149, %c0_150] : memref<9x98x128xf32, #tpu.memory_space<vmem>>, vector<1x98x128xf32>
      %201 = vector.shape_cast %200 : vector<1x98x128xf32> to vector<98x128xf32>
      %202 = arith.mulf %199, %201 : vector<98x128xf32>
      %203 = arith.truncf %202 : vector<98x128xf32> to vector<98x128xbf16>
      %c8_151 = arith.constant 8 : index
      %c0_152 = arith.constant 0 : index
      %c0_153 = arith.constant 0 : index
      %204 = vector.load %arg9[%c8_151, %c0_152, %c0_153] : memref<16x128x128xbf16, #tpu.memory_space<vmem>>, vector<1x128x128xbf16>
      %205 = vector.shape_cast %204 : vector<1x128x128xbf16> to vector<128x128xbf16>
      %cst_154 = arith.constant dense<0.000000e+00> : vector<98x128xf32>
      %206 = tpu.matmul %203, %205, %cst_154 {dimension_numbers = #tpu.dot_dimension_numbers<[1], [0], [0], [1], [0, 0, 1, 1], [], []>} : vector<98x128xbf16>, vector<128x128xbf16>, vector<98x128xf32> -> vector<98x128xf32>
      %207 = arith.addf %198, %206 : vector<98x128xf32>
      %c8_155 = arith.constant 8 : index
      %c0_156 = arith.constant 0 : index
      %208 = vector.load %arg15[%c8_155, %c0_156] : memref<120x128xf32, #tpu.memory_space<vmem>>, vector<98x128xf32>
      %c4_157 = arith.constant 4 : index
      %c0_158 = arith.constant 0 : index
      %c0_159 = arith.constant 0 : index
      %209 = vector.load %arg8[%c4_157, %c0_158, %c0_159] : memref<9x98x128xf32, #tpu.memory_space<vmem>>, vector<1x98x128xf32>
      %210 = vector.shape_cast %209 : vector<1x98x128xf32> to vector<98x128xf32>
      %211 = arith.mulf %208, %210 : vector<98x128xf32>
      %212 = arith.truncf %211 : vector<98x128xf32> to vector<98x128xbf16>
      %c10 = arith.constant 10 : index
      %c0_160 = arith.constant 0 : index
      %c0_161 = arith.constant 0 : index
      %213 = vector.load %arg9[%c10, %c0_160, %c0_161] : memref<16x128x128xbf16, #tpu.memory_space<vmem>>, vector<1x128x128xbf16>
      %214 = vector.shape_cast %213 : vector<1x128x128xbf16> to vector<128x128xbf16>
      %cst_162 = arith.constant dense<0.000000e+00> : vector<98x128xf32>
      %215 = tpu.matmul %212, %214, %cst_162 {dimension_numbers = #tpu.dot_dimension_numbers<[1], [0], [0], [1], [0, 0, 1, 1], [], []>} : vector<98x128xbf16>, vector<128x128xbf16>, vector<98x128xf32> -> vector<98x128xf32>
      %216 = arith.addf %207, %215 : vector<98x128xf32>
      %c3_163 = arith.constant 3 : index
      %c0_164 = arith.constant 0 : index
      %c0_165 = arith.constant 0 : index
      %217 = vector.load %arg16[%c3_163, %c0_164, %c0_165] : memref<4x98x128xf32, #tpu.memory_space<vmem>>, vector<1x98x128xf32>
      %218 = vector.shape_cast %217 : vector<1x98x128xf32> to vector<98x128xf32>
      %219 = vector.shape_cast %216 : vector<98x128xf32> to vector<1x98x128xf32>
      tpu.vector_store %arg16[%c3_163, %c0_164, %c0_165], %219 {strides = array<i32>} : memref<4x98x128xf32, #tpu.memory_space<vmem>>, vector<1x98x128xf32>,
      %cst_166 = arith.constant 0.000000e+00 : f32
      %220 = vector.broadcast %cst_166 : f32 to vector<1x128xf32>
      %c0_167 = arith.constant 0 : index
      %c0_168 = arith.constant 0 : index
      %c0_169 = arith.constant 0 : index
      %221 = vector.load %arg16[%c0_167, %c0_168, %c0_169] : memref<4x98x128xf32, #tpu.memory_space<vmem>>, vector<1x98x128xf32>
      %222 = vector.shape_cast %221 : vector<1x98x128xf32> to vector<98x128xf32>
      %cst_170 = arith.constant dense<0.000000e+00> : vector<128xf32>
      %223 = vector.multi_reduction <add>, %222, %cst_170 [0] : vector<98x128xf32> to vector<128xf32>
      %224 = vector.shape_cast %223 : vector<128xf32> to vector<1x128xf32>
      %225 = arith.addf %220, %224 : vector<1x128xf32>
      %c1_171 = arith.constant 1 : index
      %c0_172 = arith.constant 0 : index
      %c0_173 = arith.constant 0 : index
      %226 = vector.load %arg16[%c1_171, %c0_172, %c0_173] : memref<4x98x128xf32, #tpu.memory_space<vmem>>, vector<1x98x128xf32>
      %227 = vector.shape_cast %226 : vector<1x98x128xf32> to vector<98x128xf32>
      %cst_174 = arith.constant dense<0.000000e+00> : vector<128xf32>
      %228 = vector.multi_reduction <add>, %227, %cst_174 [0] : vector<98x128xf32> to vector<128xf32>
      %229 = vector.shape_cast %228 : vector<128xf32> to vector<1x128xf32>
      %230 = arith.addf %225, %229 : vector<1x128xf32>
      %c2_175 = arith.constant 2 : index
      %c0_176 = arith.constant 0 : index
      %c0_177 = arith.constant 0 : index
      %231 = vector.load %arg16[%c2_175, %c0_176, %c0_177] : memref<4x98x128xf32, #tpu.memory_space<vmem>>, vector<1x98x128xf32>
      %232 = vector.shape_cast %231 : vector<1x98x128xf32> to vector<98x128xf32>
      %cst_178 = arith.constant dense<0.000000e+00> : vector<128xf32>
      %233 = vector.multi_reduction <add>, %232, %cst_178 [0] : vector<98x128xf32> to vector<128xf32>
      %234 = vector.shape_cast %233 : vector<128xf32> to vector<1x128xf32>
      %235 = arith.addf %230, %234 : vector<1x128xf32>
      %c3_179 = arith.constant 3 : index
      %c0_180 = arith.constant 0 : index
      %c0_181 = arith.constant 0 : index
      %236 = vector.load %arg16[%c3_179, %c0_180, %c0_181] : memref<4x98x128xf32, #tpu.memory_space<vmem>>, vector<1x98x128xf32>
      %237 = vector.shape_cast %236 : vector<1x98x128xf32> to vector<98x128xf32>
      %cst_182 = arith.constant dense<0.000000e+00> : vector<128xf32>
      %238 = vector.multi_reduction <add>, %237, %cst_182 [0] : vector<98x128xf32> to vector<128xf32>
      %239 = vector.shape_cast %238 : vector<128xf32> to vector<1x128xf32>
      %240 = arith.addf %235, %239 : vector<1x128xf32>
      %cst_183 = arith.constant 0.00255102036 : f32
      %241 = vector.broadcast %cst_183 : f32 to vector<1x128xf32>
      %242 = arith.mulf %240, %241 : vector<1x128xf32>
      %cst_184 = arith.constant 0.000000e+00 : f32
      %243 = vector.broadcast %cst_184 : f32 to vector<1x128xf32>
      %c0_185 = arith.constant 0 : index
      %c0_186 = arith.constant 0 : index
      %c0_187 = arith.constant 0 : index
      %244 = vector.load %arg16[%c0_185, %c0_186, %c0_187] : memref<4x98x128xf32, #tpu.memory_space<vmem>>, vector<1x98x128xf32>
      %245 = vector.shape_cast %244 : vector<1x98x128xf32> to vector<98x128xf32>
      %246 = vector.broadcast %242 : vector<1x128xf32> to vector<98x128xf32>
      %247 = arith.subf %245, %246 : vector<98x128xf32>
      %248 = arith.mulf %247, %247 : vector<98x128xf32>
      %cst_188 = arith.constant dense<0.000000e+00> : vector<128xf32>
      %249 = vector.multi_reduction <add>, %248, %cst_188 [0] : vector<98x128xf32> to vector<128xf32>
      %250 = vector.shape_cast %249 : vector<128xf32> to vector<1x128xf32>
      %251 = arith.addf %243, %250 : vector<1x128xf32>
      %c1_189 = arith.constant 1 : index
      %c0_190 = arith.constant 0 : index
      %c0_191 = arith.constant 0 : index
      %252 = vector.load %arg16[%c1_189, %c0_190, %c0_191] : memref<4x98x128xf32, #tpu.memory_space<vmem>>, vector<1x98x128xf32>
      %253 = vector.shape_cast %252 : vector<1x98x128xf32> to vector<98x128xf32>
      %254 = vector.broadcast %242 : vector<1x128xf32> to vector<98x128xf32>
      %255 = arith.subf %253, %254 : vector<98x128xf32>
      %256 = arith.mulf %255, %255 : vector<98x128xf32>
      %cst_192 = arith.constant dense<0.000000e+00> : vector<128xf32>
      %257 = vector.multi_reduction <add>, %256, %cst_192 [0] : vector<98x128xf32> to vector<128xf32>
      %258 = vector.shape_cast %257 : vector<128xf32> to vector<1x128xf32>
      %259 = arith.addf %251, %258 : vector<1x128xf32>
      %c2_193 = arith.constant 2 : index
      %c0_194 = arith.constant 0 : index
      %c0_195 = arith.constant 0 : index
      %260 = vector.load %arg16[%c2_193, %c0_194, %c0_195] : memref<4x98x128xf32, #tpu.memory_space<vmem>>, vector<1x98x128xf32>
      %261 = vector.shape_cast %260 : vector<1x98x128xf32> to vector<98x128xf32>
      %262 = vector.broadcast %242 : vector<1x128xf32> to vector<98x128xf32>
      %263 = arith.subf %261, %262 : vector<98x128xf32>
      %264 = arith.mulf %263, %263 : vector<98x128xf32>
      %cst_196 = arith.constant dense<0.000000e+00> : vector<128xf32>
      %265 = vector.multi_reduction <add>, %264, %cst_196 [0] : vector<98x128xf32> to vector<128xf32>
      %266 = vector.shape_cast %265 : vector<128xf32> to vector<1x128xf32>
      %267 = arith.addf %259, %266 : vector<1x128xf32>
      %c3_197 = arith.constant 3 : index
      %c0_198 = arith.constant 0 : index
      %c0_199 = arith.constant 0 : index
      %268 = vector.load %arg16[%c3_197, %c0_198, %c0_199] : memref<4x98x128xf32, #tpu.memory_space<vmem>>, vector<1x98x128xf32>
      %269 = vector.shape_cast %268 : vector<1x98x128xf32> to vector<98x128xf32>
      %270 = vector.broadcast %242 : vector<1x128xf32> to vector<98x128xf32>
      %271 = arith.subf %269, %270 : vector<98x128xf32>
      %272 = arith.mulf %271, %271 : vector<98x128xf32>
      %cst_200 = arith.constant dense<0.000000e+00> : vector<128xf32>
      %273 = vector.multi_reduction <add>, %272, %cst_200 [0] : vector<98x128xf32> to vector<128xf32>
      %274 = vector.shape_cast %273 : vector<128xf32> to vector<1x128xf32>
      %275 = arith.addf %267, %274 : vector<1x128xf32>
      %cst_201 = arith.constant 0.00255102036 : f32
      %276 = vector.broadcast %cst_201 : f32 to vector<1x128xf32>
      %277 = arith.mulf %275, %276 : vector<1x128xf32>
      %c0_202 = arith.constant 0 : index
      %c0_203 = arith.constant 0 : index
      %278 = vector.load %arg10[%c0_202, %c0_203] : memref<1x128xf32, #tpu.memory_space<vmem>>, vector<1x128xf32>
      %cst_204 = arith.constant 9.99999974E-6 : f32
      %279 = vector.broadcast %cst_204 : f32 to vector<1x128xf32>
      %280 = arith.addf %277, %279 : vector<1x128xf32>
      %281 = math.rsqrt %280 : vector<1x128xf32>
      %282 = arith.mulf %278, %281 : vector<1x128xf32>
      %c0_205 = arith.constant 0 : index
      %c0_206 = arith.constant 0 : index
      %283 = vector.load %arg11[%c0_205, %c0_206] : memref<1x128xf32, #tpu.memory_space<vmem>>, vector<1x128xf32>
      %284 = arith.mulf %242, %282 : vector<1x128xf32>
      %285 = arith.subf %283, %284 : vector<1x128xf32>
      %c0_207 = arith.constant 0 : index
      %c0_208 = arith.constant 0 : index
      %c0_209 = arith.constant 0 : index
      %286 = vector.load %arg16[%c0_207, %c0_208, %c0_209] : memref<4x98x128xf32, #tpu.memory_space<vmem>>, vector<1x98x128xf32>
      %287 = vector.shape_cast %286 : vector<1x98x128xf32> to vector<98x128xf32>
      %288 = vector.broadcast %282 : vector<1x128xf32> to vector<98x128xf32>
      %289 = arith.mulf %287, %288 : vector<98x128xf32>
      %290 = vector.broadcast %285 : vector<1x128xf32> to vector<98x128xf32>
      %291 = arith.addf %289, %290 : vector<98x128xf32>
      %cst_210 = arith.constant 0.000000e+00 : f32
      %292 = vector.broadcast %cst_210 : f32 to vector<98x128xf32>
      %293 = arith.maximumf %291, %292 : vector<98x128xf32>
      %294 = arith.truncf %293 : vector<98x128xf32> to vector<98x128xbf16>
      %c0_211 = arith.constant 0 : index
      %c0_212 = arith.constant 0 : index
      %295 = vector.load %arg12[%c0_211, %c0_212] : memref<128x16xbf16, #tpu.memory_space<vmem>>, vector<128x16xbf16>
      %cst_213 = arith.constant dense<0.000000e+00> : vector<98x16xf32>
      %296 = tpu.matmul %294, %295, %cst_213 {dimension_numbers = #tpu.dot_dimension_numbers<[1], [0], [0], [1], [0, 0, 1, 1], [], []>} : vector<98x128xbf16>, vector<128x16xbf16>, vector<98x16xf32> -> vector<98x16xf32>
      %c0_214 = arith.constant 0 : index
      %c0_215 = arith.constant 0 : index
      %c0_216 = arith.constant 0 : index
      %297 = vector.load %arg13[%c0_214, %c0_215, %c0_216] : memref<4x98x16xf32, #tpu.memory_space<vmem>>, vector<1x98x16xf32>
      %298 = vector.shape_cast %297 : vector<1x98x16xf32> to vector<98x16xf32>
      %299 = vector.shape_cast %296 : vector<98x16xf32> to vector<1x98x16xf32>
      tpu.vector_store %arg13[%c0_214, %c0_215, %c0_216], %299 {strides = array<i32>} : memref<4x98x16xf32, #tpu.memory_space<vmem>>, vector<1x98x16xf32>,
      %c1_217 = arith.constant 1 : index
      %c0_218 = arith.constant 0 : index
      %c0_219 = arith.constant 0 : index
      %300 = vector.load %arg16[%c1_217, %c0_218, %c0_219] : memref<4x98x128xf32, #tpu.memory_space<vmem>>, vector<1x98x128xf32>
      %301 = vector.shape_cast %300 : vector<1x98x128xf32> to vector<98x128xf32>
      %302 = vector.broadcast %282 : vector<1x128xf32> to vector<98x128xf32>
      %303 = arith.mulf %301, %302 : vector<98x128xf32>
      %304 = vector.broadcast %285 : vector<1x128xf32> to vector<98x128xf32>
      %305 = arith.addf %303, %304 : vector<98x128xf32>
      %cst_220 = arith.constant 0.000000e+00 : f32
      %306 = vector.broadcast %cst_220 : f32 to vector<98x128xf32>
      %307 = arith.maximumf %305, %306 : vector<98x128xf32>
      %308 = arith.truncf %307 : vector<98x128xf32> to vector<98x128xbf16>
      %c0_221 = arith.constant 0 : index
      %c0_222 = arith.constant 0 : index
      %309 = vector.load %arg12[%c0_221, %c0_222] : memref<128x16xbf16, #tpu.memory_space<vmem>>, vector<128x16xbf16>
      %cst_223 = arith.constant dense<0.000000e+00> : vector<98x16xf32>
      %310 = tpu.matmul %308, %309, %cst_223 {dimension_numbers = #tpu.dot_dimension_numbers<[1], [0], [0], [1], [0, 0, 1, 1], [], []>} : vector<98x128xbf16>, vector<128x16xbf16>, vector<98x16xf32> -> vector<98x16xf32>
      %c1_224 = arith.constant 1 : index
      %c0_225 = arith.constant 0 : index
      %c0_226 = arith.constant 0 : index
      %311 = vector.load %arg13[%c1_224, %c0_225, %c0_226] : memref<4x98x16xf32, #tpu.memory_space<vmem>>, vector<1x98x16xf32>
      %312 = vector.shape_cast %311 : vector<1x98x16xf32> to vector<98x16xf32>
      %313 = vector.shape_cast %310 : vector<98x16xf32> to vector<1x98x16xf32>
      tpu.vector_store %arg13[%c1_224, %c0_225, %c0_226], %313 {strides = array<i32>} : memref<4x98x16xf32, #tpu.memory_space<vmem>>, vector<1x98x16xf32>,
      %c2_227 = arith.constant 2 : index
      %c0_228 = arith.constant 0 : index
      %c0_229 = arith.constant 0 : index
      %314 = vector.load %arg16[%c2_227, %c0_228, %c0_229] : memref<4x98x128xf32, #tpu.memory_space<vmem>>, vector<1x98x128xf32>
      %315 = vector.shape_cast %314 : vector<1x98x128xf32> to vector<98x128xf32>
      %316 = vector.broadcast %282 : vector<1x128xf32> to vector<98x128xf32>
      %317 = arith.mulf %315, %316 : vector<98x128xf32>
      %318 = vector.broadcast %285 : vector<1x128xf32> to vector<98x128xf32>
      %319 = arith.addf %317, %318 : vector<98x128xf32>
      %cst_230 = arith.constant 0.000000e+00 : f32
      %320 = vector.broadcast %cst_230 : f32 to vector<98x128xf32>
      %321 = arith.maximumf %319, %320 : vector<98x128xf32>
      %322 = arith.truncf %321 : vector<98x128xf32> to vector<98x128xbf16>
      %c0_231 = arith.constant 0 : index
      %c0_232 = arith.constant 0 : index
      %323 = vector.load %arg12[%c0_231, %c0_232] : memref<128x16xbf16, #tpu.memory_space<vmem>>, vector<128x16xbf16>
      %cst_233 = arith.constant dense<0.000000e+00> : vector<98x16xf32>
      %324 = tpu.matmul %322, %323, %cst_233 {dimension_numbers = #tpu.dot_dimension_numbers<[1], [0], [0], [1], [0, 0, 1, 1], [], []>} : vector<98x128xbf16>, vector<128x16xbf16>, vector<98x16xf32> -> vector<98x16xf32>
      %c2_234 = arith.constant 2 : index
      %c0_235 = arith.constant 0 : index
      %c0_236 = arith.constant 0 : index
      %325 = vector.load %arg13[%c2_234, %c0_235, %c0_236] : memref<4x98x16xf32, #tpu.memory_space<vmem>>, vector<1x98x16xf32>
      %326 = vector.shape_cast %325 : vector<1x98x16xf32> to vector<98x16xf32>
      %327 = vector.shape_cast %324 : vector<98x16xf32> to vector<1x98x16xf32>
      tpu.vector_store %arg13[%c2_234, %c0_235, %c0_236], %327 {strides = array<i32>} : memref<4x98x16xf32, #tpu.memory_space<vmem>>, vector<1x98x16xf32>,
      %c3_237 = arith.constant 3 : index
      %c0_238 = arith.constant 0 : index
      %c0_239 = arith.constant 0 : index
      %328 = vector.load %arg16[%c3_237, %c0_238, %c0_239] : memref<4x98x128xf32, #tpu.memory_space<vmem>>, vector<1x98x128xf32>
      %329 = vector.shape_cast %328 : vector<1x98x128xf32> to vector<98x128xf32>
      %330 = vector.broadcast %282 : vector<1x128xf32> to vector<98x128xf32>
      %331 = arith.mulf %329, %330 : vector<98x128xf32>
      %332 = vector.broadcast %285 : vector<1x128xf32> to vector<98x128xf32>
      %333 = arith.addf %331, %332 : vector<98x128xf32>
      %cst_240 = arith.constant 0.000000e+00 : f32
      %334 = vector.broadcast %cst_240 : f32 to vector<98x128xf32>
      %335 = arith.maximumf %333, %334 : vector<98x128xf32>
      %336 = arith.truncf %335 : vector<98x128xf32> to vector<98x128xbf16>
      %c0_241 = arith.constant 0 : index
      %c0_242 = arith.constant 0 : index
      %337 = vector.load %arg12[%c0_241, %c0_242] : memref<128x16xbf16, #tpu.memory_space<vmem>>, vector<128x16xbf16>
      %cst_243 = arith.constant dense<0.000000e+00> : vector<98x16xf32>
      %338 = tpu.matmul %336, %337, %cst_243 {dimension_numbers = #tpu.dot_dimension_numbers<[1], [0], [0], [1], [0, 0, 1, 1], [], []>} : vector<98x128xbf16>, vector<128x16xbf16>, vector<98x16xf32> -> vector<98x16xf32>
      %c3_244 = arith.constant 3 : index
      %c0_245 = arith.constant 0 : index
      %c0_246 = arith.constant 0 : index
      %339 = vector.load %arg13[%c3_244, %c0_245, %c0_246] : memref<4x98x16xf32, #tpu.memory_space<vmem>>, vector<1x98x16xf32>
      %340 = vector.shape_cast %339 : vector<1x98x16xf32> to vector<98x16xf32>
      %341 = vector.shape_cast %338 : vector<98x16xf32> to vector<1x98x16xf32>
      tpu.vector_store %arg13[%c3_244, %c0_245, %c0_246], %341 {strides = array<i32>} : memref<4x98x16xf32, #tpu.memory_space<vmem>>, vector<1x98x16xf32>,
    } else {
    }
    return
  }
  func.func @transform_0(%arg0: i32) -> (i32, i32) {
    %c0_i32 = arith.constant 0 : i32
    %c0_i32_0 = arith.constant 0 : i32
    %c0_i32_1 = arith.constant 0 : i32
    return %c0_i32, %c0_i32_0 : i32, i32
  }
  func.func @transform_1(%arg0: i32) -> (i32, i32) {
    %c0_i32 = arith.constant 0 : i32
    %c0_i32_0 = arith.constant 0 : i32
    %c0_i32_1 = arith.constant 0 : i32
    return %c0_i32, %c0_i32_0 : i32, i32
  }
  func.func @transform_2(%arg0: i32) -> (i32, i32) {
    %c0_i32 = arith.constant 0 : i32
    %c0_i32_0 = arith.constant 0 : i32
    %c0_i32_1 = arith.constant 0 : i32
    return %c0_i32, %c0_i32_0 : i32, i32
  }
  func.func @transform_3(%arg0: i32) -> (i32, i32) {
    %c0_i32 = arith.constant 0 : i32
    %c0_i32_0 = arith.constant 0 : i32
    %c0_i32_1 = arith.constant 0 : i32
    return %c0_i32, %c0_i32_0 : i32, i32
  }
  func.func @transform_4(%arg0: i32) -> (i32, i32) {
    %c0_i32 = arith.constant 0 : i32
    %c0_i32_0 = arith.constant 0 : i32
    return %c0_i32, %arg0 : i32, i32
  }
  func.func @transform_5(%arg0: i32) -> (i32, i32) {
    %c0_i32 = arith.constant 0 : i32
    %c0_i32_0 = arith.constant 0 : i32
    %c0_i32_1 = arith.constant 0 : i32
    return %c0_i32, %c0_i32_0 : i32, i32
  }
  func.func @transform_6(%arg0: i32) -> (i32, i32) {
    %c0_i32 = arith.constant 0 : i32
    %c0_i32_0 = arith.constant 0 : i32
    %c0_i32_1 = arith.constant 0 : i32
    return %c0_i32, %c0_i32_0 : i32, i32
  }
  func.func @transform_7(%arg0: i32) -> (i32, i32, i32) {
    %c0_i32 = arith.constant 0 : i32
    %c0_i32_0 = arith.constant 0 : i32
    %c0_i32_1 = arith.constant 0 : i32
    %c0_i32_2 = arith.constant 0 : i32
    return %c0_i32, %c0_i32_0, %c0_i32_1 : i32, i32, i32
  }
  func.func @transform_8(%arg0: i32) -> (i32, i32, i32) {
    %c0_i32 = arith.constant 0 : i32
    %c0_i32_0 = arith.constant 0 : i32
    %c0_i32_1 = arith.constant 0 : i32
    %c0_i32_2 = arith.constant 0 : i32
    return %c0_i32, %c0_i32_0, %c0_i32_1 : i32, i32, i32
  }
  func.func @transform_9(%arg0: i32) -> (i32, i32) {
    %c0_i32 = arith.constant 0 : i32
    %c0_i32_0 = arith.constant 0 : i32
    %c0_i32_1 = arith.constant 0 : i32
    return %c0_i32, %c0_i32_0 : i32, i32
  }
  func.func @transform_10(%arg0: i32) -> (i32, i32) {
    %c0_i32 = arith.constant 0 : i32
    %c0_i32_0 = arith.constant 0 : i32
    %c0_i32_1 = arith.constant 0 : i32
    return %c0_i32, %c0_i32_0 : i32, i32
  }
  func.func @transform_11(%arg0: i32) -> (i32, i32) {
    %c0_i32 = arith.constant 0 : i32
    %c0_i32_0 = arith.constant 0 : i32
    %c0_i32_1 = arith.constant 0 : i32
    return %c0_i32, %c0_i32_0 : i32, i32
  }
  func.func @transform_12(%arg0: i32) -> (i32, i32, i32) {
    %c0_i32 = arith.constant 0 : i32
    %c0_i32_0 = arith.constant 0 : i32
    %c0_i32_1 = arith.constant 0 : i32
    %c0_i32_2 = arith.constant 0 : i32
    return %c0_i32, %c0_i32_0, %c0_i32_1 : i32, i32, i32
  }
}

</mosaic_0001>

<bundles_post_ra>
// kernel: squeeze.20
= control target key start
LH: loop header
LB: loop body
LE: loop exit
PB: predicated region body
PF: predicated region fallthrough
CT: control target
= control target key end

     0   :  { %vm3_vm0 = vcmask 130048   ;;  %s274_s0 = inlined_call_operand.vmem [shape: f32[1,98,16], index: 0, kind: input, shape index: {}]   ;;  %s275_s1 = inlined_call_operand.vmem [shape: f32[2,7,7,16], index: 1, kind: output, shape index: {}]  }
   0x1   :  { %v2_v0 = vld [vmem:[%s274_s0] sm:$0xff]   ;;  %v90_v1 = vld [vmem:[%s274_s0 + $0x8] sm:$0xff]   ;;  %v93_v2 = vld [vmem:[%s274_s0 + $0x10] sm:$0xff]  }
   0x2   :  { %4 = vst.msk [vmem:[%s275_s1] sm:$0x7f] %vm3_vm0, %v2_v0   ;;  %89 = vst.msk [vmem:[%s275_s1 + $0x1] sm:$0x80] %vm3_vm0, %v2_v0   ;;  %v96_v3 = vld [vmem:[%s274_s0 + $0x18] sm:$0xff]   ;;  %v99_v4 = vld [vmem:[%s274_s0 + $0x20] sm:$0xff]  }
   0x3   :  { %91 = vst.msk [vmem:[%s275_s1 + $0x9] sm:$0x3f] %vm3_vm0, %v90_v1   ;;  %92 = vst.msk [vmem:[%s275_s1 + $0xa] sm:$0xc0] %vm3_vm0, %v90_v1   ;;  %v102_v5 = vld [vmem:[%s274_s0 + $0x28] sm:$0xff]   ;;  %v105_v6 = vld [vmem:[%s274_s0 + $0x30] sm:$0xff]  }
   0x4   :  { %94 = vst.msk [vmem:[%s275_s1 + $0x12] sm:$0x1f] %vm3_vm0, %v93_v2   ;;  %95 = vst.msk [vmem:[%s275_s1 + $0x13] sm:$0xe0] %vm3_vm0, %v93_v2   ;;  %v108_v7 = vld [vmem:[%s274_s0 + $0x38] sm:$0xff]   ;;  %v111_v8 = vld [vmem:[%s274_s0 + $0x40] sm:$0xff]  }
   0x5   :  { %97 = vst.msk [vmem:[%s275_s1 + $0x1b] sm:$0xf] %vm3_vm0, %v96_v3   ;;  %98 = vst.msk [vmem:[%s275_s1 + $0x1c] sm:$0xf0] %vm3_vm0, %v96_v3   ;;  %v114_v9 = vld [vmem:[%s274_s0 + $0x48] sm:$0xff]   ;;  %v117_v10 = vld [vmem:[%s274_s0 + $0x50] sm:$0xff]  }
   0x6   :  { %100 = vst.msk [vmem:[%s275_s1 + $0x24] sm:$0x7] %vm3_vm0, %v99_v4   ;;  %101 = vst.msk [vmem:[%s275_s1 + $0x25] sm:$0xf8] %vm3_vm0, %v99_v4   ;;  %v120_v11 = vld [vmem:[%s274_s0 + $0x58] sm:$0xff]  }
   0x7   :  { %103 = vst.msk [vmem:[%s275_s1 + $0x2d] sm:$0x3] %vm3_vm0, %v102_v5   ;;  %104 = vst.msk [vmem:[%s275_s1 + $0x2e] sm:$0xfc] %vm3_vm0, %v102_v5   ;;  %v123_v12 = vld [vmem:[%s274_s0 + $0x60] sm:$0x3]  }
   0x8   :  { %106 = vst.msk [vmem:[%s275_s1 + $0x36] ss:$2 sm:$0x3] %vm3_vm0, %v105_v6   ;;  %107 = vst.msk [vmem:[%s275_s1 + $0x37] sm:$0xfc] %vm3_vm0, %v105_v6  }
   0x9   :  { %109 = vst.msk [vmem:[%s275_s1 + $0x40] sm:$0x7f] %vm3_vm0, %v108_v7   ;;  %110 = vst.msk [vmem:[%s275_s1 + $0x41] sm:$0x80] %vm3_vm0, %v108_v7  }
   0xa   :  { %112 = vst.msk [vmem:[%s275_s1 + $0x49] sm:$0x3f] %vm3_vm0, %v111_v8   ;;  %113 = vst.msk [vmem:[%s275_s1 + $0x4a] sm:$0xc0] %vm3_vm0, %v111_v8  }
   0xb   :  { %115 = vst.msk [vmem:[%s275_s1 + $0x52] sm:$0x1f] %vm3_vm0, %v114_v9   ;;  %116 = vst.msk [vmem:[%s275_s1 + $0x53] sm:$0xe0] %vm3_vm0, %v114_v9  }
   0xc   :  { %118 = vst.msk [vmem:[%s275_s1 + $0x5b] sm:$0xf] %vm3_vm0, %v117_v10   ;;  %119 = vst.msk [vmem:[%s275_s1 + $0x5c] sm:$0xf0] %vm3_vm0, %v117_v10  }
   0xd   :  { %121 = vst.msk [vmem:[%s275_s1 + $0x64] sm:$0x7] %vm3_vm0, %v120_v11   ;;  %122 = vst.msk [vmem:[%s275_s1 + $0x65] sm:$0xf8] %vm3_vm0, %v120_v11  }
   0xe   :  { %124 = vst.msk [vmem:[%s275_s1 + $0x6d] sm:$0x3] %vm3_vm0, %v123_v12  }

// kernel: netG_forward.1
= control target key start
LH: loop header
LB: loop body
LE: loop exit
PB: predicated region body
PF: predicated region fallthrough
CT: control target
= control target key end

     0   :  { %s15979_s0 = inlined_call_operand.hbm [shape: f32[2,16], index: 0, kind: input, shape index: {}]   ;;  %s15980_s1 = inlined_call_operand.hbm [shape: bf16[16,1024], index: 1, kind: input, shape index: {}]   ;;  %s15981_s2 = inlined_call_operand.hbm [shape: f32[1,1024], index: 2, kind: input, shape index: {}]   ;;  %s15982_s3 = inlined_call_operand.hbm [shape: f32[1,1024], index: 3, kind: input, shape index: {}]   ;;  %s15983_s4 = inlined_call_operand.hbm [shape: bf16[1024,6272], index: 4, kind: input, shape index: {}]   ;;  %s15984_s5 = inlined_call_operand.hbm [shape: f32[1,128], index: 5, kind: input, shape index: {}]   ;;  %s15985_s6 = inlined_call_operand.hbm [shape: f32[1,128], index: 6, kind: input, shape index: {}]   ;;  %s15986_s7 = inlined_call_operand.hbm [shape: f32[9,98,128], index: 7, kind: input, shape index: {}]   ;;  %s15987_s8 = inlined_call_operand.hbm [shape: bf16[16,128,128], index: 8, kind: input, shape index: {}]   ;;  %s15988_s9 = inlined_call_operand.hbm [shape: f32[1,128], index: 9, kind: input, shape index: {}]   ;;  %s15989_s10 = inlined_call_operand.hbm [shape: f32[1,128], index: 10, kind: input, shape index: {}]   ;;  %s15990_s11 = inlined_call_operand.vmem [shape: bf16[128,16], index: 11, kind: input, shape index: {}]   ;;  %s15991_s12 = inlined_call_operand.vmem [shape: f32[4,98,16], index: 12, kind: output, shape index: {}]  }
   0x1   :  { %16012 = sst [smem:[#allocation39_spill]] %s15979_s0 }
   0x2   :  { %16013 = sst [smem:[#allocation40_spill]] %s15980_s1 }
   0x3   :  { %16014 = sst [smem:[#allocation41_spill]] %s15983_s4 }
   0x4   :  { %16015 = sst [smem:[#allocation42_spill]] %s15990_s11 }
   0x5   :  { %16016 = sst [smem:[#allocation43_spill]] %s15991_s12 }
   0x6   :  { %17 = vsyncpa [#allocation6], 0 }
   0x7   :  { %18 = vsyncpa [#allocation8], 0 }
   0x8   :  { %19 = vsyncpa [#allocation11], 0 }
   0x9   :  { %20 = vsyncpa [#allocation16], 0 }
   0xa   :  { %21 = vsyncpa [#allocation19], 0  ;;  %s13366_s21 = smov 0   ;;  %s13368_s22 = smov 0  }
   0xb   :  { %s13370_s23 = smov 0   ;;  %s13372_s24 = smov 0  }
   0xc LB: > { %s13275_s25 = smov [#allocation7]   ;;  %s13387_s27 = sadd.s32 4294967295, %s13273_s24   ;;  %s13273_s24 = sphi %s13372_s24, %s16069_s24   ;;  %s13269_s23 = sphi %s13370_s23, %s16068_s23   ;;  %s13265_s22 = sphi %s13368_s22, %s16067_s22   ;;  %s13261_s21 = sphi %s13366_s21, %s16066_s21  }
   0xd   : > { %s333_s26 = sshll.u32 %s13275_s25, 4  ;;  %p9583_p0 = scmp.ge.s32.totalorder %s13273_s24, 1  ;;  %s13393_s26 = int_to_ptr.vmem [resolvable:$true] %s333_s26 }
   0xe   : > { %p15996_p1 = scmp.eq.s32.totalorder %s13387_s27, 0  ;;  %p310_p2 = scmp.lt.s32.totalorder %s13273_s24, 8 }
   0xf   : > { %s13276_s29 = smov [#allocation5]   ;;  %s13277_s14 = smov [#allocation9]  }
  0x10   : > { %p13395_p4 = pnand %p9583_p0, %p310_p2  ;;  %s323_s30 = sshll.u32 %s13276_s29, 4  ;;  %s13407_s30 = int_to_ptr.vmem [resolvable:$true] %s323_s30 }
  0x11   : > { %s347_s15 = sshll.u32 %s13277_s14, 4  ;;  %s16020_s1 = sld [smem:[#allocation40_spill]]  ;;  %s13409_s15 = int_to_ptr.vmem [resolvable:$true] %s347_s15 }
  0x12   : > { %s16017_s28 = scalar_select %p13395_p4, 1, 0 }
  0x13   : > { %p11959_p5 = pneg %p13395_p4 }
  0x14   : > { %16018 = sst [smem:[#allocation29_spill]] %s16017_s28 }
  0x15   : > { %p13403_p6 = pnand %p11959_p5, %p15996_p1 }
  0x17   : > { %s12901_s18 = scalar_lea.hbm %s16020_s1, 1024  ;;  %p13419_p8 = pneg %p13403_p6 }
  0x18   : > { %p12902_p7 = scmp.ne.s32.totalorder %s16020_s1, %s12901_s18  ;;  %p12908_p11 = scmp.lt.u32.totalorder %s12901_s18, %s16020_s1 }
  0x1a   : > { %p12904_p9 = pnand %p13419_p8, %p12902_p7 }
  0x1c   : > { %p12905_p10 = pneg %p12904_p9 }
  0x1e   : > { %p12910_p12 = pnand %p12908_p11, %p12905_p10 }
  0x20   : > { %12913 = shalt.err (!%p12910_p12)
}
  0x21   : > { %s12914_s16 = scalar_lea.vmem %s13393_s26, 1024  ;;  %p12922_p5 = scmp.lt.s32.totalorder %s13393_s26, %s13393_s26 }
  0x22   : > { %p12915_p13 = scmp.ne.s32.totalorder %s13393_s26, %s12914_s16  ;;  %p12923_p3 = scmp.lt.s32.totalorder %s12914_s16, %s12914_s16 }
  0x24   : > { %p12917_p0 = pnand %p12915_p13, %p13419_p8  ;;  %p12924_p7 = por %p12923_p3, %p12922_p5 }
  0x26   : > { %p12918_p2 = pneg %p12917_p0 }
  0x28   : > { %p12925_p9 = pnand %p12924_p7, %p12918_p2 }
  0x2a   : > { %12928 = shalt.err (!%p12925_p9)
}
  0x2b   : > { %s13278_s17 = smov 512   ;;  %s13279_s18 = smov 32  }
  0x2c   : > { %11965 = dma.hbm_to_vmem [thread:$0]  (!%p13403_p6), %s16020_s1, 1024, %s13393_s26, [#allocation8], %s13278_s17, %s13278_s17, %s13279_s18  }
  0x2d   : > { %s16022_s0 = sld [smem:[#allocation39_spill]] }
  0x33   : > { %s12929_s12 = scalar_lea.hbm %s16022_s0, 32 }
  0x34   : > { %p12930_p3 = scmp.ne.s32.totalorder %s16022_s0, %s12929_s12  ;;  %p12936_p12 = scmp.lt.u32.totalorder %s12929_s12, %s16022_s0 }
  0x36   : > { %p12932_p10 = pnand %p12930_p3, %p13419_p8 }
  0x38   : > { %p12933_p11 = pneg %p12932_p10 }
  0x3a   : > { %p12938_p13 = pnand %p12936_p12, %p12933_p11 }
  0x3c   : > { %12941 = shalt.err (!%p12938_p13)
}
  0x3d   : > { %s12942_s26 = scalar_lea.vmem %s13407_s30, 32  ;;  %p12950_p7 = scmp.lt.s32.totalorder %s13407_s30, %s13407_s30 }
  0x3e   : > { %p12943_p0 = scmp.ne.s32.totalorder %s13407_s30, %s12942_s26  ;;  %p12951_p9 = scmp.lt.s32.totalorder %s12942_s26, %s12942_s26 }
  0x40   : > { %p12945_p2 = pnand %p12943_p0, %p13419_p8  ;;  %p12952_p3 = por %p12951_p9, %p12950_p7 }
  0x42   : > { %p12946_p5 = pneg %p12945_p2 }
  0x44   : > { %p12953_p10 = pnand %p12952_p3, %p12946_p5 }
  0x46   : > { %12956 = shalt.err (!%p12953_p10)
}
  0x47   : > { %11962 = dma.hbm_to_vmem [thread:$0]  (!%p13403_p6), %s16022_s0, 32, %s13407_s30, [#allocation6]  }
  0x48   : > { %s12957_s17 = scalar_lea.hbm %s15981_s2, 128 }
  0x49   : > { %p12958_p11 = scmp.ne.s32.totalorder %s15981_s2, %s12957_s17  ;;  %p12964_p0 = scmp.lt.u32.totalorder %s12957_s17, %s15981_s2 }
  0x4b   : > { %p12960_p12 = pnand %p12958_p11, %p13419_p8 }
  0x4d   : > { %p12961_p13 = pneg %p12960_p12 }
  0x4f   : > { %p12966_p2 = pnand %p12964_p0, %p12961_p13 }
  0x51   : > { %12969 = shalt.err (!%p12966_p2)
}
  0x52   : > { %s12970_s30 = scalar_lea.vmem %s13409_s15, 128  ;;  %p12978_p3 = scmp.lt.s32.totalorder %s13409_s15, %s13409_s15 }
  0x53   : > { %p12971_p5 = scmp.ne.s32.totalorder %s13409_s15, %s12970_s30  ;;  %p12979_p10 = scmp.lt.s32.totalorder %s12970_s30, %s12970_s30 }
  0x55   : > { %p12973_p7 = pnand %p12971_p5, %p13419_p8  ;;  %p12980_p11 = por %p12979_p10, %p12978_p3 }
  0x57   : > { %p12974_p9 = pneg %p12973_p7 }
  0x59   : > { %p12981_p12 = pnand %p12980_p11, %p12974_p9 }
  0x5b   : > { %12984 = shalt.err (!%p12981_p12)
}
  0x5c   : > { %11968 = dma.hbm_to_vmem [thread:$0]  (!%p13403_p6), %s15981_s2, 128, %s13409_s15, [#allocation8]  }
  0x5d   : > { %s13280_s26 = smov [#allocation10]   ;;  %s13281_s11 = smov [#allocation15]  }
  0x5e   : > { %s358_s4 = sshll.u32 %s13280_s26, 4  ;;  %s390_s12 = sshll.u32 %s13281_s11, 4  ;;  %s359_s4 = int_to_ptr.vmem [resolvable:$true] %s358_s4  ;;  %s391_s12 = int_to_ptr.vmem [resolvable:$true] %s390_s12 }
  0x5f   : > { %s12985_s18 = scalar_lea.hbm %s15982_s3, 128 }
  0x60   : > { %p12986_p13 = scmp.ne.s32.totalorder %s15982_s3, %s12985_s18  ;;  %p12992_p5 = scmp.lt.u32.totalorder %s12985_s18, %s15982_s3 }
  0x62   : > { %p12988_p0 = pnand %p12986_p13, %p13419_p8 }
  0x64   : > { %p12989_p2 = pneg %p12988_p0 }
  0x66   : > { %p12994_p7 = pnand %p12992_p5, %p12989_p2 }
  0x68   : > { %12997 = shalt.err (!%p12994_p7)
}
  0x69   : > { %s12998_s15 = scalar_lea.vmem %s359_s4, 128  ;;  %p13006_p11 = scmp.lt.s32.totalorder %s359_s4, %s359_s4 }
  0x6a   : > { %p12999_p9 = scmp.ne.s32.totalorder %s359_s4, %s12998_s15  ;;  %p13007_p12 = scmp.lt.s32.totalorder %s12998_s15, %s12998_s15 }
  0x6c   : > { %p13001_p3 = pnand %p12999_p9, %p13419_p8  ;;  %p13008_p1 = por %p13007_p12, %p13006_p11 }
  0x6e   : > { %p13002_p10 = pneg %p13001_p3 }
  0x70   : > { %p13009_p4 = pnand %p13008_p1, %p13002_p10 }
  0x72   : > { %13012 = shalt.err (!%p13009_p4)
}
  0x73   : > { %11971 = dma.hbm_to_vmem [thread:$0]  (!%p13403_p6), %s15982_s3, 128, %s359_s4, [#allocation11]  }
  0x74   : > { %s13013_s28 = scalar_lea.hbm %s15986_s7, 14976 }
  0x75   : > { %p13014_p13 = scmp.ne.s32.totalorder %s15986_s7, %s13013_s28  ;;  %p13020_p4 = scmp.lt.u32.totalorder %s13013_s28, %s15986_s7 }
  0x77   : > { %p13016_p0 = pnand %p13014_p13, %p13419_p8 }
  0x79   : > { %p13017_p1 = pneg %p13016_p0 }
  0x7b   : > { %p13022_p2 = pnand %p13020_p4, %p13017_p1 }
  0x7d   : > { %13025 = shalt.err (!%p13022_p2)
}
  0x7e   : > { %s13026_s29 = scalar_lea.vmem %s391_s12, 14976  ;;  %p13034_p3 = scmp.lt.s32.totalorder %s391_s12, %s391_s12 }
  0x7f   : > { %p13027_p5 = scmp.ne.s32.totalorder %s391_s12, %s13026_s29  ;;  %p13035_p10 = scmp.lt.s32.totalorder %s13026_s29, %s13026_s29 }
  0x81   : > { %p13029_p7 = pnand %p13027_p5, %p13419_p8  ;;  %p13036_p11 = por %p13035_p10, %p13034_p3 }
  0x83   : > { %p13030_p9 = pneg %p13029_p7 }
  0x85   : > { %p13037_p12 = pnand %p13036_p11, %p13030_p9 }
  0x87   : > { %13040 = shalt.err (!%p13037_p12)
}
  0x88   : > { %s13282_s4 = smov 128   ;;  %s13283_s30 = smov 8  }
  0x89   : > { %11980 = dma.hbm_to_vmem [thread:$0]  (!%p13403_p6), %s15986_s7, 14976, %s391_s12, [#allocation16], %s13282_s4, %s13282_s4, %s13283_s30  }
  0x8a   : > { %s13284_s16 = smov [#allocation18]   ;;  %s13285_s11 = smov [#allocation13]  }
  0x8b   : > { %s417_s26 = sshll.u32 %s13284_s16, 4  ;;  %s369_s28 = sshll.u32 %s13285_s11, 4  ;;  %s418_s26 = int_to_ptr.vmem [resolvable:$true] %s417_s26  ;;  %s370_s28 = int_to_ptr.vmem [resolvable:$true] %s369_s28 }
  0x8c   : > { %s13041_s19 = scalar_lea.hbm %s15988_s9, 16 }
  0x8d   : > { %p13042_p13 = scmp.ne.s32.totalorder %s15988_s9, %s13041_s19  ;;  %p13048_p4 = scmp.lt.u32.totalorder %s13041_s19, %s15988_s9 }
  0x8f   : > { %p13044_p0 = pnand %p13042_p13, %p13419_p8 }
  0x91   : > { %p13045_p1 = pneg %p13044_p0 }
  0x93   : > { %p13050_p2 = pnand %p13048_p4, %p13045_p1 }
  0x95   : > { %13053 = shalt.err (!%p13050_p2)
}
  0x96   : > { %s13054_s12 = scalar_lea.vmem %s418_s26, 16  ;;  %s13061_s4 = scalar_lea.vmem %s418_s26, 32 }
  0x97   : > { %p13055_p5 = scmp.ne.s32.totalorder %s418_s26, %s13054_s12  ;;  %p13062_p3 = scmp.lt.s32.totalorder %s418_s26, %s418_s26 }
  0x98   : > { %p13063_p10 = scmp.lt.s32.totalorder %s13061_s4, %s13054_s12 }
  0x99   : > { %p13057_p7 = pnand %p13055_p5, %p13419_p8 }
  0x9a   : > { %p13064_p11 = por %p13063_p10, %p13062_p3 }
  0x9b   : > { %p13058_p9 = pneg %p13057_p7 }
  0x9d   : > { %p13065_p12 = pnand %p13064_p11, %p13058_p9 }
  0x9f   : > { %13068 = shalt.err (!%p13065_p12)
}
  0xa0   : > { %11986 = dma.hbm_to_vmem [thread:$0]  (!%p13403_p6), %s15988_s9, 16, %s418_s26, [#allocation19]  }
  0xa1   : > { %s13069_s14 = scalar_lea.hbm %s15984_s5, 16 }
  0xa2   : > { %p13070_p13 = scmp.ne.s32.totalorder %s15984_s5, %s13069_s14  ;;  %p13076_p4 = scmp.lt.u32.totalorder %s13069_s14, %s15984_s5 }
  0xa4   : > { %p13072_p0 = pnand %p13070_p13, %p13419_p8 }
  0xa6   : > { %p13073_p1 = pneg %p13072_p0 }
  0xa8   : > { %p13078_p2 = pnand %p13076_p4, %p13073_p1 }
  0xaa   : > { %13081 = shalt.err (!%p13078_p2)
}
  0xab   : > { %s13082_s19 = scalar_lea.vmem %s370_s28, 16  ;;  %s13089_s26 = scalar_lea.vmem %s370_s28, 32 }
  0xac   : > { %p13083_p5 = scmp.ne.s32.totalorder %s370_s28, %s13082_s19  ;;  %p13090_p3 = scmp.lt.s32.totalorder %s370_s28, %s370_s28 }
  0xad   : > { %p13091_p10 = scmp.lt.s32.totalorder %s13089_s26, %s13082_s19 }
  0xae   : > { %p13085_p7 = pnand %p13083_p5, %p13419_p8 }
  0xaf   : > { %p13092_p11 = por %p13091_p10, %p13090_p3 }
  0xb0   : > { %p13086_p9 = pneg %p13085_p7 }
  0xb2   : > { %p13093_p12 = pnand %p13092_p11, %p13086_p9 }
  0xb4   : > { %13096 = shalt.err (!%p13093_p12)
}
  0xb5   : > { %11974 = dma.hbm_to_vmem [thread:$0]  (!%p13403_p6), %s15984_s5, 16, %s370_s28, [#allocation8]  }
  0xb6   : > { %s13286_s12 = smov [#allocation14]   ;;  %s13287_s30 = smov [#allocation17]  }
  0xb7   : > { %s380_s4 = sshll.u32 %s13286_s12, 4  ;;  %s403_s15 = sshll.u32 %s13287_s30, 4  ;;  %s381_s4 = int_to_ptr.vmem [resolvable:$true] %s380_s4  ;;  %s404_s15 = int_to_ptr.vmem [resolvable:$true] %s403_s15 }
  0xb8   : > { %s13097_s14 = scalar_lea.hbm %s15985_s6, 16 }
  0xb9   : > { %p13098_p13 = scmp.ne.s32.totalorder %s15985_s6, %s13097_s14  ;;  %p13104_p4 = scmp.lt.u32.totalorder %s13097_s14, %s15985_s6 }
  0xbb   : > { %p13100_p0 = pnand %p13098_p13, %p13419_p8 }
  0xbd   : > { %p13101_p1 = pneg %p13100_p0 }
  0xbf   : > { %p13106_p2 = pnand %p13104_p4, %p13101_p1 }
  0xc1   : > { %13109 = shalt.err (!%p13106_p2)
}
  0xc2   : > { %s13110_s28 = scalar_lea.vmem %s381_s4, 16  ;;  %s13117_s19 = scalar_lea.vmem %s381_s4, 32 }
  0xc3   : > { %p13111_p5 = scmp.ne.s32.totalorder %s381_s4, %s13110_s28  ;;  %p13118_p3 = scmp.lt.s32.totalorder %s381_s4, %s381_s4 }
  0xc4   : > { %p13119_p10 = scmp.lt.s32.totalorder %s13117_s19, %s13110_s28 }
  0xc5   : > { %p13113_p7 = pnand %p13111_p5, %p13419_p8 }
  0xc6   : > { %p13120_p11 = por %p13119_p10, %p13118_p3 }
  0xc7   : > { %p13114_p9 = pneg %p13113_p7 }
  0xc9   : > { %p13121_p12 = pnand %p13120_p11, %p13114_p9 }
  0xcb   : > { %13124 = shalt.err (!%p13121_p12)
}
  0xcc   : > { %11977 = dma.hbm_to_vmem [thread:$0]  (!%p13403_p6), %s15985_s6, 16, %s381_s4, [#allocation11]  }
  0xcd   : > { %s13125_s30 = scalar_lea.hbm %s15987_s8, 16384 }
  0xce   : > { %p13126_p13 = scmp.ne.s32.totalorder %s15987_s8, %s13125_s30  ;;  %p13132_p4 = scmp.lt.u32.totalorder %s13125_s30, %s15987_s8 }
  0xd0   : > { %p13128_p0 = pnand %p13126_p13, %p13419_p8 }
  0xd2   : > { %p13129_p1 = pneg %p13128_p0 }
  0xd4   : > { %p13134_p2 = pnand %p13132_p4, %p13129_p1 }
  0xd6   : > { %13137 = shalt.err (!%p13134_p2)
}
  0xd7   : > { %s13138_s11 = scalar_lea.vmem %s404_s15, 16384  ;;  %p13146_p3 = scmp.lt.s32.totalorder %s404_s15, %s404_s15 }
  0xd8   : > { %p13139_p5 = scmp.ne.s32.totalorder %s404_s15, %s13138_s11  ;;  %p13147_p10 = scmp.lt.s32.totalorder %s13138_s11, %s13138_s11 }
  0xda   : > { %p13141_p7 = pnand %p13139_p5, %p13419_p8  ;;  %p13148_p11 = por %p13147_p10, %p13146_p3 }
  0xdc   : > { %p13142_p9 = pneg %p13141_p7 }
  0xde   : > { %p13149_p12 = pnand %p13148_p11, %p13142_p9 }
  0xe0   : > { %13152 = shalt.err (!%p13149_p12)
}
  0xe1   : > { %s13288_s4 = smov 64   ;;  %s13289_s17 = smov 4  }
  0xe2   : > { %11983 = dma.hbm_to_vmem [thread:$0]  (!%p13403_p6), %s15987_s8, 16384, %s404_s15, [#allocation16], %s13288_s4, %s13288_s4, %s13289_s17  }
  0xe3   : > { %s13290_s19 = smov [#allocation20]   ;;  %s13153_s12 = scalar_lea.hbm %s15989_s10, 16 }
  0xe4   : > { %s428_s26 = sshll.u32 %s13290_s19, 4  ;;  %p13154_p13 = scmp.ne.s32.totalorder %s15989_s10, %s13153_s12  ;;  %s429_s26 = int_to_ptr.vmem [resolvable:$true] %s428_s26 }
  0xe5   : > { %p13160_p4 = scmp.lt.u32.totalorder %s13153_s12, %s15989_s10 }
  0xe6   : > { %p13156_p0 = pnand %p13154_p13, %p13419_p8 }
  0xe8   : > { %p13157_p1 = pneg %p13156_p0 }
  0xea   : > { %p13162_p2 = pnand %p13160_p4, %p13157_p1 }
  0xec   : > { %13165 = shalt.err (!%p13162_p2)
}
  0xed   : > { %s13166_s15 = scalar_lea.vmem %s429_s26, 16  ;;  %s13173_s16 = scalar_lea.vmem %s429_s26, 32 }
  0xee   : > { %p13167_p5 = scmp.ne.s32.totalorder %s429_s26, %s13166_s15  ;;  %p13174_p3 = scmp.lt.s32.totalorder %s429_s26, %s429_s26 }
  0xef   : > { %p13175_p10 = scmp.lt.s32.totalorder %s13173_s16, %s13166_s15 }
  0xf0   : > { %p13169_p7 = pnand %p13167_p5, %p13419_p8 }
  0xf1   : > { %p13176_p11 = por %p13175_p10, %p13174_p3 }
  0xf2   : > { %p13170_p9 = pneg %p13169_p7 }
  0xf4   : > { %p13177_p12 = pnand %p13176_p11, %p13170_p9 }
  0xf6   : > { %13180 = shalt.err (!%p13177_p12)
}
  0xf7   : > { %11989 = dma.hbm_to_vmem [thread:$0]  (!%p13403_p6), %s15989_s10, 16, %s429_s26, [#allocation19]  }
  0xf8   : > { %s13613_s25 = sadd.s32 1, %s13273_s24   ;;  %s118_s13 = sadd.s32 1, %s13269_s23 }
  0xf9   : > { %s115_s17 = ssub.s32 %s13273_s24, %s13613_s25  ;;  %p125_p8 = scmp.ne.s32.totalorder %s13269_s23, %s13265_s22 }
  0xfa   : > { %p116_p13 = scmp.eq.s32.totalorder %s115_s17, 0  ;;  %p126_p0 = scmp.eq.s32.totalorder %s13273_s24, 0 }
  0xfb   : > { %p131_p1 = scmp.ne.s32.totalorder %s13265_s22, %s13261_s21  ;;  %p12004_p4 = scmp.lt.s32.totalorder %s13273_s24, 7 }
  0xfc   : > { %s13625_s18 = scalar_select %p116_p13, %s13269_s23, %s118_s13  }
  0xfd   : > { %p127_p2 = por %p126_p0, %p125_p8  ;;  %p16023_p5 = scmp.eq.s32.totalorder %s13387_s27, 0 }
  0xfe   : > { %s442_s19 = sand.u32 1, %s13273_s24   ;;  %s444_s26 = sand.u32 1, %s13269_s23  }
  0xff   : > { %p13629_p7 = por %p16023_p5, %p131_p1  ;;  %s11915_s20 = smul.u32 3584, %s444_s26 }
 0x100   : > { %s10276_s29 = smul.u32 448, %s13273_s24  ;;  %p13636_p6 = pnand %p12004_p4, %p127_p2 }
 0x101   : > { %s16026_s21 = sld [smem:[#allocation41_spill]]  ;;  %s446_s15 = scalar_lea.vmem [#allocation12], %s11915_s20 }
 0x102   : > { %s453_s16 = sshll.u32 %s446_s15, 4  ;;  %s13647_s24 = scalar_lea.sflag [#allocation6], %s442_s19  ;;  %s13645_s16 = int_to_ptr.vmem [resolvable:$true] %s453_s16 }
 0x103   : > { %p13183_p3 = pneg %p13636_p6 }
 0x107   : > { %s16027_s1 = smov %s16026_s21  ;;  %s13643_s14 = scalar_lea.hbm %s16026_s21, %s10276_s29 }
 0x108   : > { %s13181_s11 = scalar_lea.hbm %s13643_s14, 57344  ;;  %s13186_s17 = scalar_lea.hbm %s16027_s1, 401408 }
 0x109   : > { %p13182_p9 = scmp.ne.s32.totalorder %s13643_s14, %s13181_s11  ;;  %p13187_p12 = scmp.lt.u32.totalorder %s13643_s14, %s16027_s1 }
 0x10a   : > { %p13188_p8 = scmp.lt.u32.totalorder %s13186_s17, %s13181_s11  ;;  %p13190_p0 = scmp.lt.u32.totalorder %s13181_s11, %s13643_s14 }
 0x10b   : > { %p13184_p10 = pnand %p13183_p3, %p13182_p9 }
 0x10c   : > { %p13189_p13 = por %p13188_p8, %p13187_p12 }
 0x10d   : > { %p13185_p11 = pneg %p13184_p10 }
 0x10e   : > { %p13191_p1 = por %p13190_p0, %p13189_p13 }
 0x110   : > { %p13192_p4 = pnand %p13191_p1, %p13185_p11 }
 0x112   : > { %13195 = shalt.err (!%p13192_p4)
}
 0x113   : > { %s13196_s19 = scalar_lea.vmem %s13645_s16, 57344  ;;  %s13291_s20 = smov [#allocation12]  }
 0x114   : > { %p13197_p2 = scmp.ne.s32.totalorder %s13645_s16, %s13196_s19  ;;  %s13201_s30 = sshll.u32 %s13291_s20, 4  ;;  %s13202_s30 = int_to_ptr.vmem [resolvable:$false] %s13201_s30 }
 0x115   : > { %s13203_s0 = scalar_lea.vmem %s13202_s30, 114688  ;;  %p13204_p10 = scmp.lt.s32.totalorder %s13645_s16, %s13202_s30 }
 0x116   : > { %p13199_p5 = pnand %p13197_p2, %p13183_p3  ;;  %p13205_p12 = scmp.lt.s32.totalorder %s13203_s0, %s13196_s19 }
 0x118   : > { %p13200_p9 = pneg %p13199_p5  ;;  %p13206_p8 = por %p13205_p12, %p13204_p10 }
 0x11a   : > { %p13207_p13 = pnand %p13206_p8, %p13200_p9 }
 0x11c   : > { %13210 = shalt.err (!%p13207_p13)
}
 0x11d   : > { %s13292_s21 = smov 3136   ;;  %s13293_s15 = smov 448  }
 0x11e   : > { %s13294_s11 = smov 28   ;;  %s16028_s4 = sld [smem:[#allocation29_spill]] }
 0x11f   : > { %11993 = dma.hbm_to_vmem [thread:$0]  (!%p13636_p6), %s13643_s14, 57344, %s13645_s16, %s13647_s24, %s13292_s21, %s13293_s15, %s13294_s11  }
 0x124   : > { %p16029_p3 = scmp.ne.s32.totalorder %s16028_s4, 0 }
 0x125   : > { %p16030_p11 = scmp.eq.s32.totalorder (!%p16029_p3), %s13387_s27, 0 }
 0x126   : > { %465 = sbr.rel (%p16029_p3) target bundleno = 2520 (0x9d8), region = 68 }
 0x12d   : > { %13228 = dma.done.wait (%p16030_p11), [#allocation6], 32   ;;  %p16031_p0 = pmov %p16030_p11 }
 0x12f   : > { %13230 = vsyncadd (%p16031_p0), [#allocation6], 4294967264  ;;  %p16032_p1 = pmov %p16031_p0 }
 0x130   : > { %p16033_p4 = pmov %p16031_p0 }
 0x131   : > { %13232 = dma.done.wait (%p16032_p1), [#allocation8], 1152  }
 0x132   : > { %13234 = vsyncadd (%p16033_p4), [#allocation8], 4294966144  ;;  %p16034_p2 = pmov %p16031_p0 }
 0x133   : > { %p16035_p6 = pmov %p16031_p0 }
 0x134   : > { %13236 = dma.done.wait (%p16034_p2), [#allocation11], 128  }
 0x135   : > { %13238 = vsyncadd (%p16035_p6), [#allocation11], 4294967168  ;;  %s483_s12 = sand.u32 1, %s13387_s27   ;;  %s485_s14 = sand.u32 1, %s13265_s22  }
 0x136   : > { %s11916_s16 = smul.u32 3584, %s485_s14  ;;  %s484_s24 = scalar_lea.sflag [#allocation6], %s483_s12 }
 0x138   : > { %s13691_s13 = scalar_lea.vmem [#allocation12], %s11916_s16 }
 0x139   : > { %13240 = dma.done.wait (%p13629_p7), %s484_s24, 57344  }
 0x13a   : > { %13242 = vsyncadd (%p13629_p7), %s484_s24, 4294909952  ;;  %p16036_p5 = pmov %p16031_p0 }
 0x13b   : > { %p16037_p9 = pmov %p16031_p0 }
 0x13c   : > { %13244 = dma.done.wait (%p16036_p5), [#allocation8], 16  }
 0x13d   : > { %13246 = vsyncadd (%p16037_p9), [#allocation8], 4294967280  ;;  %p16038_p10 = pmov %p16031_p0 }
 0x13e   : > { %p16039_p12 = pmov %p16031_p0 }
 0x13f   : > { %13248 = dma.done.wait (%p16038_p10), [#allocation11], 16  }
 0x140   : > { %13250 = vsyncadd (%p16039_p12), [#allocation11], 4294967280  ;;  %p16040_p8 = pmov %p16031_p0 }
 0x141   : > { %p16041_p13 = pmov %p16031_p0 }
 0x142   : > { %13252 = dma.done.wait (%p16040_p8), [#allocation16], 31360  }
 0x143   : > { %13254 = vsyncadd (%p16041_p13), [#allocation16], 4294935936  ;;  %p16042_p7 = pmov %p16031_p0 }
 0x144   : > { %p16043_p3 = pmov %p16031_p0 }
 0x145   : > { %13256 = dma.done.wait (%p16042_p7), [#allocation19], 32  }
 0x146   : > { %13258 = vsyncadd (%p16043_p3), [#allocation19], 4294967264  ;;  %p16044_p11 = scmp.ne.s32.totalorder %s13387_s27, 0 }
 0x147   : > { %v570_v0 = vld [vmem:[#allocation7] sm:$0xff] (!%p16044_p11)  ;;  %v571_v2 = vld [vmem:[#allocation7 + $0x8] sm:$0xff] (!%p16044_p11)  ;;  %v13295_v3 = vmov (!%p16044_p11), 0.0   ;;  %v13296_v7 = vmov (!%p16044_p11), 0   ;;  %v568_v8 = vld [vmem:[#allocation5] sm:$0x3] (!%p16044_p11)  ;;  %v958_v46 = vlaneseq (!%p16044_p11) }
 0x148   : > { %552 = sbr.rel (%p16044_p11) target bundleno = 630 (0x276), region = 116  ;;  %v574_v1 = vld [vmem:[#allocation7 + $0x20] sm:$0xff] (!%p16044_p11)  ;;  %553 = vst [vmem:[#allocation3] sm:$0xff] (!%p16044_p11), %v13295_v3  ;;  %554 = vst [vmem:[#allocation3 + $0x8] sm:$0xff] (!%p16044_p11), %v13295_v3  ;;  %v575_v5 = vld [vmem:[#allocation7 + $0x28] sm:$0xff] (!%p16044_p11)  ;;  %654 = vmatprep.mubr.bf16.mxu0 (!%p16044_p11), %v13296_v7  ;;  %695 = vmatprep.mubr.bf16.mxu1 (!%p16044_p11), %v13296_v7  ;;  %v569_v15 = vpack.c.bf16 (!%p16044_p11), %v568_v8, %v568_v8  ;;  %vm618_vm0 = vcmask (!%p16044_p11), 130048  }
 0x149   : > { %555 = vst [vmem:[#allocation3 + $0x10] sm:$0xff] (!%p16044_p11), %v13295_v3  ;;  %556 = vst [vmem:[#allocation3 + $0x18] sm:$0xff] (!%p16044_p11), %v13295_v3  ;;  %v9609_v4 = vcombine.high (!%p16044_p11), %v570_v0, %v574_v1  ;;  %v9608_v6 = vcombine.low (!%p16044_p11), %v570_v0, %v574_v1  ;;  %v572_v9 = vld [vmem:[#allocation7 + $0x10] sm:$0xff] (!%p16044_p11)  ;;  %v9611_v10 = vcombine.high (!%p16044_p11), %v571_v2, %v575_v5  ;;  %v573_v13 = vld [vmem:[#allocation7 + $0x18] sm:$0xff] (!%p16044_p11)  ;;  %vm786_vm1 = vcmask (!%p16044_p11), 1041408  }
 0x14a   : > { %557 = vst [vmem:[#allocation3 + $0x20] sm:$0xff] (!%p16044_p11), %v13295_v3  ;;  %558 = vst [vmem:[#allocation3 + $0x28] sm:$0xff] (!%p16044_p11), %v13295_v3  ;;  %v9610_v11 = vcombine.low (!%p16044_p11), %v571_v2, %v575_v5  ;;  %v576_v12 = vld [vmem:[#allocation7 + $0x30] sm:$0xff] (!%p16044_p11)  ;;  %v577_v14 = vld [vmem:[#allocation7 + $0x38] sm:$0xff] (!%p16044_p11) }
 0x14b   : > { %559 = vst [vmem:[#allocation3 + $0x30] sm:$0xff] (!%p16044_p11), %v13295_v3  ;;  %560 = vst [vmem:[#allocation3 + $0x38] sm:$0xff] (!%p16044_p11), %v13295_v3  ;;  %622 = vmatprep.subr.bf16.mxu0 (!%p16044_p11), %v9609_v4  ;;  %v9613_v16 = vcombine.high (!%p16044_p11), %v572_v9, %v576_v12  ;;  %v9615_v17 = vcombine.high (!%p16044_p11), %v573_v13, %v577_v14  ;;  %663 = vmatprep.subr.bf16.mxu1 (!%p16044_p11), %v9611_v10 }
 0x14c   : > { %561 = vst [vmem:[#allocation3 + $0x40] sm:$0xff] (!%p16044_p11), %v13295_v3  ;;  %562 = vst [vmem:[#allocation3 + $0x48] sm:$0xff] (!%p16044_p11), %v13295_v3  ;;  %623 = vmatpush1.bf16.msra.mxu0 (!%p16044_p11), %v9608_v6  ;;  %v9612_v18 = vcombine.low (!%p16044_p11), %v572_v9, %v576_v12  ;;  %664 = vmatpush1.bf16.msra.mxu1 (!%p16044_p11), %v9610_v11  ;;  %v9614_v19 = vcombine.low (!%p16044_p11), %v573_v13, %v577_v14 }
 0x14d   : > { %563 = vst [vmem:[#allocation3 + $0x50] sm:$0xff] (!%p16044_p11), %v13295_v3  ;;  %564 = vst [vmem:[#allocation3 + $0x58] sm:$0xff] (!%p16044_p11), %v13295_v3  ;;  %704 = vmatprep.subr.bf16.mxu0 (!%p16044_p11), %v9613_v16  ;;  %745 = vmatprep.subr.bf16.mxu1 (!%p16044_p11), %v9615_v17 }
 0x14e   : > { %565 = vst [vmem:[#allocation3 + $0x60] sm:$0xff] (!%p16044_p11), %v13295_v3  ;;  %566 = vst [vmem:[#allocation3 + $0x68] sm:$0xff] (!%p16044_p11), %v13295_v3 }
 0x14f   : > { %567 = vst [vmem:[#allocation3 + $0x70] sm:$0xff] %v13295_v3  ;;  %9616 = vmatmul.mubr.msk.bf16.vlgmr.msra.gmra.mrb[0].mxu0 %vm618_vm0, %v569_v15  ;;  %9617 = vmatmul.mubr.msk.bf16.vlgmr.msra.gmra.mrb[0].mxu1 %vm618_vm0, %v569_v15 }
 0x150   : > { %705 = vmatpush1.bf16.msra.mxu0 %v9612_v18  ;;  %746 = vmatpush1.bf16.msra.mxu1 %v9614_v19 }
 0x151   : > { %736 = vmatprep.mubr.bf16.mxu0 %v13296_v7  ;;  %777 = vmatprep.mubr.bf16.mxu1 %v13296_v7 }
 0x157   : > { %9618 = vmatmul.mubr.msk.bf16.vlgmr.msra.gmra.mrb[4].mxu0 %vm618_vm0, %v569_v15  ;;  %9619 = vmatmul.mubr.msk.bf16.vlgmr.msra.gmra.mrb[4].mxu1 %vm618_vm0, %v569_v15 }
 0x222   : > { %v656_v20 = vpop.f32.mrb[0].mxu0  ;;  %v13716_v22 = vpop.f32.mrb[0].mxu1 }
 0x223   : > { %v787_v21 = vsel %vm786_vm1, %v656_v20, 0.0  ;;  %v13718_v23 = vpop.f32.mrb[1].mxu0  ;;  %v801_v25 = vsel %vm786_vm1, %v13716_v22, 0.0  ;;  %v13724_v27 = vpop.f32.mrb[1].mxu1 }
 0x224   : > { %v788_v24 = vrot.slane %v787_v21, 4  ;;  %v794_v26 = vsel %vm786_vm1, %v13718_v23, 0.0  ;;  %v660_v28 = vpop.f32.mrb[2].mxu0  ;;  %v802_v29 = vrot.slane %v801_v25, 4  ;;  %v808_v31 = vsel %vm786_vm1, %v13724_v27, 0.0  ;;  %v701_v32 = vpop.f32.mrb[2].mxu1 }
 0x225   : > { %v795_v30 = vrot.slane %v794_v26, 4  ;;  %v661_v33 = vpop.f32.mrb[3].mxu0  ;;  %v809_v35 = vrot.slane %v808_v31, 4  ;;  %v702_v36 = vpop.f32.mrb[3].mxu1 }
 0x226   : > { %v789_v34 = vadd.f32 %v788_v24, %v787_v21  ;;  %v803_v37 = vadd.f32 %v802_v29, %v801_v25 }
 0x227   : > { %v796_v38 = vadd.f32 %v795_v30, %v794_v26  ;;  %v810_v40 = vadd.f32 %v809_v35, %v808_v31 }
 0x228   : > { %v790_v39 = vrot.slane %v789_v34, 2  ;;  %v804_v41 = vrot.slane %v803_v37, 2 }
 0x229   : > { %v797_v42 = vrot.slane %v796_v38, 2  ;;  %v811_v44 = vrot.slane %v810_v40, 2 }
 0x22a   : > { %v791_v43 = vadd.f32 %v790_v39, %v789_v34  ;;  %v13728_v45 = vpop.f32.mrb[4].mxu0  ;;  %v805_v47 = vadd.f32 %v804_v41, %v803_v37  ;;  %v13732_v50 = vpop.f32.mrb[4].mxu1 }
 0x22b   : > { %v798_v48 = vadd.f32 %v797_v42, %v796_v38  ;;  %v815_v49 = vsel %vm786_vm1, %v13728_v45, 0.0  ;;  %v13734_v51 = vpop.f32.mrb[5].mxu0  ;;  %v812_v53 = vadd.f32 %v811_v44, %v810_v40  ;;  %v829_v55 = vsel %vm786_vm1, %v13732_v50, 0.0  ;;  %v13738_v56 = vpop.f32.mrb[5].mxu1 }
 0x22c   : > { %v792_v52 = vrot.slane %v791_v43, 1  ;;  %v816_v54 = vrot.slane %v815_v49, 4  ;;  %v742_v57 = vpop.f32.mrb[6].mxu0  ;;  %v806_v58 = vrot.slane %v805_v47, 1  ;;  %v830_v60 = vrot.slane %v829_v55, 4  ;;  %v783_v62 = vpop.f32.mrb[6].mxu1 }
 0x22d   : > { %v799_v59 = vrot.slane %v798_v48, 1  ;;  %v822_v61 = vsel %vm786_vm1, %v13734_v51, 0.0  ;;  %v743_v63 = vpop.f32.mrb[7].mxu0  ;;  %v813_v1 = vrot.slane %v812_v53, 1  ;;  %v784_v4 = vpop.f32.mrb[7].mxu1  ;;  %v836_v8 = vsel %vm786_vm1, %v13738_v56, 0.0 }
 0x22e   : > { %v793_v0 = vadd.f32 %v792_v52, %v791_v43  ;;  %v817_v2 = vadd.f32 %v816_v54, %v815_v49  ;;  %v823_v3 = vrot.slane %v822_v61, 4  ;;  %v807_v5 = vadd.f32 %v806_v58, %v805_v47 }
 0x22f   : > { %v800_v6 = vadd.f32 %v799_v59, %v798_v48  ;;  %v831_v7 = vadd.f32 %v830_v60, %v829_v55  ;;  %v814_v10 = vadd.f32 %v813_v1, %v812_v53  ;;  %v837_v16 = vrot.slane %v836_v8, 4 }
 0x230   : > { %v844_v9 = vmul.f32 0.5, %v793_v0  ;;  %v818_v11 = vrot.slane %v817_v2, 2  ;;  %v824_v12 = vadd.f32 %v823_v3, %v822_v61  ;;  %v846_v13 = vmul.f32 0.5, %v807_v5 }
 0x231   : > { %v845_v14 = vmul.f32 0.5, %v800_v6  ;;  %v832_v15 = vrot.slane %v831_v7, 2  ;;  %v847_v18 = vmul.f32 0.5, %v814_v10  ;;  %v838_v28 = vadd.f32 %v837_v16, %v836_v8 }
 0x232   : > { %v13744_v17 = vsub.f32 %v656_v20, %v844_v9  ;;  %v819_v19 = vadd.f32 %v818_v11, %v817_v2  ;;  %v825_v21 = vrot.slane %v824_v12, 2  ;;  %v13747_v24 = vsub.f32 %v13716_v22, %v846_v13 }
 0x233   : > { %v13750_v25 = vsub.f32 %v13718_v23, %v845_v14  ;;  %v833_v26 = vadd.f32 %v832_v15, %v831_v7  ;;  %v13755_v30 = vsub.f32 %v13724_v27, %v847_v18  ;;  %v839_v34 = vrot.slane %v838_v28, 2 }
 0x234   : > { %v860_v29 = vmul.f32 %v13744_v17, %v13744_v17  ;;  %v820_v31 = vrot.slane %v819_v19, 1  ;;  %v826_v20 = vadd.f32 %v825_v21, %v824_v12  ;;  %v862_v32 = vmul.f32 %v13747_v24, %v13747_v24 }
 0x235   : > { %v861_v22 = vmul.f32 %v13750_v25, %v13750_v25  ;;  %v834_v33 = vrot.slane %v833_v26, 1  ;;  %v863_v35 = vmul.f32 %v13755_v30, %v13755_v30  ;;  %v840_v57 = vadd.f32 %v839_v34, %v838_v28 }
 0x236   : > { %v868_v23 = vsel %vm786_vm1, %v860_v29, 0.0  ;;  %v821_v36 = vadd.f32 %v820_v31, %v819_v19  ;;  %v827_v37 = vrot.slane %v826_v20, 1  ;;  %v882_v27 = vsel %vm786_vm1, %v862_v32, 0.0 }
 0x237   : > { %v869_v38 = vrot.slane %v868_v23, 4  ;;  %v875_v39 = vsel %vm786_vm1, %v861_v22, 0.0  ;;  %v835_v40 = vadd.f32 %v834_v33, %v833_v26  ;;  %v883_v41 = vrot.slane %v882_v27, 4 }
 0x238   : > { %v876_v42 = vrot.slane %v875_v39, 4  ;;  %v889_v43 = vsel %vm786_vm1, %v863_v35, 0.0  ;;  %v848_v44 = vmul.f32 0.5, %v821_v36  ;;  %v828_v52 = vadd.f32 %v827_v37, %v826_v20 }
 0x239   : > { %v870_v47 = vadd.f32 %v869_v38, %v868_v23  ;;  %v890_v48 = vrot.slane %v889_v43, 4  ;;  %v850_v49 = vmul.f32 0.5, %v835_v40  ;;  %v884_v53 = vadd.f32 %v883_v41, %v882_v27 }
 0x23a   : > { %v877_v54 = vadd.f32 %v876_v42, %v875_v39  ;;  %v13768_v55 = vsub.f32 %v13728_v45, %v848_v44  ;;  %v849_v61 = vmul.f32 0.5, %v828_v52  ;;  %v841_v1 = vrot.slane %v840_v57, 1 }
 0x23b   : > { %v871_v58 = vrot.slane %v870_v47, 2  ;;  %v891_v59 = vadd.f32 %v890_v48, %v889_v43  ;;  %v13771_v60 = vsub.f32 %v13732_v50, %v850_v49  ;;  %v885_v62 = vrot.slane %v884_v53, 2 }
 0x23c   : > { %v878_v63 = vrot.slane %v877_v54, 2  ;;  %v864_v0 = vmul.f32 %v13768_v55, %v13768_v55  ;;  %v13778_v45 = vsub.f32 %v13734_v51, %v849_v61  ;;  %v842_v7 = vadd.f32 %v841_v1, %v840_v57 }
 0x23d   : > { %v872_v2 = vadd.f32 %v871_v58, %v870_v47  ;;  %v892_v3 = vrot.slane %v891_v59, 2  ;;  %v866_v4 = vmul.f32 %v13771_v60, %v13771_v60  ;;  %v886_v5 = vadd.f32 %v885_v62, %v884_v53 }
 0x23e   : > { %v879_v6 = vadd.f32 %v878_v63, %v877_v54  ;;  %v896_v50 = vsel %vm786_vm1, %v864_v0, 0.0  ;;  %v865_v15 = vmul.f32 %v13778_v45, %v13778_v45  ;;  %v851_v19 = vmul.f32 0.5, %v842_v7 }
 0x23f   : > { %v873_v8 = vrot.slane %v872_v2, 1  ;;  %v893_v9 = vadd.f32 %v892_v3, %v891_v59  ;;  %v897_v10 = vrot.slane %v896_v50, 4  ;;  %v910_v11 = vsel %vm786_vm1, %v866_v4, 0.0 }
 0x240   : > { %v887_v12 = vrot.slane %v886_v5, 1  ;;  %v880_v13 = vrot.slane %v879_v6, 1  ;;  %v911_v14 = vrot.slane %v910_v11, 4  ;;  %v903_v29 = vsel %vm786_vm1, %v865_v15, 0.0 }
 0x241   : > { %v874_v16 = vadd.f32 %v873_v8, %v872_v2  ;;  %v894_v18 = vrot.slane %v893_v9, 1  ;;  %v898_v51 = vadd.f32 %v897_v10, %v896_v50  ;;  %v904_v22 = vrot.slane %v903_v29, 4  ;;  %v13800_v50 = vld [vmem:[#allocation10] sm:$0xff] }
 0x242   : > { %v888_v21 = vadd.f32 %v887_v12, %v886_v5  ;;  %v881_v26 = vadd.f32 %v880_v13, %v879_v6  ;;  %v912_v28 = vadd.f32 %v911_v14, %v910_v11  ;;  %v13786_v35 = vsub.f32 %v13738_v56, %v851_v19 }
 0x243   : > { %v924_v31 = vmul.f32 0.5, %v874_v16  ;;  %v895_v20 = vadd.f32 %v894_v18, %v893_v9  ;;  %v899_v32 = vrot.slane %v898_v51, 2  ;;  %v905_v27 = vadd.f32 %v904_v22, %v903_v29 }
 0x244   : > { %v926_v33 = vmul.f32 0.5, %v888_v21  ;;  %v925_v34 = vmul.f32 0.5, %v881_v26  ;;  %v913_v23 = vrot.slane %v912_v28, 2  ;;  %v867_v42 = vmul.f32 %v13786_v35, %v13786_v35 }
 0x245   : > { %v932_v36 = vadd.f32 1e-05, %v924_v31  ;;  %v927_v37 = vmul.f32 0.5, %v895_v20  ;;  %v900_v38 = vadd.f32 %v899_v32, %v898_v51  ;;  %v906_v47 = vrot.slane %v905_v27, 2 }
 0x246   : > { %v934_v39 = vadd.f32 1e-05, %v926_v33  ;;  %v933_v40 = vadd.f32 1e-05, %v925_v34  ;;  %v914_v41 = vadd.f32 %v913_v23, %v912_v28  ;;  %v13791_v48 = vshrl.u32 %v958_v46, 7  ;;  %v13796_v46 = vld [vmem:[#allocation9] sm:$0xff] }
 0x247   : > { %12072 = vrsqrt.f32 %v932_v36  ;;  %v935_v43 = vadd.f32 1e-05, %v927_v37  ;;  %v901_v44 = vrot.slane %v900_v38, 1  ;;  %v917_v49 = vsel %vm786_vm1, %v867_v42, 0.0 }
 0x248   : > { %12074 = vrsqrt.f32 %v934_v39  ;;  %v915_v56 = vrot.slane %v914_v41, 1  ;;  %v907_v53 = vadd.f32 %v906_v47, %v905_v27  ;;  %v918_v54 = vrot.slane %v917_v49, 4 }
 0x249   : > { %12076 = vrsqrt.f32 %v933_v40  ;;  %v902_v52 = vadd.f32 %v901_v44, %v900_v38  ;;  %v960_v62 = vsub.s32 0, %v13791_v48  ;;  %v968_v63 = vsub.s32 2, %v13791_v48 }
 0x24a   : > { %12078 = vrsqrt.f32 %v935_v43  ;;  %v916_v57 = vadd.f32 %v915_v56, %v914_v41  ;;  %v908_v59 = vrot.slane %v907_v53, 1  ;;  %v919_v61 = vadd.f32 %v918_v54, %v917_v49 }
 0x24b   : > { %v928_v58 = vmul.f32 0.5, %v902_v52  ;;  %v964_v1 = vsub.s32 1, %v13791_v48  ;;  %v972_v5 = vsub.s32 3, %v13791_v48  ;;  %v961_v9 = vrot.slane %v13796_v46, %v960_v62 }
 0x24c   : > { %v930_v0 = vmul.f32 0.5, %v916_v57  ;;  %v909_v3 = vadd.f32 %v908_v59, %v907_v53  ;;  %v920_v4 = vrot.slane %v919_v61, 2  ;;  %v969_v11 = vrot.slane %v13796_v46, %v968_v63 }
 0x24d   : > { %v936_v2 = vadd.f32 1e-05, %v928_v58  ;;  %v965_v12 = vrot.slane %v13796_v46, %v964_v1  ;;  %v1011_v18 = vrot.slane %v13800_v50, %v960_v62  ;;  %v1019_v51 = vrot.slane %v13800_v50, %v968_v63 }
 0x24e   : > { %v938_v6 = vadd.f32 1e-05, %v930_v0  ;;  %v929_v7 = vmul.f32 0.5, %v909_v3  ;;  %v921_v8 = vadd.f32 %v920_v4, %v919_v61  ;;  %v13297_v19 = vmov 1966171168  }
 0x24f   : > { %12080 = vrsqrt.f32 %v936_v2  ;;  %v1085_v21 = vunpack.c.l.s4 %v13297_v19  ;;  %v973_v29 = vrot.slane %v13796_v46, %v972_v5  ;;  %v1015_v33 = vrot.slane %v13800_v50, %v964_v1 }
 0x250   : > { %12082 = vrsqrt.f32 %v938_v6  ;;  %v937_v13 = vadd.f32 1e-05, %v929_v7  ;;  %v922_v14 = vrot.slane %v921_v8, 1  ;;  %v1023_v36 = vrot.slane %v13800_v50, %v972_v5 }
 0x251   : > { %v12073_v10 = vpop.eup %12072  ;;  %v1086_v27 = vunpack.c.0.s8 %v1085_v21  ;;  %v984_v41 = vsub.s32 6, %v13791_v48  ;;  %v980_v47 = vsub.s32 5, %v13791_v48 }
 0x252   : > { %v12075_v15 = vpop.eup %12074  ;;  %v948_v16 = vmul.f32 %v12073_v10, %v13744_v17  ;;  %12084 = vrsqrt.f32 %v937_v13  ;;  %v923_v31 = vadd.f32 %v922_v14, %v921_v8  ;;  %v976_v17 = vsub.s32 4, %v13791_v48 }
 0x253   : > { %v12077_v26 = vpop.eup %12076  ;;  %v950_v28 = vmul.f32 %v12075_v15, %v13747_v24  ;;  %v1089_v54 = vsub.s32 %v1086_v27, %v13791_v48  ;;  %v985_v61 = vrot.slane %v13796_v46, %v984_v41  ;;  %v981_v1 = vrot.slane %v13796_v46, %v980_v47 }
 0x254   : > { %v12079_v20 = vpop.eup %12078  ;;  %v998_v32 = vmul.f32 %v961_v9, %v948_v16  ;;  %v949_v22 = vmul.f32 %v12077_v26, %v13750_v25  ;;  %v931_v37 = vmul.f32 0.5, %v923_v31  ;;  %v977_v44 = vrot.slane %v13796_v46, %v976_v17 }
 0x255   : > { %v1000_v34 = vmul.f32 %v969_v11, %v950_v28  ;;  %v951_v23 = vmul.f32 %v12079_v20, %v13755_v30  ;;  %v1027_v58 = vrot.slane %v13800_v50, %v976_v17  ;;  %v1031_v4 = vrot.slane %v13800_v50, %v980_v47 }
 0x256   : > { %v1048_v38 = vadd.f32 %v1011_v18, %v998_v32  ;;  %v999_v24 = vmul.f32 %v965_v12, %v949_v22  ;;  %v939_v42 = vadd.f32 1e-05, %v931_v37  ;;  %v1035_v10 = vrot.slane %v13800_v50, %v984_v41 }
 0x257   : > { %v1050_v39 = vadd.f32 %v1019_v51, %v1000_v34  ;;  %v1001_v40 = vmul.f32 %v973_v29, %v951_v23 }
 0x258   : > { %v1056_v43 = vmax.f32 %v1048_v38, 0.0  ;;  %v1049_v25 = vadd.f32 %v1015_v33, %v999_v24  ;;  %12086 = vrsqrt.f32 %v939_v42 }
 0x259   : > { %v12081_v56 = vpop.eup %12080  ;;  %v1058_v49 = vmax.f32 %v1050_v39, 0.0  ;;  %v1051_v30 = vadd.f32 %v1023_v36, %v1001_v40 }
 0x25a   : > { %v12083_v52 = vpop.eup %12082  ;;  %v1057_v53 = vmax.f32 %v1049_v25, 0.0  ;;  %v952_v57 = vmul.f32 %v12081_v56, %v13768_v55  ;;  %v988_v55 = vsub.s32 7, %v13791_v48 }
 0x25b   : > { %v1059_v59 = vmax.f32 %v1051_v30, 0.0  ;;  %v954_v0 = vmul.f32 %v12083_v52, %v13771_v60 }
 0x25c   : > { %v9620_v62 = vpack.c.bf16 %v1057_v53, %v1056_v43  ;;  %v1002_v63 = vmul.f32 %v977_v44, %v952_v57  ;;  %v12085_v2 = vpop.eup %12084  ;;  %v989_v14 = vrot.slane %v13796_v46, %v988_v55  ;;  %v1039_v19 = vrot.slane %v13800_v50, %v988_v55 }
 0x25d   : > { %v9621_v3 = vpack.c.bf16 %v1059_v59, %v1058_v49  ;;  %v953_v7 = vmul.f32 %v12085_v2, %v13778_v45  ;;  %v1004_v9 = vmul.f32 %v985_v61, %v954_v0 }
 0x25e   : > { %v1090_v5 = vrot.slane %v9620_v62, %v1089_v54  ;;  %v1052_v6 = vadd.f32 %v1027_v58, %v1002_v63 }
 0x25f   : > { %v1097_v8 = vrot.slane %v9621_v3, %v1089_v54  ;;  %v1003_v11 = vmul.f32 %v981_v1, %v953_v7  ;;  %v1054_v16 = vadd.f32 %v1035_v10, %v1004_v9 }
 0x260   : > { %v1060_v13 = vmax.f32 %v1052_v6, 0.0 }
 0x261   : > { %v1112_v12 = vcombine.low %v1090_v5, %v1097_v8  ;;  %v1053_v60 = vadd.f32 %v1031_v4, %v1003_v11  ;;  %v1062_v48 = vmax.f32 %v1054_v16, 0.0 }
 0x262   : > { %v12087_v15 = vpop.eup %12086 }
 0x263   : > { %v1061_v18 = vmax.f32 %v1053_v60, 0.0  ;;  %v955_v51 = vmul.f32 %v12087_v15, %v13786_v35  ;;  %v1120_v22 = vrot.slane %v1112_v12, %v1089_v54 }
 0x265   : > { %v9622_v45 = vpack.c.bf16 %v1061_v18, %v1060_v13  ;;  %v1005_v21 = vmul.f32 %v989_v14, %v955_v51 }
 0x267   : > { %v1055_v26 = vadd.f32 %v1039_v19, %v1005_v21  ;;  %v1104_v29 = vrot.slane %v9622_v45, %v1089_v54 }
 0x269   : > { %v1063_v28 = vmax.f32 %v1055_v26, 0.0 }
 0x26b   : > { %v9623_v31 = vpack.c.bf16 %v1063_v28, %v1062_v48 }
 0x26d   : > { %v1111_v20 = vrot.slane %v9623_v31, %v1089_v54 }
 0x26f   : > { %v1113_v32 = vcombine.low %v1104_v29, %v1111_v20 }
 0x271   : > { %v1127_v33 = vrot.slane %v1113_v32, %v1089_v54 }
 0x273   : > { %v1128_v17 = vcombine.low %v1120_v22, %v1127_v33 }
 0x275   : > { %1130 = vst [vmem:[#allocation2] sm:$0xff] %v1128_v17 }
 0x276 PF: > { %v12088_v35 = vld [vmem:[%s13691_s13 + $0x4] ss:$28 sps:$4 sm:$0xff]   ;;  %v12094_v23 = vld [vmem:[%s13691_s13 + $0x3c] ss:$28 sps:$4 sm:$0xff]   ;;  %v12100_v24 = vld [vmem:[%s13691_s13 + $0x74] ss:$28 sps:$4 sm:$0xff]   ;;  %v1649_v55 = vlaneseq }
 0x277   : > { %v12090_v46 = vld [vmem:[%s13691_s13 + $0x384] ss:$28 sps:$4 sm:$0xff]   ;;  %4006 = vmatprep.subr.bf16.mxu1 %v12088_v35  ;;  %v12096_v36 = vld [vmem:[%s13691_s13 + $0x3bc] ss:$28 sps:$4 sm:$0xff]   ;;  %v12102_v27 = vld [vmem:[%s13691_s13 + $0x3f4] ss:$28 sps:$4 sm:$0xff]  }
 0x278   : > { %v12092_v50 = vld [vmem:[%s13691_s13] ss:$28 sps:$4 sm:$0xff]   ;;  %4047 = vmatprep.subr.bf16.mxu0 %v12090_v46  ;;  %v12098_v37 = vld [vmem:[%s13691_s13 + $0x38] ss:$28 sps:$4 sm:$0xff]   ;;  %v12104_v39 = vld [vmem:[%s13691_s13 + $0x70] ss:$28 sps:$4 sm:$0xff]  }
 0x279   : > { %v12093_v34 = vld [vmem:[%s13691_s13 + $0x380] ss:$28 sps:$4 sm:$0xff]   ;;  %4007 = vmatpush1.bf16.msra.mxu1 %v12092_v50  ;;  %v12099_v38 = vld [vmem:[%s13691_s13 + $0x3b8] ss:$28 sps:$4 sm:$0xff]   ;;  %v12105_v40 = vld [vmem:[%s13691_s13 + $0x3f0] ss:$28 sps:$4 sm:$0xff]  }
 0x27a   : > { %4048 = vmatpush1.bf16.msra.mxu0 %v12093_v34  ;;  %4008 = vmatprep.subr.bf16.mxu1 %v12094_v23  ;;  %v12106_v41 = vld [vmem:[%s13691_s13 + $0xac] ss:$28 sps:$4 sm:$0xff]   ;;  %v12112_v44 = vld [vmem:[%s13691_s13 + $0xe4] ss:$28 sps:$4 sm:$0xff]   ;;  %v12118_v30 = vld [vmem:[%s13691_s13 + $0x11c] ss:$28 sps:$4 sm:$0xff]  }
 0x27b   : > { %4049 = vmatprep.subr.bf16.mxu0 %v12096_v36  ;;  %v12108_v42 = vld [vmem:[%s13691_s13 + $0x42c] ss:$28 sps:$4 sm:$0xff]   ;;  %v12114_v47 = vld [vmem:[%s13691_s13 + $0x464] ss:$28 sps:$4 sm:$0xff]   ;;  %v12120_v52 = vld [vmem:[%s13691_s13 + $0x49c] ss:$28 sps:$4 sm:$0xff]  }
 0x27c   : > { %v12110_v43 = vld [vmem:[%s13691_s13 + $0xa8] ss:$28 sps:$4 sm:$0xff]   ;;  %v12116_v56 = vld [vmem:[%s13691_s13 + $0xe0] ss:$28 sps:$4 sm:$0xff]   ;;  %v12122_v53 = vld [vmem:[%s13691_s13 + $0x118] ss:$28 sps:$4 sm:$0xff]  }
 0x27d   : > { %4009 = vmatpush1.bf16.msra.mxu1 %v12098_v37  ;;  %v12111_v25 = vld [vmem:[%s13691_s13 + $0x428] ss:$28 sps:$4 sm:$0xff]   ;;  %v12117_v49 = vld [vmem:[%s13691_s13 + $0x460] ss:$28 sps:$4 sm:$0xff]   ;;  %v12123_v54 = vld [vmem:[%s13691_s13 + $0x498] ss:$28 sps:$4 sm:$0xff]  }
 0x27e   : > { %4050 = vmatpush1.bf16.msra.mxu0 %v12099_v38  ;;  %4010 = vmatprep.subr.bf16.mxu1 %v12100_v24  ;;  %v12124_v57 = vld [vmem:[%s13691_s13 + $0x154] ss:$28 sps:$4 sm:$0xff]   ;;  %v12130_v62 = vld [vmem:[%s13691_s13 + $0x18c] ss:$28 sps:$4 sm:$0xff]   ;;  %v12136_v2 = vld [vmem:[%s13691_s13 + $0x1c4] ss:$28 sps:$4 sm:$0xff]  }
 0x27f   : > { %4051 = vmatprep.subr.bf16.mxu0 %v12102_v27  ;;  %v12126_v58 = vld [vmem:[%s13691_s13 + $0x4d4] ss:$28 sps:$4 sm:$0xff]   ;;  %v12132_v63 = vld [vmem:[%s13691_s13 + $0x50c] ss:$28 sps:$4 sm:$0xff]   ;;  %v12138_v3 = vld [vmem:[%s13691_s13 + $0x544] ss:$28 sps:$4 sm:$0xff]  }
 0x280   : > { %v12128_v59 = vld [vmem:[%s13691_s13 + $0x150] ss:$28 sps:$4 sm:$0xff]   ;;  %v12134_v0 = vld [vmem:[%s13691_s13 + $0x188] ss:$28 sps:$4 sm:$0xff]   ;;  %v12140_v4 = vld [vmem:[%s13691_s13 + $0x1c0] ss:$28 sps:$4 sm:$0xff]  }
 0x281   : > { %4011 = vmatpush1.bf16.msra.mxu1 %v12104_v39  ;;  %v12129_v61 = vld [vmem:[%s13691_s13 + $0x4d0] ss:$28 sps:$4 sm:$0xff]   ;;  %v12135_v1 = vld [vmem:[%s13691_s13 + $0x508] ss:$28 sps:$4 sm:$0xff]   ;;  %v12141_v5 = vld [vmem:[%s13691_s13 + $0x540] ss:$28 sps:$4 sm:$0xff]  }
 0x282   : > { %4052 = vmatpush1.bf16.msra.mxu0 %v12105_v40  ;;  %4012 = vmatprep.subr.bf16.mxu1 %v12106_v41  ;;  %v13298_v6 = vmov 1966171168   ;;  %v12142_v8 = vld [vmem:[%s13691_s13 + $0x1fc] ss:$28 sps:$4 sm:$0xff]   ;;  %v13870_v12 = vshrl.u32 %v1649_v55, 7  ;;  %v1131_v45 = vld [vmem:[#allocation2] sm:$0xff] }
 0x283   : > { %4053 = vmatprep.subr.bf16.mxu0 %v12108_v42  ;;  %v1647_v7 = vunpack.c.l.s4 %v13298_v6  ;;  %v12144_v9 = vld [vmem:[%s13691_s13 + $0x57c] ss:$28 sps:$4 sm:$0xff]   ;;  %v12148_v60 = vld [vmem:[%s13691_s13 + $0x234] ss:$28 sps:$4 sm:$0xff]   ;;  %v12154_v51 = vld [vmem:[%s13691_s13 + $0x26c] ss:$28 sps:$4 sm:$0xff]   ;;  %v1645_v26 = vcombine.high %v1131_v45, %v1131_v45 }
 0x284   : > { %v12146_v10 = vld [vmem:[%s13691_s13 + $0x1f8] ss:$28 sps:$4 sm:$0xff]   ;;  %v12152_v15 = vld [vmem:[%s13691_s13 + $0x230] ss:$28 sps:$4 sm:$0xff]   ;;  %v12158_v21 = vld [vmem:[%s13691_s13 + $0x268] ss:$28 sps:$4 sm:$0xff]  }
 0x285   : > { %4013 = vmatpush1.bf16.msra.mxu1 %v12110_v43  ;;  %v1648_v11 = vunpack.c.0.s8 %v1647_v7  ;;  %v12147_v13 = vld [vmem:[%s13691_s13 + $0x578] ss:$28 sps:$4 sm:$0xff]   ;;  %v12153_v16 = vld [vmem:[%s13691_s13 + $0x5b0] ss:$28 sps:$4 sm:$0xff]   ;;  %v12159_v28 = vld [vmem:[%s13691_s13 + $0x5e8] ss:$28 sps:$4 sm:$0xff]  }
 0x286   : > { %4054 = vmatpush1.bf16.msra.mxu0 %v12111_v25  ;;  %4014 = vmatprep.subr.bf16.mxu1 %v12112_v44  ;;  %v12150_v14 = vld [vmem:[%s13691_s13 + $0x5b4] ss:$28 sps:$4 sm:$0xff]   ;;  %v12156_v19 = vld [vmem:[%s13691_s13 + $0x5ec] ss:$28 sps:$4 sm:$0xff]   ;;  %v12160_v29 = vld [vmem:[%s13691_s13 + $0x2a4] ss:$28 sps:$4 sm:$0xff]  }
 0x287   : > { %4055 = vmatprep.subr.bf16.mxu0 %v12114_v47  ;;  %v13878_v18 = vsub.s32 %v1648_v11, %v13870_v12  ;;  %v12162_v31 = vld [vmem:[%s13691_s13 + $0x624] ss:$28 sps:$4 sm:$0xff]   ;;  %v12166_v46 = vld [vmem:[%s13691_s13 + $0x2dc] ss:$28 sps:$4 sm:$0xff]   ;;  %v12172_v37 = vld [vmem:[%s13691_s13 + $0x314] ss:$28 sps:$4 sm:$0xff]  }
 0x288   : > { %v12164_v22 = vld [vmem:[%s13691_s13 + $0x2a0] ss:$28 sps:$4 sm:$0xff]   ;;  %v12170_v23 = vld [vmem:[%s13691_s13 + $0x2d8] ss:$28 sps:$4 sm:$0xff]   ;;  %v12176_v24 = vld [vmem:[%s13691_s13 + $0x310] ss:$28 sps:$4 sm:$0xff]  }
 0x289   : > { %4015 = vmatpush1.bf16.msra.mxu1 %v12116_v56  ;;  %v1652_v48 = vrot.slane %v1131_v45, %v13878_v18  ;;  %v1659_v32 = vrot.slane %v1645_v26, %v13878_v18  ;;  %v12165_v35 = vld [vmem:[%s13691_s13 + $0x620] ss:$28 sps:$4 sm:$0xff]   ;;  %v12171_v36 = vld [vmem:[%s13691_s13 + $0x658] ss:$28 sps:$4 sm:$0xff]   ;;  %v12177_v27 = vld [vmem:[%s13691_s13 + $0x690] ss:$28 sps:$4 sm:$0xff]  }
 0x28a   : > { %4056 = vmatpush1.bf16.msra.mxu0 %v12117_v49  ;;  %4016 = vmatprep.subr.bf16.mxu1 %v12118_v30  ;;  %v12168_v50 = vld [vmem:[%s13691_s13 + $0x65c] ss:$28 sps:$4 sm:$0xff]   ;;  %v12174_v38 = vld [vmem:[%s13691_s13 + $0x694] ss:$28 sps:$4 sm:$0xff]   ;;  %v12178_v39 = vld [vmem:[%s13691_s13 + $0x34c] ss:$28 sps:$4 sm:$0xff]  }
 0x28b   : > { %4057 = vmatprep.subr.bf16.mxu0 %v12120_v52  ;;  %v1660_v20 = vcombine.high %v1652_v48, %v1652_v48  ;;  %v13893_v17 = vrot.slane %v1659_v32, %v13878_v18  ;;  %v12180_v40 = vld [vmem:[%s13691_s13 + $0x6cc] ss:$28 sps:$4 sm:$0xff]   ;;  %v13914_v42 = vrot.slane %v1652_v48, %v13878_v18  ;;  %v12186_v25 = vld [vmem:[%s13691_s13 + $0x704] ss:$28 sps:$4 sm:$0xff]   ;;  %v1661_v47 = vcombine.high %v1659_v32, %v1659_v32  ;;  %v12192_v52 = vld [vmem:[%s13691_s13 + $0x73c] ss:$28 sps:$4 sm:$0xff]  }
 0x28c   : > { %v12182_v41 = vld [vmem:[%s13691_s13 + $0x348] ss:$28 sps:$4 sm:$0xff]   ;;  %v12184_v56 = vld [vmem:[%s13691_s13 + $0x700] ss:$28 sps:$4 sm:$0xff]   ;;  %v12222_v11 = vld [vmem:[%s13691_s13 + $0x854] ss:$28 sps:$4 sm:$0xff]  }
 0x28d   : > { %4017 = vmatpush1.bf16.msra.mxu1 %v12122_v53  ;;  %v13890_v33 = vrot.slane %v1660_v20, %v13878_v18  ;;  %v12183_v43 = vld [vmem:[%s13691_s13 + $0x6c8] ss:$28 sps:$4 sm:$0xff]   ;;  %v13922_v49 = vcombine.high %v13914_v42, %v13914_v42  ;;  %v12208_v6 = vld [vmem:[%s13691_s13 + $0x7e0] ss:$28 sps:$4 sm:$0xff]   ;;  %v12246_v20 = vld [vmem:[%s13691_s13 + $0x934] ss:$28 sps:$4 sm:$0xff]  }
 0x28e   : > { %4058 = vmatpush1.bf16.msra.mxu0 %v12123_v54  ;;  %4018 = vmatprep.subr.bf16.mxu1 %v12124_v57  ;;  %v12189_v44 = vld [vmem:[%s13691_s13 + $0xc] ss:$28 sps:$4 sm:$0xff]   ;;  %v12195_v53 = vld [vmem:[%s13691_s13 + $0x44] ss:$28 sps:$4 sm:$0xff]   ;;  %v13928_v54 = vrot.slane %v1661_v47, %v13878_v18  ;;  %v12190_v57 = vld [vmem:[%s13691_s13 + $0x738] ss:$28 sps:$4 sm:$0xff]  }
 0x28f   : > { %4059 = vmatprep.subr.bf16.mxu0 %v12126_v58  ;;  %v13900_v34 = vcombine.high %v13890_v33, %v13890_v33  ;;  %4038 = vmatprep.mubr.bf16.mxu1 %v13890_v33  ;;  %v12187_v30 = vld [vmem:[%s13691_s13 + $0x8] ss:$28 sps:$4 sm:$0xff]   ;;  %v12193_v58 = vld [vmem:[%s13691_s13 + $0x40] ss:$28 sps:$4 sm:$0xff]   ;;  %v12268_v47 = vld [vmem:[%s13691_s13 + $0xa10] ss:$28 sps:$4 sm:$0xff]  }
 0x290   : > { %v12211_v7 = vld [vmem:[%s13691_s13 + $0xe8] ss:$28 sps:$4 sm:$0xff]   ;;  %v12216_v55 = vld [vmem:[%s13691_s13 + $0x81c] ss:$28 sps:$4 sm:$0xff]   ;;  %vm4676_vm2 = vcmask 1040384   ;;  %vm4678_vm3 = vcmask 1041408  }
 0x291   : > { %4019 = vmatpush1.bf16.msra.mxu1 %v12128_v59  ;;  %4079 = vmatprep.mubr.bf16.mxu0 %v13900_v34  ;;  %v12198_v59 = vld [vmem:[%s13691_s13 + $0x774] ss:$28 sps:$4 sm:$0xff]   ;;  %v12226_v18 = vld [vmem:[%s13691_s13 + $0x888] ss:$28 sps:$4 sm:$0xff]   ;;  %v12240_v26 = vld [vmem:[%s13691_s13 + $0x8fc] ss:$28 sps:$4 sm:$0xff]  }
 0x292   : > { %4060 = vmatpush1.bf16.msra.mxu0 %v12129_v61  ;;  %4020 = vmatprep.subr.bf16.mxu1 %v12130_v62  ;;  %v12201_v61 = vld [vmem:[%s13691_s13 + $0x7c] ss:$28 sps:$4 sm:$0xff]   ;;  %v12196_v62 = vld [vmem:[%s13691_s13 + $0x770] ss:$28 sps:$4 sm:$0xff]   ;;  %v12235_v48 = vld [vmem:[%s13691_s13 + $0x1c8] ss:$28 sps:$4 sm:$0xff]  }
 0x293   : > { %4061 = vmatprep.subr.bf16.mxu0 %v12132_v63  ;;  %v12199_v63 = vld [vmem:[%s13691_s13 + $0x78] ss:$28 sps:$4 sm:$0xff]   ;;  %v12237_v45 = vld [vmem:[%s13691_s13 + $0x1cc] ss:$28 sps:$4 sm:$0xff]   ;;  %vm4680_vm4 = vcmask 1042432   ;;  %vm4682_vm5 = vcmask 1043456  }
 0x294   : > { %v12249_v32 = vld [vmem:[%s13691_s13 + $0x23c] ss:$28 sps:$4 sm:$0xff]   ;;  %vm4684_vm6 = vcmask 1044480   ;;  %s9472_s28 = smul.u32 7, %s13387_s27  ;;  %vm4686_vm7 = vcmask 1045504   ;;  %p10074_p0 = scmp.ne.s32.totalorder %s13387_s27, 6 }
 0x295   : > { %4021 = vmatpush1.bf16.msra.mxu1 %v12134_v0  ;;  %v12204_v0 = vld [vmem:[%s13691_s13 + $0x7ac] ss:$28 sps:$4 sm:$0xff]  }
 0x296   : > { %4062 = vmatpush1.bf16.msra.mxu0 %v12135_v1  ;;  %4022 = vmatprep.subr.bf16.mxu1 %v12136_v2  ;;  %v12207_v1 = vld [vmem:[%s13691_s13 + $0xb4] ss:$28 sps:$4 sm:$0xff]   ;;  %v12202_v2 = vld [vmem:[%s13691_s13 + $0x7a8] ss:$28 sps:$4 sm:$0xff]   ;;  %s9473_s17 = scalar_lea.vmem [#allocation3], %s9472_s28 }
 0x297   : > { %4063 = vmatprep.subr.bf16.mxu0 %v12138_v3  ;;  %v12205_v3 = vld [vmem:[%s13691_s13 + $0xb0] ss:$28 sps:$4 sm:$0xff]  }
 0x299   : > { %4023 = vmatpush1.bf16.msra.mxu1 %v12140_v4  ;;  %v12210_v4 = vld [vmem:[%s13691_s13 + $0x7e4] ss:$28 sps:$4 sm:$0xff]  }
 0x29a   : > { %4064 = vmatpush1.bf16.msra.mxu0 %v12141_v5  ;;  %4024 = vmatprep.subr.bf16.mxu1 %v12142_v8  ;;  %v12213_v5 = vld [vmem:[%s13691_s13 + $0xec] ss:$28 sps:$4 sm:$0xff]   ;;  %v12219_v8 = vld [vmem:[%s13691_s13 + $0x124] ss:$28 sps:$4 sm:$0xff]  }
 0x29b   : > { %4065 = vmatprep.subr.bf16.mxu0 %v12144_v9  ;;  %v12214_v9 = vld [vmem:[%s13691_s13 + $0x818] ss:$28 sps:$4 sm:$0xff]  }
 0x29d   : > { %4025 = vmatpush1.bf16.msra.mxu1 %v12146_v10  ;;  %v12217_v10 = vld [vmem:[%s13691_s13 + $0x120] ss:$28 sps:$4 sm:$0xff]  }
 0x29e   : > { %4066 = vmatpush1.bf16.msra.mxu0 %v12147_v13  ;;  %4026 = vmatprep.subr.bf16.mxu1 %v12148_v60  ;;  %v12225_v13 = vld [vmem:[%s13691_s13 + $0x15c] ss:$28 sps:$4 sm:$0xff]   ;;  %v12220_v60 = vld [vmem:[%s13691_s13 + $0x850] ss:$28 sps:$4 sm:$0xff]  }
 0x29f   : > { %4067 = vmatprep.subr.bf16.mxu0 %v12150_v14  ;;  %v12223_v14 = vld [vmem:[%s13691_s13 + $0x158] ss:$28 sps:$4 sm:$0xff]  }
 0x2a1   : > { %4027 = vmatpush1.bf16.msra.mxu1 %v12152_v15  ;;  %v12228_v15 = vld [vmem:[%s13691_s13 + $0x88c] ss:$28 sps:$4 sm:$0xff]  }
 0x2a2   : > { %4068 = vmatpush1.bf16.msra.mxu0 %v12153_v16  ;;  %4028 = vmatprep.subr.bf16.mxu1 %v12154_v51  ;;  %v12231_v16 = vld [vmem:[%s13691_s13 + $0x194] ss:$28 sps:$4 sm:$0xff]  }
 0x2a3   : > { %4069 = vmatprep.subr.bf16.mxu0 %v12156_v19  ;;  %v12229_v51 = vld [vmem:[%s13691_s13 + $0x190] ss:$28 sps:$4 sm:$0xff]   ;;  %v12234_v19 = vld [vmem:[%s13691_s13 + $0x8c4] ss:$28 sps:$4 sm:$0xff]  }
 0x2a5   : > { %4029 = vmatpush1.bf16.msra.mxu1 %v12158_v21  ;;  %v12232_v21 = vld [vmem:[%s13691_s13 + $0x8c0] ss:$28 sps:$4 sm:$0xff]  }
 0x2a6   : > { %4070 = vmatpush1.bf16.msra.mxu0 %v12159_v28  ;;  %4030 = vmatprep.subr.bf16.mxu1 %v12160_v29  ;;  %v12243_v28 = vld [vmem:[%s13691_s13 + $0x204] ss:$28 sps:$4 sm:$0xff]   ;;  %v12238_v29 = vld [vmem:[%s13691_s13 + $0x8f8] ss:$28 sps:$4 sm:$0xff]  }
 0x2a7   : > { %4071 = vmatprep.subr.bf16.mxu0 %v12162_v31  ;;  %v12241_v31 = vld [vmem:[%s13691_s13 + $0x200] ss:$28 sps:$4 sm:$0xff]  }
 0x2a9   : > { %4031 = vmatpush1.bf16.msra.mxu1 %v12164_v22  ;;  %v12244_v22 = vld [vmem:[%s13691_s13 + $0x930] ss:$28 sps:$4 sm:$0xff]  }
 0x2aa   : > { %4072 = vmatpush1.bf16.msra.mxu0 %v12165_v35  ;;  %4032 = vmatprep.subr.bf16.mxu1 %v12166_v46  ;;  %v12247_v35 = vld [vmem:[%s13691_s13 + $0x238] ss:$28 sps:$4 sm:$0xff]   ;;  %v12252_v46 = vld [vmem:[%s13691_s13 + $0x96c] ss:$28 sps:$4 sm:$0xff]  }
 0x2ab   : > { %4073 = vmatprep.subr.bf16.mxu0 %v12168_v50  ;;  %v12255_v50 = vld [vmem:[%s13691_s13 + $0x274] ss:$28 sps:$4 sm:$0xff]  }
 0x2ad   : > { %4033 = vmatpush1.bf16.msra.mxu1 %v12170_v23  ;;  %v12250_v23 = vld [vmem:[%s13691_s13 + $0x968] ss:$28 sps:$4 sm:$0xff]  }
 0x2ae   : > { %4074 = vmatpush1.bf16.msra.mxu0 %v12171_v36  ;;  %4034 = vmatprep.subr.bf16.mxu1 %v12172_v37  ;;  %v12253_v36 = vld [vmem:[%s13691_s13 + $0x270] ss:$28 sps:$4 sm:$0xff]   ;;  %v12258_v37 = vld [vmem:[%s13691_s13 + $0x9a4] ss:$28 sps:$4 sm:$0xff]  }
 0x2af   : > { %4075 = vmatprep.subr.bf16.mxu0 %v12174_v38  ;;  %v12261_v38 = vld [vmem:[%s13691_s13 + $0x2ac] ss:$28 sps:$4 sm:$0xff]  }
 0x2b1   : > { %4035 = vmatpush1.bf16.msra.mxu1 %v12176_v24  ;;  %v12256_v24 = vld [vmem:[%s13691_s13 + $0x9a0] ss:$28 sps:$4 sm:$0xff]  }
 0x2b2   : > { %4076 = vmatpush1.bf16.msra.mxu0 %v12177_v27  ;;  %4036 = vmatprep.subr.bf16.mxu1 %v12178_v39  ;;  %v12259_v27 = vld [vmem:[%s13691_s13 + $0x2a8] ss:$28 sps:$4 sm:$0xff]   ;;  %v12264_v39 = vld [vmem:[%s13691_s13 + $0x9dc] ss:$28 sps:$4 sm:$0xff]  }
 0x2b3   : > { %4077 = vmatprep.subr.bf16.mxu0 %v12180_v40  ;;  %v12267_v40 = vld [vmem:[%s13691_s13 + $0x2e4] ss:$28 sps:$4 sm:$0xff]  }
 0x2b5   : > { %4037 = vmatpush1.bf16.msra.mxu1 %v12182_v41  ;;  %v12262_v41 = vld [vmem:[%s13691_s13 + $0x9d8] ss:$28 sps:$4 sm:$0xff]  }
 0x2b6   : > { %4078 = vmatpush1.bf16.msra.mxu0 %v12183_v43  ;;  %4170 = vmatprep.subr.bf16.mxu1 %v12189_v44  ;;  %v12265_v43 = vld [vmem:[%s13691_s13 + $0x2e0] ss:$28 sps:$4 sm:$0xff]  }
 0x2b7   : > { %4088 = vmatprep.subr.bf16.mxu0 %v12186_v25  ;;  %v12270_v25 = vld [vmem:[%s13691_s13 + $0xa14] ss:$28 sps:$4 sm:$0xff]   ;;  %v12273_v44 = vld [vmem:[%s13691_s13 + $0x31c] ss:$28 sps:$4 sm:$0xff]  }
 0x2b8   : > { %4039 = vmatmul.mubr.bf16.vlgmr.msra.gmra.mrb[0].mxu1 %v13914_v42 }
 0x2b9   : > { %4080 = vmatmul.mubr.bf16.vlgmr.msra.gmra.mrb[0].mxu0 %v13922_v49  ;;  %4171 = vmatpush1.bf16.msra.mxu1 %v12187_v30  ;;  %v12276_v30 = vld [vmem:[%s13691_s13 + $0xa4c] ss:$28 sps:$4 sm:$0xff]  }
 0x2ba   : > { %4089 = vmatpush1.bf16.msra.mxu0 %v12184_v56  ;;  %4172 = vmatprep.subr.bf16.mxu1 %v12195_v53  ;;  %v12271_v56 = vld [vmem:[%s13691_s13 + $0x318] ss:$28 sps:$4 sm:$0xff]   ;;  %v12274_v53 = vld [vmem:[%s13691_s13 + $0xa48] ss:$28 sps:$4 sm:$0xff]  }
 0x2bb   : > { %4090 = vmatprep.subr.bf16.mxu0 %v12192_v52  ;;  %4120 = vmatprep.mubr.bf16.mxu0 %v13928_v54  ;;  %v12279_v52 = vld [vmem:[%s13691_s13 + $0x354] ss:$28 sps:$4 sm:$0xff]  }
 0x2bc   : > { %4202 = vmatprep.mubr.bf16.mxu1 %v13890_v33 }
 0x2bd   : > { %4173 = vmatpush1.bf16.msra.mxu1 %v12193_v58  ;;  %v12283_v58 = vld [vmem:[%s13691_s13 + $0xa84] ss:$28 sps:$4 sm:$0xff]  }
 0x2be   : > { %4091 = vmatpush1.bf16.msra.mxu0 %v12190_v57  ;;  %4174 = vmatprep.subr.bf16.mxu1 %v12201_v61  ;;  %v12277_v57 = vld [vmem:[%s13691_s13 + $0x350] ss:$28 sps:$4 sm:$0xff]   ;;  %v12281_v61 = vld [vmem:[%s13691_s13 + $0xa80] ss:$28 sps:$4 sm:$0xff]  }
 0x2bf   : > { %4092 = vmatprep.subr.bf16.mxu0 %v12198_v59  ;;  %v12286_v59 = vld [vmem:[%s13691_s13 + $0x38c] ss:$28 sps:$4 sm:$0xff]  }
 0x2c1   : > { %4175 = vmatpush1.bf16.msra.mxu1 %v12199_v63  ;;  %v12289_v63 = vld [vmem:[%s13691_s13 + $0xabc] ss:$28 sps:$4 sm:$0xff]  }
 0x2c2   : > { %4093 = vmatpush1.bf16.msra.mxu0 %v12196_v62  ;;  %4176 = vmatprep.subr.bf16.mxu1 %v12207_v1  ;;  %v12284_v62 = vld [vmem:[%s13691_s13 + $0x388] ss:$28 sps:$4 sm:$0xff]   ;;  %v14000_v1 = vcombine.high %v13928_v54, %v13928_v54 }
 0x2c3   : > { %4094 = vmatprep.subr.bf16.mxu0 %v12204_v0  ;;  %v12292_v0 = vld [vmem:[%s13691_s13 + $0x3c4] ss:$28 sps:$4 sm:$0xff]  }
 0x2c5   : > { %4177 = vmatpush1.bf16.msra.mxu1 %v12205_v3  ;;  %v12290_v3 = vld [vmem:[%s13691_s13 + $0x3c0] ss:$28 sps:$4 sm:$0xff]  }
 0x2c6   : > { %4095 = vmatpush1.bf16.msra.mxu0 %v12202_v2  ;;  %4178 = vmatprep.subr.bf16.mxu1 %v12213_v5  ;;  %v12287_v2 = vld [vmem:[%s13691_s13 + $0xab8] ss:$28 sps:$4 sm:$0xff]  }
 0x2c7   : > { %4096 = vmatprep.subr.bf16.mxu0 %v12210_v4  ;;  %v12295_v4 = vld [vmem:[%s13691_s13 + $0xaf4] ss:$28 sps:$4 sm:$0xff]   ;;  %v12298_v5 = vld [vmem:[%s13691_s13 + $0x3fc] ss:$28 sps:$4 sm:$0xff]  }
 0x2c9   : > { %4179 = vmatpush1.bf16.msra.mxu1 %v12211_v7  ;;  %v12296_v7 = vld [vmem:[%s13691_s13 + $0x3f8] ss:$28 sps:$4 sm:$0xff]  }
 0x2ca   : > { %4097 = vmatpush1.bf16.msra.mxu0 %v12208_v6  ;;  %4180 = vmatprep.subr.bf16.mxu1 %v12219_v8  ;;  %v12293_v6 = vld [vmem:[%s13691_s13 + $0xaf0] ss:$28 sps:$4 sm:$0xff]  }
 0x2cb   : > { %4098 = vmatprep.subr.bf16.mxu0 %v12216_v55  ;;  %v12301_v55 = vld [vmem:[%s13691_s13 + $0xb2c] ss:$28 sps:$4 sm:$0xff]   ;;  %v12304_v8 = vld [vmem:[%s13691_s13 + $0x434] ss:$28 sps:$4 sm:$0xff]  }
 0x2cd   : > { %4181 = vmatpush1.bf16.msra.mxu1 %v12217_v10  ;;  %v12302_v10 = vld [vmem:[%s13691_s13 + $0x430] ss:$28 sps:$4 sm:$0xff]  }
 0x2ce   : > { %4099 = vmatpush1.bf16.msra.mxu0 %v12214_v9  ;;  %4182 = vmatprep.subr.bf16.mxu1 %v12225_v13  ;;  %v12299_v9 = vld [vmem:[%s13691_s13 + $0xb28] ss:$28 sps:$4 sm:$0xff]  }
 0x2cf   : > { %4100 = vmatprep.subr.bf16.mxu0 %v12222_v11  ;;  %v12307_v11 = vld [vmem:[%s13691_s13 + $0xb64] ss:$28 sps:$4 sm:$0xff]   ;;  %v12310_v13 = vld [vmem:[%s13691_s13 + $0x46c] ss:$28 sps:$4 sm:$0xff]  }
 0x2d1   : > { %4183 = vmatpush1.bf16.msra.mxu1 %v12223_v14  ;;  %v12308_v14 = vld [vmem:[%s13691_s13 + $0x468] ss:$28 sps:$4 sm:$0xff]  }
 0x2d2   : > { %4101 = vmatpush1.bf16.msra.mxu0 %v12220_v60  ;;  %4184 = vmatprep.subr.bf16.mxu1 %v12231_v16  ;;  %v12305_v60 = vld [vmem:[%s13691_s13 + $0xb60] ss:$28 sps:$4 sm:$0xff]  }
 0x2d3   : > { %4102 = vmatprep.subr.bf16.mxu0 %v12228_v15  ;;  %v12313_v15 = vld [vmem:[%s13691_s13 + $0xb9c] ss:$28 sps:$4 sm:$0xff]   ;;  %v12316_v16 = vld [vmem:[%s13691_s13 + $0x4a4] ss:$28 sps:$4 sm:$0xff]  }
 0x2d5   : > { %4185 = vmatpush1.bf16.msra.mxu1 %v12229_v51  ;;  %v12314_v51 = vld [vmem:[%s13691_s13 + $0x4a0] ss:$28 sps:$4 sm:$0xff]  }
 0x2d6   : > { %4103 = vmatpush1.bf16.msra.mxu0 %v12226_v18  ;;  %4186 = vmatprep.subr.bf16.mxu1 %v12237_v45  ;;  %v12311_v18 = vld [vmem:[%s13691_s13 + $0xb98] ss:$28 sps:$4 sm:$0xff]  }
 0x2d7   : > { %4104 = vmatprep.subr.bf16.mxu0 %v12234_v19  ;;  %v12319_v19 = vld [vmem:[%s13691_s13 + $0xbd4] ss:$28 sps:$4 sm:$0xff]   ;;  %v12322_v45 = vld [vmem:[%s13691_s13 + $0x4dc] ss:$28 sps:$4 sm:$0xff]  }
 0x2d9   : > { %4187 = vmatpush1.bf16.msra.mxu1 %v12235_v48  ;;  %v12320_v48 = vld [vmem:[%s13691_s13 + $0x4d8] ss:$28 sps:$4 sm:$0xff]  }
 0x2da   : > { %4105 = vmatpush1.bf16.msra.mxu0 %v12232_v21  ;;  %4188 = vmatprep.subr.bf16.mxu1 %v12243_v28  ;;  %v12317_v21 = vld [vmem:[%s13691_s13 + $0xbd0] ss:$28 sps:$4 sm:$0xff]  }
 0x2db   : > { %4106 = vmatprep.subr.bf16.mxu0 %v12240_v26  ;;  %v12325_v26 = vld [vmem:[%s13691_s13 + $0xc0c] ss:$28 sps:$4 sm:$0xff]   ;;  %v12328_v28 = vld [vmem:[%s13691_s13 + $0x514] ss:$28 sps:$4 sm:$0xff]  }
 0x2dd   : > { %4189 = vmatpush1.bf16.msra.mxu1 %v12241_v31  ;;  %v12326_v31 = vld [vmem:[%s13691_s13 + $0x510] ss:$28 sps:$4 sm:$0xff]  }
 0x2de   : > { %4107 = vmatpush1.bf16.msra.mxu0 %v12238_v29  ;;  %4190 = vmatprep.subr.bf16.mxu1 %v12249_v32  ;;  %v12323_v29 = vld [vmem:[%s13691_s13 + $0xc08] ss:$28 sps:$4 sm:$0xff]  }
 0x2df   : > { %4108 = vmatprep.subr.bf16.mxu0 %v12246_v20  ;;  %v12331_v20 = vld [vmem:[%s13691_s13 + $0xc44] ss:$28 sps:$4 sm:$0xff]   ;;  %v12334_v32 = vld [vmem:[%s13691_s13 + $0x54c] ss:$28 sps:$4 sm:$0xff]  }
 0x2e1   : > { %4191 = vmatpush1.bf16.msra.mxu1 %v12247_v35  ;;  %v12332_v35 = vld [vmem:[%s13691_s13 + $0x548] ss:$28 sps:$4 sm:$0xff]  }
 0x2e2   : > { %4109 = vmatpush1.bf16.msra.mxu0 %v12244_v22  ;;  %4192 = vmatprep.subr.bf16.mxu1 %v12255_v50  ;;  %v12329_v22 = vld [vmem:[%s13691_s13 + $0xc40] ss:$28 sps:$4 sm:$0xff]  }
 0x2e3   : > { %4110 = vmatprep.subr.bf16.mxu0 %v12252_v46  ;;  %v12337_v46 = vld [vmem:[%s13691_s13 + $0xc7c] ss:$28 sps:$4 sm:$0xff]   ;;  %v12340_v50 = vld [vmem:[%s13691_s13 + $0x584] ss:$28 sps:$4 sm:$0xff]  }
 0x2e5   : > { %4193 = vmatpush1.bf16.msra.mxu1 %v12253_v36  ;;  %v12338_v36 = vld [vmem:[%s13691_s13 + $0x580] ss:$28 sps:$4 sm:$0xff]  }
 0x2e6   : > { %4111 = vmatpush1.bf16.msra.mxu0 %v12250_v23  ;;  %4194 = vmatprep.subr.bf16.mxu1 %v12261_v38  ;;  %v12335_v23 = vld [vmem:[%s13691_s13 + $0xc78] ss:$28 sps:$4 sm:$0xff]  }
 0x2e7   : > { %4112 = vmatprep.subr.bf16.mxu0 %v12258_v37  ;;  %v12343_v37 = vld [vmem:[%s13691_s13 + $0xcb4] ss:$28 sps:$4 sm:$0xff]   ;;  %v12346_v38 = vld [vmem:[%s13691_s13 + $0x5bc] ss:$28 sps:$4 sm:$0xff]  }
 0x2e9   : > { %4195 = vmatpush1.bf16.msra.mxu1 %v12259_v27  ;;  %v12344_v27 = vld [vmem:[%s13691_s13 + $0x5b8] ss:$28 sps:$4 sm:$0xff]  }
 0x2ea   : > { %4113 = vmatpush1.bf16.msra.mxu0 %v12256_v24  ;;  %4196 = vmatprep.subr.bf16.mxu1 %v12267_v40  ;;  %v12341_v24 = vld [vmem:[%s13691_s13 + $0xcb0] ss:$28 sps:$4 sm:$0xff]  }
 0x2eb   : > { %4114 = vmatprep.subr.bf16.mxu0 %v12264_v39  ;;  %v12349_v39 = vld [vmem:[%s13691_s13 + $0xcec] ss:$28 sps:$4 sm:$0xff]   ;;  %v12352_v40 = vld [vmem:[%s13691_s13 + $0x5f4] ss:$28 sps:$4 sm:$0xff]  }
 0x2ed   : > { %4197 = vmatpush1.bf16.msra.mxu1 %v12265_v43  ;;  %v12350_v43 = vld [vmem:[%s13691_s13 + $0x5f0] ss:$28 sps:$4 sm:$0xff]  }
 0x2ee   : > { %4115 = vmatpush1.bf16.msra.mxu0 %v12262_v41  ;;  %4198 = vmatprep.subr.bf16.mxu1 %v12273_v44  ;;  %v12347_v41 = vld [vmem:[%s13691_s13 + $0xce8] ss:$28 sps:$4 sm:$0xff]  }
 0x2ef   : > { %4116 = vmatprep.subr.bf16.mxu0 %v12270_v25  ;;  %v12355_v25 = vld [vmem:[%s13691_s13 + $0xd24] ss:$28 sps:$4 sm:$0xff]   ;;  %v12358_v44 = vld [vmem:[%s13691_s13 + $0x62c] ss:$28 sps:$4 sm:$0xff]  }
 0x2f1   : > { %4199 = vmatpush1.bf16.msra.mxu1 %v12271_v56  ;;  %v12356_v56 = vld [vmem:[%s13691_s13 + $0x628] ss:$28 sps:$4 sm:$0xff]  }
 0x2f2   : > { %4117 = vmatpush1.bf16.msra.mxu0 %v12268_v47  ;;  %4200 = vmatprep.subr.bf16.mxu1 %v12279_v52  ;;  %v12353_v47 = vld [vmem:[%s13691_s13 + $0xd20] ss:$28 sps:$4 sm:$0xff]  }
 0x2f3   : > { %4118 = vmatprep.subr.bf16.mxu0 %v12276_v30  ;;  %v12361_v30 = vld [vmem:[%s13691_s13 + $0xd5c] ss:$28 sps:$4 sm:$0xff]   ;;  %v12364_v52 = vld [vmem:[%s13691_s13 + $0x664] ss:$28 sps:$4 sm:$0xff]  }
 0x2f5   : > { %4201 = vmatpush1.bf16.msra.mxu1 %v12277_v57  ;;  %v12362_v57 = vld [vmem:[%s13691_s13 + $0x660] ss:$28 sps:$4 sm:$0xff]  }
 0x2f6   : > { %4119 = vmatpush1.bf16.msra.mxu0 %v12274_v53  ;;  %4211 = vmatprep.subr.bf16.mxu1 %v12286_v59  ;;  %v12359_v53 = vld [vmem:[%s13691_s13 + $0xd58] ss:$28 sps:$4 sm:$0xff]  }
 0x2f7   : > { %4129 = vmatprep.subr.bf16.mxu0 %v12283_v58  ;;  %v12367_v58 = vld [vmem:[%s13691_s13 + $0xd94] ss:$28 sps:$4 sm:$0xff]   ;;  %v12370_v59 = vld [vmem:[%s13691_s13 + $0x69c] ss:$28 sps:$4 sm:$0xff]  }
 0x2f8   : > { %4203 = vmatmul.mubr.bf16.vlgmr.msra.gmra.mrb[4].mxu1 %v13914_v42 }
 0x2f9   : > { %4121 = vmatmul.mubr.bf16.vlgmr.msra.gmra.mrb[0].mxu0 %v13893_v17  ;;  %4212 = vmatpush1.bf16.msra.mxu1 %v12284_v62  ;;  %v12368_v62 = vld [vmem:[%s13691_s13 + $0x698] ss:$28 sps:$4 sm:$0xff]  }
 0x2fa   : > { %4130 = vmatpush1.bf16.msra.mxu0 %v12281_v61  ;;  %4213 = vmatprep.subr.bf16.mxu1 %v12292_v0  ;;  %v12365_v61 = vld [vmem:[%s13691_s13 + $0xd90] ss:$28 sps:$4 sm:$0xff]  }
 0x2fb   : > { %4131 = vmatprep.subr.bf16.mxu0 %v12289_v63  ;;  %4161 = vmatprep.mubr.bf16.mxu0 %v14000_v1  ;;  %v12373_v63 = vld [vmem:[%s13691_s13 + $0xdcc] ss:$28 sps:$4 sm:$0xff]   ;;  %v12376_v0 = vld [vmem:[%s13691_s13 + $0x6d4] ss:$28 sps:$4 sm:$0xff]  }
 0x2fc   : > { %4243 = vmatprep.mubr.bf16.mxu1 %v13900_v34 }
 0x2fd   : > { %4214 = vmatpush1.bf16.msra.mxu1 %v12290_v3  ;;  %v12374_v3 = vld [vmem:[%s13691_s13 + $0x6d0] ss:$28 sps:$4 sm:$0xff]  }
 0x2fe   : > { %4132 = vmatpush1.bf16.msra.mxu0 %v12287_v2  ;;  %4215 = vmatprep.subr.bf16.mxu1 %v12298_v5  ;;  %v12371_v2 = vld [vmem:[%s13691_s13 + $0xdc8] ss:$28 sps:$4 sm:$0xff]   ;;  %v12382_v5 = vld [vmem:[%s13691_s13 + $0x14] ss:$28 sps:$4 sm:$0xff]  }
 0x2ff   : > { %4133 = vmatprep.subr.bf16.mxu0 %v12295_v4  ;;  %v12379_v4 = vld [vmem:[%s13691_s13 + $0x70c] ss:$28 sps:$4 sm:$0xff]  }
 0x301   : > { %4216 = vmatpush1.bf16.msra.mxu1 %v12296_v7  ;;  %v12377_v7 = vld [vmem:[%s13691_s13 + $0x708] ss:$28 sps:$4 sm:$0xff]  }
 0x302   : > { %4134 = vmatpush1.bf16.msra.mxu0 %v12293_v6  ;;  %4217 = vmatprep.subr.bf16.mxu1 %v12304_v8  ;;  %v14068_v6 = vcombine.high %v13893_v17, %v13893_v17  ;;  %v12385_v8 = vld [vmem:[%s13691_s13 + $0x744] ss:$28 sps:$4 sm:$0xff]  }
 0x303   : > { %4135 = vmatprep.subr.bf16.mxu0 %v12301_v55  ;;  %v12380_v55 = vld [vmem:[%s13691_s13 + $0x10] ss:$28 sps:$4 sm:$0xff]  }
 0x305   : > { %4218 = vmatpush1.bf16.msra.mxu1 %v12302_v10  ;;  %v12383_v10 = vld [vmem:[%s13691_s13 + $0x740] ss:$28 sps:$4 sm:$0xff]  }
 0x306   : > { %4136 = vmatpush1.bf16.msra.mxu0 %v12299_v9  ;;  %4219 = vmatprep.subr.bf16.mxu1 %v12310_v13  ;;  %v12388_v9 = vld [vmem:[%s13691_s13 + $0x4c] ss:$28 sps:$4 sm:$0xff]   ;;  %v12391_v13 = vld [vmem:[%s13691_s13 + $0x77c] ss:$28 sps:$4 sm:$0xff]  }
 0x307   : > { %4137 = vmatprep.subr.bf16.mxu0 %v12307_v11  ;;  %v12386_v11 = vld [vmem:[%s13691_s13 + $0x48] ss:$28 sps:$4 sm:$0xff]  }
 0x309   : > { %4220 = vmatpush1.bf16.msra.mxu1 %v12308_v14  ;;  %v12389_v14 = vld [vmem:[%s13691_s13 + $0x778] ss:$28 sps:$4 sm:$0xff]  }
 0x30a   : > { %4138 = vmatpush1.bf16.msra.mxu0 %v12305_v60  ;;  %4221 = vmatprep.subr.bf16.mxu1 %v12316_v16  ;;  %v12394_v60 = vld [vmem:[%s13691_s13 + $0x84] ss:$28 sps:$4 sm:$0xff]   ;;  %v12397_v16 = vld [vmem:[%s13691_s13 + $0x7b4] ss:$28 sps:$4 sm:$0xff]  }
 0x30b   : > { %4139 = vmatprep.subr.bf16.mxu0 %v12313_v15  ;;  %v12392_v15 = vld [vmem:[%s13691_s13 + $0x80] ss:$28 sps:$4 sm:$0xff]  }
 0x30d   : > { %4222 = vmatpush1.bf16.msra.mxu1 %v12314_v51  ;;  %v12395_v51 = vld [vmem:[%s13691_s13 + $0x7b0] ss:$28 sps:$4 sm:$0xff]  }
 0x30e   : > { %4140 = vmatpush1.bf16.msra.mxu0 %v12311_v18  ;;  %4223 = vmatprep.subr.bf16.mxu1 %v12322_v45  ;;  %v12400_v18 = vld [vmem:[%s13691_s13 + $0xbc] ss:$28 sps:$4 sm:$0xff]   ;;  %v12403_v45 = vld [vmem:[%s13691_s13 + $0x7ec] ss:$28 sps:$4 sm:$0xff]  }
 0x30f   : > { %4141 = vmatprep.subr.bf16.mxu0 %v12319_v19  ;;  %v12398_v19 = vld [vmem:[%s13691_s13 + $0xb8] ss:$28 sps:$4 sm:$0xff]  }
 0x311   : > { %4224 = vmatpush1.bf16.msra.mxu1 %v12320_v48  ;;  %v12401_v48 = vld [vmem:[%s13691_s13 + $0x7e8] ss:$28 sps:$4 sm:$0xff]  }
 0x312   : > { %4142 = vmatpush1.bf16.msra.mxu0 %v12317_v21  ;;  %4225 = vmatprep.subr.bf16.mxu1 %v12328_v28  ;;  %v12406_v21 = vld [vmem:[%s13691_s13 + $0xf4] ss:$28 sps:$4 sm:$0xff]   ;;  %v12409_v28 = vld [vmem:[%s13691_s13 + $0x824] ss:$28 sps:$4 sm:$0xff]  }
 0x313   : > { %4143 = vmatprep.subr.bf16.mxu0 %v12325_v26  ;;  %v12404_v26 = vld [vmem:[%s13691_s13 + $0xf0] ss:$28 sps:$4 sm:$0xff]  }
 0x315   : > { %4226 = vmatpush1.bf16.msra.mxu1 %v12326_v31  ;;  %v12407_v31 = vld [vmem:[%s13691_s13 + $0x820] ss:$28 sps:$4 sm:$0xff]  }
 0x316   : > { %4144 = vmatpush1.bf16.msra.mxu0 %v12323_v29  ;;  %4227 = vmatprep.subr.bf16.mxu1 %v12334_v32  ;;  %v12412_v29 = vld [vmem:[%s13691_s13 + $0x12c] ss:$28 sps:$4 sm:$0xff]   ;;  %v12415_v32 = vld [vmem:[%s13691_s13 + $0x85c] ss:$28 sps:$4 sm:$0xff]  }
 0x317   : > { %4145 = vmatprep.subr.bf16.mxu0 %v12331_v20  ;;  %v12410_v20 = vld [vmem:[%s13691_s13 + $0x128] ss:$28 sps:$4 sm:$0xff]  }
 0x319   : > { %4228 = vmatpush1.bf16.msra.mxu1 %v12332_v35  ;;  %v12413_v35 = vld [vmem:[%s13691_s13 + $0x858] ss:$28 sps:$4 sm:$0xff]  }
 0x31a   : > { %4146 = vmatpush1.bf16.msra.mxu0 %v12329_v22  ;;  %4229 = vmatprep.subr.bf16.mxu1 %v12340_v50  ;;  %v12418_v22 = vld [vmem:[%s13691_s13 + $0x164] ss:$28 sps:$4 sm:$0xff]   ;;  %v12421_v50 = vld [vmem:[%s13691_s13 + $0x894] ss:$28 sps:$4 sm:$0xff]  }
 0x31b   : > { %4147 = vmatprep.subr.bf16.mxu0 %v12337_v46  ;;  %v12416_v46 = vld [vmem:[%s13691_s13 + $0x160] ss:$28 sps:$4 sm:$0xff]  }
 0x31d   : > { %4230 = vmatpush1.bf16.msra.mxu1 %v12338_v36  ;;  %v12419_v36 = vld [vmem:[%s13691_s13 + $0x890] ss:$28 sps:$4 sm:$0xff]  }
 0x31e   : > { %4148 = vmatpush1.bf16.msra.mxu0 %v12335_v23  ;;  %4231 = vmatprep.subr.bf16.mxu1 %v12346_v38  ;;  %v12424_v23 = vld [vmem:[%s13691_s13 + $0x19c] ss:$28 sps:$4 sm:$0xff]   ;;  %v12427_v38 = vld [vmem:[%s13691_s13 + $0x8cc] ss:$28 sps:$4 sm:$0xff]  }
 0x31f   : > { %4149 = vmatprep.subr.bf16.mxu0 %v12343_v37  ;;  %v12422_v37 = vld [vmem:[%s13691_s13 + $0x198] ss:$28 sps:$4 sm:$0xff]  }
 0x321   : > { %4232 = vmatpush1.bf16.msra.mxu1 %v12344_v27  ;;  %v12425_v27 = vld [vmem:[%s13691_s13 + $0x8c8] ss:$28 sps:$4 sm:$0xff]  }
 0x322   : > { %4150 = vmatpush1.bf16.msra.mxu0 %v12341_v24  ;;  %4233 = vmatprep.subr.bf16.mxu1 %v12352_v40  ;;  %v12430_v24 = vld [vmem:[%s13691_s13 + $0x1d4] ss:$28 sps:$4 sm:$0xff]   ;;  %v12433_v40 = vld [vmem:[%s13691_s13 + $0x904] ss:$28 sps:$4 sm:$0xff]  }
 0x323   : > { %4151 = vmatprep.subr.bf16.mxu0 %v12349_v39  ;;  %v12428_v39 = vld [vmem:[%s13691_s13 + $0x1d0] ss:$28 sps:$4 sm:$0xff]  }
 0x325   : > { %4234 = vmatpush1.bf16.msra.mxu1 %v12350_v43  ;;  %v12431_v43 = vld [vmem:[%s13691_s13 + $0x900] ss:$28 sps:$4 sm:$0xff]  }
 0x326   : > { %4152 = vmatpush1.bf16.msra.mxu0 %v12347_v41  ;;  %4235 = vmatprep.subr.bf16.mxu1 %v12358_v44  ;;  %v12436_v41 = vld [vmem:[%s13691_s13 + $0x20c] ss:$28 sps:$4 sm:$0xff]   ;;  %v12439_v44 = vld [vmem:[%s13691_s13 + $0x93c] ss:$28 sps:$4 sm:$0xff]  }
 0x327   : > { %4153 = vmatprep.subr.bf16.mxu0 %v12355_v25  ;;  %v12434_v25 = vld [vmem:[%s13691_s13 + $0x208] ss:$28 sps:$4 sm:$0xff]  }
 0x329   : > { %4236 = vmatpush1.bf16.msra.mxu1 %v12356_v56  ;;  %v12437_v56 = vld [vmem:[%s13691_s13 + $0x938] ss:$28 sps:$4 sm:$0xff]  }
 0x32a   : > { %4154 = vmatpush1.bf16.msra.mxu0 %v12353_v47  ;;  %4237 = vmatprep.subr.bf16.mxu1 %v12364_v52  ;;  %v12442_v47 = vld [vmem:[%s13691_s13 + $0x244] ss:$28 sps:$4 sm:$0xff]   ;;  %v12445_v52 = vld [vmem:[%s13691_s13 + $0x974] ss:$28 sps:$4 sm:$0xff]  }
 0x32b   : > { %4155 = vmatprep.subr.bf16.mxu0 %v12361_v30  ;;  %v12440_v30 = vld [vmem:[%s13691_s13 + $0x240] ss:$28 sps:$4 sm:$0xff]  }
 0x32d   : > { %4238 = vmatpush1.bf16.msra.mxu1 %v12362_v57  ;;  %v12443_v57 = vld [vmem:[%s13691_s13 + $0x970] ss:$28 sps:$4 sm:$0xff]  }
 0x32e   : > { %4156 = vmatpush1.bf16.msra.mxu0 %v12359_v53  ;;  %4239 = vmatprep.subr.bf16.mxu1 %v12370_v59  ;;  %v12448_v53 = vld [vmem:[%s13691_s13 + $0x27c] ss:$28 sps:$4 sm:$0xff]   ;;  %v12451_v59 = vld [vmem:[%s13691_s13 + $0x9ac] ss:$28 sps:$4 sm:$0xff]  }
 0x32f   : > { %4157 = vmatprep.subr.bf16.mxu0 %v12367_v58  ;;  %v12446_v58 = vld [vmem:[%s13691_s13 + $0x278] ss:$28 sps:$4 sm:$0xff]  }
 0x331   : > { %4240 = vmatpush1.bf16.msra.mxu1 %v12368_v62  ;;  %v12449_v62 = vld [vmem:[%s13691_s13 + $0x9a8] ss:$28 sps:$4 sm:$0xff]  }
 0x332   : > { %4158 = vmatpush1.bf16.msra.mxu0 %v12365_v61  ;;  %4241 = vmatprep.subr.bf16.mxu1 %v12376_v0  ;;  %v12454_v61 = vld [vmem:[%s13691_s13 + $0x2b4] ss:$28 sps:$4 sm:$0xff]   ;;  %v12457_v0 = vld [vmem:[%s13691_s13 + $0x9e4] ss:$28 sps:$4 sm:$0xff]  }
 0x333   : > { %4159 = vmatprep.subr.bf16.mxu0 %v12373_v63  ;;  %v12452_v63 = vld [vmem:[%s13691_s13 + $0x2b0] ss:$28 sps:$4 sm:$0xff]  }
 0x335   : > { %4242 = vmatpush1.bf16.msra.mxu1 %v12374_v3  ;;  %v12455_v3 = vld [vmem:[%s13691_s13 + $0x9e0] ss:$28 sps:$4 sm:$0xff]  }
 0x336   : > { %4160 = vmatpush1.bf16.msra.mxu0 %v12371_v2  ;;  %4252 = vmatprep.subr.bf16.mxu1 %v12379_v4  ;;  %v12460_v2 = vld [vmem:[%s13691_s13 + $0x2ec] ss:$28 sps:$4 sm:$0xff]  }
 0x337   : > { %4334 = vmatprep.subr.bf16.mxu0 %v12382_v5  ;;  %v12458_v4 = vld [vmem:[%s13691_s13 + $0x2e8] ss:$28 sps:$4 sm:$0xff]   ;;  %v12463_v5 = vld [vmem:[%s13691_s13 + $0xa1c] ss:$28 sps:$4 sm:$0xff]  }
 0x338   : > { %4244 = vmatmul.mubr.bf16.vlgmr.msra.gmra.mrb[4].mxu1 %v13922_v49 }
 0x339   : > { %4162 = vmatmul.mubr.bf16.vlgmr.msra.gmra.mrb[0].mxu0 %v14068_v6  ;;  %4253 = vmatpush1.bf16.msra.mxu1 %v12377_v7  ;;  %v12466_v7 = vld [vmem:[%s13691_s13 + $0x324] ss:$28 sps:$4 sm:$0xff]  }
 0x33a   : > { %4335 = vmatpush1.bf16.msra.mxu0 %v12380_v55  ;;  %4254 = vmatprep.subr.bf16.mxu1 %v12385_v8  ;;  %v12461_v55 = vld [vmem:[%s13691_s13 + $0xa18] ss:$28 sps:$4 sm:$0xff]   ;;  %v12464_v8 = vld [vmem:[%s13691_s13 + $0x320] ss:$28 sps:$4 sm:$0xff]  }
 0x33b   : > { %4336 = vmatprep.subr.bf16.mxu0 %v12388_v9  ;;  %4284 = vmatprep.mubr.bf16.mxu1 %v13928_v54  ;;  %v12469_v9 = vld [vmem:[%s13691_s13 + $0xa54] ss:$28 sps:$4 sm:$0xff]  }
 0x33c   : > { %4366 = vmatprep.mubr.bf16.mxu0 %v13890_v33 }
 0x33d   : > { %4255 = vmatpush1.bf16.msra.mxu1 %v12383_v10  ;;  %v12472_v10 = vld [vmem:[%s13691_s13 + $0x35c] ss:$28 sps:$4 sm:$0xff]  }
 0x33e   : > { %4337 = vmatpush1.bf16.msra.mxu0 %v12386_v11  ;;  %4256 = vmatprep.subr.bf16.mxu1 %v12391_v13  ;;  %v12467_v11 = vld [vmem:[%s13691_s13 + $0xa50] ss:$28 sps:$4 sm:$0xff]   ;;  %v12470_v13 = vld [vmem:[%s13691_s13 + $0x358] ss:$28 sps:$4 sm:$0xff]  }
 0x33f   : > { %4338 = vmatprep.subr.bf16.mxu0 %v12394_v60  ;;  %v12475_v60 = vld [vmem:[%s13691_s13 + $0xa8c] ss:$28 sps:$4 sm:$0xff]  }
 0x341   : > { %4257 = vmatpush1.bf16.msra.mxu1 %v12389_v14  ;;  %v12478_v14 = vld [vmem:[%s13691_s13 + $0x394] ss:$28 sps:$4 sm:$0xff]  }
 0x342   : > { %4339 = vmatpush1.bf16.msra.mxu0 %v12392_v15  ;;  %4258 = vmatprep.subr.bf16.mxu1 %v12397_v16  ;;  %v12473_v15 = vld [vmem:[%s13691_s13 + $0xa88] ss:$28 sps:$4 sm:$0xff]   ;;  %v12476_v16 = vld [vmem:[%s13691_s13 + $0x390] ss:$28 sps:$4 sm:$0xff]  }
 0x343   : > { %4340 = vmatprep.subr.bf16.mxu0 %v12400_v18  ;;  %v12481_v18 = vld [vmem:[%s13691_s13 + $0xac4] ss:$28 sps:$4 sm:$0xff]  }
 0x345   : > { %4259 = vmatpush1.bf16.msra.mxu1 %v12395_v51  ;;  %v12484_v51 = vld [vmem:[%s13691_s13 + $0x3cc] ss:$28 sps:$4 sm:$0xff]  }
 0x346   : > { %4341 = vmatpush1.bf16.msra.mxu0 %v12398_v19  ;;  %4260 = vmatprep.subr.bf16.mxu1 %v12403_v45  ;;  %v12479_v19 = vld [vmem:[%s13691_s13 + $0xac0] ss:$28 sps:$4 sm:$0xff]   ;;  %v12482_v45 = vld [vmem:[%s13691_s13 + $0x3c8] ss:$28 sps:$4 sm:$0xff]  }
 0x347   : > { %4342 = vmatprep.subr.bf16.mxu0 %v12406_v21  ;;  %v12487_v21 = vld [vmem:[%s13691_s13 + $0xafc] ss:$28 sps:$4 sm:$0xff]  }
 0x349   : > { %4261 = vmatpush1.bf16.msra.mxu1 %v12401_v48  ;;  %v12490_v48 = vld [vmem:[%s13691_s13 + $0x404] ss:$28 sps:$4 sm:$0xff]  }
 0x34a   : > { %4343 = vmatpush1.bf16.msra.mxu0 %v12404_v26  ;;  %4262 = vmatprep.subr.bf16.mxu1 %v12409_v28  ;;  %v12485_v26 = vld [vmem:[%s13691_s13 + $0xaf8] ss:$28 sps:$4 sm:$0xff]   ;;  %v12488_v28 = vld [vmem:[%s13691_s13 + $0x400] ss:$28 sps:$4 sm:$0xff]  }
 0x34b   : > { %4344 = vmatprep.subr.bf16.mxu0 %v12412_v29  ;;  %v12493_v29 = vld [vmem:[%s13691_s13 + $0xb34] ss:$28 sps:$4 sm:$0xff]  }
 0x34d   : > { %4263 = vmatpush1.bf16.msra.mxu1 %v12407_v31  ;;  %v12496_v31 = vld [vmem:[%s13691_s13 + $0x43c] ss:$28 sps:$4 sm:$0xff]  }
 0x34e   : > { %4345 = vmatpush1.bf16.msra.mxu0 %v12410_v20  ;;  %4264 = vmatprep.subr.bf16.mxu1 %v12415_v32  ;;  %v12491_v20 = vld [vmem:[%s13691_s13 + $0xb30] ss:$28 sps:$4 sm:$0xff]   ;;  %v12494_v32 = vld [vmem:[%s13691_s13 + $0x438] ss:$28 sps:$4 sm:$0xff]  }
 0x34f   : > { %4346 = vmatprep.subr.bf16.mxu0 %v12418_v22  ;;  %v12499_v22 = vld [vmem:[%s13691_s13 + $0xb6c] ss:$28 sps:$4 sm:$0xff]  }
 0x351   : > { %4265 = vmatpush1.bf16.msra.mxu1 %v12413_v35  ;;  %v12502_v35 = vld [vmem:[%s13691_s13 + $0x474] ss:$28 sps:$4 sm:$0xff]  }
 0x352   : > { %4347 = vmatpush1.bf16.msra.mxu0 %v12416_v46  ;;  %4266 = vmatprep.subr.bf16.mxu1 %v12421_v50  ;;  %v12497_v46 = vld [vmem:[%s13691_s13 + $0xb68] ss:$28 sps:$4 sm:$0xff]   ;;  %v12500_v50 = vld [vmem:[%s13691_s13 + $0x470] ss:$28 sps:$4 sm:$0xff]  }
 0x353   : > { %4348 = vmatprep.subr.bf16.mxu0 %v12424_v23  ;;  %v12505_v23 = vld [vmem:[%s13691_s13 + $0xba4] ss:$28 sps:$4 sm:$0xff]  }
 0x355   : > { %4267 = vmatpush1.bf16.msra.mxu1 %v12419_v36  ;;  %v12508_v36 = vld [vmem:[%s13691_s13 + $0x4ac] ss:$28 sps:$4 sm:$0xff]  }
 0x356   : > { %4349 = vmatpush1.bf16.msra.mxu0 %v12422_v37  ;;  %4268 = vmatprep.subr.bf16.mxu1 %v12427_v38  ;;  %v12503_v37 = vld [vmem:[%s13691_s13 + $0xba0] ss:$28 sps:$4 sm:$0xff]   ;;  %v12506_v38 = vld [vmem:[%s13691_s13 + $0x4a8] ss:$28 sps:$4 sm:$0xff]  }
 0x357   : > { %4350 = vmatprep.subr.bf16.mxu0 %v12430_v24  ;;  %v12511_v24 = vld [vmem:[%s13691_s13 + $0xbdc] ss:$28 sps:$4 sm:$0xff]  }
 0x359   : > { %4269 = vmatpush1.bf16.msra.mxu1 %v12425_v27  ;;  %v12514_v27 = vld [vmem:[%s13691_s13 + $0x4e4] ss:$28 sps:$4 sm:$0xff]  }
 0x35a   : > { %4351 = vmatpush1.bf16.msra.mxu0 %v12428_v39  ;;  %4270 = vmatprep.subr.bf16.mxu1 %v12433_v40  ;;  %v12509_v40 = vld [vmem:[%s13691_s13 + $0xbd8] ss:$28 sps:$4 sm:$0xff]  }
 0x35b   : > { %4352 = vmatprep.subr.bf16.mxu0 %v12436_v41 }
 0x35d   : > { %4271 = vmatpush1.bf16.msra.mxu1 %v12431_v43  ;;  %v12512_v43 = vld [vmem:[%s13691_s13 + $0x4e0] ss:$28 sps:$4 sm:$0xff]  }
 0x35e   : > { %4353 = vmatpush1.bf16.msra.mxu0 %v12434_v25  ;;  %4272 = vmatprep.subr.bf16.mxu1 %v12439_v44 }
 0x35f   : > { %4354 = vmatprep.subr.bf16.mxu0 %v12442_v47  ;;  %v12517_v47 = vld [vmem:[%s13691_s13 + $0xc14] ss:$28 sps:$4 sm:$0xff]  }
 0x361   : > { %4273 = vmatpush1.bf16.msra.mxu1 %v12437_v56  ;;  %v12520_v56 = vld [vmem:[%s13691_s13 + $0x51c] ss:$28 sps:$4 sm:$0xff]  }
 0x362   : > { %4355 = vmatpush1.bf16.msra.mxu0 %v12440_v30  ;;  %4274 = vmatprep.subr.bf16.mxu1 %v12445_v52  ;;  %v12515_v30 = vld [vmem:[%s13691_s13 + $0xc10] ss:$28 sps:$4 sm:$0xff]   ;;  %v12518_v52 = vld [vmem:[%s13691_s13 + $0x518] ss:$28 sps:$4 sm:$0xff]  }
 0x363   : > { %4356 = vmatprep.subr.bf16.mxu0 %v12448_v53  ;;  %v12523_v53 = vld [vmem:[%s13691_s13 + $0xc4c] ss:$28 sps:$4 sm:$0xff]  }
 0x365   : > { %4275 = vmatpush1.bf16.msra.mxu1 %v12443_v57  ;;  %v12526_v57 = vld [vmem:[%s13691_s13 + $0x554] ss:$28 sps:$4 sm:$0xff]  }
 0x366   : > { %4357 = vmatpush1.bf16.msra.mxu0 %v12446_v58  ;;  %4276 = vmatprep.subr.bf16.mxu1 %v12451_v59  ;;  %v12521_v58 = vld [vmem:[%s13691_s13 + $0xc48] ss:$28 sps:$4 sm:$0xff]   ;;  %v12524_v59 = vld [vmem:[%s13691_s13 + $0x550] ss:$28 sps:$4 sm:$0xff]  }
 0x367   : > { %4358 = vmatprep.subr.bf16.mxu0 %v12454_v61  ;;  %v12529_v61 = vld [vmem:[%s13691_s13 + $0xc84] ss:$28 sps:$4 sm:$0xff]  }
 0x369   : > { %4277 = vmatpush1.bf16.msra.mxu1 %v12449_v62  ;;  %v12532_v62 = vld [vmem:[%s13691_s13 + $0x58c] ss:$28 sps:$4 sm:$0xff]  }
 0x36a   : > { %4359 = vmatpush1.bf16.msra.mxu0 %v12452_v63  ;;  %4278 = vmatprep.subr.bf16.mxu1 %v12457_v0  ;;  %v12527_v63 = vld [vmem:[%s13691_s13 + $0xc80] ss:$28 sps:$4 sm:$0xff]   ;;  %v12530_v0 = vld [vmem:[%s13691_s13 + $0x588] ss:$28 sps:$4 sm:$0xff]  }
 0x36b   : > { %4360 = vmatprep.subr.bf16.mxu0 %v12460_v2  ;;  %v12535_v2 = vld [vmem:[%s13691_s13 + $0xcbc] ss:$28 sps:$4 sm:$0xff]  }
 0x36d   : > { %4279 = vmatpush1.bf16.msra.mxu1 %v12455_v3  ;;  %v12538_v3 = vld [vmem:[%s13691_s13 + $0x5c4] ss:$28 sps:$4 sm:$0xff]  }
 0x36e   : > { %4361 = vmatpush1.bf16.msra.mxu0 %v12458_v4  ;;  %4280 = vmatprep.subr.bf16.mxu1 %v12463_v5  ;;  %v12533_v4 = vld [vmem:[%s13691_s13 + $0xcb8] ss:$28 sps:$4 sm:$0xff]   ;;  %v12536_v5 = vld [vmem:[%s13691_s13 + $0x5c0] ss:$28 sps:$4 sm:$0xff]  }
 0x36f   : > { %4362 = vmatprep.subr.bf16.mxu0 %v12466_v7  ;;  %v12541_v7 = vld [vmem:[%s13691_s13 + $0xcf4] ss:$28 sps:$4 sm:$0xff]  }
 0x371   : > { %4281 = vmatpush1.bf16.msra.mxu1 %v12461_v55  ;;  %v12544_v55 = vld [vmem:[%s13691_s13 + $0x5fc] ss:$28 sps:$4 sm:$0xff]  }
 0x372   : > { %4363 = vmatpush1.bf16.msra.mxu0 %v12464_v8  ;;  %4282 = vmatprep.subr.bf16.mxu1 %v12469_v9  ;;  %v12539_v8 = vld [vmem:[%s13691_s13 + $0xcf0] ss:$28 sps:$4 sm:$0xff]   ;;  %v12542_v9 = vld [vmem:[%s13691_s13 + $0x5f8] ss:$28 sps:$4 sm:$0xff]  }
 0x373   : > { %4364 = vmatprep.subr.bf16.mxu0 %v12472_v10  ;;  %v12547_v10 = vld [vmem:[%s13691_s13 + $0xd2c] ss:$28 sps:$4 sm:$0xff]  }
 0x375   : > { %4283 = vmatpush1.bf16.msra.mxu1 %v12467_v11  ;;  %v12550_v11 = vld [vmem:[%s13691_s13 + $0x634] ss:$28 sps:$4 sm:$0xff]  }
 0x376   : > { %4365 = vmatpush1.bf16.msra.mxu0 %v12470_v13  ;;  %4293 = vmatprep.subr.bf16.mxu1 %v12475_v60  ;;  %v12545_v13 = vld [vmem:[%s13691_s13 + $0xd28] ss:$28 sps:$4 sm:$0xff]   ;;  %v12548_v60 = vld [vmem:[%s13691_s13 + $0x630] ss:$28 sps:$4 sm:$0xff]  }
 0x377   : > { %4375 = vmatprep.subr.bf16.mxu0 %v12478_v14  ;;  %v12553_v14 = vld [vmem:[%s13691_s13 + $0xd64] ss:$28 sps:$4 sm:$0xff]  }
 0x378   : > { %4285 = vmatmul.mubr.bf16.vlgmr.msra.gmra.mrb[4].mxu1 %v13893_v17 }
 0x379   : > { %4367 = vmatmul.mubr.bf16.vlgmr.msra.gmra.mrb[4].mxu0 %v13914_v42  ;;  %4294 = vmatpush1.bf16.msra.mxu1 %v12473_v15  ;;  %v12556_v15 = vld [vmem:[%s13691_s13 + $0x66c] ss:$28 sps:$4 sm:$0xff]  }
 0x37a   : > { %4376 = vmatpush1.bf16.msra.mxu0 %v12476_v16  ;;  %4295 = vmatprep.subr.bf16.mxu1 %v12481_v18  ;;  %v12551_v16 = vld [vmem:[%s13691_s13 + $0xd60] ss:$28 sps:$4 sm:$0xff]   ;;  %v12554_v18 = vld [vmem:[%s13691_s13 + $0x668] ss:$28 sps:$4 sm:$0xff]  }
 0x37b   : > { %4377 = vmatprep.subr.bf16.mxu0 %v12484_v51  ;;  %4325 = vmatprep.mubr.bf16.mxu1 %v14000_v1  ;;  %v12559_v51 = vld [vmem:[%s13691_s13 + $0xd9c] ss:$28 sps:$4 sm:$0xff]  }
 0x37c   : > { %4407 = vmatprep.mubr.bf16.mxu0 %v13900_v34 }
 0x37d   : > { %4296 = vmatpush1.bf16.msra.mxu1 %v12479_v19  ;;  %v12562_v19 = vld [vmem:[%s13691_s13 + $0x6a4] ss:$28 sps:$4 sm:$0xff]  }
 0x37e   : > { %4378 = vmatpush1.bf16.msra.mxu0 %v12482_v45  ;;  %4297 = vmatprep.subr.bf16.mxu1 %v12487_v21  ;;  %v12557_v45 = vld [vmem:[%s13691_s13 + $0xd98] ss:$28 sps:$4 sm:$0xff]   ;;  %v12560_v21 = vld [vmem:[%s13691_s13 + $0x6a0] ss:$28 sps:$4 sm:$0xff]  }
 0x37f   : > { %4379 = vmatprep.subr.bf16.mxu0 %v12490_v48  ;;  %v12565_v48 = vld [vmem:[%s13691_s13 + $0xdd4] ss:$28 sps:$4 sm:$0xff]  }
 0x381   : > { %4298 = vmatpush1.bf16.msra.mxu1 %v12485_v26  ;;  %v12568_v26 = vld [vmem:[%s13691_s13 + $0x6dc] ss:$28 sps:$4 sm:$0xff]  }
 0x382   : > { %4380 = vmatpush1.bf16.msra.mxu0 %v12488_v28  ;;  %4299 = vmatprep.subr.bf16.mxu1 %v12493_v29  ;;  %v12563_v28 = vld [vmem:[%s13691_s13 + $0xdd0] ss:$28 sps:$4 sm:$0xff]   ;;  %v12566_v29 = vld [vmem:[%s13691_s13 + $0x6d8] ss:$28 sps:$4 sm:$0xff]  }
 0x383   : > { %4381 = vmatprep.subr.bf16.mxu0 %v12496_v31  ;;  %v12571_v31 = vld [vmem:[%s13691_s13 + $0x714] ss:$28 sps:$4 sm:$0xff]  }
 0x385   : > { %4300 = vmatpush1.bf16.msra.mxu1 %v12491_v20  ;;  %v12572_v20 = vld [vmem:[%s13691_s13 + $0x1d8] ss:$28 sps:$4 sm:$0xff]  }
 0x386   : > { %4382 = vmatpush1.bf16.msra.mxu0 %v12494_v32  ;;  %4301 = vmatprep.subr.bf16.mxu1 %v12499_v22  ;;  %v12569_v32 = vld [vmem:[%s13691_s13 + $0x710] ss:$28 sps:$4 sm:$0xff]   ;;  %v12573_v22 = vld [vmem:[%s13691_s13 + $0x18] ss:$28 sps:$4 sm:$0xff]  }
 0x387   : > { %4383 = vmatprep.subr.bf16.mxu0 %v12502_v35  ;;  %v12576_v35 = vld [vmem:[%s13691_s13 + $0x74c] ss:$28 sps:$4 sm:$0xff]  }
 0x389   : > { %4302 = vmatpush1.bf16.msra.mxu1 %v12497_v46  ;;  %v12577_v46 = vld [vmem:[%s13691_s13 + $0x210] ss:$28 sps:$4 sm:$0xff]  }
 0x38a   : > { %4384 = vmatpush1.bf16.msra.mxu0 %v12500_v50  ;;  %4303 = vmatprep.subr.bf16.mxu1 %v12505_v23  ;;  %v12574_v50 = vld [vmem:[%s13691_s13 + $0x748] ss:$28 sps:$4 sm:$0xff]   ;;  %v12578_v23 = vld [vmem:[%s13691_s13 + $0x50] ss:$28 sps:$4 sm:$0xff]  }
 0x38b   : > { %4385 = vmatprep.subr.bf16.mxu0 %v12508_v36  ;;  %v14166_v39 = vpop.f32.mrb[0].mxu1  ;;  %v12581_v36 = vld [vmem:[%s13691_s13 + $0x784] ss:$28 sps:$4 sm:$0xff]  }
 0x38c   : > { %v14169_v41 = vpop.f32.mrb[1].mxu1 }
 0x38d   : > { %v4044_v25 = vpop.f32.mrb[2].mxu1  ;;  %4304 = vmatpush1.bf16.msra.mxu1 %v12503_v37  ;;  %v12582_v37 = vld [vmem:[%s13691_s13 + $0x248] ss:$28 sps:$4 sm:$0xff]  }
 0x38e   : > { %4386 = vmatpush1.bf16.msra.mxu0 %v12506_v38  ;;  %v4045_v44 = vpop.f32.mrb[3].mxu1  ;;  %4305 = vmatprep.subr.bf16.mxu1 %v12511_v24  ;;  %v12579_v38 = vld [vmem:[%s13691_s13 + $0x780] ss:$28 sps:$4 sm:$0xff]   ;;  %v12583_v24 = vld [vmem:[%s13691_s13 + $0x88] ss:$28 sps:$4 sm:$0xff]  }
 0x38f   : > { %4387 = vmatprep.subr.bf16.mxu0 %v12514_v27  ;;  %v12586_v27 = vld [vmem:[%s13691_s13 + $0x7bc] ss:$28 sps:$4 sm:$0xff]   ;;  %v12591_v25 = vld [vmem:[%s13691_s13 + $0x7f4] ss:$28 sps:$4 sm:$0xff]  }
 0x390   : > { %v12592_v44 = vld [vmem:[%s13691_s13 + $0x2b8] ss:$28 sps:$4 sm:$0xff]  }
 0x391   : > { %4306 = vmatpush1.bf16.msra.mxu1 %v12509_v40  ;;  %v12587_v40 = vld [vmem:[%s13691_s13 + $0x280] ss:$28 sps:$4 sm:$0xff]  }
 0x392   : > { %4388 = vmatpush1.bf16.msra.mxu0 %v12512_v43  ;;  %4307 = vmatprep.subr.bf16.mxu1 %v12517_v47  ;;  %v12584_v43 = vld [vmem:[%s13691_s13 + $0x7b8] ss:$28 sps:$4 sm:$0xff]   ;;  %v12589_v47 = vld [vmem:[%s13691_s13 + $0x7f0] ss:$28 sps:$4 sm:$0xff]  }
 0x393   : > { %4389 = vmatprep.subr.bf16.mxu0 %v12520_v56  ;;  %v12593_v56 = vld [vmem:[%s13691_s13 + $0xf8] ss:$28 sps:$4 sm:$0xff]  }
 0x395   : > { %4308 = vmatpush1.bf16.msra.mxu1 %v12515_v30  ;;  %v12596_v30 = vld [vmem:[%s13691_s13 + $0x82c] ss:$28 sps:$4 sm:$0xff]  }
 0x396   : > { %4390 = vmatpush1.bf16.msra.mxu0 %v12518_v52  ;;  %4309 = vmatprep.subr.bf16.mxu1 %v12523_v53  ;;  %v12597_v52 = vld [vmem:[%s13691_s13 + $0x2f0] ss:$28 sps:$4 sm:$0xff]   ;;  %v12594_v53 = vld [vmem:[%s13691_s13 + $0x828] ss:$28 sps:$4 sm:$0xff]  }
 0x397   : > { %4391 = vmatprep.subr.bf16.mxu0 %v12526_v57  ;;  %v12598_v57 = vld [vmem:[%s13691_s13 + $0x130] ss:$28 sps:$4 sm:$0xff]  }
 0x399   : > { %4310 = vmatpush1.bf16.msra.mxu1 %v12521_v58  ;;  %v12601_v58 = vld [vmem:[%s13691_s13 + $0x864] ss:$28 sps:$4 sm:$0xff]  }
 0x39a   : > { %4392 = vmatpush1.bf16.msra.mxu0 %v12524_v59  ;;  %4311 = vmatprep.subr.bf16.mxu1 %v12529_v61  ;;  %v12602_v59 = vld [vmem:[%s13691_s13 + $0x328] ss:$28 sps:$4 sm:$0xff]   ;;  %v12599_v61 = vld [vmem:[%s13691_s13 + $0x860] ss:$28 sps:$4 sm:$0xff]  }
 0x39b   : > { %4393 = vmatprep.subr.bf16.mxu0 %v12532_v62  ;;  %v12603_v62 = vld [vmem:[%s13691_s13 + $0x168] ss:$28 sps:$4 sm:$0xff]  }
 0x39d   : > { %4312 = vmatpush1.bf16.msra.mxu1 %v12527_v63  ;;  %v12606_v63 = vld [vmem:[%s13691_s13 + $0x89c] ss:$28 sps:$4 sm:$0xff]  }
 0x39e   : > { %4394 = vmatpush1.bf16.msra.mxu0 %v12530_v0  ;;  %4313 = vmatprep.subr.bf16.mxu1 %v12535_v2  ;;  %v12607_v0 = vld [vmem:[%s13691_s13 + $0x360] ss:$28 sps:$4 sm:$0xff]   ;;  %v12604_v2 = vld [vmem:[%s13691_s13 + $0x898] ss:$28 sps:$4 sm:$0xff]  }
 0x39f   : > { %4395 = vmatprep.subr.bf16.mxu0 %v12538_v3  ;;  %v12608_v3 = vld [vmem:[%s13691_s13 + $0x1a0] ss:$28 sps:$4 sm:$0xff]  }
 0x3a1   : > { %4314 = vmatpush1.bf16.msra.mxu1 %v12533_v4  ;;  %v12611_v4 = vld [vmem:[%s13691_s13 + $0x8d4] ss:$28 sps:$4 sm:$0xff]  }
 0x3a2   : > { %4396 = vmatpush1.bf16.msra.mxu0 %v12536_v5  ;;  %4315 = vmatprep.subr.bf16.mxu1 %v12541_v7  ;;  %v12612_v5 = vld [vmem:[%s13691_s13 + $0x558] ss:$28 sps:$4 sm:$0xff]   ;;  %v12609_v7 = vld [vmem:[%s13691_s13 + $0x8d0] ss:$28 sps:$4 sm:$0xff]  }
 0x3a3   : > { %4397 = vmatprep.subr.bf16.mxu0 %v12544_v55  ;;  %v12613_v55 = vld [vmem:[%s13691_s13 + $0x398] ss:$28 sps:$4 sm:$0xff]  }
 0x3a5   : > { %4316 = vmatpush1.bf16.msra.mxu1 %v12539_v8  ;;  %v12616_v8 = vld [vmem:[%s13691_s13 + $0x90c] ss:$28 sps:$4 sm:$0xff]  }
 0x3a6   : > { %4398 = vmatpush1.bf16.msra.mxu0 %v12542_v9  ;;  %4317 = vmatprep.subr.bf16.mxu1 %v12547_v10  ;;  %v12617_v9 = vld [vmem:[%s13691_s13 + $0x590] ss:$28 sps:$4 sm:$0xff]   ;;  %v12614_v10 = vld [vmem:[%s13691_s13 + $0x908] ss:$28 sps:$4 sm:$0xff]  }
 0x3a7   : > { %4399 = vmatprep.subr.bf16.mxu0 %v12550_v11  ;;  %v12618_v11 = vld [vmem:[%s13691_s13 + $0x3d0] ss:$28 sps:$4 sm:$0xff]  }
 0x3a9   : > { %4318 = vmatpush1.bf16.msra.mxu1 %v12545_v13  ;;  %v12621_v13 = vld [vmem:[%s13691_s13 + $0x944] ss:$28 sps:$4 sm:$0xff]  }
 0x3aa   : > { %4400 = vmatpush1.bf16.msra.mxu0 %v12548_v60  ;;  %4319 = vmatprep.subr.bf16.mxu1 %v12553_v14  ;;  %v12622_v60 = vld [vmem:[%s13691_s13 + $0x5c8] ss:$28 sps:$4 sm:$0xff]   ;;  %v12619_v14 = vld [vmem:[%s13691_s13 + $0x940] ss:$28 sps:$4 sm:$0xff]  }
 0x3ab   : > { %4401 = vmatprep.subr.bf16.mxu0 %v12556_v15  ;;  %v12626_v15 = vld [vmem:[%s13691_s13 + $0x97c] ss:$28 sps:$4 sm:$0xff]  }
 0x3ad   : > { %4320 = vmatpush1.bf16.msra.mxu1 %v12551_v16  ;;  %v12627_v16 = vld [vmem:[%s13691_s13 + $0x600] ss:$28 sps:$4 sm:$0xff]  }
 0x3ae   : > { %4402 = vmatpush1.bf16.msra.mxu0 %v12554_v18  ;;  %4321 = vmatprep.subr.bf16.mxu1 %v12559_v51  ;;  %v12624_v18 = vld [vmem:[%s13691_s13 + $0x978] ss:$28 sps:$4 sm:$0xff]   ;;  %v12628_v51 = vld [vmem:[%s13691_s13 + $0x440] ss:$28 sps:$4 sm:$0xff]  }
 0x3af   : > { %4403 = vmatprep.subr.bf16.mxu0 %v12562_v19  ;;  %v12632_v19 = vld [vmem:[%s13691_s13 + $0x638] ss:$28 sps:$4 sm:$0xff]  }
 0x3b1   : > { %4322 = vmatpush1.bf16.msra.mxu1 %v12557_v45  ;;  %v12629_v45 = vld [vmem:[%s13691_s13 + $0x9b0] ss:$28 sps:$4 sm:$0xff]  }
 0x3b2   : > { %4404 = vmatpush1.bf16.msra.mxu0 %v12560_v21  ;;  %4323 = vmatprep.subr.bf16.mxu1 %v12565_v48  ;;  %v12633_v21 = vld [vmem:[%s13691_s13 + $0x478] ss:$28 sps:$4 sm:$0xff]   ;;  %v12636_v48 = vld [vmem:[%s13691_s13 + $0x9ec] ss:$28 sps:$4 sm:$0xff]  }
 0x3b3   : > { %4405 = vmatprep.subr.bf16.mxu0 %v12568_v26  ;;  %v12637_v26 = vld [vmem:[%s13691_s13 + $0x670] ss:$28 sps:$4 sm:$0xff]  }
 0x3b5   : > { %4324 = vmatpush1.bf16.msra.mxu1 %v12563_v28  ;;  %v12634_v28 = vld [vmem:[%s13691_s13 + $0x9e8] ss:$28 sps:$4 sm:$0xff]  }
 0x3b6   : > { %4406 = vmatpush1.bf16.msra.mxu0 %v12566_v29  ;;  %10277 = vmatprep.subr.bf16.mxu1 %v12572_v20  ;;  %v12638_v29 = vld [vmem:[%s13691_s13 + $0x4b0] ss:$28 sps:$4 sm:$0xff]   ;;  %v12642_v20 = vld [vmem:[%s13691_s13 + $0x6a8] ss:$28 sps:$4 sm:$0xff]  }
 0x3b7   : > { %4416 = vmatprep.subr.bf16.mxu0 %v12571_v31  ;;  %v12641_v31 = vld [vmem:[%s13691_s13 + $0xa24] ss:$28 sps:$4 sm:$0xff]  }
 0x3b8   : > { %4326 = vmatmul.mubr.bf16.vlgmr.msra.gmra.mrb[4].mxu1 %v14068_v6 }
 0x3b9   : > { %4408 = vmatmul.mubr.bf16.vlgmr.msra.gmra.mrb[4].mxu0 %v13922_v49  ;;  %10278 = vmatpush3.bf16.msra.mxu1 %v12573_v22  ;;  %v12643_v22 = vld [vmem:[%s13691_s13 + $0x4e8] ss:$28 sps:$4 sm:$0xff]  }
 0x3ba   : > { %4417 = vmatpush1.bf16.msra.mxu0 %v12569_v32  ;;  %10279 = vmatprep.subr.bf16.mxu1 %v12577_v46  ;;  %v12639_v32 = vld [vmem:[%s13691_s13 + $0xa20] ss:$28 sps:$4 sm:$0xff]  }
 0x3bb   : > { %4418 = vmatprep.subr.bf16.mxu0 %v12576_v35  ;;  %4530 = vmatprep.mubr.bf16.mxu1 %v13890_v33  ;;  %v12588_v33 = vld [vmem:[%s13691_s13 + $0xc0] ss:$28 sps:$4 sm:$0xff]  }
 0x3bc   : > { %4448 = vmatprep.mubr.bf16.mxu0 %v13928_v54  ;;  %v12646_v35 = vld [vmem:[%s13691_s13 + $0xa5c] ss:$28 sps:$4 sm:$0xff]  }
 0x3bd   : > { %10280 = vmatpush3.bf16.msra.mxu1 %v12578_v23  ;;  %v12647_v46 = vld [vmem:[%s13691_s13 + $0x6e0] ss:$28 sps:$4 sm:$0xff]  }
 0x3be   : > { %4419 = vmatpush1.bf16.msra.mxu0 %v12574_v50  ;;  %10281 = vmatprep.subr.bf16.mxu1 %v12582_v37  ;;  %v12644_v50 = vld [vmem:[%s13691_s13 + $0xa58] ss:$28 sps:$4 sm:$0xff]   ;;  %v12648_v23 = vld [vmem:[%s13691_s13 + $0x520] ss:$28 sps:$4 sm:$0xff]  }
 0x3bf   : > { %4420 = vmatprep.subr.bf16.mxu0 %v12581_v36  ;;  %v12651_v36 = vld [vmem:[%s13691_s13 + $0xa94] ss:$28 sps:$4 sm:$0xff]  }
 0x3c0   : > { %v12652_v37 = vld [vmem:[%s13691_s13 + $0x8d8] ss:$28 sps:$4 sm:$0xff]  }
 0x3c1   : > { %10282 = vmatpush3.bf16.msra.mxu1 %v12583_v24  ;;  %v12653_v24 = vld [vmem:[%s13691_s13 + $0x718] ss:$28 sps:$4 sm:$0xff]  }
 0x3c2   : > { %4421 = vmatpush1.bf16.msra.mxu0 %v12579_v38  ;;  %10283 = vmatprep.subr.bf16.mxu1 %v12587_v40  ;;  %v12649_v38 = vld [vmem:[%s13691_s13 + $0xa90] ss:$28 sps:$4 sm:$0xff]  }
 0x3c3   : > { %4422 = vmatprep.subr.bf16.mxu0 %v12586_v27  ;;  %v12656_v27 = vld [vmem:[%s13691_s13 + $0xacc] ss:$28 sps:$4 sm:$0xff]  }
 0x3c4   : > { %v12657_v40 = vld [vmem:[%s13691_s13 + $0x910] ss:$28 sps:$4 sm:$0xff]  }
 0x3c5   : > { %10284 = vmatpush3.bf16.msra.mxu1 %v12588_v33  ;;  %v12658_v33 = vld [vmem:[%s13691_s13 + $0x750] ss:$28 sps:$4 sm:$0xff]  }
 0x3c6   : > { %4423 = vmatpush1.bf16.msra.mxu0 %v12584_v43  ;;  %10285 = vmatprep.subr.bf16.mxu1 %v12592_v44  ;;  %v12654_v43 = vld [vmem:[%s13691_s13 + $0xac8] ss:$28 sps:$4 sm:$0xff]  }
 0x3c7   : > { %4424 = vmatprep.subr.bf16.mxu0 %v12591_v25  ;;  %v12661_v25 = vld [vmem:[%s13691_s13 + $0xb04] ss:$28 sps:$4 sm:$0xff]  }
 0x3c8   : > { %v12662_v44 = vld [vmem:[%s13691_s13 + $0x948] ss:$28 sps:$4 sm:$0xff]  }
 0x3c9   : > { %10286 = vmatpush3.bf16.msra.mxu1 %v12593_v56  ;;  %v12666_v56 = vld [vmem:[%s13691_s13 + $0xb3c] ss:$28 sps:$4 sm:$0xff]  }
 0x3ca   : > { %4425 = vmatpush1.bf16.msra.mxu0 %v12589_v47  ;;  %10287 = vmatprep.subr.bf16.mxu1 %v12597_v52  ;;  %v12663_v47 = vld [vmem:[%s13691_s13 + $0x788] ss:$28 sps:$4 sm:$0xff]   ;;  %v12664_v52 = vld [vmem:[%s13691_s13 + $0xb38] ss:$28 sps:$4 sm:$0xff]  }
 0x3cb   : > { %4426 = vmatprep.subr.bf16.mxu0 %v12596_v30  ;;  %v12667_v30 = vld [vmem:[%s13691_s13 + $0x980] ss:$28 sps:$4 sm:$0xff]  }
 0x3cd   : > { %10288 = vmatpush3.bf16.msra.mxu1 %v12598_v57  ;;  %v12672_v57 = vld [vmem:[%s13691_s13 + $0x9b8] ss:$28 sps:$4 sm:$0xff]  }
 0x3ce   : > { %4427 = vmatpush1.bf16.msra.mxu0 %v12594_v53  ;;  %10289 = vmatprep.subr.bf16.mxu1 %v12602_v59  ;;  %v12671_v53 = vld [vmem:[%s13691_s13 + $0xb74] ss:$28 sps:$4 sm:$0xff]  }
 0x3cf   : > { %4428 = vmatprep.subr.bf16.mxu0 %v12601_v58  ;;  %v12669_v58 = vld [vmem:[%s13691_s13 + $0xb70] ss:$28 sps:$4 sm:$0xff]   ;;  %v12673_v59 = vld [vmem:[%s13691_s13 + $0x7f8] ss:$28 sps:$4 sm:$0xff]  }
 0x3d1   : > { %10290 = vmatpush3.bf16.msra.mxu1 %v12603_v62  ;;  %v12677_v62 = vld [vmem:[%s13691_s13 + $0x9f0] ss:$28 sps:$4 sm:$0xff]  }
 0x3d2   : > { %4429 = vmatpush1.bf16.msra.mxu0 %v12599_v61  ;;  %10291 = vmatprep.subr.bf16.mxu1 %v12607_v0  ;;  %v12676_v61 = vld [vmem:[%s13691_s13 + $0xbac] ss:$28 sps:$4 sm:$0xff]  }
 0x3d3   : > { %4430 = vmatprep.subr.bf16.mxu0 %v12606_v63  ;;  %v12674_v63 = vld [vmem:[%s13691_s13 + $0xba8] ss:$28 sps:$4 sm:$0xff]   ;;  %v12678_v0 = vld [vmem:[%s13691_s13 + $0x830] ss:$28 sps:$4 sm:$0xff]  }
 0x3d5   : > { %10292 = vmatpush3.bf16.msra.mxu1 %v12608_v3  ;;  %v12682_v3 = vld [vmem:[%s13691_s13 + $0xa28] ss:$28 sps:$4 sm:$0xff]  }
 0x3d6   : > { %4431 = vmatpush1.bf16.msra.mxu0 %v12604_v2  ;;  %10299 = vmatprep.subr.bf16.mxu1 %v12612_v5  ;;  %v12681_v2 = vld [vmem:[%s13691_s13 + $0xbe4] ss:$28 sps:$4 sm:$0xff]  }
 0x3d7   : > { %4432 = vmatprep.subr.bf16.mxu0 %v12611_v4 }
 0x3d8   : > { %4531 = vmatmul.mubr.bf16.vlgmr.msra.gmra.mrb[8].mxu1 %v13914_v42  ;;  %v12623_v42 = vld [vmem:[%s13691_s13 + $0x408] ss:$28 sps:$4 sm:$0xff]  }
 0x3d9   : > { %10300 = vmatpush3.bf16.msra.mxu1 %v12613_v55  ;;  %4570 = vmatprep.mubr.bf16.mxu1 %v13900_v34  ;;  %v12631_v34 = vld [vmem:[%s13691_s13 + $0x9b4] ss:$28 sps:$4 sm:$0xff]  }
 0x3da   : > { %4433 = vmatpush1.bf16.msra.mxu0 %v12609_v7  ;;  %10301 = vmatprep.subr.bf16.mxu1 %v12617_v9  ;;  %v12679_v9 = vld [vmem:[%s13691_s13 + $0xbe0] ss:$28 sps:$4 sm:$0xff]  }
 0x3db   : > { %4434 = vmatprep.subr.bf16.mxu0 %v12616_v8 }
 0x3dd   : > { %10302 = vmatpush3.bf16.msra.mxu1 %v12618_v11 }
 0x3de   : > { %4435 = vmatpush1.bf16.msra.mxu0 %v12614_v10  ;;  %10303 = vmatprep.subr.bf16.mxu1 %v12622_v60  ;;  %v12683_v10 = vld [vmem:[%s13691_s13 + $0x868] ss:$28 sps:$4 sm:$0xff]   ;;  %v12686_v60 = vld [vmem:[%s13691_s13 + $0xc1c] ss:$28 sps:$4 sm:$0xff]  }
 0x3df   : > { %4436 = vmatprep.subr.bf16.mxu0 %v12621_v13 }
 0x3e1   : > { %10304 = vmatpush3.bf16.msra.mxu1 %v12623_v42 }
 0x3e2   : > { %4437 = vmatpush1.bf16.msra.mxu0 %v12619_v14  ;;  %10305 = vmatprep.subr.bf16.mxu1 %v12627_v16  ;;  %v12688_v16 = vld [vmem:[%s13691_s13 + $0x8a0] ss:$28 sps:$4 sm:$0xff]  }
 0x3e3   : > { %4438 = vmatprep.subr.bf16.mxu0 %v12626_v15  ;;  %v12684_v15 = vld [vmem:[%s13691_s13 + $0xc18] ss:$28 sps:$4 sm:$0xff]  }
 0x3e5   : > { %10306 = vmatpush3.bf16.msra.mxu1 %v12628_v51  ;;  %v12692_v51 = vld [vmem:[%s13691_s13 + $0xc58] ss:$28 sps:$4 sm:$0xff]  }
 0x3e6   : > { %4439 = vmatpush1.bf16.msra.mxu0 %v12624_v18  ;;  %10307 = vmatprep.subr.bf16.mxu1 %v12632_v19  ;;  %v12691_v18 = vld [vmem:[%s13691_s13 + $0xc54] ss:$28 sps:$4 sm:$0xff]  }
 0x3e7   : > { %4440 = vmatprep.subr.bf16.mxu0 %v12631_v34  ;;  %v12689_v34 = vld [vmem:[%s13691_s13 + $0xc50] ss:$28 sps:$4 sm:$0xff]   ;;  %v12693_v19 = vld [vmem:[%s13691_s13 + $0xa98] ss:$28 sps:$4 sm:$0xff]  }
 0x3e9   : > { %10308 = vmatpush3.bf16.msra.mxu1 %v12633_v21  ;;  %v12697_v21 = vld [vmem:[%s13691_s13 + $0xc90] ss:$28 sps:$4 sm:$0xff]  }
 0x3ea   : > { %4441 = vmatpush1.bf16.msra.mxu0 %v12629_v45  ;;  %10309 = vmatprep.subr.bf16.mxu1 %v12637_v26  ;;  %v12696_v45 = vld [vmem:[%s13691_s13 + $0xc8c] ss:$28 sps:$4 sm:$0xff]  }
 0x3eb   : > { %4442 = vmatprep.subr.bf16.mxu0 %v12636_v48  ;;  %v12694_v48 = vld [vmem:[%s13691_s13 + $0xc88] ss:$28 sps:$4 sm:$0xff]   ;;  %v12698_v26 = vld [vmem:[%s13691_s13 + $0xad0] ss:$28 sps:$4 sm:$0xff]  }
 0x3ed   : > { %10310 = vmatpush3.bf16.msra.mxu1 %v12638_v29  ;;  %v12702_v29 = vld [vmem:[%s13691_s13 + $0xcc8] ss:$28 sps:$4 sm:$0xff]  }
 0x3ee   : > { %4443 = vmatpush1.bf16.msra.mxu0 %v12634_v28  ;;  %10311 = vmatprep.subr.bf16.mxu1 %v12642_v20  ;;  %v12701_v28 = vld [vmem:[%s13691_s13 + $0xcc4] ss:$28 sps:$4 sm:$0xff]   ;;  %v12706_v20 = vld [vmem:[%s13691_s13 + $0xcfc] ss:$28 sps:$4 sm:$0xff]  }
 0x3ef   : > { %4444 = vmatprep.subr.bf16.mxu0 %v12641_v31  ;;  %v12699_v31 = vld [vmem:[%s13691_s13 + $0xcc0] ss:$28 sps:$4 sm:$0xff]  }
 0x3f1   : > { %10312 = vmatpush3.bf16.msra.mxu1 %v12643_v22  ;;  %v12704_v22 = vld [vmem:[%s13691_s13 + $0xcf8] ss:$28 sps:$4 sm:$0xff]  }
 0x3f2   : > { %4445 = vmatpush1.bf16.msra.mxu0 %v12639_v32  ;;  %10313 = vmatprep.subr.bf16.mxu1 %v12647_v46  ;;  %v12707_v32 = vld [vmem:[%s13691_s13 + $0xd00] ss:$28 sps:$4 sm:$0xff]   ;;  %v12712_v46 = vld [vmem:[%s13691_s13 + $0xd38] ss:$28 sps:$4 sm:$0xff]  }
 0x3f3   : > { %4446 = vmatprep.subr.bf16.mxu0 %v12646_v35  ;;  %v12708_v35 = vld [vmem:[%s13691_s13 + $0xb40] ss:$28 sps:$4 sm:$0xff]  }
 0x3f5   : > { %10314 = vmatpush3.bf16.msra.mxu1 %v12648_v23  ;;  %v12713_v23 = vld [vmem:[%s13691_s13 + $0xb78] ss:$28 sps:$4 sm:$0xff]  }
 0x3f6   : > { %4447 = vmatpush1.bf16.msra.mxu0 %v12644_v50  ;;  %10321 = vmatprep.subr.bf16.mxu1 %v12652_v37  ;;  %v12709_v50 = vld [vmem:[%s13691_s13 + $0xd30] ss:$28 sps:$4 sm:$0xff]  }
 0x3f7   : > { %4457 = vmatprep.subr.bf16.mxu0 %v12651_v36  ;;  %v12716_v36 = vld [vmem:[%s13691_s13 + $0xd6c] ss:$28 sps:$4 sm:$0xff]  }
 0x3f8   : > { %4571 = vmatmul.mubr.bf16.vlgmr.msra.gmra.mrb[12].mxu1 %v13922_v49  ;;  %v12659_v49 = vld [vmem:[%s13691_s13 + $0xb00] ss:$28 sps:$4 sm:$0xff]   ;;  %v12717_v37 = vld [vmem:[%s13691_s13 + $0xd70] ss:$28 sps:$4 sm:$0xff]  }
 0x3f9   : > { %4449 = vmatmul.mubr.bf16.vlgmr.msra.gmra.mrb[4].mxu0 %v13893_v17  ;;  %10322 = vmatpush3.bf16.msra.mxu1 %v12653_v24  ;;  %v12718_v24 = vld [vmem:[%s13691_s13 + $0xbb0] ss:$28 sps:$4 sm:$0xff]  }
 0x3fa   : > { %4458 = vmatpush1.bf16.msra.mxu0 %v12649_v38  ;;  %10323 = vmatprep.subr.bf16.mxu1 %v12657_v40  ;;  %v12714_v38 = vld [vmem:[%s13691_s13 + $0xd68] ss:$28 sps:$4 sm:$0xff]  }
 0x3fb   : > { %4459 = vmatprep.subr.bf16.mxu0 %v12656_v27  ;;  %4610 = vmatprep.mubr.bf16.mxu1 %v13928_v54  ;;  %v12668_v54 = vld [vmem:[%s13691_s13 + $0x7c0] ss:$28 sps:$4 sm:$0xff]   ;;  %v12722_v40 = vld [vmem:[%s13691_s13 + $0xda8] ss:$28 sps:$4 sm:$0xff]  }
 0x3fc   : > { %4489 = vmatprep.mubr.bf16.mxu0 %v14000_v1  ;;  %v12721_v27 = vld [vmem:[%s13691_s13 + $0xda4] ss:$28 sps:$4 sm:$0xff]  }
 0x3fd   : > { %10324 = vmatpush3.bf16.msra.mxu1 %v12658_v33  ;;  %v12723_v33 = vld [vmem:[%s13691_s13 + $0xbe8] ss:$28 sps:$4 sm:$0xff]  }
 0x3fe   : > { %4460 = vmatpush1.bf16.msra.mxu0 %v12654_v43  ;;  %10325 = vmatprep.subr.bf16.mxu1 %v12662_v44  ;;  %v12719_v43 = vld [vmem:[%s13691_s13 + $0xda0] ss:$28 sps:$4 sm:$0xff]  }
 0x3ff   : > { %4461 = vmatprep.subr.bf16.mxu0 %v12661_v25  ;;  %v12726_v25 = vld [vmem:[%s13691_s13 + $0xddc] ss:$28 sps:$4 sm:$0xff]  }
 0x400   : > { %v12727_v44 = vld [vmem:[%s13691_s13 + $0xde0] ss:$28 sps:$4 sm:$0xff]  }
 0x401   : > { %10326 = vmatpush3.bf16.msra.mxu1 %v12663_v47  ;;  %v12728_v47 = vld [vmem:[%s13691_s13 + $0xc20] ss:$28 sps:$4 sm:$0xff]  }
 0x402   : > { %4462 = vmatpush1.bf16.msra.mxu0 %v12659_v49  ;;  %10327 = vmatprep.subr.bf16.mxu1 %v12667_v30  ;;  %v12724_v49 = vld [vmem:[%s13691_s13 + $0xdd8] ss:$28 sps:$4 sm:$0xff]  }
 0x403   : > { %4463 = vmatprep.subr.bf16.mxu0 %v12666_v56 }
 0x405   : > { %10328 = vmatpush3.bf16.msra.mxu1 %v12668_v54 }
 0x406   : > { %4464 = vmatpush1.bf16.msra.mxu0 %v12664_v52  ;;  %10329 = vmatprep.subr.bf16.mxu1 %v12672_v57 }
 0x407   : > { %4465 = vmatprep.subr.bf16.mxu0 %v12671_v53 }
 0x409   : > { %10330 = vmatpush3.bf16.msra.mxu1 %v12673_v59 }
 0x40a   : > { %4466 = vmatpush1.bf16.msra.mxu0 %v12669_v58  ;;  %10331 = vmatprep.subr.bf16.mxu1 %v12677_v62 }
 0x40b   : > { %4467 = vmatprep.subr.bf16.mxu0 %v12676_v61 }
 0x40c   : > { %v4163_v4 = vpop.f32.mrb[0].mxu0 }
 0x40d   : > { %v11545_v5 = vadd.f32 %v4163_v4, %v14166_v39  ;;  %v4165_v7 = vpop.f32.mrb[1].mxu0  ;;  %10332 = vmatpush3.bf16.msra.mxu1 %v12678_v0  ;;  %v12687_v39 = vld [vmem:[%s13691_s13 + $0xa60] ss:$28 sps:$4 sm:$0xff]  }
 0x40e   : > { %v11546_v55 = vadd.f32 %v4165_v7, %v14169_v41  ;;  %v4167_v8 = vpop.f32.mrb[2].mxu0  ;;  %4468 = vmatpush1.bf16.msra.mxu0 %v12674_v63  ;;  %10333 = vmatprep.subr.bf16.mxu1 %v12682_v3 }
 0x40f   : > { %v4693_v11 = vrot.slane %v11545_v5, 1  ;;  %v4168_v13 = vpop.f32.mrb[3].mxu0  ;;  %4469 = vmatprep.subr.bf16.mxu0 %v12681_v2 }
 0x410   : > { %v4659_v14 = vrot.slane %v11546_v55, 7 }
 0x411   : > { %v14314_v41 = vsel %vm4676_vm2, %v4693_v11, %v11546_v55  ;;  %10334 = vmatpush3.bf16.msra.mxu1 %v12683_v10 }
 0x412   : > { %v14316_v42 = vsel %vm4676_vm2, %v11545_v5, %v4659_v14  ;;  %4470 = vmatpush1.bf16.msra.mxu0 %v12679_v9  ;;  %10335 = vmatprep.subr.bf16.mxu1 %v12687_v39 }
 0x413   : > { %4471 = vmatprep.subr.bf16.mxu0 %v12686_v60 }
 0x415   : > { %10336 = vmatpush3.bf16.msra.mxu1 %v12688_v16 }
 0x416   : > { %4472 = vmatpush1.bf16.msra.mxu0 %v12684_v15  ;;  %10343 = vmatprep.subr.bf16.mxu1 %v12692_v51 }
 0x417   : > { %4473 = vmatprep.subr.bf16.mxu0 %v12691_v18 }
 0x418   : > { %4611 = vmatmul.mubr.bf16.vlgmr.msra.gmra.mrb[16].mxu1 %v13893_v17  ;;  %v12703_v17 = vld [vmem:[%s13691_s13 + $0xb08] ss:$28 sps:$4 sm:$0xff]  }
 0x419   : > { %10344 = vmatpush3.bf16.msra.mxu1 %v12693_v19  ;;  %4650 = vmatprep.mubr.bf16.mxu1 %v14000_v1  ;;  %v12711_v1 = vld [vmem:[%s13691_s13 + $0xd34] ss:$28 sps:$4 sm:$0xff]  }
 0x41a   : > { %4474 = vmatpush1.bf16.msra.mxu0 %v12689_v34  ;;  %10345 = vmatprep.subr.bf16.mxu1 %v12697_v21 }
 0x41b   : > { %4475 = vmatprep.subr.bf16.mxu0 %v12696_v45 }
 0x41d   : > { %10346 = vmatpush3.bf16.msra.mxu1 %v12698_v26 }
 0x41e   : > { %4476 = vmatpush1.bf16.msra.mxu0 %v12694_v48  ;;  %10347 = vmatprep.subr.bf16.mxu1 %v12702_v29 }
 0x41f   : > { %4477 = vmatprep.subr.bf16.mxu0 %v12701_v28 }
 0x421   : > { %10348 = vmatpush3.bf16.msra.mxu1 %v12703_v17 }
 0x422   : > { %4478 = vmatpush1.bf16.msra.mxu0 %v12699_v31  ;;  %10349 = vmatprep.subr.bf16.mxu1 %v12707_v32 }
 0x423   : > { %4479 = vmatprep.subr.bf16.mxu0 %v12706_v20 }
 0x425   : > { %10350 = vmatpush3.bf16.msra.mxu1 %v12708_v35 }
 0x426   : > { %4480 = vmatpush1.bf16.msra.mxu0 %v12704_v22  ;;  %10351 = vmatprep.subr.bf16.mxu1 %v12712_v46 }
 0x427   : > { %4481 = vmatprep.subr.bf16.mxu0 %v12711_v1 }
 0x429   : > { %10352 = vmatpush3.bf16.msra.mxu1 %v12713_v23 }
 0x42a   : > { %4482 = vmatpush1.bf16.msra.mxu0 %v12709_v50  ;;  %10353 = vmatprep.subr.bf16.mxu1 %v12717_v37 }
 0x42b   : > { %4483 = vmatprep.subr.bf16.mxu0 %v12716_v36 }
 0x42d   : > { %10354 = vmatpush3.bf16.msra.mxu1 %v12718_v24 }
 0x42e   : > { %4484 = vmatpush1.bf16.msra.mxu0 %v12714_v38  ;;  %10355 = vmatprep.subr.bf16.mxu1 %v12722_v40 }
 0x42f   : > { %4485 = vmatprep.subr.bf16.mxu0 %v12721_v27 }
 0x431   : > { %10356 = vmatpush3.bf16.msra.mxu1 %v12723_v33 }
 0x432   : > { %4486 = vmatpush1.bf16.msra.mxu0 %v12719_v43  ;;  %10357 = vmatprep.subr.bf16.mxu1 %v12727_v44 }
 0x433   : > { %4487 = vmatprep.subr.bf16.mxu0 %v12726_v25 }
 0x435   : > { %10358 = vmatpush3.bf16.msra.mxu1 %v12728_v47 }
 0x436   : > { %4488 = vmatpush1.bf16.msra.mxu0 %v12724_v49 }
 0x438   : > { %4651 = vmatmul.mubr.bf16.vlgmr.msra.gmra.mrb[20].mxu1 %v14068_v6 }
 0x439   : > { %4490 = vmatmul.mubr.bf16.vlgmr.msra.gmra.mrb[4].mxu0 %v14068_v6 }
 0x48b   : > { %v4327_v56 = vpop.f32.mrb[4].mxu1 }
 0x48c   : > { %v4662_v30 = vrot.slane %v4327_v56, 6  ;;  %v4695_v52 = vrot.slane %v4327_v56, 7  ;;  %v4329_v54 = vpop.f32.mrb[5].mxu1 }
 0x48d   : > { %v4665_v53 = vrot.slane %v4329_v54, 5  ;;  %v4697_v57 = vrot.slane %v4329_v54, 6  ;;  %v4331_v58 = vpop.f32.mrb[6].mxu1 }
 0x48e   : > { %v4679_v59 = vsel %vm4678_vm3, %v14316_v42, %v4662_v30  ;;  %v4706_v61 = vsel %vm4678_vm3, %v14314_v41, %v4695_v52  ;;  %v4332_v62 = vpop.f32.mrb[7].mxu1 }
 0x48f   : > { %v4681_v63 = vsel %vm4680_vm4, %v4679_v59, %v4665_v53  ;;  %v4707_v0 = vsel %vm4680_vm4, %v4706_v61, %v4697_v57 }
 0x4ab   : > { %v10293_v2 = vpop.f32.mrb[8].mxu1 }
 0x4ac   : > { %v10294_v6 = vpop.f32.mrb[9].mxu1 }
 0x4ad   : > { %v10295_v3 = vadd.f32 %v10294_v6, %v10293_v2  ;;  %v10296_v4 = vpop.f32.mrb[10].mxu1 }
 0x4ae   : > { %v10297_v5 = vpop.f32.mrb[11].mxu1 }
 0x4cb   : > { %v10315_v7 = vpop.f32.mrb[12].mxu1 }
 0x4cc   : > { %v10316_v55 = vpop.f32.mrb[13].mxu1 }
 0x4cd   : > { %v10317_v8 = vadd.f32 %v10316_v55, %v10315_v7  ;;  %v10318_v9 = vpop.f32.mrb[14].mxu1 }
 0x4ce   : > { %v10319_v10 = vpop.f32.mrb[15].mxu1 }
 0x4cf   : > { %v4573_v11 = vadd.f32 %v10317_v8, %v10295_v3 }
 0x4eb   : > { %v10337_v13 = vpop.f32.mrb[16].mxu1 }
 0x4ec   : > { %v10338_v60 = vpop.f32.mrb[17].mxu1 }
 0x4ed   : > { %v10339_v39 = vadd.f32 %v10338_v60, %v10337_v13  ;;  %v10340_v14 = vpop.f32.mrb[18].mxu1 }
 0x4ee   : > { %v10341_v41 = vpop.f32.mrb[19].mxu1 }
 0x4ef   : > { %v4613_v42 = vadd.f32 %v10339_v39, %v4573_v11 }
 0x50b   : > { %v10359_v16 = vpop.f32.mrb[20].mxu1 }
 0x50c   : > { %v4491_v15 = vpop.f32.mrb[4].mxu0  ;;  %v10360_v19 = vpop.f32.mrb[21].mxu1 }
 0x50d   : > { %v4668_v18 = vrot.slane %v4491_v15, 4  ;;  %v4699_v51 = vrot.slane %v4491_v15, 5  ;;  %v4493_v34 = vpop.f32.mrb[5].mxu0  ;;  %v10361_v48 = vadd.f32 %v10360_v19, %v10359_v16  ;;  %v10362_v28 = vpop.f32.mrb[22].mxu1 }
 0x50e   : > { %v4671_v45 = vrot.slane %v4493_v34, 3  ;;  %v4701_v21 = vrot.slane %v4493_v34, 4  ;;  %v4495_v26 = vpop.f32.mrb[6].mxu0  ;;  %v10363_v20 = vpop.f32.mrb[23].mxu1  ;;  %4717 = sbr.rel (%p10074_p0) target bundleno = 2520 (0x9d8), region = 120 }
 0x50f   : > { %v4683_v29 = vsel %vm4682_vm5, %v4681_v63, %v4668_v18  ;;  %v4708_v31 = vsel %vm4682_vm5, %v4707_v0, %v4699_v51  ;;  %v4496_v17 = vpop.f32.mrb[7].mxu0  ;;  %v4653_v35 = vadd.f32 %v10361_v48, %v4613_v42 }
 0x510   : > { %v4685_v32 = vsel %vm4684_vm6, %v4683_v29, %v4671_v45  ;;  %v4709_v22 = vsel %vm4684_vm6, %v4708_v31, %v4701_v21 }
 0x511   : > { %v4674_v1 = vrot.slane %v4653_v35, 2  ;;  %v4703_v46 = vrot.slane %v4653_v35, 3 }
 0x513   : > { %v4687_v50 = vsel %vm4686_vm7, %v4685_v32, %v4674_v1  ;;  %v4710_v23 = vsel %vm4686_vm7, %v4709_v22, %v4703_v46 }
 0x514   : > { %10072 = vst [vmem:[%s9473_s17 + $0x8] sm:$0x7f] %v4687_v50  ;;  %10073 = vst [vmem:[%s9473_s17 + $0x39] sm:$0x7f] %v4710_v23 }
 0x515   : > { %v12729_v36 = vld [vmem:[#allocation17 + $0x1c0] sm:$0xff]   ;;  %v16000_v37 = vmov 0.0   ;;  %v12731_v24 = vld [vmem:[#allocation17 + $0x1c8] sm:$0xff]   ;;  %vm13300_vm8 = vmmov 0   ;;  %v12733_v40 = vld [vmem:[#allocation17 + $0x1d0] sm:$0xff]   ;;  %s16054_s29 = sld [smem:[#allocation42_spill]] }
 0x516   : > { %10665 = vmatprep.subr.bf16.mxu0 %v16000_v37  ;;  %10841 = vmatprep.subr.bf16.mxu1 %v16000_v37  ;;  %v12730_v38 = vld [vmem:[#allocation17 + $0x180] sm:$0xff]   ;;  %v12732_v27 = vld [vmem:[#allocation17 + $0x188] sm:$0xff]   ;;  %v12734_v43 = vld [vmem:[#allocation17 + $0x190] sm:$0xff]   ;;  %vm8753_vm9 = vcmask 130048   ;;  %s16065_s28 = sld [smem:[#allocation43_spill]]  ;;  %vm8766_vm10 = vcmask 123904  }
 0x517   : > { %10666 = vmatpush3.bf16.msra.mxu0 %v12729_v36  ;;  %10681 = vmatprep.mubr.msk.bf16.mxu0 %vm13300_vm8, %v16000_v37  ;;  %v12735_v33 = vld [vmem:[#allocation17 + $0x1d8] sm:$0xff]   ;;  %v12737_v44 = vld [vmem:[#allocation17 + $0x1e0] sm:$0xff]   ;;  %v12739_v54 = vld [vmem:[#allocation17 + $0x1e8] sm:$0xff]  }
 0x518   : > { %10842 = vmatpush3.bf16.msra.mxu1 %v12730_v38  ;;  %10667 = vmatprep.subr.bf16.mxu0 %v16000_v37  ;;  %v12736_v25 = vld [vmem:[#allocation17 + $0x198] sm:$0xff]   ;;  %v12738_v49 = vld [vmem:[#allocation17 + $0x1a0] sm:$0xff]   ;;  %v12740_v57 = vld [vmem:[#allocation17 + $0x1a8] sm:$0xff]  }
 0x519   : > { %10843 = vmatprep.subr.bf16.mxu1 %v16000_v37  ;;  %10857 = vmatprep.mubr.msk.bf16.mxu1 %vm13300_vm8, %v16000_v37  ;;  %v12741_v62 = vld [vmem:[#allocation17 + $0x1f0] sm:$0xff]   ;;  %v12743_v4 = vld [vmem:[#allocation17 + $0x1f8] sm:$0xff]  }
 0x51a   : > { %v12742_v0 = vld [vmem:[#allocation17 + $0x1b0] sm:$0xff]   ;;  %v12744_v7 = vld [vmem:[#allocation17 + $0x1b8] sm:$0xff]  }
 0x51b   : > { %10668 = vmatpush3.bf16.msra.mxu0 %v12731_v24  ;;  %v14376_v47 = vld [vmem:[#allocation3 + $0x8] sm:$0xff]  ;;  %v14378_v56 = vld [vmem:[#allocation3 + $0x10] sm:$0xff]  ;;  %v14380_v30 = vld [vmem:[#allocation3 + $0x18] sm:$0xff] }
 0x51c   : > { %10844 = vmatpush3.bf16.msra.mxu1 %v12732_v27  ;;  %10669 = vmatprep.subr.bf16.mxu0 %v16000_v37  ;;  %v4731_v52 = vadd.f32 %v14378_v56, %v14376_v47  ;;  %v14384_v53 = vld [vmem:[#allocation3 + $0x20] sm:$0xff]  ;;  %v14389_v59 = vld [vmem:[#allocation3 + $0x28] sm:$0xff]  ;;  %v14392_v63 = vld [vmem:[#allocation3 + $0x30] sm:$0xff] }
 0x51d   : > { %10845 = vmatprep.subr.bf16.mxu1 %v16000_v37  ;;  %v14397_v6 = vld [vmem:[#allocation3 + $0x38] sm:$0xff]  ;;  %v14400_v5 = vld [vmem:[#allocation3 + $0x40] sm:$0xff]  ;;  %v14405_v8 = vld [vmem:[#allocation3 + $0x48] sm:$0xff] }
 0x51e   : > { %v4732_v58 = vadd.f32 %v4731_v52, %v14380_v30  ;;  %v14408_v10 = vld [vmem:[#allocation3 + $0x50] sm:$0xff]  ;;  %v14412_v13 = vld [vmem:[#allocation3 + $0x58] sm:$0xff]  ;;  %v14415_v60 = vld [vmem:[#allocation3 + $0x68] sm:$0x3] }
 0x51f   : > { %10670 = vmatpush3.bf16.msra.mxu0 %v12733_v40  ;;  %v14418_v14 = vld [vmem:[#allocation3 + $0x60] sm:$0xff]  ;;  %v4742_v42 = vsel %vm4678_vm3, %v14415_v60, 0.0 }
 0x520   : > { %10846 = vmatpush3.bf16.msra.mxu1 %v12734_v43  ;;  %10671 = vmatprep.subr.bf16.mxu0 %v16000_v37  ;;  %v4733_v61 = vadd.f32 %v4732_v58, %v14384_v53 }
 0x521   : > { %10847 = vmatprep.subr.bf16.mxu1 %v16000_v37 }
 0x522   : > { %v4734_v2 = vadd.f32 %v4733_v61, %v14389_v59 }
 0x523   : > { %10672 = vmatpush3.bf16.msra.mxu0 %v12735_v33 }
 0x524   : > { %10848 = vmatpush3.bf16.msra.mxu1 %v12736_v25  ;;  %10673 = vmatprep.subr.bf16.mxu0 %v16000_v37  ;;  %v4735_v3 = vadd.f32 %v4734_v2, %v14392_v63 }
 0x525   : > { %10849 = vmatprep.subr.bf16.mxu1 %v16000_v37 }
 0x526   : > { %v4736_v55 = vadd.f32 %v4735_v3, %v14397_v6 }
 0x527   : > { %10674 = vmatpush3.bf16.msra.mxu0 %v12737_v44 }
 0x528   : > { %10850 = vmatpush3.bf16.msra.mxu1 %v12738_v49  ;;  %10675 = vmatprep.subr.bf16.mxu0 %v16000_v37  ;;  %v4737_v9 = vadd.f32 %v4736_v55, %v14400_v5 }
 0x529   : > { %10851 = vmatprep.subr.bf16.mxu1 %v16000_v37 }
 0x52a   : > { %v4738_v11 = vadd.f32 %v4737_v9, %v14405_v8 }
 0x52b   : > { %10676 = vmatpush3.bf16.msra.mxu0 %v12739_v54 }
 0x52c   : > { %10852 = vmatpush3.bf16.msra.mxu1 %v12740_v57  ;;  %10677 = vmatprep.subr.bf16.mxu0 %v16000_v37  ;;  %v4739_v39 = vadd.f32 %v4738_v11, %v14408_v10 }
 0x52d   : > { %10853 = vmatprep.subr.bf16.mxu1 %v16000_v37 }
 0x52e   : > { %v4740_v41 = vadd.f32 %v4739_v39, %v14412_v13 }
 0x52f   : > { %10678 = vmatpush3.bf16.msra.mxu0 %v12741_v62 }
 0x530   : > { %10854 = vmatpush3.bf16.msra.mxu1 %v12742_v0  ;;  %10679 = vmatprep.subr.bf16.mxu0 %v16000_v37  ;;  %v4741_v15 = vadd.f32 %v4740_v41, %v14418_v14 }
 0x531   : > { %10855 = vmatprep.subr.bf16.mxu1 %v16000_v37 }
 0x532   : > { %v4743_v16 = vadd.f32 %v4742_v42, %v4741_v15 }
 0x533   : > { %10680 = vmatpush3.bf16.msra.mxu0 %v12743_v4 }
 0x534   : > { %10856 = vmatpush3.bf16.msra.mxu1 %v12744_v7  ;;  %10709 = vmatprep.subr.bf16.mxu0 %v16000_v37  ;;  %v4744_v18 = vrot.slane %v4743_v16, 4 }
 0x535   : > { %10885 = vmatprep.subr.bf16.mxu1 %v16000_v37 }
 0x536   : > { %v4745_v51 = vadd.f32 %v4744_v18, %v4743_v16 }
 0x538   : > { %v4746_v34 = vrot.slane %v4745_v51, 2 }
 0x53a   : > { %v4747_v19 = vadd.f32 %v4746_v34, %v4745_v51 }
 0x53c   : > { %v4748_v45 = vrot.slane %v4747_v19, 1 }
 0x53e   : > { %v4749_v21 = vadd.f32 %v4748_v45, %v4747_v19 }
 0x540   : > { %v4750_v48 = vmul.f32 0.010204081, %v4749_v21  ;;  %v4797_v21 = vld [vmem:[#allocation13] sm:$0x1] }
 0x542   : > { %v4751_v26 = vsub.f32 %v14376_v47, %v4750_v48  ;;  %v4752_v28 = vsub.f32 %v14378_v56, %v4750_v48  ;;  %v4753_v29 = vsub.f32 %v14380_v30, %v4750_v48  ;;  %v4754_v31 = vsub.f32 %v14384_v53, %v4750_v48 }
 0x543   : > { %v4755_v32 = vsub.f32 %v14389_v59, %v4750_v48  ;;  %v4756_v35 = vsub.f32 %v14392_v63, %v4750_v48  ;;  %v4757_v50 = vsub.f32 %v14397_v6, %v4750_v48  ;;  %v4758_v38 = vsub.f32 %v14400_v5, %v4750_v48 }
 0x544   : > { %v4764_v17 = vmul.f32 %v4751_v26, %v4751_v26  ;;  %v4765_v20 = vmul.f32 %v4752_v28, %v4752_v28  ;;  %v4766_v22 = vmul.f32 %v4753_v29, %v4753_v29  ;;  %v4767_v1 = vmul.f32 %v4754_v31, %v4754_v31  ;;  %v4801_v31 = vld [vmem:[#allocation14] sm:$0x1] }
 0x545   : > { %v4768_v23 = vmul.f32 %v4755_v32, %v4755_v32  ;;  %v4769_v24 = vmul.f32 %v4756_v35, %v4756_v35  ;;  %v4759_v40 = vsub.f32 %v14405_v8, %v4750_v48  ;;  %v4770_v43 = vmul.f32 %v4757_v50, %v4757_v50 }
 0x546   : > { %v4777_v46 = vadd.f32 %v4765_v20, %v4764_v17  ;;  %v4760_v25 = vsub.f32 %v14408_v10, %v4750_v48  ;;  %v4771_v44 = vmul.f32 %v4758_v38, %v4758_v38  ;;  %v4761_v52 = vsub.f32 %v14412_v13, %v4750_v48 }
 0x547   : > { %v4772_v54 = vmul.f32 %v4759_v40, %v4759_v40  ;;  %v4763_v58 = vsub.f32 %v14415_v60, %v4750_v48  ;;  %v4762_v61 = vsub.f32 %v14418_v14, %v4750_v48  ;;  %v14439_v26 = vsub.s32 0, %v13870_v12 }
 0x548   : > { %v4778_v36 = vadd.f32 %v4777_v46, %v4766_v22  ;;  %v4773_v62 = vmul.f32 %v4760_v25, %v4760_v25  ;;  %v4774_v2 = vmul.f32 %v4761_v52, %v4761_v52 }
 0x549   : > { %v4776_v4 = vmul.f32 %v4763_v58, %v4763_v58  ;;  %v4775_v7 = vmul.f32 %v4762_v61, %v4762_v61  ;;  %16045 = vst [vmem:[#allocation30_spill] sm:$0xff] %v14439_v26  ;;  %v5785_v61 = vld [vmem:[#allocation15 + $0x1b0] sm:$0xff] }
 0x54a   : > { %v4779_v27 = vadd.f32 %v4778_v36, %v4767_v1 }
 0x54b   : > { %v4788_v11 = vsel %vm4678_vm3, %v4776_v4, 0.0 }
 0x54c   : > { %v4780_v33 = vadd.f32 %v4779_v27, %v4768_v23  ;;  %v5783_v27 = vld [vmem:[#allocation15 + $0x1a0] sm:$0xff] }
 0x54e   : > { %v4781_v49 = vadd.f32 %v4780_v33, %v4769_v24 }
 0x550   : > { %v4782_v57 = vadd.f32 %v4781_v49, %v4770_v43 }
 0x552   : > { %v4783_v0 = vadd.f32 %v4782_v57, %v4771_v44  ;;  %v12746_v44 = vld [vmem:[#allocation17 + $0x100] sm:$0xff]  }
 0x554   : > { %v4784_v3 = vadd.f32 %v4783_v0, %v4772_v54 }
 0x556   : > { %v4785_v55 = vadd.f32 %v4784_v3, %v4773_v62  ;;  %v5786_v62 = vld [vmem:[#allocation15 + $0x1b8] sm:$0xff] }
 0x558   : > { %v4786_v9 = vadd.f32 %v4785_v55, %v4774_v2 }
 0x55a   : > { %v4787_v39 = vadd.f32 %v4786_v9, %v4775_v7 }
 0x55c   : > { %v4789_v41 = vadd.f32 %v4788_v11, %v4787_v39 }
 0x55e   : > { %v4790_v42 = vrot.slane %v4789_v41, 4 }
 0x560   : > { %v4791_v15 = vadd.f32 %v4790_v42, %v4789_v41 }
 0x562   : > { %v4792_v16 = vrot.slane %v4791_v15, 2 }
 0x564   : > { %v4793_v18 = vadd.f32 %v4792_v16, %v4791_v15  ;;  %v4947_v15 = vld [vmem:[#allocation15 + $0x140] sm:$0xff]  ;;  %v12748_v16 = vld [vmem:[#allocation17 + $0x108] sm:$0xff]  }
 0x566   : > { %v4794_v51 = vrot.slane %v4793_v18, 1 }
 0x568   : > { %v4795_v34 = vadd.f32 %v4794_v51, %v4793_v18 }
 0x56a   : > { %v4796_v19 = vmul.f32 0.010204081, %v4795_v34 }
 0x56c   : > { %v4798_v45 = vadd.f32 1e-05, %v4796_v19 }
 0x56e   : > { %12889 = vrsqrt.f32 %v4798_v45 }
 0x578   : > { %v12890_v28 = vpop.eup %12889 }
 0x579   : > { %v4800_v29 = vmul.f32 %v12890_v28, %v4797_v21  ;;  %v12745_v21 = vld [vmem:[#allocation17 + $0x140] sm:$0xff]  }
 0x57b   : > { %v4802_v17 = vmul.f32 %v4800_v29, %v4750_v48  ;;  %v4808_v20 = vrot.slane %v4800_v29, %v14439_v26 }
 0x57d   : > { %v4803_v32 = vsub.f32 %v4801_v31, %v4802_v17  ;;  %v4810_v22 = vmul.f32 %v4808_v20, %v14376_v47  ;;  %v4811_v35 = vmul.f32 %v4808_v20, %v14378_v56  ;;  %v4812_v1 = vmul.f32 %v4808_v20, %v14380_v30  ;;  %v4948_v31 = vld [vmem:[#allocation15 + $0x148] sm:$0xff]  ;;  %v4949_v17 = vld [vmem:[#allocation15 + $0x150] sm:$0xff] }
 0x57e   : > { %v4813_v46 = vmul.f32 %v4808_v20, %v14384_v53  ;;  %v4814_v50 = vmul.f32 %v4808_v20, %v14389_v59  ;;  %v4815_v12 = vmul.f32 %v4808_v20, %v14392_v63  ;;  %v4816_v23 = vmul.f32 %v4808_v20, %v14397_v6  ;;  %v5784_v63 = vld [vmem:[#allocation15 + $0x1a8] sm:$0xff] }
 0x57f   : > { %v4827_v36 = vrot.slane %v4803_v32, %v14439_v26  ;;  %v4817_v48 = vmul.f32 %v4808_v20, %v14400_v5  ;;  %v4818_v38 = vmul.f32 %v4808_v20, %v14405_v8  ;;  %v4819_v47 = vmul.f32 %v4808_v20, %v14408_v10  ;;  %v5787_v32 = vld [vmem:[#allocation15 + $0x1c0] sm:$0xff] }
 0x580   : > { %v4820_v56 = vmul.f32 %v4808_v20, %v14412_v13  ;;  %v4821_v30 = vmul.f32 %v4808_v20, %v14418_v14  ;;  %v4822_v0 = vmul.f32 %v4808_v20, %v14415_v60  ;;  %v4946_v60 = vld [vmem:[#allocation15 + $0x138] sm:$0xff] }
 0x581   : > { %v4829_v24 = vadd.f32 %v4827_v36, %v4810_v22  ;;  %v4830_v53 = vadd.f32 %v4827_v36, %v4811_v35  ;;  %v4831_v59 = vadd.f32 %v4827_v36, %v4812_v1  ;;  %v4832_v40 = vadd.f32 %v4827_v36, %v4813_v46  ;;  %v5788_v1 = vld [vmem:[#allocation15 + $0x1c8] sm:$0xff] }
 0x582   : > { %v14455_v43 = vadd.f32 %v4827_v36, %v4814_v50  ;;  %v14457_v6 = vadd.f32 %v4827_v36, %v4815_v12  ;;  %v14459_v33 = vadd.f32 %v4827_v36, %v4816_v23  ;;  %v14461_v5 = vadd.f32 %v4827_v36, %v4817_v48  ;;  %v12750_v12 = vld [vmem:[#allocation17 + $0x110] sm:$0xff]  }
 0x583   : > { %v4842_v8 = vmax.f32 %v4829_v24, 0.0  ;;  %v4843_v10 = vmax.f32 %v4830_v53, 0.0  ;;  %v4844_v25 = vmax.f32 %v4831_v59, 0.0  ;;  %v4845_v13 = vmax.f32 %v4832_v40, 0.0  ;;  %v4950_v24 = vld [vmem:[#allocation15 + $0x158] sm:$0xff]  ;;  %v4951_v53 = vld [vmem:[#allocation15 + $0x160] sm:$0xff] }
 0x584   : > { %v4846_v14 = vmax.f32 %v14455_v43, 0.0  ;;  %v4847_v49 = vmax.f32 %v14457_v6, 0.0  ;;  %v4848_v52 = vmax.f32 %v14459_v33, 0.0  ;;  %v4849_v54 = vmax.f32 %v14461_v5, 0.0  ;;  %v5789_v59 = vld [vmem:[#allocation15 + $0x1d0] sm:$0xff]  ;;  %v5790_v43 = vld [vmem:[#allocation15 + $0x1d8] sm:$0xff] }
 0x585   : > { %4855 = vst [vmem:[#allocation3 + $0x8] sm:$0xff] %v4842_v8  ;;  %4856 = vst [vmem:[#allocation3 + $0x10] sm:$0xff] %v4843_v10  ;;  %v5796_v57 = vmul.f32 %v5783_v27, %v4842_v8  ;;  %v5797_v58 = vmul.f32 %v5784_v63, %v4843_v10  ;;  %v14474_v3 = vadd.f32 %v4827_v36, %v4818_v38  ;;  %v12747_v38 = vld [vmem:[#allocation17 + $0x148] sm:$0xff]   ;;  %v12751_v6 = vld [vmem:[#allocation17 + $0x158] sm:$0xff]  }
 0x586   : > { %4857 = vst [vmem:[#allocation3 + $0x18] sm:$0xff] %v4844_v25  ;;  %4858 = vst [vmem:[#allocation3 + $0x20] sm:$0xff] %v4845_v13  ;;  %v14476_v4 = vadd.f32 %v4827_v36, %v4819_v47  ;;  %v5798_v7 = vmul.f32 %v5785_v61, %v4844_v25  ;;  %v14478_v55 = vadd.f32 %v4827_v36, %v4820_v56  ;;  %v12749_v47 = vld [vmem:[#allocation17 + $0x150] sm:$0xff]   ;;  %v12752_v56 = vld [vmem:[#allocation17 + $0x118] sm:$0xff]  }
 0x587   : > { %4859 = vst [vmem:[#allocation3 + $0x28] sm:$0xff] %v4846_v14  ;;  %4860 = vst [vmem:[#allocation3 + $0x30] sm:$0xff] %v4847_v49  ;;  %v14472_v2 = vpack.c.bf16 %v5797_v58, %v5796_v57  ;;  %v14480_v9 = vadd.f32 %v4827_v36, %v4821_v30  ;;  %v5799_v11 = vmul.f32 %v5786_v62, %v4845_v13  ;;  %v4850_v39 = vmax.f32 %v14474_v3, 0.0  ;;  %v5284_v10 = vld [vmem:[#allocation15 + $0x78] sm:$0xff]  ;;  %v5285_v25 = vld [vmem:[#allocation15 + $0x80] sm:$0xff] }
 0x588   : > { %4861 = vst [vmem:[#allocation3 + $0x38] sm:$0xff] %v4848_v52  ;;  %4862 = vst [vmem:[#allocation3 + $0x40] sm:$0xff] %v4849_v54  ;;  %v4851_v41 = vmax.f32 %v14476_v4, 0.0  ;;  %v4841_v42 = vadd.f32 %v4827_v36, %v4822_v0  ;;  %v4852_v18 = vmax.f32 %v14478_v55, 0.0  ;;  %v5800_v50 = vmul.f32 %v5787_v32, %v4846_v14  ;;  %v5286_v57 = vld [vmem:[#allocation15 + $0x88] sm:$0xff]  ;;  %v5287_v58 = vld [vmem:[#allocation15 + $0x90] sm:$0xff] }
 0x589   : > { %10858 = vmatmul.mubr.bf16.vlgmr.msra.gmra.mrb[0].mxu1 %v14472_v2  ;;  %v4853_v51 = vmax.f32 %v14480_v9, 0.0  ;;  %4863 = vst [vmem:[#allocation3 + $0x48] sm:$0xff] %v4850_v39  ;;  %v14498_v20 = vpack.c.bf16 %v5799_v11, %v5798_v7  ;;  %v5801_v48 = vmul.f32 %v5788_v1, %v4847_v49  ;;  %v5802_v8 = vmul.f32 %v5789_v59, %v4848_v52  ;;  %v12754_v49 = vld [vmem:[#allocation17 + $0x120] sm:$0xff]   ;;  %v5288_v52 = vld [vmem:[#allocation15 + $0x98] sm:$0xff]  ;;  %v5791_v62 = vld [vmem:[#allocation15 + $0x1e0] sm:$0xff] }
 0x58a   : > { %10886 = vmatpush3.bf16.msra.mxu1 %v12746_v44  ;;  %10861 = vmatprep.mubr.msk.bf16.mxu1 %vm13300_vm8, %v16000_v37  ;;  %4864 = vst [vmem:[#allocation3 + $0x50] sm:$0xff] %v4851_v41  ;;  %v4854_v34 = vmax.f32 %v4841_v42, 0.0  ;;  %4865 = vst [vmem:[#allocation3 + $0x58] sm:$0xff] %v4852_v18  ;;  %v5803_v14 = vmul.f32 %v5790_v43, %v4849_v54  ;;  %v4952_v42 = vld [vmem:[#allocation15 + $0x168] sm:$0xff]  ;;  %v5291_v1 = vld [vmem:[#allocation15 + $0xb0] sm:$0xff] }
 0x58b   : > { %10887 = vmatprep.subr.bf16.mxu1 %v16000_v37  ;;  %4866 = vst [vmem:[#allocation3 + $0x60] sm:$0xff] %v4853_v51  ;;  %v14507_v27 = vpack.c.bf16 %v5801_v48, %v5800_v50  ;;  %v12758_v3 = vld [vmem:[#allocation17 + $0x130] sm:$0xff]   ;;  %v5793_v4 = vld [vmem:[#allocation15 + $0x1f0] sm:$0xff] }
 0x58c   : > { %v4932_v19 = vld [vmem:[#allocation3 + $0x7] sm:$0xff]  ;;  %v4933_v45 = vld [vmem:[#allocation3 + $0xf] sm:$0xff]  ;;  %4867 = vst [vmem:[#allocation3 + $0x68] sm:$0x3] %v4854_v34 }
 0x58d   : > { %v4959_v28 = vmul.f32 %v4946_v60, %v4932_v19  ;;  %v4960_v29 = vmul.f32 %v4947_v15, %v4933_v45  ;;  %v4934_v22 = vld [vmem:[#allocation3 + $0x17] sm:$0xff]  ;;  %v4935_v35 = vld [vmem:[#allocation3 + $0x1f] sm:$0xff]  ;;  %v5289_v60 = vld [vmem:[#allocation15 + $0xa0] sm:$0xff] }
 0x58e   : > { %10888 = vmatpush3.bf16.msra.mxu1 %v12748_v16  ;;  %v4961_v23 = vmul.f32 %v4948_v31, %v4934_v22  ;;  %v4962_v36 = vmul.f32 %v4949_v17, %v4935_v35  ;;  %v4936_v40 = vld [vmem:[#allocation3 + $0x27] sm:$0xff]  ;;  %v4937_v63 = vld [vmem:[#allocation3 + $0x2f] sm:$0xff]  ;;  %v14520_v33 = vld [vmem:[#allocation3 + $0x19] sm:$0xff]  ;;  %v14536_v17 = vpack.c.bf16 %v5803_v14, %v5802_v8 }
 0x58f   : > { %v4972_v46 = vpack.c.bf16 %v4960_v29, %v4959_v28  ;;  %10889 = vmatprep.subr.bf16.mxu1 %v16000_v37  ;;  %v4963_v13 = vmul.f32 %v4950_v24, %v4936_v40  ;;  %v4964_v44 = vmul.f32 %v4951_v53, %v4937_v63  ;;  %v14518_v61 = vld [vmem:[#allocation3 + $0x11] sm:$0xff]  ;;  %v14525_v5 = vld [vmem:[#allocation3 + $0x21] sm:$0xff]  ;;  %v14527_v54 = vld [vmem:[#allocation3 + $0x29] sm:$0xff]  ;;  %v5298_v7 = vmul.f32 %v14520_v33, %v5285_v25 }
 0x590   : > { %v4973_v30 = vpack.c.bf16 %v4962_v36, %v4961_v23  ;;  %v5297_v0 = vmul.f32 %v14518_v61, %v5284_v10  ;;  %v4938_v11 = vld [vmem:[#allocation3 + $0x37] sm:$0xff]  ;;  %v5299_v45 = vmul.f32 %v14525_v5, %v5286_v57  ;;  %v4939_v31 = vld [vmem:[#allocation3 + $0x3f] sm:$0xff]  ;;  %v4940_v10 = vld [vmem:[#allocation3 + $0x47] sm:$0xff] }
 0x591   : > { %10682 = vmatmul.mubr.bf16.vlgmr.msra.gmra.mrb[0].mxu0 %v4972_v46  ;;  %10862 = vmatmul.mubr.bf16.gmra.mrb[4].mxu1 %v14498_v20  ;;  %v4953_v15 = vld [vmem:[#allocation15 + $0x170] sm:$0xff]  ;;  %v12753_v16 = vld [vmem:[#allocation17 + $0x160] sm:$0xff]   ;;  %v4974_v29 = vpack.c.bf16 %v4964_v44, %v4963_v13  ;;  %v4965_v24 = vmul.f32 %v4952_v42, %v4938_v11  ;;  %v5292_v43 = vld [vmem:[#allocation15 + $0xb8] sm:$0xff] }
 0x592   : > { %10710 = vmatpush3.bf16.msra.mxu0 %v12745_v21  ;;  %10685 = vmatprep.mubr.msk.bf16.mxu0 %vm13300_vm8, %v16000_v37  ;;  %v5792_v34 = vld [vmem:[#allocation15 + $0x1e8] sm:$0xff]  ;;  %v5300_v21 = vmul.f32 %v14527_v54, %v5287_v58  ;;  %v14540_v22 = vpack.c.bf16 %v5298_v7, %v5297_v0  ;;  %v12756_v46 = vld [vmem:[#allocation17 + $0x128] sm:$0xff]   ;;  %v4966_v53 = vmul.f32 %v4953_v15, %v4939_v31  ;;  %v4954_v13 = vld [vmem:[#allocation15 + $0x178] sm:$0xff] }
 0x593   : > { %10711 = vmatprep.subr.bf16.mxu0 %v16000_v37  ;;  %10865 = vmatprep.mubr.msk.bf16.mxu1 %vm13300_vm8, %v16000_v37  ;;  %v14532_v19 = vld [vmem:[#allocation3 + $0x31] sm:$0xff]  ;;  %v14538_v32 = vld [vmem:[#allocation3 + $0x39] sm:$0xff]  ;;  %v14544_v50 = vld [vmem:[#allocation3 + $0x41] sm:$0xff]  ;;  %v5805_v59 = vmul.f32 %v5792_v34, %v4851_v41  ;;  %v4967_v7 = vmul.f32 %v4954_v13, %v4940_v10 }
 0x594   : > { %10890 = vmatpush3.bf16.msra.mxu1 %v12750_v12  ;;  %v5290_v28 = vld [vmem:[#allocation15 + $0xa8] sm:$0xff]  ;;  %v5301_v35 = vmul.f32 %v14532_v19, %v5288_v52  ;;  %v14546_v12 = vld [vmem:[#allocation3 + $0x49] sm:$0xff]  ;;  %v14548_v23 = vpack.c.bf16 %v5300_v21, %v5299_v45  ;;  %v5302_v36 = vmul.f32 %v14538_v32, %v5289_v60  ;;  %v4944_v31 = vld [vmem:[#allocation3 + $0x67] sm:$0x3] }
 0x595   : > { %10891 = vmatprep.subr.bf16.mxu1 %v16000_v37  ;;  %v5303_v48 = vmul.f32 %v14544_v50, %v5290_v28  ;;  %v14561_v40 = vld [vmem:[#allocation3 + $0x51] sm:$0xff]  ;;  %v14563_v63 = vld [vmem:[#allocation3 + $0x59] sm:$0xff]  ;;  %v5794_v14 = vld [vmem:[#allocation15 + $0x1f8] sm:$0xff] }
 0x596   : > { %10712 = vmatpush3.bf16.msra.mxu0 %v12747_v38  ;;  %v5804_v38 = vmul.f32 %v5791_v62, %v4850_v39  ;;  %v5305_v41 = vmul.f32 %v14561_v40, %v5292_v43  ;;  %v4941_v25 = vld [vmem:[#allocation3 + $0x4f] sm:$0xff]  ;;  %v12757_v58 = vld [vmem:[#allocation17 + $0x170] sm:$0xff]   ;;  %v5806_v62 = vmul.f32 %v5793_v4, %v4852_v18  ;;  %v5807_v11 = vmul.f32 %v5794_v14, %v4853_v51  ;;  %v4942_v55 = vld [vmem:[#allocation3 + $0x57] sm:$0xff] }
 0x597   : > { %10713 = vmatprep.subr.bf16.mxu0 %v16000_v37  ;;  %v4955_v44 = vld [vmem:[#allocation15 + $0x180] sm:$0xff]  ;;  %v4943_v18 = vld [vmem:[#allocation3 + $0x5f] sm:$0xff]  ;;  %v4956_v15 = vld [vmem:[#allocation15 + $0x188] sm:$0xff] }
 0x598   : > { %10892 = vmatpush3.bf16.msra.mxu1 %v12752_v56  ;;  %v14555_v56 = vpack.c.bf16 %v5302_v36, %v5301_v35  ;;  %v14574_v57 = vpack.c.bf16 %v5805_v59, %v5804_v38  ;;  %v12760_v0 = vld [vmem:[#allocation17 + $0x138] sm:$0xff]   ;;  %v4968_v60 = vmul.f32 %v4955_v44, %v4941_v25  ;;  %v5782_v34 = vld [vmem:[#allocation3 + $0x68] sm:$0x3]  ;;  %v14591_v51 = vpack.c.bf16 %v5807_v11, %v5806_v62  ;;  %v4958_v35 = vld [vmem:[#allocation15 + $0x198] sm:$0x3] }
 0x599   : > { %10686 = vmatmul.mubr.bf16.gmra.mrb[4].mxu0 %v4973_v30  ;;  %10866 = vmatmul.mubr.bf16.gmra.mrb[8].mxu1 %v14507_v27  ;;  %v5304_v30 = vmul.f32 %v14546_v12, %v5291_v1  ;;  %v12759_v42 = vld [vmem:[#allocation17 + $0x178] sm:$0xff]   ;;  %v4969_v21 = vmul.f32 %v4956_v15, %v4942_v55  ;;  %v5721_v36 = vld [vmem:[#allocation15 + $0x210] sm:$0xff]  ;;  %v5722_v43 = vld [vmem:[#allocation15 + $0x218] sm:$0xff] }
 0x59a   : > { %10714 = vmatpush3.bf16.msra.mxu0 %v12749_v47  ;;  %10689 = vmatprep.mubr.msk.bf16.mxu0 %vm13300_vm8, %v16000_v37  ;;  %v12755_v47 = vld [vmem:[#allocation17 + $0x168] sm:$0xff]   ;;  %v5795_v45 = vld [vmem:[#allocation15 + $0x200] sm:$0x3]  ;;  %v4976_v9 = vpack.c.bf16 %v4968_v60, %v4967_v7  ;;  %v5735_v4 = vmul.f32 %v5722_v43, %v14520_v33  ;;  %v12761_v10 = vld [vmem:[#allocation17 + $0x340] sm:$0xff]  }
 0x59b   : > { %10715 = vmatprep.subr.bf16.mxu0 %v16000_v37  ;;  %10869 = vmatprep.mubr.msk.bf16.mxu1 %vm13300_vm8, %v16000_v37  ;;  %v14567_v39 = vpack.c.bf16 %v5304_v30, %v5303_v48  ;;  %v14600_v1 = vld [vmem:[#allocation3 + $0x9] sm:$0xff]  ;;  %v5724_v25 = vld [vmem:[#allocation15 + $0x228] sm:$0xff]  ;;  %v5725_v13 = vld [vmem:[#allocation15 + $0x230] sm:$0xff] }
 0x59c   : > { %10893 = vmatprep.subr.bf16.mxu1 %v16000_v37  ;;  %v12766_v33 = vld [vmem:[#allocation17 + $0x310] sm:$0xff]   ;;  %v5738_v44 = vmul.f32 %v5725_v13, %v14532_v19  ;;  %v12763_v14 = vld [vmem:[#allocation17 + $0x348] sm:$0xff]   ;;  %v5727_v62 = vld [vmem:[#allocation15 + $0x240] sm:$0xff] }
 0x59d   : > { %10894 = vmatpush3.bf16.msra.mxu1 %v12754_v49  ;;  %v4975_v49 = vpack.c.bf16 %v4966_v53, %v4965_v24  ;;  %v5734_v24 = vmul.f32 %v5721_v36, %v14518_v61  ;;  %v12764_v61 = vld [vmem:[#allocation17 + $0x308] sm:$0xff]   ;;  %v12770_v7 = vld [vmem:[#allocation17 + $0x320] sm:$0xff]   ;;  %v12767_v60 = vld [vmem:[#allocation17 + $0x358] sm:$0xff]  }
 0x59e   : > { %10716 = vmatpush3.bf16.msra.mxu0 %v12751_v6  ;;  %10895 = vmatprep.subr.bf16.mxu1 %v16000_v37  ;;  %v5293_v6 = vld [vmem:[#allocation15 + $0xc0] sm:$0xff]  ;;  %v12771_v15 = vld [vmem:[#allocation17 + $0x368] sm:$0xff]  }
 0x59f   : > { %10717 = vmatprep.subr.bf16.mxu0 %v16000_v37  ;;  %v5306_v8 = vmul.f32 %v14563_v63, %v5293_v6  ;;  %v5723_v6 = vld [vmem:[#allocation15 + $0x220] sm:$0xff]  ;;  %v5283_v43 = vld [vmem:[#allocation15 + $0x70] sm:$0xff] }
 0x5a1   : > { %10690 = vmatmul.mubr.bf16.gmra.mrb[8].mxu0 %v4974_v29  ;;  %10870 = vmatmul.mubr.bf16.gmra.mrb[12].mxu1 %v14536_v17  ;;  %v14577_v52 = vpack.c.bf16 %v5306_v8, %v5305_v41  ;;  %v5808_v29 = vmul.f32 %v5795_v45, %v5782_v34  ;;  %v5736_v41 = vmul.f32 %v5723_v6, %v14525_v5  ;;  %v5731_v45 = vld [vmem:[#allocation15 + $0x260] sm:$0xff] }
 0x5a2   : > { %10693 = vmatprep.mubr.msk.bf16.mxu0 %vm13300_vm8, %v16000_v37  ;;  %10718 = vmatpush3.bf16.msra.mxu0 %v12753_v16  ;;  %v4957_v16 = vld [vmem:[#allocation15 + $0x190] sm:$0xff]  ;;  %v5737_v5 = vmul.f32 %v5724_v25, %v14527_v54  ;;  %v5726_v54 = vld [vmem:[#allocation15 + $0x238] sm:$0xff]  ;;  %v6107_v25 = vld [vmem:[#allocation3 + $0x12] sm:$0xff] }
 0x5a3   : > { %10873 = vmatprep.mubr.msk.bf16.mxu1 %vm13300_vm8, %v16000_v37  ;;  %10719 = vmatprep.subr.bf16.mxu0 %v16000_v37  ;;  %v4970_v28 = vmul.f32 %v4957_v16, %v4943_v18  ;;  %v5815_v38 = vpack.c.bf16 %v5808_v29, %v5808_v29  ;;  %v5747_v8 = vpack.c.bf16 %v5736_v41, %v5735_v4  ;;  %v12774_v16 = vld [vmem:[#allocation17 + $0x330] sm:$0xff]   ;;  %v12775_v29 = vld [vmem:[#allocation17 + $0x378] sm:$0xff]  }
 0x5a4   : > { %10896 = vmatpush3.bf16.msra.mxu1 %v12756_v46  ;;  %v5720_v46 = vld [vmem:[#allocation15 + $0x208] sm:$0xff]  ;;  %v5739_v19 = vmul.f32 %v5726_v54, %v14538_v32  ;;  %v5268_v4 = vld [vmem:[#allocation3 + $0x1] sm:$0xff] }
 0x5a5   : > { %10897 = vmatprep.subr.bf16.mxu1 %v16000_v37  ;;  %v4977_v48 = vpack.c.bf16 %v4970_v28, %v4969_v21  ;;  %v5733_v30 = vmul.f32 %v5720_v46, %v14600_v1  ;;  %v5728_v32 = vld [vmem:[#allocation15 + $0x248] sm:$0xff]  ;;  %v4894_v46 = vld [vmem:[#allocation15 + $0x200] sm:$0x3]  ;;  %v6123_v54 = vld [vmem:[#allocation15 + $0xf0] sm:$0xff] }
 0x5a6   : > { %10720 = vmatpush3.bf16.msra.mxu0 %v12755_v47  ;;  %v4971_v47 = vmul.f32 %v4958_v35, %v4944_v31  ;;  %v5741_v55 = vmul.f32 %v5728_v32, %v14546_v12  ;;  %v5730_v12 = vld [vmem:[#allocation15 + $0x258] sm:$0xff]  ;;  %v5732_v35 = vld [vmem:[#allocation15 + $0x268] sm:$0x3] }
 0x5a7   : > { %10721 = vmatprep.subr.bf16.mxu0 %v16000_v37  ;;  %v5746_v59 = vpack.c.bf16 %v5734_v24, %v5733_v30  ;;  %v5743_v21 = vmul.f32 %v5730_v12, %v14563_v63  ;;  %v6105_v30 = vld [vmem:[#allocation3 + $0x2] sm:$0xff]  ;;  %v6106_v24 = vld [vmem:[#allocation3 + $0xa] sm:$0xff] }
 0x5a8   : > { %10898 = vmatpush3.bf16.msra.mxu1 %v12758_v3  ;;  %v4978_v53 = vpack.c.bf16 %v4971_v47, %v4971_v47  ;;  %v12762_v3 = vld [vmem:[#allocation17 + $0x300] sm:$0xff]   ;;  %v4880_v47 = vld [vmem:[#allocation3 + $0x68] sm:$0x3]  ;;  %v12783_v12 = vld [vmem:[#allocation17 + $0x3d8] sm:$0xff]  }
 0x5a9   : > { %10694 = vmatmul.mubr.bf16.gmra.mrb[12].mxu0 %v4975_v49  ;;  %10874 = vmatmul.mubr.bf16.gmra.mrb[16].mxu1 %v14574_v57  ;;  %v12768_v49 = vld [vmem:[#allocation17 + $0x318] sm:$0xff]   ;;  %v12781_v32 = vld [vmem:[#allocation17 + $0x3d0] sm:$0xff]  }
 0x5aa   : > { %10697 = vmatprep.mubr.msk.bf16.mxu0 %vm13300_vm8, %v16000_v37  ;;  %10877 = vmatprep.mubr.msk.bf16.mxu1 %vm13300_vm8, %v16000_v37 }
 0x5ab   : > { %10722 = vmatpush3.bf16.msra.mxu0 %v12757_v58  ;;  %10899 = vmatprep.subr.bf16.mxu1 %v16000_v37  ;;  %v5748_v58 = vpack.c.bf16 %v5738_v44, %v5737_v5 }
 0x5ac   : > { %10723 = vmatprep.subr.bf16.mxu0 %v16000_v37  ;;  %10900 = vmatpush3.bf16.msra.mxu1 %v12760_v0  ;;  %v5740_v0 = vmul.f32 %v5727_v62, %v14544_v50  ;;  %v12772_v50 = vld [vmem:[#allocation17 + $0x328] sm:$0xff]   ;;  %v6110_v62 = vld [vmem:[#allocation3 + $0x2a] sm:$0xff] }
 0x5ad   : > { %10929 = vmatprep.subr.bf16.mxu1 %v16000_v37 }
 0x5ae   : > { %v5749_v11 = vpack.c.bf16 %v5740_v0, %v5739_v19  ;;  %v6124_v19 = vld [vmem:[#allocation15 + $0xf8] sm:$0xff] }
 0x5af   : > { %10724 = vmatpush3.bf16.msra.mxu0 %v12759_v42  ;;  %v5729_v42 = vld [vmem:[#allocation15 + $0x250] sm:$0xff]  ;;  %v12782_v0 = vld [vmem:[#allocation17 + $0x390] sm:$0xff]  }
 0x5b0   : > { %10753 = vmatprep.subr.bf16.mxu0 %v16000_v37  ;;  %v5742_v18 = vmul.f32 %v5729_v42, %v14561_v40  ;;  %v12773_v40 = vld [vmem:[#allocation17 + $0x370] sm:$0xff]  }
 0x5b1   : > { %10698 = vmatmul.mubr.bf16.gmra.mrb[16].mxu0 %v4976_v9  ;;  %10878 = vmatmul.mubr.bf16.gmra.mrb[20].mxu1 %v14591_v51  ;;  %v12776_v9 = vld [vmem:[#allocation17 + $0x338] sm:$0xff]  }
 0x5b2   : > { %10701 = vmatprep.mubr.msk.bf16.mxu0 %vm13300_vm8, %v16000_v37  ;;  %10881 = vmatprep.mubr.msk.bf16.mxu1 %vm13300_vm8, %v16000_v37  ;;  %v5750_v34 = vpack.c.bf16 %v5742_v18, %v5741_v55  ;;  %v6112_v55 = vld [vmem:[#allocation3 + $0x3a] sm:$0xff]  ;;  %v6125_v18 = vld [vmem:[#allocation15 + $0x100] sm:$0xff] }
 0x5b9   : > { %10702 = vmatmul.mubr.bf16.gmra.mrb[20].mxu0 %v4977_v48  ;;  %10882 = vmatmul.mubr.bf16.gmra.mrb[24].mxu1 %v5815_v38  ;;  %v6119_v48 = vld [vmem:[#allocation15 + $0xd0] sm:$0xff]  ;;  %v6120_v38 = vld [vmem:[#allocation15 + $0xd8] sm:$0xff] }
 0x5ba   : > { %10705 = vmatprep.mubr.msk.bf16.mxu0 %vm13300_vm8, %v16000_v37  ;;  %10901 = vmatprep.mubr.msk.bf16.mxu1 %vm13300_vm8, %v16000_v37 }
 0x5c1   : > { %10706 = vmatmul.mubr.bf16.gmra.mrb[24].mxu0 %v4978_v53  ;;  %10902 = vmatmul.mubr.bf16.vlgmr.msra.gmra.mrb[0].mxu1 %v5746_v59  ;;  %v4907_v53 = vmul.f32 %v4894_v46, %v4880_v47  ;;  %v6133_v59 = vmul.f32 %v6120_v38, %v6106_v24  ;;  %v12790_v46 = vld [vmem:[#allocation17 + $0x3b0] sm:$0xff]   ;;  %v6116_v38 = vld [vmem:[#allocation3 + $0x5a] sm:$0xff]  ;;  %v6129_v47 = vld [vmem:[#allocation15 + $0x120] sm:$0xff] }
 0x5c2   : > { %10725 = vmatprep.mubr.msk.bf16.mxu0 %vm13300_vm8, %v16000_v37  ;;  %10930 = vmatpush3.bf16.msra.mxu1 %v12762_v3  ;;  %v5282_v3 = vld [vmem:[#allocation15 + $0x68] sm:$0xff]  ;;  %v12789_v24 = vld [vmem:[#allocation17 + $0x3f0] sm:$0xff]  }
 0x5c3   : > { %10905 = vmatprep.mubr.msk.bf16.mxu1 %vm13300_vm8, %v16000_v37  ;;  %10931 = vmatprep.subr.bf16.mxu1 %v16000_v37  ;;  %v4914_v6 = vpack.c.bf16 %v4907_v53, %v4907_v53  ;;  %v5295_v13 = vmul.f32 %v5282_v3, %v5268_v4  ;;  %v12792_v53 = vld [vmem:[#allocation17 + $0x3b8] sm:$0xff]   ;;  %v6131_v4 = vld [vmem:[#allocation15 + $0x130] sm:$0x3] }
 0x5c4   : > { %v12791_v3 = vld [vmem:[#allocation17 + $0x3f8] sm:$0xff]  }
 0x5c6   : > { %10932 = vmatpush3.bf16.msra.mxu1 %v12764_v61  ;;  %v6121_v61 = vld [vmem:[#allocation15 + $0xe0] sm:$0xff] }
 0x5c7   : > { %10933 = vmatprep.subr.bf16.mxu1 %v16000_v37  ;;  %v6134_v5 = vmul.f32 %v6121_v61, %v6107_v25 }
 0x5c9   : > { %10726 = vmatmul.mubr.bf16.vlgmr.msra.gmra.mrb[0].mxu0 %v14472_v2  ;;  %10906 = vmatmul.mubr.bf16.gmra.mrb[4].mxu1 %v5747_v8  ;;  %v12765_v2 = vld [vmem:[#allocation17 + $0x350] sm:$0xff]   ;;  %v6122_v8 = vld [vmem:[#allocation15 + $0xe8] sm:$0xff] }
 0x5ca   : > { %10754 = vmatpush3.bf16.msra.mxu0 %v12761_v10  ;;  %10729 = vmatprep.mubr.msk.bf16.mxu0 %vm13300_vm8, %v16000_v37  ;;  %v12778_v10 = vld [vmem:[#allocation17 + $0x380] sm:$0xff]  }
 0x5cb   : > { %10755 = vmatprep.subr.bf16.mxu0 %v16000_v37  ;;  %10909 = vmatprep.mubr.msk.bf16.mxu1 %vm13300_vm8, %v16000_v37 }
 0x5cc   : > { %10934 = vmatpush3.bf16.msra.mxu1 %v12766_v33  ;;  %v5296_v33 = vmul.f32 %v14600_v1, %v5283_v43  ;;  %v6109_v1 = vld [vmem:[#allocation3 + $0x22] sm:$0xff] }
 0x5cd   : > { %10935 = vmatprep.subr.bf16.mxu1 %v16000_v37 }
 0x5ce   : > { %10756 = vmatpush3.bf16.msra.mxu0 %v12763_v14  ;;  %v12780_v14 = vld [vmem:[#allocation17 + $0x388] sm:$0xff]  }
 0x5cf   : > { %10757 = vmatprep.subr.bf16.mxu0 %v16000_v37 }
 0x5d0   : > { %10936 = vmatpush3.bf16.msra.mxu1 %v12768_v49  ;;  %v14673_v49 = vpack.c.bf16 %v5296_v33, %v5295_v13  ;;  %v5481_v13 = vld [vmem:[#allocation3] sm:$0xff]  ;;  %v5482_v33 = vld [vmem:[#allocation3 + $0x8] sm:$0xff] }
 0x5d1   : > { %10730 = vmatmul.mubr.bf16.gmra.mrb[4].mxu0 %v14498_v20  ;;  %10910 = vmatmul.mubr.bf16.gmra.mrb[8].mxu1 %v5748_v58  ;;  %v12769_v20 = vld [vmem:[#allocation17 + $0x360] sm:$0xff]  }
 0x5d2   : > { %10758 = vmatpush3.bf16.msra.mxu0 %v12765_v2  ;;  %10733 = vmatprep.mubr.msk.bf16.mxu0 %vm13300_vm8, %v16000_v37  ;;  %v12777_v58 = vld [vmem:[#allocation17 + $0x3c0] sm:$0xff]  }
 0x5d3   : > { %10759 = vmatprep.subr.bf16.mxu0 %v16000_v37  ;;  %10913 = vmatprep.mubr.msk.bf16.mxu1 %vm13300_vm8, %v16000_v37 }
 0x5d4   : > { %10937 = vmatprep.subr.bf16.mxu1 %v16000_v37 }
 0x5d5   : > { %10938 = vmatpush3.bf16.msra.mxu1 %v12770_v7  ;;  %v6136_v7 = vmul.f32 %v6123_v54, %v6109_v1  ;;  %v12796_v54 = vld [vmem:[#allocation17 + $0x88] sm:$0xff]  }
 0x5d6   : > { %10760 = vmatpush3.bf16.msra.mxu0 %v12767_v60  ;;  %10939 = vmatprep.subr.bf16.mxu1 %v16000_v37  ;;  %v6137_v60 = vmul.f32 %v6124_v19, %v6110_v62  ;;  %v12793_v62 = vld [vmem:[#allocation17 + $0xc0] sm:$0xff]  }
 0x5d7   : > { %10761 = vmatprep.subr.bf16.mxu0 %v16000_v37  ;;  %v14726_v19 = vld [vmem:[#allocation3 + $0x10] sm:$0xff] }
 0x5d8   : > { %v6147_v42 = vpack.c.bf16 %v6137_v60, %v6136_v7  ;;  %v5496_v7 = vld [vmem:[#allocation15 + $0x10] sm:$0xff]  ;;  %v5497_v60 = vld [vmem:[#allocation15 + $0x18] sm:$0xff] }
 0x5d9   : > { %10734 = vmatmul.mubr.bf16.gmra.mrb[8].mxu0 %v14507_v27  ;;  %10914 = vmatmul.mubr.bf16.gmra.mrb[12].mxu1 %v5749_v11  ;;  %v5717_v27 = vld [vmem:[#allocation3 + $0x61] sm:$0xff] }
 0x5da   : > { %10737 = vmatprep.mubr.msk.bf16.mxu0 %vm13300_vm8, %v16000_v37  ;;  %10762 = vmatpush3.bf16.msra.mxu0 %v12769_v20  ;;  %v5744_v28 = vmul.f32 %v5731_v45, %v5717_v27  ;;  %v12779_v11 = vld [vmem:[#allocation17 + $0x3c8] sm:$0xff]   ;;  %v12784_v20 = vld [vmem:[#allocation17 + $0x398] sm:$0xff]   ;;  %v12786_v27 = vld [vmem:[#allocation17 + $0x3a0] sm:$0xff]  }
 0x5db   : > { %10917 = vmatprep.mubr.msk.bf16.mxu1 %vm13300_vm8, %v16000_v37  ;;  %10763 = vmatprep.subr.bf16.mxu0 %v16000_v37 }
 0x5dc   : > { %10940 = vmatpush3.bf16.msra.mxu1 %v12772_v50  ;;  %v5751_v31 = vpack.c.bf16 %v5744_v28, %v5743_v21  ;;  %v6111_v50 = vld [vmem:[#allocation3 + $0x32] sm:$0xff]  ;;  %v6114_v21 = vld [vmem:[#allocation3 + $0x4a] sm:$0xff]  ;;  %v6127_v28 = vld [vmem:[#allocation15 + $0x110] sm:$0xff] }
 0x5dd   : > { %10941 = vmatprep.subr.bf16.mxu1 %v16000_v37 }
 0x5de   : > { %10764 = vmatpush3.bf16.msra.mxu0 %v12771_v15  ;;  %v6126_v15 = vld [vmem:[#allocation15 + $0x108] sm:$0xff] }
 0x5df   : > { %10765 = vmatprep.subr.bf16.mxu0 %v16000_v37 }
 0x5e0   : > { %10942 = vmatpush3.bf16.msra.mxu1 %v12774_v16  ;;  %v6138_v16 = vmul.f32 %v6125_v18, %v6111_v50  ;;  %v14739_v18 = vld [vmem:[#allocation3 + $0x20] sm:$0xff] }
 0x5e1   : > { %10738 = vmatmul.mubr.bf16.gmra.mrb[12].mxu0 %v14536_v17  ;;  %10918 = vmatmul.mubr.bf16.gmra.mrb[16].mxu1 %v5750_v34  ;;  %v5718_v17 = vld [vmem:[#allocation3 + $0x69] sm:$0x3]  ;;  %v6139_v34 = vmul.f32 %v6126_v15, %v6112_v55  ;;  %v5498_v15 = vld [vmem:[#allocation15 + $0x20] sm:$0xff] }
 0x5e2   : > { %10741 = vmatprep.mubr.msk.bf16.mxu0 %vm13300_vm8, %v16000_v37  ;;  %10921 = vmatprep.mubr.msk.bf16.mxu1 %vm13300_vm8, %v16000_v37  ;;  %v5745_v63 = vmul.f32 %v5732_v35, %v5718_v17  ;;  %v12797_v55 = vld [vmem:[#allocation17 + $0xd0] sm:$0xff]  }
 0x5e3   : > { %10766 = vmatpush3.bf16.msra.mxu0 %v12773_v40  ;;  %10943 = vmatprep.subr.bf16.mxu1 %v16000_v37  ;;  %v6148_v45 = vpack.c.bf16 %v6139_v34, %v6138_v16  ;;  %v12785_v40 = vld [vmem:[#allocation17 + $0x3e0] sm:$0xff]   ;;  %v5511_v34 = vmul.f32 %v5498_v15, %v14739_v18  ;;  %v7461_v15 = vld [vmem:[#allocation15 + $0x2f0] sm:$0xff] }
 0x5e4   : > { %10767 = vmatprep.subr.bf16.mxu0 %v16000_v37  ;;  %10944 = vmatpush3.bf16.msra.mxu1 %v12776_v9  ;;  %v5752_v36 = vpack.c.bf16 %v5745_v63, %v5745_v63  ;;  %v6113_v9 = vld [vmem:[#allocation3 + $0x42] sm:$0xff]  ;;  %v5499_v16 = vld [vmem:[#allocation15 + $0x28] sm:$0xff] }
 0x5e5   : > { %10973 = vmatprep.subr.bf16.mxu1 %v16000_v37  ;;  %v6140_v17 = vmul.f32 %v6127_v28, %v6113_v9  ;;  %v12787_v63 = vld [vmem:[#allocation17 + $0x3e8] sm:$0xff]   ;;  %v14754_v9 = vld [vmem:[#allocation3 + $0x30] sm:$0xff]  ;;  %v5501_v28 = vld [vmem:[#allocation15 + $0x38] sm:$0xff] }
 0x5e7   : > { %10768 = vmatpush3.bf16.msra.mxu0 %v12775_v29  ;;  %v6128_v29 = vld [vmem:[#allocation15 + $0x118] sm:$0xff] }
 0x5e8   : > { %10797 = vmatprep.subr.bf16.mxu0 %v16000_v37  ;;  %v6141_v35 = vmul.f32 %v6128_v29, %v6114_v21  ;;  %v14756_v21 = vld [vmem:[#allocation3 + $0x38] sm:$0xff] }
 0x5e9   : > { %10742 = vmatmul.mubr.bf16.gmra.mrb[16].mxu0 %v14574_v57  ;;  %10922 = vmatmul.mubr.bf16.gmra.mrb[20].mxu1 %v5751_v31  ;;  %v6132_v57 = vmul.f32 %v6119_v48, %v6105_v30  ;;  %v12788_v31 = vld [vmem:[#allocation17 + $0x3a8] sm:$0xff]   ;;  %v6115_v48 = vld [vmem:[#allocation3 + $0x52] sm:$0xff] }
 0x5ea   : > { %10745 = vmatprep.mubr.msk.bf16.mxu0 %vm13300_vm8, %v16000_v37  ;;  %10925 = vmatprep.mubr.msk.bf16.mxu1 %vm13300_vm8, %v16000_v37  ;;  %v6130_v30 = vld [vmem:[#allocation15 + $0x128] sm:$0xff] }
 0x5eb   : > { %v6145_v41 = vpack.c.bf16 %v6133_v59, %v6132_v57  ;;  %v6142_v57 = vmul.f32 %v6129_v47, %v6115_v48  ;;  %v6143_v59 = vmul.f32 %v6130_v30, %v6116_v38  ;;  %v12801_v29 = vld [vmem:[#allocation17 + $0xe0] sm:$0xff]   ;;  %v14768_v48 = vld [vmem:[#allocation3 + $0x40] sm:$0xff]  ;;  %v14771_v38 = vld [vmem:[#allocation3 + $0x48] sm:$0xff] }
 0x5ec   : > { %v5503_v47 = vld [vmem:[#allocation15 + $0x48] sm:$0xff]  ;;  %v12805_v30 = vld [vmem:[#allocation17 + $0xf0] sm:$0xff]  }
 0x5ed   : > { %v6150_v43 = vpack.c.bf16 %v6143_v59, %v6142_v57  ;;  %v5516_v57 = vmul.f32 %v5503_v47, %v14771_v38  ;;  %v12807_v59 = vld [vmem:[#allocation17 + $0xf8] sm:$0xff]  }
 0x5f1   : > { %10746 = vmatmul.mubr.bf16.gmra.mrb[20].mxu0 %v14591_v51  ;;  %10926 = vmatmul.mubr.bf16.gmra.mrb[24].mxu1 %v5752_v36  ;;  %v6108_v51 = vld [vmem:[#allocation3 + $0x1a] sm:$0xff]  ;;  %v6149_v36 = vpack.c.bf16 %v6141_v35, %v6140_v17  ;;  %v5514_v35 = vmul.f32 %v5501_v28, %v14756_v21  ;;  %v6611_v28 = vld [vmem:[#allocation3 + $0x26] sm:$0xff] }
 0x5f2   : > { %10749 = vmatprep.mubr.msk.bf16.mxu0 %vm13300_vm8, %v16000_v37  ;;  %10945 = vmatprep.mubr.msk.bf16.mxu1 %vm13300_vm8, %v16000_v37  ;;  %v6135_v44 = vmul.f32 %v6122_v8, %v6108_v51  ;;  %v5280_v8 = vld [vmem:[#allocation3 + $0x61] sm:$0x3] }
 0x5f4   : > { %v6146_v2 = vpack.c.bf16 %v6135_v44, %v6134_v5  ;;  %v5494_v5 = vld [vmem:[#allocation15] sm:$0xff]  ;;  %v5495_v44 = vld [vmem:[#allocation15 + $0x8] sm:$0xff] }
 0x5f9   : > { %10750 = vmatmul.mubr.bf16.gmra.mrb[24].mxu0 %v4914_v6  ;;  %10946 = vmatmul.mubr.bf16.vlgmr.msra.gmra.mrb[0].mxu1 %v6145_v41  ;;  %v6117_v6 = vld [vmem:[#allocation3 + $0x62] sm:$0x3] }
 0x5fa   : > { %10769 = vmatprep.mubr.msk.bf16.mxu0 %vm13300_vm8, %v16000_v37  ;;  %10974 = vmatpush3.bf16.msra.mxu1 %v12778_v10  ;;  %v6144_v41 = vmul.f32 %v6131_v4, %v6117_v6  ;;  %v5294_v10 = vld [vmem:[#allocation15 + $0xc8] sm:$0x3]  ;;  %v14785_v6 = vld [vmem:[#allocation3 + $0x58] sm:$0xff] }
 0x5fb   : > { %10949 = vmatprep.mubr.msk.bf16.mxu1 %vm13300_vm8, %v16000_v37  ;;  %10975 = vmatprep.subr.bf16.mxu1 %v16000_v37  ;;  %v5307_v25 = vmul.f32 %v5294_v10, %v5280_v8  ;;  %v5504_v4 = vld [vmem:[#allocation15 + $0x50] sm:$0xff] }
 0x5fc   : > { %v6151_v61 = vpack.c.bf16 %v6144_v41, %v6144_v41  ;;  %v6330_v41 = vld [vmem:[#allocation3 + $0x61] sm:$0x3] }
 0x5fd   : > { %v5314_v51 = vpack.c.bf16 %v5307_v25, %v5307_v25 }
 0x5fe   : > { %10976 = vmatpush3.bf16.msra.mxu1 %v12780_v14  ;;  %v12794_v14 = vld [vmem:[#allocation17 + $0x80] sm:$0xff]  }
 0x5ff   : > { %10977 = vmatprep.subr.bf16.mxu1 %v16000_v37 }
 0x601   : > { %10770 = vmatmul.mubr.bf16.vlgmr.msra.gmra.mrb[0].mxu0 %v14673_v49  ;;  %10950 = vmatmul.mubr.bf16.gmra.mrb[4].mxu1 %v6146_v2  ;;  %v5508_v2 = vmul.f32 %v5495_v44, %v5482_v33  ;;  %v5506_v33 = vld [vmem:[#allocation15 + $0x60] sm:$0x3] }
 0x602   : > { %10798 = vmatpush3.bf16.msra.mxu0 %v12777_v58  ;;  %10773 = vmatprep.mubr.msk.bf16.mxu0 %vm13300_vm8, %v16000_v37  ;;  %v5507_v58 = vmul.f32 %v5494_v5, %v5481_v13  ;;  %v5493_v13 = vld [vmem:[#allocation3 + $0x60] sm:$0x3]  ;;  %v7445_v44 = vld [vmem:[#allocation3 + $0xf] sm:$0xff] }
 0x603   : > { %10799 = vmatprep.subr.bf16.mxu0 %v16000_v37  ;;  %10953 = vmatprep.mubr.msk.bf16.mxu1 %vm13300_vm8, %v16000_v37 }
 0x604   : > { %10978 = vmatpush3.bf16.msra.mxu1 %v12782_v0  ;;  %v5520_v1 = vpack.c.bf16 %v5508_v2, %v5507_v58  ;;  %v14728_v0 = vld [vmem:[#allocation3 + $0x18] sm:$0xff]  ;;  %v7458_v58 = vld [vmem:[#allocation15 + $0x2d8] sm:$0xff]  ;;  %v7459_v2 = vld [vmem:[#allocation15 + $0x2e0] sm:$0xff] }
 0x605   : > { %10979 = vmatprep.subr.bf16.mxu1 %v16000_v37 }
 0x606   : > { %10800 = vmatpush3.bf16.msra.mxu0 %v12779_v11  ;;  %v5509_v11 = vmul.f32 %v5496_v7, %v14726_v19  ;;  %v6609_v7 = vld [vmem:[#allocation3 + $0x16] sm:$0xff] }
 0x607   : > { %10801 = vmatprep.subr.bf16.mxu0 %v16000_v37 }
 0x608   : > { %10980 = vmatpush3.bf16.msra.mxu1 %v12784_v20  ;;  %v5510_v20 = vmul.f32 %v5497_v60, %v14728_v0  ;;  %v6622_v60 = vld [vmem:[#allocation15 + $0x270] sm:$0xff] }
 0x609   : > { %10774 = vmatmul.mubr.bf16.gmra.mrb[4].mxu0 %v14540_v22  ;;  %10954 = vmatmul.mubr.bf16.gmra.mrb[8].mxu1 %v6147_v42  ;;  %v12800_v42 = vld [vmem:[#allocation17 + $0x98] sm:$0xff]  }
 0x60a   : > { %10802 = vmatpush3.bf16.msra.mxu0 %v12781_v32  ;;  %10777 = vmatprep.mubr.msk.bf16.mxu0 %vm13300_vm8, %v16000_v37  ;;  %v12795_v32 = vld [vmem:[#allocation17 + $0xc8] sm:$0xff]   ;;  %v5521_v50 = vpack.c.bf16 %v5510_v20, %v5509_v11  ;;  %v6623_v11 = vld [vmem:[#allocation15 + $0x278] sm:$0xff] }
 0x60b   : > { %10803 = vmatprep.subr.bf16.mxu0 %v16000_v37  ;;  %10957 = vmatprep.mubr.msk.bf16.mxu1 %vm13300_vm8, %v16000_v37 }
 0x60c   : > { %10981 = vmatprep.subr.bf16.mxu1 %v16000_v37 }
 0x60d   : > { %10982 = vmatpush3.bf16.msra.mxu1 %v12786_v27 }
 0x60e   : > { %10804 = vmatpush3.bf16.msra.mxu0 %v12783_v12  ;;  %10983 = vmatprep.subr.bf16.mxu1 %v16000_v37  ;;  %v12802_v12 = vld [vmem:[#allocation17 + $0xa0] sm:$0xff]  }
 0x60f   : > { %10805 = vmatprep.subr.bf16.mxu0 %v16000_v37 }
 0x611   : > { %10778 = vmatmul.mubr.bf16.gmra.mrb[8].mxu0 %v14548_v23  ;;  %10958 = vmatmul.mubr.bf16.gmra.mrb[12].mxu1 %v6148_v45  ;;  %v12799_v45 = vld [vmem:[#allocation17 + $0xd8] sm:$0xff]  }
 0x612   : > { %10781 = vmatprep.mubr.msk.bf16.mxu0 %vm13300_vm8, %v16000_v37  ;;  %10806 = vmatpush3.bf16.msra.mxu0 %v12785_v40 }
 0x613   : > { %10961 = vmatprep.mubr.msk.bf16.mxu1 %vm13300_vm8, %v16000_v37  ;;  %10807 = vmatprep.subr.bf16.mxu0 %v16000_v37 }
 0x614   : > { %10984 = vmatpush3.bf16.msra.mxu1 %v12788_v31  ;;  %v12804_v31 = vld [vmem:[#allocation17 + $0xa8] sm:$0xff]  }
 0x615   : > { %10985 = vmatprep.subr.bf16.mxu1 %v16000_v37 }
 0x616   : > { %10808 = vmatpush3.bf16.msra.mxu0 %v12787_v63  ;;  %v12803_v63 = vld [vmem:[#allocation17 + $0xe8] sm:$0xff]  }
 0x617   : > { %10809 = vmatprep.subr.bf16.mxu0 %v16000_v37 }
 0x618   : > { %10986 = vmatpush3.bf16.msra.mxu1 %v12790_v46  ;;  %v12806_v46 = vld [vmem:[#allocation17 + $0xb0] sm:$0xff]  }
 0x619   : > { %10782 = vmatmul.mubr.bf16.gmra.mrb[12].mxu0 %v14555_v56  ;;  %10962 = vmatmul.mubr.bf16.gmra.mrb[16].mxu1 %v6149_v36 }
 0x61a   : > { %10785 = vmatprep.mubr.msk.bf16.mxu0 %vm13300_vm8, %v16000_v37  ;;  %10965 = vmatprep.mubr.msk.bf16.mxu1 %vm13300_vm8, %v16000_v37 }
 0x61b   : > { %10810 = vmatpush3.bf16.msra.mxu0 %v12789_v24  ;;  %10987 = vmatprep.subr.bf16.mxu1 %v16000_v37  ;;  %v12808_v24 = vld [vmem:[#allocation17 + $0xb8] sm:$0xff]  }
 0x61c   : > { %10811 = vmatprep.subr.bf16.mxu0 %v16000_v37  ;;  %10988 = vmatpush3.bf16.msra.mxu1 %v12792_v53 }
 0x61d   : > { %11193 = vmatprep.subr.bf16.mxu1 %v16000_v37 }
 0x61f   : > { %10812 = vmatpush3.bf16.msra.mxu0 %v12791_v3 }
 0x620   : > { %11017 = vmatprep.subr.bf16.mxu0 %v16000_v37 }
 0x621   : > { %10786 = vmatmul.mubr.bf16.gmra.mrb[16].mxu0 %v14567_v39  ;;  %10966 = vmatmul.mubr.bf16.gmra.mrb[20].mxu1 %v6150_v43  ;;  %v14783_v43 = vld [vmem:[#allocation3 + $0x50] sm:$0xff] }
 0x622   : > { %10789 = vmatprep.mubr.msk.bf16.mxu0 %vm13300_vm8, %v16000_v37  ;;  %10969 = vmatprep.mubr.msk.bf16.mxu1 %vm13300_vm8, %v16000_v37  ;;  %v5517_v8 = vmul.f32 %v5504_v4, %v14783_v43  ;;  %v6612_v4 = vld [vmem:[#allocation3 + $0x2e] sm:$0xff] }
 0x629   : > { %10790 = vmatmul.mubr.bf16.gmra.mrb[20].mxu0 %v14577_v52  ;;  %10970 = vmatmul.mubr.bf16.gmra.mrb[24].mxu1 %v6151_v61  ;;  %v6343_v61 = vld [vmem:[#allocation15 + $0xc8] sm:$0x3] }
 0x62a   : > { %10793 = vmatprep.mubr.msk.bf16.mxu0 %vm13300_vm8, %v16000_v37  ;;  %10989 = vmatprep.mubr.msk.bf16.mxu1 %vm13300_vm8, %v16000_v37  ;;  %v6356_v25 = vmul.f32 %v6343_v61, %v6330_v41  ;;  %v12816_v41 = vld [vmem:[#allocation17 + $0x18] sm:$0xff]  }
 0x62c   : > { %v6363_v5 = vpack.c.bf16 %v6356_v25, %v6356_v25 }
 0x631   : > { %10794 = vmatmul.mubr.bf16.gmra.mrb[24].mxu0 %v5314_v51  ;;  %10990 = vmatmul.mubr.bf16.vlgmr.msra.gmra.mrb[0].mxu1 %v14673_v49  ;;  %v12798_v49 = vld [vmem:[#allocation17 + $0x90] sm:$0xff]  }
 0x632   : > { %10813 = vmatprep.mubr.msk.bf16.mxu0 %vm13300_vm8, %v16000_v37  ;;  %11194 = vmatpush3.bf16.msra.mxu1 %v12794_v14  ;;  %v7446_v14 = vld [vmem:[#allocation3 + $0x17] sm:$0xff] }
 0x633   : > { %10993 = vmatprep.mubr.msk.bf16.mxu1 %vm13300_vm8, %v16000_v37  ;;  %11195 = vmatprep.subr.bf16.mxu1 %v16000_v37 }
 0x636   : > { %11196 = vmatpush3.bf16.msra.mxu1 %v12796_v54  ;;  %v5519_v54 = vmul.f32 %v5506_v33, %v5493_v13  ;;  %v7452_v13 = vld [vmem:[#allocation3 + $0x47] sm:$0xff]  ;;  %v7464_v33 = vld [vmem:[#allocation15 + $0x308] sm:$0xff] }
 0x637   : > { %11197 = vmatprep.subr.bf16.mxu1 %v16000_v37 }
 0x639   : > { %10814 = vmatmul.mubr.bf16.vlgmr.msra.gmra.mrb[0].mxu0 %v5520_v1  ;;  %10994 = vmatmul.mubr.bf16.gmra.mrb[4].mxu1 %v14540_v22  ;;  %v14742_v22 = vld [vmem:[#allocation3 + $0x28] sm:$0xff]  ;;  %v7471_v1 = vmul.f32 %v7458_v58, %v7445_v44 }
 0x63a   : > { %11018 = vmatpush3.bf16.msra.mxu0 %v12793_v62  ;;  %10817 = vmatprep.mubr.msk.bf16.mxu0 %vm13300_vm8, %v16000_v37  ;;  %v5512_v27 = vmul.f32 %v5499_v16, %v14742_v22  ;;  %v6608_v62 = vld [vmem:[#allocation3 + $0xe] sm:$0xff] }
 0x63b   : > { %11019 = vmatprep.subr.bf16.mxu0 %v16000_v37  ;;  %10997 = vmatprep.mubr.msk.bf16.mxu1 %vm13300_vm8, %v16000_v37  ;;  %v6635_v16 = vmul.f32 %v6622_v60, %v6608_v62  ;;  %v6615_v62 = vld [vmem:[#allocation3 + $0x46] sm:$0xff] }
 0x63c   : > { %11198 = vmatpush3.bf16.msra.mxu1 %v12798_v49  ;;  %v5522_v40 = vpack.c.bf16 %v5512_v27, %v5511_v34  ;;  %v5526_v49 = vpack.c.bf16 %v5519_v54, %v5519_v54  ;;  %v6636_v34 = vmul.f32 %v6623_v11, %v6609_v7  ;;  %v12818_v54 = vld [vmem:[#allocation17 + $0x20] sm:$0xff]   ;;  %v6628_v7 = vld [vmem:[#allocation15 + $0x2a0] sm:$0xff] }
 0x63d   : > { %11199 = vmatprep.subr.bf16.mxu1 %v16000_v37 }
 0x63e   : > { %11020 = vmatpush3.bf16.msra.mxu0 %v12795_v32  ;;  %v7447_v32 = vld [vmem:[#allocation3 + $0x1f] sm:$0xff] }
 0x63f   : > { %11021 = vmatprep.subr.bf16.mxu0 %v16000_v37 }
 0x640   : > { %11200 = vmatpush3.bf16.msra.mxu1 %v12800_v42  ;;  %v7448_v42 = vld [vmem:[#allocation3 + $0x27] sm:$0xff] }
 0x641   : > { %10818 = vmatmul.mubr.bf16.gmra.mrb[4].mxu0 %v5521_v50  ;;  %10998 = vmatmul.mubr.bf16.gmra.mrb[8].mxu1 %v14548_v23  ;;  %v5500_v23 = vld [vmem:[#allocation15 + $0x30] sm:$0xff]  ;;  %v12810_v50 = vld [vmem:[#allocation17] sm:$0xff]  }
 0x642   : > { %11022 = vmatpush3.bf16.msra.mxu0 %v12797_v55  ;;  %10821 = vmatprep.mubr.msk.bf16.mxu0 %vm13300_vm8, %v16000_v37  ;;  %v5513_v17 = vmul.f32 %v5500_v23, %v14754_v9  ;;  %v7460_v55 = vld [vmem:[#allocation15 + $0x2e8] sm:$0xff]  ;;  %v6610_v23 = vld [vmem:[#allocation3 + $0x1e] sm:$0xff] }
 0x643   : > { %11023 = vmatprep.subr.bf16.mxu0 %v16000_v37  ;;  %11001 = vmatprep.mubr.msk.bf16.mxu1 %vm13300_vm8, %v16000_v37  ;;  %v7473_v27 = vmul.f32 %v7460_v55, %v7447_v32  ;;  %v7453_v32 = vld [vmem:[#allocation3 + $0x4f] sm:$0xff]  ;;  %v7466_v55 = vld [vmem:[#allocation15 + $0x318] sm:$0xff] }
 0x644   : > { %11201 = vmatprep.subr.bf16.mxu1 %v16000_v37  ;;  %v5523_v36 = vpack.c.bf16 %v5514_v35, %v5513_v17  ;;  %v6625_v17 = vld [vmem:[#allocation15 + $0x288] sm:$0xff] }
 0x645   : > { %11202 = vmatpush3.bf16.msra.mxu1 %v12802_v12  ;;  %v7474_v12 = vmul.f32 %v7461_v15, %v7448_v42  ;;  %v7454_v42 = vld [vmem:[#allocation3 + $0x57] sm:$0xff]  ;;  %v7467_v15 = vld [vmem:[#allocation15 + $0x320] sm:$0xff] }
 0x646   : > { %11024 = vmatpush3.bf16.msra.mxu0 %v12799_v45  ;;  %11203 = vmatprep.subr.bf16.mxu1 %v16000_v37  ;;  %v12812_v45 = vld [vmem:[#allocation17 + $0x8] sm:$0xff]  }
 0x647   : > { %11025 = vmatprep.subr.bf16.mxu0 %v16000_v37  ;;  %v14808_v35 = vpack.c.bf16 %v7474_v12, %v7473_v27  ;;  %v7479_v12 = vmul.f32 %v7466_v55, %v7453_v32  ;;  %v12826_v55 = vld [vmem:[#allocation17 + $0x200] sm:$0xff]  }
 0x649   : > { %10822 = vmatmul.mubr.bf16.gmra.mrb[8].mxu0 %v5522_v40  ;;  %11002 = vmatmul.mubr.bf16.gmra.mrb[12].mxu1 %v14555_v56  ;;  %v5502_v56 = vld [vmem:[#allocation15 + $0x40] sm:$0xff]  ;;  %v12809_v40 = vld [vmem:[#allocation17 + $0x40] sm:$0xff]  }
 0x64a   : > { %10825 = vmatprep.mubr.msk.bf16.mxu0 %vm13300_vm8, %v16000_v37  ;;  %11026 = vmatpush3.bf16.msra.mxu0 %v12801_v29  ;;  %v5515_v53 = vmul.f32 %v5502_v56, %v14768_v48  ;;  %v6648_v29 = vpack.c.bf16 %v6636_v34, %v6635_v16  ;;  %v7463_v56 = vld [vmem:[#allocation15 + $0x300] sm:$0xff]  ;;  %v12820_v34 = vld [vmem:[#allocation17 + $0x28] sm:$0xff]  }
 0x64b   : > { %11005 = vmatprep.mubr.msk.bf16.mxu1 %vm13300_vm8, %v16000_v37  ;;  %11027 = vmatprep.subr.bf16.mxu0 %v16000_v37 }
 0x64c   : > { %11204 = vmatpush3.bf16.msra.mxu1 %v12804_v31  ;;  %v5524_v3 = vpack.c.bf16 %v5516_v57, %v5515_v53  ;;  %v6624_v31 = vld [vmem:[#allocation15 + $0x280] sm:$0xff] }
 0x64d   : > { %11205 = vmatprep.subr.bf16.mxu1 %v16000_v37  ;;  %v6637_v47 = vmul.f32 %v6624_v31, %v6610_v23  ;;  %v6616_v23 = vld [vmem:[#allocation3 + $0x4e] sm:$0xff] }
 0x64e   : > { %11028 = vmatpush3.bf16.msra.mxu0 %v12803_v63  ;;  %v7449_v63 = vld [vmem:[#allocation3 + $0x2f] sm:$0xff] }
 0x64f   : > { %11029 = vmatprep.subr.bf16.mxu0 %v16000_v37 }
 0x650   : > { %11206 = vmatpush3.bf16.msra.mxu1 %v12806_v46  ;;  %v7450_v46 = vld [vmem:[#allocation3 + $0x37] sm:$0xff] }
 0x651   : > { %10826 = vmatmul.mubr.bf16.gmra.mrb[12].mxu0 %v5523_v36  ;;  %11006 = vmatmul.mubr.bf16.gmra.mrb[16].mxu1 %v14567_v39  ;;  %v5505_v39 = vld [vmem:[#allocation15 + $0x58] sm:$0xff]  ;;  %v7476_v57 = vmul.f32 %v7463_v56, %v7450_v46 }
 0x652   : > { %10829 = vmatprep.mubr.msk.bf16.mxu0 %vm13300_vm8, %v16000_v37  ;;  %11009 = vmatprep.mubr.msk.bf16.mxu1 %vm13300_vm8, %v16000_v37  ;;  %v5518_v10 = vmul.f32 %v5505_v39, %v14785_v6  ;;  %v7462_v36 = vld [vmem:[#allocation15 + $0x2f8] sm:$0xff]  ;;  %v6613_v39 = vld [vmem:[#allocation3 + $0x36] sm:$0xff] }
 0x653   : > { %11030 = vmatpush3.bf16.msra.mxu0 %v12805_v30  ;;  %11207 = vmatprep.subr.bf16.mxu1 %v16000_v37  ;;  %v12814_v30 = vld [vmem:[#allocation17 + $0x10] sm:$0xff]   ;;  %v7475_v53 = vmul.f32 %v7462_v36, %v7449_v63 }
 0x654   : > { %11031 = vmatprep.subr.bf16.mxu0 %v16000_v37  ;;  %11208 = vmatpush3.bf16.msra.mxu1 %v12808_v24  ;;  %v5525_v51 = vpack.c.bf16 %v5518_v10, %v5517_v8  ;;  %v6638_v24 = vmul.f32 %v6625_v17, %v6611_v28  ;;  %v6626_v8 = vld [vmem:[#allocation15 + $0x290] sm:$0xff]  ;;  %v6627_v10 = vld [vmem:[#allocation15 + $0x298] sm:$0xff]  ;;  %v6617_v28 = vld [vmem:[#allocation3 + $0x56] sm:$0xff] }
 0x655   : > { %11237 = vmatprep.subr.bf16.mxu1 %v16000_v37  ;;  %v14817_v25 = vpack.c.bf16 %v7476_v57, %v7475_v53  ;;  %v6639_v44 = vmul.f32 %v6626_v8, %v6612_v4  ;;  %v6630_v17 = vld [vmem:[#allocation15 + $0x2b0] sm:$0xff]  ;;  %v6631_v63 = vld [vmem:[#allocation15 + $0x2b8] sm:$0xff]  ;;  %v12824_v57 = vld [vmem:[#allocation17 + $0x38] sm:$0xff]  }
 0x656   : > { %v6649_v61 = vpack.c.bf16 %v6638_v24, %v6637_v47  ;;  %v7455_v36 = vld [vmem:[#allocation3 + $0x5f] sm:$0xff]  ;;  %v7456_v56 = vld [vmem:[#allocation3 + $0x67] sm:$0xff]  ;;  %v7468_v47 = vld [vmem:[#allocation15 + $0x328] sm:$0xff]  ;;  %v6643_v53 = vmul.f32 %v6630_v17, %v6616_v23 }
 0x657   : > { %11032 = vmatpush3.bf16.msra.mxu0 %v12807_v59  ;;  %v12811_v59 = vld [vmem:[#allocation17 + $0x48] sm:$0xff]   ;;  %v12821_v24 = vld [vmem:[#allocation17 + $0x70] sm:$0xff]  }
 0x658   : > { %11061 = vmatprep.subr.bf16.mxu0 %v16000_v37  ;;  %v6619_v8 = vld [vmem:[#allocation3 + $0x66] sm:$0xff] }
 0x659   : > { %10830 = vmatmul.mubr.bf16.gmra.mrb[16].mxu0 %v5524_v3  ;;  %11010 = vmatmul.mubr.bf16.gmra.mrb[20].mxu1 %v14577_v52  ;;  %v7472_v52 = vmul.f32 %v7459_v2, %v7446_v14  ;;  %v12813_v3 = vld [vmem:[#allocation17 + $0x50] sm:$0xff]   ;;  %v6640_v14 = vmul.f32 %v6627_v10, %v6613_v39  ;;  %v12823_v39 = vld [vmem:[#allocation17 + $0x78] sm:$0xff]  }
 0x65a   : > { %10833 = vmatprep.mubr.msk.bf16.mxu0 %vm13300_vm8, %v16000_v37  ;;  %11013 = vmatprep.mubr.msk.bf16.mxu1 %vm13300_vm8, %v16000_v37  ;;  %v6632_v10 = vld [vmem:[#allocation15 + $0x2c0] sm:$0xff]  ;;  %v7403_v17 = vld [vmem:[#allocation15 + $0x378] sm:$0xff] }
 0x65b   : > { %v14800_v20 = vpack.c.bf16 %v7472_v52, %v7471_v1  ;;  %v12815_v1 = vld [vmem:[#allocation17 + $0x58] sm:$0xff]   ;;  %v6614_v52 = vld [vmem:[#allocation3 + $0x3e] sm:$0xff]  ;;  %v6650_v60 = vpack.c.bf16 %v6640_v14, %v6639_v44 }
 0x65c   : > { %v6641_v16 = vmul.f32 %v6628_v7, %v6614_v52  ;;  %v6634_v52 = vld [vmem:[#allocation15 + $0x2d0] sm:$0x3]  ;;  %v7397_v7 = vld [vmem:[#allocation15 + $0x348] sm:$0xff] }
 0x65d   : > { %v7410_v32 = vmul.f32 %v7397_v7, %v14728_v0 }
 0x661   : > { %10834 = vmatmul.mubr.bf16.gmra.mrb[20].mxu0 %v5525_v51  ;;  %11014 = vmatmul.mubr.bf16.gmra.mrb[24].mxu1 %v6363_v5  ;;  %v7451_v51 = vld [vmem:[#allocation3 + $0x3f] sm:$0xff] }
 0x662   : > { %10837 = vmatprep.mubr.msk.bf16.mxu0 %vm13300_vm8, %v16000_v37  ;;  %11209 = vmatprep.mubr.msk.bf16.mxu1 %vm13300_vm8, %v16000_v37  ;;  %v7465_v5 = vld [vmem:[#allocation15 + $0x310] sm:$0xff]  ;;  %v7477_v58 = vmul.f32 %v7464_v33, %v7451_v51  ;;  %v7457_v33 = vld [vmem:[#allocation3 + $0x6f] sm:$0x3] }
 0x663   : > { %v7478_v2 = vmul.f32 %v7465_v5, %v7452_v13  ;;  %v6633_v13 = vld [vmem:[#allocation15 + $0x2c8] sm:$0xff]  ;;  %v7470_v5 = vld [vmem:[#allocation15 + $0x338] sm:$0x3] }
 0x664   : > { %v6646_v14 = vmul.f32 %v6633_v13, %v6619_v8 }
 0x665   : > { %v14828_v11 = vpack.c.bf16 %v7478_v2, %v7477_v58  ;;  %v7483_v58 = vmul.f32 %v7470_v5, %v7457_v33  ;;  %v7408_v33 = vld [vmem:[#allocation15 + $0x3a0] sm:$0x3] }
 0x669   : > { %10838 = vmatmul.mubr.bf16.gmra.mrb[24].mxu0 %v5526_v49  ;;  %11210 = vmatmul.mubr.bf16.vlgmr.msra.gmra.mrb[28].mxu1 %v14800_v20  ;;  %v6629_v49 = vld [vmem:[#allocation15 + $0x2a8] sm:$0xff] }
 0x66a   : > { %11033 = vmatprep.mubr.msk.bf16.mxu0 %vm13300_vm8, %v16000_v37  ;;  %11238 = vmatpush3.bf16.msra.mxu1 %v12810_v50  ;;  %v12817_v50 = vld [vmem:[#allocation17 + $0x60] sm:$0xff]   ;;  %v6642_v27 = vmul.f32 %v6629_v49, %v6615_v62  ;;  %v7396_v62 = vld [vmem:[#allocation15 + $0x340] sm:$0xff] }
 0x66b   : > { %11213 = vmatprep.mubr.msk.bf16.mxu1 %vm13300_vm8, %v16000_v37  ;;  %11239 = vmatprep.subr.bf16.mxu1 %v16000_v37  ;;  %v7409_v49 = vmul.f32 %v7396_v62, %v14726_v19  ;;  %v12828_v19 = vld [vmem:[#allocation17 + $0x208] sm:$0xff]  }
 0x66c   : > { %v6651_v31 = vpack.c.bf16 %v6642_v27, %v6641_v16  ;;  %v7399_v16 = vld [vmem:[#allocation15 + $0x358] sm:$0xff] }
 0x66d   : > { %v7412_v27 = vmul.f32 %v7399_v16, %v14742_v22  ;;  %v7783_v16 = vld [vmem:[#allocation3 + $0x21] sm:$0xff] }
 0x66e   : > { %11240 = vmatpush3.bf16.msra.mxu1 %v12812_v45  ;;  %v7480_v45 = vmul.f32 %v7467_v15, %v7454_v42  ;;  %v7398_v15 = vld [vmem:[#allocation15 + $0x350] sm:$0xff] }
 0x66f   : > { %11241 = vmatprep.subr.bf16.mxu1 %v16000_v37 }
 0x670   : > { %v14838_v46 = vpack.c.bf16 %v7480_v45, %v7479_v12  ;;  %v12825_v12 = vld [vmem:[#allocation17 + $0x240] sm:$0xff]   ;;  %v7400_v45 = vld [vmem:[#allocation15 + $0x360] sm:$0xff] }
 0x671   : > { %11034 = vmatmul.mubr.bf16.vlgmr.msra.gmra.mrb[28].mxu0 %v6648_v29  ;;  %11214 = vmatmul.mubr.bf16.gmra.mrb[32].mxu1 %v14808_v35  ;;  %v12822_v29 = vld [vmem:[#allocation17 + $0x30] sm:$0xff]   ;;  %v7413_v22 = vmul.f32 %v7400_v45, %v14754_v9  ;;  %v7402_v9 = vld [vmem:[#allocation15 + $0x370] sm:$0xff] }
 0x672   : > { %11062 = vmatpush3.bf16.msra.mxu0 %v12809_v40  ;;  %11037 = vmatprep.mubr.msk.bf16.mxu0 %vm13300_vm8, %v16000_v37  ;;  %v12819_v40 = vld [vmem:[#allocation17 + $0x68] sm:$0xff]  }
 0x673   : > { %11063 = vmatprep.subr.bf16.mxu0 %v16000_v37  ;;  %11217 = vmatprep.mubr.msk.bf16.mxu1 %vm13300_vm8, %v16000_v37 }
 0x674   : > { %11242 = vmatpush3.bf16.msra.mxu1 %v12814_v30  ;;  %v7469_v30 = vld [vmem:[#allocation15 + $0x330] sm:$0xff] }
 0x675   : > { %11243 = vmatprep.subr.bf16.mxu1 %v16000_v37  ;;  %v7482_v4 = vmul.f32 %v7469_v30, %v7456_v56  ;;  %v12831_v56 = vld [vmem:[#allocation17 + $0x258] sm:$0xff]   ;;  %v7405_v30 = vld [vmem:[#allocation15 + $0x388] sm:$0xff] }
 0x676   : > { %11064 = vmatpush3.bf16.msra.mxu0 %v12811_v59  ;;  %v6644_v59 = vmul.f32 %v6631_v63, %v6617_v28  ;;  %v12827_v28 = vld [vmem:[#allocation17 + $0x248] sm:$0xff]   ;;  %v7416_v63 = vmul.f32 %v7403_v17, %v14771_v38  ;;  %v7785_v17 = vld [vmem:[#allocation3 + $0x31] sm:$0xff] }
 0x677   : > { %11065 = vmatprep.subr.bf16.mxu0 %v16000_v37  ;;  %v12836_v38 = vld [vmem:[#allocation17 + $0x228] sm:$0xff]  }
 0x678   : > { %11244 = vmatpush3.bf16.msra.mxu1 %v12816_v41  ;;  %v6652_v41 = vpack.c.bf16 %v6644_v59, %v6643_v53  ;;  %v7418_v53 = vmul.f32 %v7405_v30, %v14785_v6  ;;  %v12838_v59 = vld [vmem:[#allocation17 + $0x230] sm:$0xff]   ;;  %v7406_v6 = vld [vmem:[#allocation15 + $0x390] sm:$0xff] }
 0x679   : > { %11038 = vmatmul.mubr.bf16.gmra.mrb[32].mxu0 %v6649_v61  ;;  %11218 = vmatmul.mubr.bf16.gmra.mrb[36].mxu1 %v14817_v25  ;;  %v6618_v61 = vld [vmem:[#allocation3 + $0x5e] sm:$0xff] }
 0x67a   : > { %11066 = vmatpush3.bf16.msra.mxu0 %v12813_v3  ;;  %11041 = vmatprep.mubr.msk.bf16.mxu0 %vm13300_vm8, %v16000_v37  ;;  %v7481_v3 = vmul.f32 %v7468_v47, %v7455_v36  ;;  %v6645_v44 = vmul.f32 %v6632_v10, %v6618_v61  ;;  %v12834_v36 = vld [vmem:[#allocation17 + $0x220] sm:$0xff]   ;;  %v12839_v10 = vld [vmem:[#allocation17 + $0x278] sm:$0xff]   ;;  %v12843_v30 = vld [vmem:[#allocation17 + $0x2c8] sm:$0xff]  }
 0x67b   : > { %11067 = vmatprep.subr.bf16.mxu0 %v16000_v37  ;;  %11221 = vmatprep.mubr.msk.bf16.mxu1 %vm13300_vm8, %v16000_v37 }
 0x67c   : > { %11245 = vmatprep.subr.bf16.mxu1 %v16000_v37  ;;  %v14849_v51 = vpack.c.bf16 %v7482_v4, %v7481_v3  ;;  %v6653_v2 = vpack.c.bf16 %v6646_v14, %v6645_v44  ;;  %v14901_v4 = vld [vmem:[#allocation3 + $0x60] sm:$0xff]  ;;  %v6556_v44 = vld [vmem:[#allocation3 + $0x6f] sm:$0x3] }
 0x67d   : > { %11246 = vmatpush3.bf16.msra.mxu1 %v12818_v54  ;;  %v6620_v54 = vld [vmem:[#allocation3 + $0x6e] sm:$0x3]  ;;  %v7419_v61 = vmul.f32 %v7406_v6, %v14901_v4  ;;  %v6570_v14 = vld [vmem:[#allocation15 + $0x338] sm:$0x3] }
 0x67e   : > { %11068 = vmatpush3.bf16.msra.mxu0 %v12815_v1  ;;  %11247 = vmatprep.subr.bf16.mxu1 %v16000_v37  ;;  %v7490_v1 = vpack.c.bf16 %v7483_v58, %v7483_v58  ;;  %v6583_v62 = vmul.f32 %v6570_v14, %v6556_v44  ;;  %v6950_v44 = vld [vmem:[#allocation3 + $0x38] sm:$0xff]  ;;  %v6951_v14 = vld [vmem:[#allocation3 + $0x40] sm:$0xff] }
 0x67f   : > { %11069 = vmatprep.subr.bf16.mxu0 %v16000_v37 }
 0x681   : > { %11042 = vmatmul.mubr.bf16.gmra.mrb[36].mxu0 %v6650_v60  ;;  %11222 = vmatmul.mubr.bf16.gmra.mrb[40].mxu1 %v14828_v11  ;;  %v6647_v60 = vmul.f32 %v6634_v52, %v6620_v54  ;;  %v7781_v54 = vld [vmem:[#allocation3 + $0x11] sm:$0xff]  ;;  %v7794_v52 = vld [vmem:[#allocation15 + $0x210] sm:$0xff] }
 0x682   : > { %11045 = vmatprep.mubr.msk.bf16.mxu0 %vm13300_vm8, %v16000_v37  ;;  %11070 = vmatpush3.bf16.msra.mxu0 %v12817_v50  ;;  %v7422_v50 = vpack.c.bf16 %v7410_v32, %v7409_v49  ;;  %v7807_v7 = vmul.f32 %v7794_v52, %v7781_v54  ;;  %v6945_v49 = vld [vmem:[#allocation3 + $0x10] sm:$0xff]  ;;  %v6964_v54 = vld [vmem:[#allocation15 + $0x1d8] sm:$0xff] }
 0x683   : > { %11225 = vmatprep.mubr.msk.bf16.mxu1 %vm13300_vm8, %v16000_v37  ;;  %11071 = vmatprep.subr.bf16.mxu0 %v16000_v37  ;;  %v6654_v42 = vpack.c.bf16 %v6647_v60, %v6647_v60  ;;  %v6944_v60 = vld [vmem:[#allocation3 + $0x8] sm:$0xff] }
 0x684   : > { %11248 = vmatpush3.bf16.msra.mxu1 %v12820_v34  ;;  %v7411_v34 = vmul.f32 %v7398_v15, %v14739_v18  ;;  %v12830_v18 = vld [vmem:[#allocation17 + $0x210] sm:$0xff]   ;;  %v6957_v32 = vld [vmem:[#allocation15 + $0x1a0] sm:$0xff]  ;;  %v7782_v15 = vld [vmem:[#allocation3 + $0x19] sm:$0xff] }
 0x685   : > { %11249 = vmatprep.subr.bf16.mxu1 %v16000_v37  ;;  %v7788_v52 = vld [vmem:[#allocation3 + $0x49] sm:$0xff] }
 0x686   : > { %11072 = vmatpush3.bf16.msra.mxu0 %v12819_v40  ;;  %v7423_v0 = vpack.c.bf16 %v7412_v27, %v7411_v34  ;;  %v7401_v40 = vld [vmem:[#allocation15 + $0x368] sm:$0xff]  ;;  %v7796_v27 = vld [vmem:[#allocation15 + $0x220] sm:$0xff] }
 0x687   : > { %11073 = vmatprep.subr.bf16.mxu0 %v16000_v37  ;;  %v7414_v23 = vmul.f32 %v7401_v40, %v14756_v21  ;;  %v7415_v21 = vmul.f32 %v7402_v9, %v14768_v48  ;;  %v7404_v48 = vld [vmem:[#allocation15 + $0x380] sm:$0xff]  ;;  %v12842_v34 = vld [vmem:[#allocation17 + $0x280] sm:$0xff]   ;;  %v7809_v45 = vmul.f32 %v7796_v27, %v7783_v16  ;;  %v12844_v40 = vld [vmem:[#allocation17 + $0x288] sm:$0xff]  }
 0x688   : > { %11250 = vmatpush3.bf16.msra.mxu1 %v12822_v29  ;;  %v12832_v29 = vld [vmem:[#allocation17 + $0x218] sm:$0xff]  }
 0x689   : > { %11046 = vmatmul.mubr.bf16.gmra.mrb[40].mxu0 %v6651_v31  ;;  %11226 = vmatmul.mubr.bf16.gmra.mrb[44].mxu1 %v14838_v46  ;;  %v7424_v31 = vpack.c.bf16 %v7414_v23, %v7413_v22  ;;  %v7425_v47 = vpack.c.bf16 %v7416_v63, %v7415_v21  ;;  %v6946_v22 = vld [vmem:[#allocation3 + $0x18] sm:$0xff]  ;;  %v6947_v23 = vld [vmem:[#allocation3 + $0x20] sm:$0xff]  ;;  %v7784_v9 = vld [vmem:[#allocation3 + $0x29] sm:$0xff] }
 0x68a   : > { %11049 = vmatprep.mubr.msk.bf16.mxu0 %vm13300_vm8, %v16000_v37  ;;  %11229 = vmatprep.mubr.msk.bf16.mxu1 %vm13300_vm8, %v16000_v37  ;;  %v7797_v21 = vld [vmem:[#allocation15 + $0x228] sm:$0xff]  ;;  %v7798_v63 = vld [vmem:[#allocation15 + $0x230] sm:$0xff]  ;;  %v6952_v16 = vld [vmem:[#allocation3 + $0x48] sm:$0xff] }
 0x68b   : > { %11074 = vmatpush3.bf16.msra.mxu0 %v12821_v24  ;;  %11251 = vmatprep.subr.bf16.mxu1 %v16000_v37  ;;  %v7417_v24 = vmul.f32 %v7404_v48, %v14783_v43  ;;  %v7393_v43 = vld [vmem:[#allocation3 + $0x68] sm:$0xff]  ;;  %v7811_v48 = vmul.f32 %v7798_v63, %v7785_v17 }
 0x68c   : > { %11075 = vmatprep.subr.bf16.mxu0 %v16000_v37  ;;  %11252 = vmatpush3.bf16.msra.mxu1 %v12824_v57  ;;  %v12835_v57 = vld [vmem:[#allocation17 + $0x268] sm:$0xff]  }
 0x68d   : > { %11281 = vmatprep.subr.bf16.mxu1 %v16000_v37  ;;  %v7426_v3 = vpack.c.bf16 %v7418_v53, %v7417_v24  ;;  %v6948_v24 = vld [vmem:[#allocation3 + $0x28] sm:$0xff]  ;;  %v6949_v53 = vld [vmem:[#allocation3 + $0x30] sm:$0xff] }
 0x68f   : > { %11076 = vmatpush3.bf16.msra.mxu0 %v12823_v39  ;;  %v12837_v39 = vld [vmem:[#allocation17 + $0x270] sm:$0xff]  }
 0x690   : > { %11105 = vmatprep.subr.bf16.mxu0 %v16000_v37 }
 0x691   : > { %11050 = vmatmul.mubr.bf16.gmra.mrb[44].mxu0 %v6652_v41  ;;  %11230 = vmatmul.mubr.bf16.gmra.mrb[48].mxu1 %v14849_v51  ;;  %v12840_v41 = vld [vmem:[#allocation17 + $0x238] sm:$0xff]  }
 0x692   : > { %11053 = vmatprep.mubr.msk.bf16.mxu0 %vm13300_vm8, %v16000_v37  ;;  %11233 = vmatprep.mubr.msk.bf16.mxu1 %vm13300_vm8, %v16000_v37 }
 0x699   : > { %11054 = vmatmul.mubr.bf16.gmra.mrb[48].mxu0 %v6653_v2  ;;  %11234 = vmatmul.mubr.bf16.gmra.mrb[52].mxu1 %v7490_v1  ;;  %v7780_v2 = vld [vmem:[#allocation3 + $0x9] sm:$0xff]  ;;  %v7793_v1 = vld [vmem:[#allocation15 + $0x208] sm:$0xff] }
 0x69a   : > { %11057 = vmatprep.mubr.msk.bf16.mxu0 %vm13300_vm8, %v16000_v37  ;;  %11253 = vmatprep.mubr.msk.bf16.mxu1 %vm13300_vm8, %v16000_v37 }
 0x6a1   : > { %11058 = vmatmul.mubr.bf16.gmra.mrb[52].mxu0 %v6654_v42  ;;  %11254 = vmatmul.mubr.bf16.vlgmr.msra.gmra.mrb[28].mxu1 %v7422_v50  ;;  %v6590_v42 = vpack.c.bf16 %v6583_v62, %v6583_v62  ;;  %v6958_v50 = vld [vmem:[#allocation15 + $0x1a8] sm:$0xff] }
 0x6a2   : > { %11077 = vmatprep.mubr.msk.bf16.mxu0 %vm13300_vm8, %v16000_v37  ;;  %11282 = vmatpush3.bf16.msra.mxu1 %v12826_v55  ;;  %v7789_v62 = vld [vmem:[#allocation3 + $0x51] sm:$0xff] }
 0x6a3   : > { %11257 = vmatprep.mubr.msk.bf16.mxu1 %vm13300_vm8, %v16000_v37  ;;  %11283 = vmatprep.subr.bf16.mxu1 %v16000_v37 }
 0x6a6   : > { %11284 = vmatpush3.bf16.msra.mxu1 %v12828_v19  ;;  %v6970_v19 = vmul.f32 %v6957_v32, %v6944_v60  ;;  %v7802_v60 = vld [vmem:[#allocation15 + $0x250] sm:$0xff] }
 0x6a7   : > { %11285 = vmatprep.subr.bf16.mxu1 %v16000_v37  ;;  %v12852_v32 = vld [vmem:[#allocation17 + $0x2a8] sm:$0xff]  }
 0x6a9   : > { %11078 = vmatmul.mubr.bf16.vlgmr.msra.gmra.mrb[28].mxu0 %v14800_v20  ;;  %11258 = vmatmul.mubr.bf16.gmra.mrb[32].mxu1 %v7423_v0  ;;  %v12829_v20 = vld [vmem:[#allocation17 + $0x250] sm:$0xff]   ;;  %v6971_v0 = vmul.f32 %v6958_v50, %v6945_v49 }
 0x6aa   : > { %11106 = vmatpush3.bf16.msra.mxu0 %v12825_v12  ;;  %11081 = vmatprep.mubr.msk.bf16.mxu0 %vm13300_vm8, %v16000_v37 }
 0x6ab   : > { %11107 = vmatprep.subr.bf16.mxu0 %v16000_v37  ;;  %11261 = vmatprep.mubr.msk.bf16.mxu1 %vm13300_vm8, %v16000_v37 }
 0x6ac   : > { %11286 = vmatpush3.bf16.msra.mxu1 %v12830_v18  ;;  %v12841_v18 = vld [vmem:[#allocation17 + $0x2c0] sm:$0xff]  }
 0x6ad   : > { %11287 = vmatprep.subr.bf16.mxu1 %v16000_v37 }
 0x6ae   : > { %11108 = vmatpush3.bf16.msra.mxu0 %v12827_v28  ;;  %v14930_v28 = vpack.c.bf16 %v6971_v0, %v6970_v19  ;;  %v6965_v19 = vld [vmem:[#allocation15 + $0x1e0] sm:$0xff]  ;;  %v6966_v0 = vld [vmem:[#allocation15 + $0x1e8] sm:$0xff] }
 0x6af   : > { %11109 = vmatprep.subr.bf16.mxu0 %v16000_v37 }
 0x6b0   : > { %11288 = vmatpush3.bf16.msra.mxu1 %v12832_v29  ;;  %v6959_v29 = vld [vmem:[#allocation15 + $0x1b0] sm:$0xff] }
 0x6b1   : > { %11082 = vmatmul.mubr.bf16.gmra.mrb[32].mxu0 %v14808_v35  ;;  %11262 = vmatmul.mubr.bf16.gmra.mrb[36].mxu1 %v7424_v31  ;;  %v12833_v35 = vld [vmem:[#allocation17 + $0x260] sm:$0xff]   ;;  %v6960_v31 = vld [vmem:[#allocation15 + $0x1b8] sm:$0xff] }
 0x6b2   : > { %11110 = vmatpush3.bf16.msra.mxu0 %v12829_v20  ;;  %11085 = vmatprep.mubr.msk.bf16.mxu0 %vm13300_vm8, %v16000_v37 }
 0x6b3   : > { %11111 = vmatprep.subr.bf16.mxu0 %v16000_v37  ;;  %11265 = vmatprep.mubr.msk.bf16.mxu1 %vm13300_vm8, %v16000_v37 }
 0x6b4   : > { %11289 = vmatprep.subr.bf16.mxu1 %v16000_v37 }
 0x6b5   : > { %11290 = vmatpush3.bf16.msra.mxu1 %v12834_v36  ;;  %v6972_v36 = vmul.f32 %v6959_v29, %v6946_v22  ;;  %v7804_v22 = vld [vmem:[#allocation15 + $0x260] sm:$0xff]  ;;  %v6978_v29 = vmul.f32 %v6965_v19, %v6952_v16 }
 0x6b6   : > { %11112 = vmatpush3.bf16.msra.mxu0 %v12831_v56  ;;  %11291 = vmatprep.subr.bf16.mxu1 %v16000_v37  ;;  %v12846_v56 = vld [vmem:[#allocation17 + $0x290] sm:$0xff]  }
 0x6b7   : > { %11113 = vmatprep.subr.bf16.mxu0 %v16000_v37 }
 0x6b9   : > { %11086 = vmatmul.mubr.bf16.gmra.mrb[36].mxu0 %v14817_v25  ;;  %11266 = vmatmul.mubr.bf16.gmra.mrb[40].mxu1 %v7425_v47  ;;  %v7407_v25 = vld [vmem:[#allocation15 + $0x398] sm:$0xff]  ;;  %v6973_v47 = vmul.f32 %v6960_v31, %v6947_v23  ;;  %v12856_v31 = vld [vmem:[#allocation17 + $0x2b8] sm:$0xff]  }
 0x6ba   : > { %11089 = vmatprep.mubr.msk.bf16.mxu0 %vm13300_vm8, %v16000_v37  ;;  %11114 = vmatpush3.bf16.msra.mxu0 %v12833_v35  ;;  %v7420_v8 = vmul.f32 %v7407_v25, %v7393_v43  ;;  %v7810_v35 = vmul.f32 %v7797_v21, %v7784_v9  ;;  %v6962_v43 = vld [vmem:[#allocation15 + $0x1c8] sm:$0xff]  ;;  %v12853_v23 = vld [vmem:[#allocation17 + $0x2f0] sm:$0xff]   ;;  %v12855_v21 = vld [vmem:[#allocation17 + $0x2f8] sm:$0xff]  }
 0x6bb   : > { %11269 = vmatprep.mubr.msk.bf16.mxu1 %vm13300_vm8, %v16000_v37  ;;  %11115 = vmatprep.subr.bf16.mxu0 %v16000_v37  ;;  %v7786_v25 = vld [vmem:[#allocation3 + $0x39] sm:$0xff] }
 0x6bc   : > { %11292 = vmatpush3.bf16.msra.mxu1 %v12836_v38  ;;  %v7427_v13 = vpack.c.bf16 %v7420_v8, %v7419_v61  ;;  %v12845_v38 = vld [vmem:[#allocation17 + $0x2d0] sm:$0xff]   ;;  %v7821_v6 = vpack.c.bf16 %v7811_v48, %v7810_v35  ;;  %v7800_v61 = vld [vmem:[#allocation15 + $0x240] sm:$0xff] }
 0x6bd   : > { %11293 = vmatprep.subr.bf16.mxu1 %v16000_v37  ;;  %v6968_v35 = vld [vmem:[#allocation15 + $0x1f8] sm:$0xff] }
 0x6be   : > { %11116 = vmatpush3.bf16.msra.mxu0 %v12835_v57  ;;  %v12848_v57 = vld [vmem:[#allocation17 + $0x298] sm:$0xff]   ;;  %v7792_v48 = vld [vmem:[#allocation3 + $0x69] sm:$0x3] }
 0x6bf   : > { %11117 = vmatprep.subr.bf16.mxu0 %v16000_v37 }
 0x6c0   : > { %11294 = vmatpush3.bf16.msra.mxu1 %v12838_v59  ;;  %v14939_v59 = vpack.c.bf16 %v6973_v47, %v6972_v36  ;;  %v6954_v36 = vld [vmem:[#allocation3 + $0x58] sm:$0xff] }
 0x6c1   : > { %11090 = vmatmul.mubr.bf16.gmra.mrb[40].mxu0 %v14828_v11  ;;  %11270 = vmatmul.mubr.bf16.gmra.mrb[44].mxu1 %v7426_v3  ;;  %v7394_v11 = vld [vmem:[#allocation3 + $0x70] sm:$0x3] }
 0x6c2   : > { %11093 = vmatprep.mubr.msk.bf16.mxu0 %vm13300_vm8, %v16000_v37  ;;  %11273 = vmatprep.mubr.msk.bf16.mxu1 %vm13300_vm8, %v16000_v37  ;;  %v7421_v5 = vmul.f32 %v7408_v33, %v7394_v11  ;;  %v6961_v3 = vld [vmem:[#allocation15 + $0x1c0] sm:$0xff]  ;;  %v12850_v33 = vld [vmem:[#allocation17 + $0x2a0] sm:$0xff]  }
 0x6c3   : > { %11118 = vmatpush3.bf16.msra.mxu0 %v12837_v39  ;;  %11295 = vmatprep.subr.bf16.mxu1 %v16000_v37  ;;  %v7787_v39 = vld [vmem:[#allocation3 + $0x41] sm:$0xff]  ;;  %v6974_v8 = vmul.f32 %v6961_v3, %v6948_v24  ;;  %v6981_v24 = vmul.f32 %v14901_v4, %v6968_v35  ;;  %v6969_v4 = vld [vmem:[#allocation15 + $0x200] sm:$0x3] }
 0x6c4   : > { %11119 = vmatprep.subr.bf16.mxu0 %v16000_v37  ;;  %11296 = vmatpush3.bf16.msra.mxu1 %v12840_v41  ;;  %v7428_v58 = vpack.c.bf16 %v7421_v5, %v7421_v5  ;;  %v7799_v41 = vld [vmem:[#allocation15 + $0x238] sm:$0xff]  ;;  %v7813_v11 = vmul.f32 %v7800_v61, %v7787_v39  ;;  %v12847_v5 = vld [vmem:[#allocation17 + $0x2d8] sm:$0xff]  }
 0x6c5   : > { %11325 = vmatprep.subr.bf16.mxu1 %v16000_v37  ;;  %v6956_v39 = vld [vmem:[#allocation3 + $0x68] sm:$0x3] }
 0x6c7   : > { %11120 = vmatpush3.bf16.msra.mxu0 %v12839_v10  ;;  %v6975_v10 = vmul.f32 %v6962_v43, %v6949_v53 }
 0x6c8   : > { %11149 = vmatprep.subr.bf16.mxu0 %v16000_v37 }
 0x6c9   : > { %11094 = vmatmul.mubr.bf16.gmra.mrb[44].mxu0 %v14838_v46  ;;  %11274 = vmatmul.mubr.bf16.gmra.mrb[48].mxu1 %v7427_v13  ;;  %v7806_v46 = vmul.f32 %v7793_v1, %v7780_v2  ;;  %v7812_v13 = vmul.f32 %v7799_v41, %v7786_v25  ;;  %v14950_v2 = vpack.c.bf16 %v6975_v10, %v6974_v8 }
 0x6ca   : > { %11097 = vmatprep.mubr.msk.bf16.mxu0 %vm13300_vm8, %v16000_v37  ;;  %11277 = vmatprep.mubr.msk.bf16.mxu1 %vm13300_vm8, %v16000_v37  ;;  %v6982_v8 = vmul.f32 %v6969_v4, %v6956_v39 }
 0x6cb   : > { %v7819_v55 = vpack.c.bf16 %v7807_v7, %v7806_v46  ;;  %v7822_v1 = vpack.c.bf16 %v7813_v11, %v7812_v13  ;;  %v12849_v46 = vld [vmem:[#allocation17 + $0x2e0] sm:$0xff]  }
 0x6cc   : > { %v7801_v7 = vld [vmem:[#allocation15 + $0x248] sm:$0xff] }
 0x6cd   : > { %v7814_v50 = vmul.f32 %v7801_v7, %v7788_v52  ;;  %v7169_v52 = vld [vmem:[#allocation15 + $0x138] sm:$0xff] }
 0x6d1   : > { %11098 = vmatmul.mubr.bf16.gmra.mrb[48].mxu0 %v14849_v51  ;;  %11278 = vmatmul.mubr.bf16.gmra.mrb[52].mxu1 %v7428_v58  ;;  %v7795_v51 = vld [vmem:[#allocation15 + $0x218] sm:$0xff]  ;;  %v6963_v58 = vld [vmem:[#allocation15 + $0x1d0] sm:$0xff] }
 0x6d2   : > { %11101 = vmatprep.mubr.msk.bf16.mxu0 %vm13300_vm8, %v16000_v37  ;;  %11297 = vmatprep.mubr.msk.bf16.mxu1 %vm13300_vm8, %v16000_v37  ;;  %v7808_v12 = vmul.f32 %v7795_v51, %v7782_v15  ;;  %v6976_v49 = vmul.f32 %v6963_v58, %v6950_v44  ;;  %v12851_v15 = vld [vmem:[#allocation17 + $0x2e8] sm:$0xff]   ;;  %v12854_v51 = vld [vmem:[#allocation17 + $0x2b0] sm:$0xff]  }
 0x6d4   : > { %v7820_v20 = vpack.c.bf16 %v7809_v45, %v7808_v12  ;;  %v7790_v45 = vld [vmem:[#allocation3 + $0x59] sm:$0xff] }
 0x6d9   : > { %11102 = vmatmul.mubr.bf16.gmra.mrb[52].mxu0 %v6590_v42  ;;  %11298 = vmatmul.mubr.bf16.vlgmr.msra.gmra.mrb[28].mxu1 %v7819_v55  ;;  %v6977_v42 = vmul.f32 %v6964_v54, %v6951_v14  ;;  %v7815_v55 = vmul.f32 %v7802_v60, %v7789_v62  ;;  %v7156_v14 = vld [vmem:[#allocation3 + $0x7] sm:$0xff] }
 0x6da   : > { %11121 = vmatprep.mubr.msk.bf16.mxu0 %vm13300_vm8, %v16000_v37  ;;  %11326 = vmatpush3.bf16.msra.mxu1 %v12842_v34  ;;  %v6953_v34 = vld [vmem:[#allocation3 + $0x50] sm:$0xff] }
 0x6db   : > { %11301 = vmatprep.mubr.msk.bf16.mxu1 %vm13300_vm8, %v16000_v37  ;;  %11327 = vmatprep.subr.bf16.mxu1 %v16000_v37  ;;  %v14960_v27 = vpack.c.bf16 %v6977_v42, %v6976_v49  ;;  %v7823_v12 = vpack.c.bf16 %v7815_v55, %v7814_v50  ;;  %v7170_v62 = vld [vmem:[#allocation15 + $0x140] sm:$0xff] }
 0x6de   : > { %11328 = vmatpush3.bf16.msra.mxu1 %v12844_v40  ;;  %v7791_v40 = vld [vmem:[#allocation3 + $0x61] sm:$0xff] }
 0x6df   : > { %11329 = vmatprep.subr.bf16.mxu1 %v16000_v37  ;;  %v7817_v17 = vmul.f32 %v7804_v22, %v7791_v40  ;;  %v7171_v40 = vld [vmem:[#allocation15 + $0x148] sm:$0xff] }
 0x6e1   : > { %11122 = vmatmul.mubr.bf16.vlgmr.msra.gmra.mrb[28].mxu0 %v14930_v28  ;;  %11302 = vmatmul.mubr.bf16.gmra.mrb[32].mxu1 %v7820_v20  ;;  %v6979_v20 = vmul.f32 %v6966_v0, %v6953_v34 }
 0x6e2   : > { %11150 = vmatpush3.bf16.msra.mxu0 %v12841_v18  ;;  %11125 = vmatprep.mubr.msk.bf16.mxu0 %vm13300_vm8, %v16000_v37  ;;  %v7803_v18 = vld [vmem:[#allocation15 + $0x258] sm:$0xff] }
 0x6e3   : > { %11151 = vmatprep.subr.bf16.mxu0 %v16000_v37  ;;  %11305 = vmatprep.mubr.msk.bf16.mxu1 %vm13300_vm8, %v16000_v37  ;;  %v7816_v9 = vmul.f32 %v7803_v18, %v7790_v45  ;;  %v14971_v63 = vpack.c.bf16 %v6979_v20, %v6978_v29  ;;  %v7159_v45 = vld [vmem:[#allocation3 + $0x1f] sm:$0xff] }
 0x6e4   : > { %11330 = vmatpush3.bf16.msra.mxu1 %v12846_v56  ;;  %v6967_v56 = vld [vmem:[#allocation15 + $0x1f0] sm:$0xff] }
 0x6e5   : > { %11331 = vmatprep.subr.bf16.mxu1 %v16000_v37  ;;  %v7824_v47 = vpack.c.bf16 %v7817_v17, %v7816_v9  ;;  %v7172_v18 = vld [vmem:[#allocation15 + $0x150] sm:$0xff] }
 0x6e6   : > { %11152 = vmatpush3.bf16.msra.mxu0 %v12843_v30  ;;  %v7805_v30 = vld [vmem:[#allocation15 + $0x268] sm:$0x3]  ;;  %v7185_v9 = vmul.f32 %v7172_v18, %v7159_v45 }
 0x6e7   : > { %11153 = vmatprep.subr.bf16.mxu0 %v16000_v37  ;;  %v7818_v53 = vmul.f32 %v7805_v30, %v7792_v48 }
 0x6e8   : > { %11332 = vmatpush3.bf16.msra.mxu1 %v12848_v57 }
 0x6e9   : > { %11126 = vmatmul.mubr.bf16.gmra.mrb[32].mxu0 %v14939_v59  ;;  %11306 = vmatmul.mubr.bf16.gmra.mrb[36].mxu1 %v7821_v6  ;;  %v7825_v6 = vpack.c.bf16 %v7818_v53, %v7818_v53  ;;  %v7173_v53 = vld [vmem:[#allocation15 + $0x158] sm:$0xff] }
 0x6ea   : > { %11154 = vmatpush3.bf16.msra.mxu0 %v12845_v38  ;;  %11129 = vmatprep.mubr.msk.bf16.mxu0 %vm13300_vm8, %v16000_v37  ;;  %v6980_v38 = vmul.f32 %v6967_v56, %v6954_v36 }
 0x6eb   : > { %11155 = vmatprep.subr.bf16.mxu0 %v16000_v37  ;;  %11309 = vmatprep.mubr.msk.bf16.mxu1 %vm13300_vm8, %v16000_v37 }
 0x6ec   : > { %11333 = vmatprep.subr.bf16.mxu1 %v16000_v37  ;;  %v14983_v3 = vpack.c.bf16 %v6981_v24, %v6980_v38  ;;  %v7161_v24 = vld [vmem:[#allocation3 + $0x2f] sm:$0xff] }
 0x6ed   : > { %11334 = vmatpush3.bf16.msra.mxu1 %v12850_v33  ;;  %v6989_v33 = vpack.c.bf16 %v6982_v8, %v6982_v8 }
 0x6ee   : > { %11156 = vmatpush3.bf16.msra.mxu0 %v12847_v5  ;;  %11335 = vmatprep.subr.bf16.mxu1 %v16000_v37 }
 0x6ef   : > { %11157 = vmatprep.subr.bf16.mxu0 %v16000_v37 }
 0x6f1   : > { %11130 = vmatmul.mubr.bf16.gmra.mrb[36].mxu0 %v14950_v2  ;;  %11310 = vmatmul.mubr.bf16.gmra.mrb[40].mxu1 %v7822_v1  ;;  %v7157_v1 = vld [vmem:[#allocation3 + $0xf] sm:$0xff] }
 0x6f2   : > { %11133 = vmatprep.mubr.msk.bf16.mxu0 %vm13300_vm8, %v16000_v37  ;;  %11158 = vmatpush3.bf16.msra.mxu0 %v12849_v46  ;;  %v7183_v42 = vmul.f32 %v7170_v62, %v7157_v1 }
 0x6f3   : > { %11313 = vmatprep.mubr.msk.bf16.mxu1 %vm13300_vm8, %v16000_v37  ;;  %11159 = vmatprep.subr.bf16.mxu0 %v16000_v37 }
 0x6f4   : > { %11336 = vmatpush3.bf16.msra.mxu1 %v12852_v32  ;;  %v7182_v32 = vmul.f32 %v7169_v52, %v7156_v14  ;;  %v7162_v52 = vld [vmem:[#allocation3 + $0x37] sm:$0xff] }
 0x6f5   : > { %11337 = vmatprep.subr.bf16.mxu1 %v16000_v37 }
 0x6f6   : > { %11160 = vmatpush3.bf16.msra.mxu0 %v12851_v15  ;;  %v7195_v16 = vpack.c.bf16 %v7183_v42, %v7182_v32 }
 0x6f7   : > { %11161 = vmatprep.subr.bf16.mxu0 %v16000_v37 }
 0x6f8   : > { %11338 = vmatpush3.bf16.msra.mxu1 %v12854_v51 }
 0x6f9   : > { %11134 = vmatmul.mubr.bf16.gmra.mrb[40].mxu0 %v14960_v27  ;;  %11314 = vmatmul.mubr.bf16.gmra.mrb[44].mxu1 %v7823_v12 }
 0x6fa   : > { %11137 = vmatprep.mubr.msk.bf16.mxu0 %vm13300_vm8, %v16000_v37  ;;  %11317 = vmatprep.mubr.msk.bf16.mxu1 %vm13300_vm8, %v16000_v37 }
 0x6fb   : > { %11162 = vmatpush3.bf16.msra.mxu0 %v12853_v23  ;;  %11339 = vmatprep.subr.bf16.mxu1 %v16000_v37 }
 0x6fc   : > { %11163 = vmatprep.subr.bf16.mxu0 %v16000_v37  ;;  %11340 = vmatpush3.bf16.msra.mxu1 %v12856_v31 }
 0x6fd   : > { %11413 = vmatprep.subr.bf16.mxu1 %v16000_v37 }
 0x6ff   : > { %11164 = vmatpush3.bf16.msra.mxu0 %v12855_v21 }
 0x700   : > { %11369 = vmatprep.subr.bf16.mxu0 %v16000_v37 }
 0x701   : > { %11138 = vmatmul.mubr.bf16.gmra.mrb[44].mxu0 %v14971_v63  ;;  %11318 = vmatmul.mubr.bf16.gmra.mrb[48].mxu1 %v7824_v47 }
 0x702   : > { %11141 = vmatprep.mubr.msk.bf16.mxu0 %vm13300_vm8, %v16000_v37  ;;  %11321 = vmatprep.mubr.msk.bf16.mxu1 %vm13300_vm8, %v16000_v37 }
 0x704   : > { %v14981_v57 = vpop.f32.mrb[0].mxu1 }
 0x705   : > { %6531 = vst [vmem:[#allocation4 + $0x68] sm:$0xff] %v14981_v57  ;;  %v10991_v43 = vpop.f32.mrb[1].mxu1 }
 0x706   : > { %v14986_v25 = vpop.f32.mrb[2].mxu1  ;;  %v7174_v43 = vld [vmem:[#allocation15 + $0x160] sm:$0xff] }
 0x707   : > { %6532 = vst [vmem:[#allocation4 + $0x70] sm:$0xff] %v14986_v25  ;;  %v8264_v41 = vadd.f32 %v14986_v25, %v14981_v57  ;;  %v10992_v61 = vpop.f32.mrb[3].mxu1  ;;  %v7187_v8 = vmul.f32 %v7174_v43, %v7161_v24 }
 0x709   : > { %11142 = vmatmul.mubr.bf16.gmra.mrb[48].mxu0 %v14983_v3  ;;  %11322 = vmatmul.mubr.bf16.gmra.mrb[52].mxu1 %v7825_v6 }
 0x70a   : > { %11145 = vmatprep.mubr.msk.bf16.mxu0 %vm13300_vm8, %v16000_v37  ;;  %11341 = vmatprep.mubr.msk.bf16.mxu1 %vm13300_vm8, %v16000_v37 }
 0x70c   : > { %v14996_v10 = vpop.f32.mrb[0].mxu0  ;;  %v14998_v13 = vpop.f32.mrb[4].mxu1 }
 0x70d   : > { %16046 = vst [vmem:[#allocation31_spill] sm:$0xff] %v14996_v10  ;;  %5693 = vst [vmem:[#allocation4] sm:$0xff] %v14996_v10  ;;  %v10815_v11 = vpop.f32.mrb[1].mxu0  ;;  %v8265_v5 = vadd.f32 %v8264_v41, %v14998_v13  ;;  %v10995_v44 = vpop.f32.mrb[5].mxu1 }
 0x70e   : > { %6533 = vst [vmem:[#allocation4 + $0x78] sm:$0xff] %v14998_v13  ;;  %v15003_v58 = vpop.f32.mrb[2].mxu0  ;;  %v15005_v54 = vpop.f32.mrb[6].mxu1 }
 0x70f   : > { %16047 = vst [vmem:[#allocation32_spill] sm:$0xff] %v15003_v58  ;;  %5694 = vst [vmem:[#allocation4 + $0x8] sm:$0xff] %v15003_v58  ;;  %v10816_v46 = vpop.f32.mrb[3].mxu0  ;;  %v8266_v7 = vadd.f32 %v8265_v5, %v15005_v54  ;;  %v10996_v60 = vpop.f32.mrb[7].mxu1  ;;  %v8231_v49 = vadd.f32 %v15003_v58, %v14996_v10 }
 0x710   : > { %6534 = vst [vmem:[#allocation4 + $0x80] sm:$0xff] %v15005_v54  ;;  %v7175_v60 = vld [vmem:[#allocation15 + $0x168] sm:$0xff] }
 0x711   : > { %11146 = vmatmul.mubr.bf16.gmra.mrb[52].mxu0 %v6989_v33  ;;  %11342 = vmatmul.mubr.bf16.vlgmr.msra.gmra.mrb[28].mxu1 %v14930_v28  ;;  %v7158_v28 = vld [vmem:[#allocation3 + $0x17] sm:$0xff] }
 0x712   : > { %11165 = vmatprep.mubr.msk.bf16.mxu0 %vm13300_vm8, %v16000_v37  ;;  %11345 = vmatprep.mubr.msk.bf16.mxu1 %vm13300_vm8, %v16000_v37  ;;  %v7184_v20 = vmul.f32 %v7171_v40, %v7158_v28 }
 0x714   : > { %v15017_v50 = vpop.f32.mrb[4].mxu0  ;;  %v15019_v55 = vpop.f32.mrb[8].mxu1  ;;  %v7196_v56 = vpack.c.bf16 %v7185_v9, %v7184_v20  ;;  %v7165_v20 = vld [vmem:[#allocation3 + $0x4f] sm:$0xff]  ;;  %v7177_v9 = vld [vmem:[#allocation15 + $0x178] sm:$0xff] }
 0x715   : > { %16048 = vst [vmem:[#allocation33_spill] sm:$0xff] %v15017_v50  ;;  %5695 = vst [vmem:[#allocation4 + $0x10] sm:$0xff] %v15017_v50  ;;  %v10819_v15 = vpop.f32.mrb[5].mxu0  ;;  %v8267_v34 = vadd.f32 %v8266_v7, %v15019_v55  ;;  %v10999_v51 = vpop.f32.mrb[9].mxu1  ;;  %v8232_v19 = vadd.f32 %v8231_v49, %v15017_v50  ;;  %v7163_v7 = vld [vmem:[#allocation3 + $0x3f] sm:$0xff] }
 0x716   : > { %6535 = vst [vmem:[#allocation4 + $0x88] sm:$0xff] %v15019_v55  ;;  %v15025_v0 = vpop.f32.mrb[6].mxu0  ;;  %v15027_v12 = vpop.f32.mrb[10].mxu1  ;;  %v7176_v49 = vld [vmem:[#allocation15 + $0x170] sm:$0xff] }
 0x717   : > { %16049 = vst [vmem:[#allocation34_spill] sm:$0xff] %v15025_v0  ;;  %5696 = vst [vmem:[#allocation4 + $0x18] sm:$0xff] %v15025_v0  ;;  %v10820_v22 = vpop.f32.mrb[7].mxu0  ;;  %v8268_v23 = vadd.f32 %v8267_v34, %v15027_v12  ;;  %v11000_v29 = vpop.f32.mrb[11].mxu1  ;;  %v8233_v31 = vadd.f32 %v8232_v19, %v15025_v0  ;;  %v7188_v34 = vmul.f32 %v7175_v60, %v7162_v52  ;;  %v8017_v52 = vld [vmem:[#allocation15 + $0x200] sm:$0x3] }
 0x718   : > { %6536 = vst [vmem:[#allocation4 + $0x90] sm:$0xff] %v15027_v12  ;;  %v7189_v51 = vmul.f32 %v7176_v49, %v7163_v7 }
 0x719   : > { %11166 = vmatmul.mubr.bf16.vlgmr.msra.gmra.mrb[28].mxu0 %v7195_v16  ;;  %11346 = vmatmul.mubr.bf16.gmra.mrb[32].mxu1 %v14939_v59  ;;  %v7160_v59 = vld [vmem:[#allocation3 + $0x27] sm:$0xff] }
 0x71a   : > { %11169 = vmatprep.mubr.msk.bf16.mxu0 %vm13300_vm8, %v16000_v37  ;;  %11349 = vmatprep.mubr.msk.bf16.mxu1 %vm13300_vm8, %v16000_v37  ;;  %v7186_v61 = vmul.f32 %v7173_v53, %v7160_v59  ;;  %v7198_v40 = vpack.c.bf16 %v7189_v51, %v7188_v34 }
 0x71c   : > { %v15038_v17 = vpop.f32.mrb[8].mxu0  ;;  %v15040_v21 = vpop.f32.mrb[12].mxu1  ;;  %v7197_v44 = vpack.c.bf16 %v7187_v8, %v7186_v61  ;;  %v7167_v61 = vld [vmem:[#allocation3 + $0x5f] sm:$0xff]  ;;  %v7179_v8 = vld [vmem:[#allocation15 + $0x188] sm:$0xff] }
 0x71d   : > { %16050 = vst [vmem:[#allocation35_spill] sm:$0xff] %v15038_v17  ;;  %5697 = vst [vmem:[#allocation4 + $0x20] sm:$0xff] %v15038_v17  ;;  %v10823_v36 = vpop.f32.mrb[9].mxu0  ;;  %v8269_v47 = vadd.f32 %v8268_v23, %v15040_v21  ;;  %v11003_v35 = vpop.f32.mrb[13].mxu1  ;;  %v8234_v48 = vadd.f32 %v8233_v31, %v15038_v17 }
 0x71e   : > { %6537 = vst [vmem:[#allocation4 + $0x98] sm:$0xff] %v15040_v21  ;;  %v15046_v30 = vpop.f32.mrb[10].mxu0  ;;  %v15048_v38 = vpop.f32.mrb[14].mxu1  ;;  %v7178_v36 = vld [vmem:[#allocation15 + $0x180] sm:$0xff] }
 0x71f   : > { %16051 = vst [vmem:[#allocation36_spill] sm:$0xff] %v15046_v30  ;;  %v10824_v6 = vpop.f32.mrb[11].mxu0  ;;  %6538 = vst [vmem:[#allocation4 + $0xa0] sm:$0xff] %v15048_v38  ;;  %v8270_v39 = vadd.f32 %v8269_v47, %v15048_v38  ;;  %v11004_v4 = vpop.f32.mrb[15].mxu1  ;;  %v8235_v41 = vadd.f32 %v8234_v48, %v15046_v30  ;;  %v7191_v24 = vmul.f32 %v7178_v36, %v7165_v20 }
 0x720   : > { %v7166_v6 = vld [vmem:[#allocation3 + $0x57] sm:$0xff] }
 0x721   : > { %11170 = vmatmul.mubr.bf16.gmra.mrb[32].mxu0 %v7196_v56  ;;  %11350 = vmatmul.mubr.bf16.gmra.mrb[36].mxu1 %v14950_v2  ;;  %v7192_v49 = vmul.f32 %v7179_v8, %v7166_v6 }
 0x722   : > { %11173 = vmatprep.mubr.msk.bf16.mxu0 %vm13300_vm8, %v16000_v37  ;;  %11353 = vmatprep.mubr.msk.bf16.mxu1 %vm13300_vm8, %v16000_v37 }
 0x724   : > { %v15058_v11 = vpop.f32.mrb[12].mxu0  ;;  %v15060_v33 = vpop.f32.mrb[16].mxu1 }
 0x725   : > { %v10827_v5 = vpop.f32.mrb[13].mxu0  ;;  %6539 = vst [vmem:[#allocation4 + $0xa8] sm:$0xff] %v15060_v33  ;;  %v8271_v14 = vadd.f32 %v8270_v39, %v15060_v33  ;;  %v11007_v1 = vpop.f32.mrb[17].mxu1  ;;  %v8236_v2 = vadd.f32 %v8235_v41, %v15058_v11 }
 0x726   : > { %v15065_v62 = vpop.f32.mrb[14].mxu0  ;;  %v15067_v46 = vpop.f32.mrb[18].mxu1  ;;  %v7180_v5 = vld [vmem:[#allocation15 + $0x190] sm:$0xff]  ;;  %v8004_v1 = vld [vmem:[#allocation3 + $0x68] sm:$0x3] }
 0x727   : > { %v10828_v32 = vpop.f32.mrb[15].mxu0  ;;  %6540 = vst [vmem:[#allocation4 + $0xb0] sm:$0xff] %v15067_v46  ;;  %v8272_v42 = vadd.f32 %v8271_v14, %v15067_v46  ;;  %v11008_v15 = vpop.f32.mrb[19].mxu1  ;;  %v8237_v16 = vadd.f32 %v8236_v2, %v15065_v62 }
 0x728   : > { %v7193_v32 = vmul.f32 %v7180_v5, %v7167_v61 }
 0x729   : > { %11174 = vmatmul.mubr.bf16.gmra.mrb[36].mxu0 %v7197_v44  ;;  %11354 = vmatmul.mubr.bf16.gmra.mrb[40].mxu1 %v14960_v27  ;;  %v7164_v27 = vld [vmem:[#allocation3 + $0x47] sm:$0xff] }
 0x72a   : > { %11177 = vmatprep.mubr.msk.bf16.mxu0 %vm13300_vm8, %v16000_v37  ;;  %11357 = vmatprep.mubr.msk.bf16.mxu1 %vm13300_vm8, %v16000_v37  ;;  %v7190_v48 = vmul.f32 %v7177_v9, %v7164_v27  ;;  %v7181_v27 = vld [vmem:[#allocation15 + $0x198] sm:$0x3] }
 0x72c   : > { %v15077_v28 = vpop.f32.mrb[16].mxu0  ;;  %v15079_v19 = vpop.f32.mrb[20].mxu1  ;;  %v7199_v4 = vpack.c.bf16 %v7191_v24, %v7190_v48 }
 0x72d   : > { %5701 = vst [vmem:[#allocation4 + $0x40] sm:$0xff] %v15077_v28  ;;  %v10831_v45 = vpop.f32.mrb[17].mxu0  ;;  %6541 = vst [vmem:[#allocation4 + $0xb8] sm:$0xff] %v15079_v19  ;;  %v8273_v18 = vadd.f32 %v8272_v42, %v15079_v19  ;;  %v11011_v22 = vpop.f32.mrb[21].mxu1  ;;  %v8238_v23 = vadd.f32 %v8237_v16, %v15077_v28  ;;  %v8030_v42 = vmul.f32 %v8017_v52, %v8004_v1 }
 0x72e   : > { %v15085_v29 = vpop.f32.mrb[18].mxu0  ;;  %v15087_v31 = vpop.f32.mrb[22].mxu1  ;;  %v7200_v45 = vpack.c.bf16 %v7193_v32, %v7192_v49 }
 0x72f   : > { %5702 = vst [vmem:[#allocation4 + $0x48] sm:$0xff] %v15085_v29  ;;  %v10832_v56 = vpop.f32.mrb[19].mxu0  ;;  %6542 = vst [vmem:[#allocation4 + $0xc0] sm:$0xff] %v15087_v31  ;;  %v8274_v47 = vadd.f32 %v8273_v18, %v15087_v31  ;;  %v11012_v35 = vpop.f32.mrb[23].mxu1  ;;  %v8239_v59 = vadd.f32 %v8238_v23, %v15085_v29 }
 0x731   : > { %11178 = vmatmul.mubr.bf16.gmra.mrb[40].mxu0 %v7198_v40  ;;  %11358 = vmatmul.mubr.bf16.gmra.mrb[44].mxu1 %v14971_v63  ;;  %v8037_v40 = vpack.c.bf16 %v8030_v42, %v8030_v42 }
 0x732   : > { %11181 = vmatprep.mubr.msk.bf16.mxu0 %vm13300_vm8, %v16000_v37  ;;  %11361 = vmatprep.mubr.msk.bf16.mxu1 %vm13300_vm8, %v16000_v37 }
 0x734   : > { %v15098_v53 = vpop.f32.mrb[20].mxu0  ;;  %v6511_v43 = vpop.f32.mrb[24].mxu1 }
 0x735   : > { %5703 = vst [vmem:[#allocation4 + $0x50] sm:$0xff] %v15098_v53  ;;  %v10835_v39 = vpop.f32.mrb[21].mxu0  ;;  %6543 = vst [vmem:[#allocation4 + $0xc8] sm:$0x3] %v6511_v43  ;;  %v11015_v41 = vpop.f32.mrb[25].mxu1  ;;  %v8240_v63 = vadd.f32 %v8239_v59, %v15098_v53 }
 0x736   : > { %v15102_v44 = vpop.f32.mrb[22].mxu0  ;;  %v6514_v14 = vpop.f32.mrb[26].mxu1 }
 0x737   : > { %v10836_v2 = vpop.f32.mrb[23].mxu0  ;;  %v11016_v7 = vpop.f32.mrb[27].mxu1  ;;  %v8241_v60 = vadd.f32 %v8240_v63, %v15102_v44 }
 0x739   : > { %11182 = vmatmul.mubr.bf16.gmra.mrb[44].mxu0 %v7199_v4  ;;  %11362 = vmatmul.mubr.bf16.gmra.mrb[48].mxu1 %v14983_v3  ;;  %v7168_v3 = vld [vmem:[#allocation3 + $0x67] sm:$0x3] }
 0x73a   : > { %11185 = vmatprep.mubr.msk.bf16.mxu0 %vm13300_vm8, %v16000_v37  ;;  %11365 = vmatprep.mubr.msk.bf16.mxu1 %vm13300_vm8, %v16000_v37  ;;  %v7194_v9 = vmul.f32 %v7181_v27, %v7168_v3 }
 0x73c   : > { %v5674_v15 = vpop.f32.mrb[24].mxu0  ;;  %v15110_v16 = vld [vmem:[#allocation4 + $0xc8] sm:$0x3]  ;;  %v7201_v35 = vpack.c.bf16 %v7194_v9, %v7194_v9 }
 0x73d   : > { %16052 = vst [vmem:[#allocation37_spill] sm:$0xff] %v15110_v16  ;;  %5705 = vst [vmem:[#allocation4 + $0x60] sm:$0x3] %v5674_v15  ;;  %v8275_v34 = vsel %vm4678_vm3, %v15110_v16, 0.0  ;;  %v10839_v51 = vpop.f32.mrb[25].mxu0 }
 0x73e   : > { %v8276_v18 = vadd.f32 %v8275_v34, %v8274_v47  ;;  %v5677_v22 = vpop.f32.mrb[26].mxu0 }
 0x73f   : > { %v10840_v23 = vpop.f32.mrb[27].mxu0 }
 0x740   : > { %v8277_v20 = vrot.slane %v8276_v18, 4 }
 0x741   : > { %11186 = vmatmul.mubr.bf16.gmra.mrb[48].mxu0 %v7200_v45  ;;  %11366 = vmatmul.mubr.bf16.gmra.mrb[52].mxu1 %v8037_v40 }
 0x742   : > { %v8278_v36 = vadd.f32 %v8277_v20, %v8276_v18  ;;  %11189 = vmatprep.mubr.msk.bf16.mxu0 %vm13300_vm8, %v16000_v37  ;;  %11429 = vmatprep.mubr.msk.bf16.mxu1 %vm13300_vm8, %v16000_v37 }
 0x744   : > { %v15118_v56 = vld [vmem:[#allocation4 + $0x60] sm:$0x3]  ;;  %v8279_v59 = vrot.slane %v8278_v36, 2 }
 0x745   : > { %16053 = vst [vmem:[#allocation38_spill] sm:$0xff] %v15118_v56  ;;  %v8242_v47 = vsel %vm4678_vm3, %v15118_v56, 0.0 }
 0x746   : > { %v8243_v48 = vadd.f32 %v8242_v47, %v8241_v60  ;;  %v8280_v43 = vadd.f32 %v8279_v59, %v8278_v36  ;;  %v12857_v59 = vld [vmem:[%s16054_s29] sm:$0xff]  }
 0x747   : > { %11370 = vmatpush3.bf16.msra.mxu0 %v12857_v59 }
 0x748   : > { %v8244_v24 = vrot.slane %v8243_v48, 4  ;;  %v8281_v4 = vrot.slane %v8280_v43, 1  ;;  %11371 = vmatprep.subr.bf16.mxu0 %v16000_v37 }
 0x749   : > { %11190 = vmatmul.mubr.bf16.gmra.mrb[52].mxu0 %v7201_v35 }
 0x74a   : > { %v8245_v6 = vadd.f32 %v8244_v24, %v8243_v48  ;;  %11385 = vmatprep.mubr.msk.bf16.mxu0 %vm13300_vm8, %v16000_v37  ;;  %v8282_v8 = vadd.f32 %v8281_v4, %v8280_v43  ;;  %v12858_v48 = vld [vmem:[%s16054_s29] sm:$0xff]   ;;  %v12859_v4 = vld [vmem:[%s16054_s29 + $0x8] sm:$0xff]  }
 0x74b   : > { %11414 = vmatpush3.bf16.msra.mxu1 %v12858_v48  ;;  %11372 = vmatpush3.bf16.msra.mxu0 %v12859_v4  ;;  %v12865_v48 = vld [vmem:[%s16054_s29 + $0x20] sm:$0xff]  }
 0x74c   : > { %v8246_v39 = vrot.slane %v8245_v6, 2  ;;  %11415 = vmatprep.subr.bf16.mxu1 %v16000_v37  ;;  %11373 = vmatprep.subr.bf16.mxu0 %v16000_v37 }
 0x74e   : > { %v8247_v41 = vadd.f32 %v8246_v39, %v8245_v6 }
 0x750   : > { %v8248_v61 = vrot.slane %v8247_v41, 1 }
 0x752   : > { %v8249_v5 = vadd.f32 %v8248_v61, %v8247_v41  ;;  %v12860_v41 = vld [vmem:[%s16054_s29 + $0x8] sm:$0xff]  }
 0x753   : > { %11416 = vmatpush3.bf16.msra.mxu1 %v12860_v41 }
 0x754   : > { %v15124_v63 = vadd.f32 %v8282_v8, %v8249_v5  ;;  %v12861_v5 = vld [vmem:[%s16054_s29 + $0x10] sm:$0xff]   ;;  %11417 = vmatprep.subr.bf16.mxu1 %v16000_v37 }
 0x755   : > { %11374 = vmatpush3.bf16.msra.mxu0 %v12861_v5 }
 0x756   : > { %11375 = vmatprep.subr.bf16.mxu0 %v16000_v37 }
 0x7e4   : > { %v15126_v14 = vpop.f32.mrb[28].mxu1 }
 0x7e5   : > { %8205 = vst [vmem:[#allocation4 + $0x138] sm:$0xff] %v15126_v14  ;;  %v11343_v1 = vpop.f32.mrb[29].mxu1 }
 0x7e6   : > { %v15129_v52 = vpop.f32.mrb[30].mxu1  ;;  %v12862_v1 = vld [vmem:[%s16054_s29 + $0x10] sm:$0xff]  }
 0x7e7   : > { %8206 = vst [vmem:[#allocation4 + $0x140] sm:$0xff] %v15129_v52  ;;  %v8330_v2 = vadd.f32 %v15129_v52, %v15126_v14  ;;  %v11344_v7 = vpop.f32.mrb[31].mxu1  ;;  %11418 = vmatpush3.bf16.msra.mxu1 %v12862_v1 }
 0x7e8   : > { %11419 = vmatprep.subr.bf16.mxu1 %v16000_v37 }
 0x7ec   : > { %v15134_v60 = vpop.f32.mrb[28].mxu0  ;;  %v15136_v49 = vpop.f32.mrb[32].mxu1 }
 0x7ed   : > { %7369 = vst [vmem:[#allocation4 + $0xd0] sm:$0xff] %v15134_v60  ;;  %v11167_v32 = vpop.f32.mrb[29].mxu0  ;;  %8207 = vst [vmem:[#allocation4 + $0x148] sm:$0xff] %v15136_v49  ;;  %v8331_v42 = vadd.f32 %v8330_v2, %v15136_v49  ;;  %v11347_v15 = vpop.f32.mrb[33].mxu1 }
 0x7ee   : > { %v15141_v34 = vpop.f32.mrb[30].mxu0  ;;  %v15143_v51 = vpop.f32.mrb[34].mxu1 }
 0x7ef   : > { %7370 = vst [vmem:[#allocation4 + $0xd8] sm:$0xff] %v15141_v34  ;;  %v8297_v45 = vadd.f32 %v15141_v34, %v15134_v60  ;;  %v11168_v40 = vpop.f32.mrb[31].mxu0  ;;  %8208 = vst [vmem:[#allocation4 + $0x150] sm:$0xff] %v15143_v51  ;;  %v8332_v18 = vadd.f32 %v8331_v42, %v15143_v51  ;;  %v11348_v22 = vpop.f32.mrb[35].mxu1 }
 0x7f4   : > { %v15150_v3 = vpop.f32.mrb[32].mxu0  ;;  %v15152_v27 = vpop.f32.mrb[36].mxu1 }
 0x7f5   : > { %7371 = vst [vmem:[#allocation4 + $0xe0] sm:$0xff] %v15150_v3  ;;  %v8298_v23 = vadd.f32 %v8297_v45, %v15150_v3  ;;  %v11171_v20 = vpop.f32.mrb[33].mxu0  ;;  %8209 = vst [vmem:[#allocation4 + $0x158] sm:$0xff] %v15152_v27  ;;  %v8333_v9 = vadd.f32 %v8332_v18, %v15152_v27  ;;  %v11351_v36 = vpop.f32.mrb[37].mxu1 }
 0x7f6   : > { %v15158_v47 = vpop.f32.mrb[34].mxu0  ;;  %v15160_v35 = vpop.f32.mrb[38].mxu1  ;;  %v12863_v20 = vld [vmem:[%s16054_s29 + $0x18] sm:$0xff]  }
 0x7f7   : > { %7372 = vst [vmem:[#allocation4 + $0xe8] sm:$0xff] %v15158_v47  ;;  %v8299_v24 = vadd.f32 %v8298_v23, %v15158_v47  ;;  %v11172_v43 = vpop.f32.mrb[35].mxu0  ;;  %8210 = vst [vmem:[#allocation4 + $0x160] sm:$0xff] %v15160_v35  ;;  %v8334_v6 = vadd.f32 %v8333_v9, %v15160_v35  ;;  %v11352_v39 = vpop.f32.mrb[39].mxu1  ;;  %v12864_v9 = vld [vmem:[%s16054_s29 + $0x18] sm:$0xff]   ;;  %11376 = vmatpush3.bf16.msra.mxu0 %v12863_v20  ;;  %v12870_v20 = vld [vmem:[%s16054_s29 + $0x30] sm:$0xff]  }
 0x7f8   : > { %11420 = vmatpush3.bf16.msra.mxu1 %v12864_v9  ;;  %11377 = vmatprep.subr.bf16.mxu0 %v16000_v37 }
 0x7f9   : > { %11421 = vmatprep.subr.bf16.mxu1 %v16000_v37 }
 0x7fb   : > { %11378 = vmatpush3.bf16.msra.mxu0 %v12865_v48 }
 0x7fc   : > { %v15180_v61 = vpop.f32.mrb[36].mxu0  ;;  %v15182_v8 = vpop.f32.mrb[40].mxu1  ;;  %11379 = vmatprep.subr.bf16.mxu0 %v16000_v37 }
 0x7fd   : > { %7373 = vst [vmem:[#allocation4 + $0xf0] sm:$0xff] %v15180_v61  ;;  %v8300_v2 = vadd.f32 %v8299_v24, %v15180_v61  ;;  %v11175_v7 = vpop.f32.mrb[37].mxu0  ;;  %8211 = vst [vmem:[#allocation4 + $0x168] sm:$0xff] %v15182_v8  ;;  %v8335_v32 = vadd.f32 %v8334_v6, %v15182_v8  ;;  %v11355_v42 = vpop.f32.mrb[41].mxu1  ;;  %v12866_v24 = vld [vmem:[%s16054_s29 + $0x20] sm:$0xff]  }
 0x7fe   : > { %v15196_v15 = vpop.f32.mrb[38].mxu0  ;;  %v15198_v45 = vpop.f32.mrb[42].mxu1  ;;  %11422 = vmatpush3.bf16.msra.mxu1 %v12866_v24  ;;  %v12867_v42 = vld [vmem:[%s16054_s29 + $0x28] sm:$0xff]  }
 0x7ff   : > { %7374 = vst [vmem:[#allocation4 + $0xf8] sm:$0xff] %v15196_v15  ;;  %v8301_v40 = vadd.f32 %v8300_v2, %v15196_v15  ;;  %v11176_v18 = vpop.f32.mrb[39].mxu0  ;;  %8212 = vst [vmem:[#allocation4 + $0x170] sm:$0xff] %v15198_v45  ;;  %v8336_v22 = vadd.f32 %v8335_v32, %v15198_v45  ;;  %v11356_v23 = vpop.f32.mrb[43].mxu1  ;;  %11423 = vmatprep.subr.bf16.mxu1 %v16000_v37  ;;  %11380 = vmatpush3.bf16.msra.mxu0 %v12867_v42  ;;  %v12872_v42 = vld [vmem:[%s16054_s29 + $0x38] sm:$0xff]  }
 0x800   : > { %v12869_v23 = vld [vmem:[%s16054_s29 + $0x30] sm:$0xff]   ;;  %11381 = vmatprep.subr.bf16.mxu0 %v16000_v37 }
 0x803   : > { %11382 = vmatpush3.bf16.msra.mxu0 %v12869_v23 }
 0x804   : > { %v15212_v36 = vpop.f32.mrb[40].mxu0  ;;  %v15214_v59 = vpop.f32.mrb[44].mxu1  ;;  %11383 = vmatprep.subr.bf16.mxu0 %v16000_v37 }
 0x805   : > { %7375 = vst [vmem:[#allocation4 + $0x100] sm:$0xff] %v15212_v36  ;;  %v8302_v43 = vadd.f32 %v8301_v40, %v15212_v36  ;;  %v11179_v6 = vpop.f32.mrb[41].mxu0  ;;  %8213 = vst [vmem:[#allocation4 + $0x178] sm:$0xff] %v15214_v59  ;;  %v8337_v39 = vadd.f32 %v8336_v22, %v15214_v59  ;;  %v11359_v4 = vpop.f32.mrb[45].mxu1  ;;  %v12868_v40 = vld [vmem:[%s16054_s29 + $0x28] sm:$0xff]  }
 0x806   : > { %v15228_v41 = vpop.f32.mrb[42].mxu0  ;;  %v15230_v5 = vpop.f32.mrb[46].mxu1  ;;  %11424 = vmatpush3.bf16.msra.mxu1 %v12868_v40 }
 0x807   : > { %7376 = vst [vmem:[#allocation4 + $0x108] sm:$0xff] %v15228_v41  ;;  %v8303_v1 = vadd.f32 %v8302_v43, %v15228_v41  ;;  %v11180_v2 = vpop.f32.mrb[43].mxu0  ;;  %8214 = vst [vmem:[#allocation4 + $0x180] sm:$0xff] %v15230_v5  ;;  %v8338_v7 = vadd.f32 %v8337_v39, %v15230_v5  ;;  %v11360_v32 = vpop.f32.mrb[47].mxu1  ;;  %11425 = vmatprep.subr.bf16.mxu1 %v16000_v37 }
 0x80a   : > { %11426 = vmatpush3.bf16.msra.mxu1 %v12870_v20 }
 0x80b   : > { %11427 = vmatprep.subr.bf16.mxu1 %v16000_v37 }
 0x80c   : > { %v15244_v18 = vpop.f32.mrb[44].mxu0  ;;  %v15246_v22 = vpop.f32.mrb[48].mxu1 }
 0x80d   : > { %7377 = vst [vmem:[#allocation4 + $0x110] sm:$0xff] %v15244_v18  ;;  %v8304_v9 = vadd.f32 %v8303_v1, %v15244_v18  ;;  %v11183_v48 = vpop.f32.mrb[45].mxu0  ;;  %8215 = vst [vmem:[#allocation4 + $0x188] sm:$0xff] %v15246_v22  ;;  %v8339_v24 = vadd.f32 %v8338_v7, %v15246_v22  ;;  %v11363_v43 = vpop.f32.mrb[49].mxu1  ;;  %v12871_v7 = vld [vmem:[%s16054_s29 + $0x38] sm:$0xff]  }
 0x80e   : > { %v15260_v6 = vpop.f32.mrb[46].mxu0  ;;  %v15262_v39 = vpop.f32.mrb[50].mxu1  ;;  %11384 = vmatpush3.bf16.msra.mxu0 %v12871_v7  ;;  %11428 = vmatpush3.bf16.msra.mxu1 %v12872_v42 }
 0x80f   : > { %7378 = vst [vmem:[#allocation4 + $0x118] sm:$0xff] %v15260_v6  ;;  %v8305_v4 = vadd.f32 %v8304_v9, %v15260_v6  ;;  %v11184_v2 = vpop.f32.mrb[47].mxu0  ;;  %8216 = vst [vmem:[#allocation4 + $0x190] sm:$0xff] %v15262_v39  ;;  %v8340_v1 = vadd.f32 %v8339_v24, %v15262_v39  ;;  %v11364_v32 = vpop.f32.mrb[51].mxu1  ;;  %11457 = vmatprep.subr.bf16.mxu0 %v16000_v37  ;;  %11501 = vmatprep.subr.bf16.mxu1 %v16000_v37 }
 0x814   : > { %v15276_v40 = vpop.f32.mrb[48].mxu0  ;;  %v8185_v9 = vpop.f32.mrb[52].mxu1 }
 0x815   : > { %7379 = vst [vmem:[#allocation4 + $0x120] sm:$0xff] %v15276_v40  ;;  %v8306_v23 = vadd.f32 %v8305_v4, %v15276_v40  ;;  %v11187_v20 = vpop.f32.mrb[49].mxu0  ;;  %8217 = vst [vmem:[#allocation4 + $0x198] sm:$0x3] %v8185_v9  ;;  %v11367_v48 = vpop.f32.mrb[53].mxu1 }
 0x816   : > { %v15282_v24 = vpop.f32.mrb[50].mxu0  ;;  %v8188_v43 = vpop.f32.mrb[54].mxu1 }
 0x817   : > { %7380 = vst [vmem:[#allocation4 + $0x128] sm:$0xff] %v15282_v24  ;;  %v8307_v2 = vadd.f32 %v8306_v23, %v15282_v24  ;;  %v11188_v32 = vpop.f32.mrb[51].mxu0  ;;  %v11368_v7 = vpop.f32.mrb[55].mxu1 }
 0x81c   : > { %v7349_v42 = vpop.f32.mrb[52].mxu0  ;;  %v15286_v26 = vld [vmem:[#allocation4 + $0x198] sm:$0x3] }
 0x81d   : > { %7381 = vst [vmem:[#allocation4 + $0x130] sm:$0x3] %v7349_v42  ;;  %v8341_v4 = vsel %vm4678_vm3, %v15286_v26, 0.0  ;;  %v11191_v9 = vpop.f32.mrb[53].mxu0 }
 0x81e   : > { %v8342_v20 = vadd.f32 %v8341_v4, %v8340_v1  ;;  %v7352_v48 = vpop.f32.mrb[54].mxu0 }
 0x81f   : > { %v11192_v37 = vpop.f32.mrb[55].mxu0 }
 0x820   : > { %v8343_v56 = vrot.slane %v8342_v20, 4 }
 0x822   : > { %v8344_v43 = vadd.f32 %v8343_v56, %v8342_v20 }
 0x824   : > { %v15290_v16 = vld [vmem:[#allocation4 + $0x130] sm:$0x3]  ;;  %v8345_v30 = vrot.slane %v8344_v43, 2 }
 0x825   : > { %v8308_v23 = vsel %vm4678_vm3, %v15290_v16, 0.0 }
 0x826   : > { %v8309_v32 = vadd.f32 %v8308_v23, %v8307_v2  ;;  %v8346_v42 = vadd.f32 %v8345_v30, %v8344_v43 }
 0x828   : > { %v8310_v7 = vrot.slane %v8309_v32, 4  ;;  %v8347_v10 = vrot.slane %v8346_v42, 1 }
 0x82a   : > { %v8311_v17 = vadd.f32 %v8310_v7, %v8309_v32  ;;  %v8348_v37 = vadd.f32 %v8347_v10, %v8346_v42 }
 0x82c   : > { %v8312_v0 = vrot.slane %v8311_v17, 2 }
 0x82e   : > { %v8313_v50 = vadd.f32 %v8312_v0, %v8311_v17 }
 0x830   : > { %v8314_v58 = vrot.slane %v8313_v50, 1 }
 0x832   : > { %v8315_v9 = vadd.f32 %v8314_v58, %v8313_v50 }
 0x834   : > { %v8316_v1 = vadd.f32 %v8315_v9, %v15124_v63 }
 0x836   : > { %v8349_v4 = vadd.f32 %v8348_v37, %v8316_v1 }
 0x838   : > { %v15295_v48 = vmul.f32 0.0025510204, %v8349_v4 }
 0x83a   : > { %v8489_v56 = vsub.f32 %v15126_v14, %v15295_v48  ;;  %v8490_v2 = vsub.f32 %v15129_v52, %v15295_v48  ;;  %v8491_v20 = vsub.f32 %v15136_v49, %v15295_v48  ;;  %v8492_v0 = vsub.f32 %v15143_v51, %v15295_v48 }
 0x83b   : > { %v8493_v58 = vsub.f32 %v15152_v27, %v15295_v48  ;;  %v8494_v10 = vsub.f32 %v15160_v35, %v15295_v48  ;;  %v8495_v50 = vsub.f32 %v15182_v8, %v15295_v48  ;;  %v8496_v17 = vsub.f32 %v15198_v45, %v15295_v48 }
 0x83c   : > { %v8497_v30 = vsub.f32 %v15214_v59, %v15295_v48  ;;  %v8498_v63 = vsub.f32 %v15230_v5, %v15295_v48  ;;  %v8499_v14 = vsub.f32 %v15246_v22, %v15295_v48  ;;  %v8500_v52 = vsub.f32 %v15262_v39, %v15295_v48 }
 0x83d   : > { %v8502_v49 = vmul.f32 %v8489_v56, %v8489_v56  ;;  %v8503_v51 = vmul.f32 %v8490_v2, %v8490_v2  ;;  %v8504_v27 = vmul.f32 %v8491_v20, %v8491_v20  ;;  %v8505_v35 = vmul.f32 %v8492_v0, %v8492_v0 }
 0x83e   : > { %v15323_v45 = vsub.f32 %v15058_v11, %v15295_v48  ;;  %v15327_v59 = vsub.f32 %v15065_v62, %v15295_v48  ;;  %v15331_v5 = vsub.f32 %v15077_v28, %v15295_v48  ;;  %v15335_v22 = vsub.f32 %v15085_v29, %v15295_v48 }
 0x83f   : > { %v8515_v8 = vadd.f32 %v8503_v51, %v8502_v49  ;;  %v15339_v39 = vsub.f32 %v15098_v53, %v15295_v48  ;;  %v8506_v43 = vmul.f32 %v8493_v58, %v8493_v58  ;;  %v8507_v23 = vmul.f32 %v8494_v10, %v8494_v10 }
 0x840   : > { %v15343_v7 = vsub.f32 %v15102_v44, %v15295_v48  ;;  %v8397_v42 = vsub.f32 %v14981_v57, %v15295_v48  ;;  %v8398_v28 = vsub.f32 %v14986_v25, %v15295_v48  ;;  %v8399_v29 = vsub.f32 %v14998_v13, %v15295_v48 }
 0x841   : > { %v8516_v32 = vadd.f32 %v8515_v8, %v8504_v27  ;;  %v8400_v53 = vsub.f32 %v15005_v54, %v15295_v48  ;;  %v8401_v1 = vsub.f32 %v15019_v55, %v15295_v48  ;;  %v15357_v37 = vsub.f32 %v15027_v12, %v15295_v48 }
 0x842   : > { %v15361_v57 = vsub.f32 %v15040_v21, %v15295_v48  ;;  %v15365_v25 = vsub.f32 %v15048_v38, %v15295_v48  ;;  %v15369_v13 = vsub.f32 %v15060_v33, %v15295_v48  ;;  %v15373_v54 = vsub.f32 %v15067_v46, %v15295_v48 }
 0x843   : > { %v8517_v9 = vadd.f32 %v8516_v32, %v8505_v35  ;;  %v15377_v55 = vsub.f32 %v15079_v19, %v15295_v48  ;;  %v8508_v12 = vmul.f32 %v8495_v50, %v8495_v50  ;;  %v15381_v21 = vsub.f32 %v15087_v31, %v15295_v48 }
 0x844   : > { %v8443_v38 = vsub.f32 %v15134_v60, %v15295_v48  ;;  %v8444_v33 = vsub.f32 %v15141_v34, %v15295_v48  ;;  %v8445_v46 = vsub.f32 %v15150_v3, %v15295_v48  ;;  %v8446_v56 = vsub.f32 %v15158_v47, %v15295_v48 }
 0x845   : > { %v8518_v4 = vadd.f32 %v8517_v9, %v8506_v43  ;;  %v8447_v19 = vsub.f32 %v15180_v61, %v15295_v48  ;;  %v8448_v31 = vsub.f32 %v15196_v15, %v15295_v48  ;;  %v8449_v20 = vsub.f32 %v15212_v36, %v15295_v48 }
 0x846   : > { %v8450_v60 = vsub.f32 %v15228_v41, %v15295_v48  ;;  %v15401_v34 = vsub.f32 %v15244_v18, %v15295_v48  ;;  %v15405_v3 = vsub.f32 %v15260_v6, %v15295_v48  ;;  %v15409_v47 = vsub.f32 %v15276_v40, %v15295_v48 }
 0x847   : > { %v8519_v2 = vadd.f32 %v8518_v4, %v8507_v23  ;;  %v15413_v61 = vsub.f32 %v15282_v24, %v15295_v48  ;;  %v8509_v15 = vmul.f32 %v8496_v17, %v8496_v17  ;;  %v8501_v41 = vsub.f32 %v15286_v26, %v15295_v48 }
 0x848   : > { %v8510_v0 = vmul.f32 %v8497_v30, %v8497_v30  ;;  %v8511_v58 = vmul.f32 %v8498_v63, %v8498_v63  ;;  %v8512_v50 = vmul.f32 %v8499_v14, %v8499_v14  ;;  %v8410_v49 = vmul.f32 %v8397_v42, %v8397_v42  ;;  %v16055_v63 = vld [vmem:[#allocation31_spill] sm:$0xff]  ;;  %v16056_v42 = vld [vmem:[#allocation32_spill] sm:$0xff] }
 0x849   : > { %v8520_v36 = vadd.f32 %v8519_v2, %v8508_v12  ;;  %v8514_v6 = vmul.f32 %v8501_v41, %v8501_v41  ;;  %v8411_v27 = vmul.f32 %v8398_v28, %v8398_v28  ;;  %v8456_v40 = vmul.f32 %v8443_v38, %v8443_v38  ;;  %v16057_v28 = vld [vmem:[#allocation33_spill] sm:$0xff] }
 0x84a   : > { %v8457_v35 = vmul.f32 %v8444_v33, %v8444_v33  ;;  %v8513_v8 = vmul.f32 %v8500_v52, %v8500_v52  ;;  %v8412_v17 = vmul.f32 %v8399_v29, %v8399_v29  ;;  %v8413_v23 = vmul.f32 %v8400_v53, %v8400_v53  ;;  %v16058_v29 = vld [vmem:[#allocation34_spill] sm:$0xff] }
 0x84b   : > { %v8521_v18 = vadd.f32 %v8520_v36, %v8509_v15  ;;  %v8526_v24 = vsel %vm4678_vm3, %v8514_v6, 0.0  ;;  %v8458_v9 = vmul.f32 %v8445_v46, %v8445_v46  ;;  %v8423_v26 = vadd.f32 %v8411_v27, %v8410_v49  ;;  %v16059_v46 = vld [vmem:[#allocation35_spill] sm:$0xff] }
 0x84c   : > { %v8469_v30 = vadd.f32 %v8457_v35, %v8456_v40  ;;  %v8459_v12 = vmul.f32 %v8446_v56, %v8446_v56  ;;  %v8351_v14 = vsub.f32 %v16055_v63, %v15295_v48  ;;  %v8352_v4 = vsub.f32 %v16056_v42, %v15295_v48  ;;  %v16060_v56 = vld [vmem:[#allocation36_spill] sm:$0xff]  ;;  %v16061_v42 = vld [vmem:[#allocation37_spill] sm:$0xff] }
 0x84d   : > { %v8522_v10 = vadd.f32 %v8521_v18, %v8510_v0  ;;  %v8353_v38 = vsub.f32 %v16057_v28, %v15295_v48  ;;  %v8424_v33 = vadd.f32 %v8423_v26, %v8412_v17  ;;  %v8354_v53 = vsub.f32 %v16058_v29, %v15295_v48 }
 0x84e   : > { %v8470_v2 = vadd.f32 %v8469_v30, %v8458_v9  ;;  %v8355_v15 = vsub.f32 %v16059_v46, %v15295_v48  ;;  %v8356_v36 = vsub.f32 %v16060_v56, %v15295_v48  ;;  %v8364_v41 = vmul.f32 %v8351_v14, %v8351_v14 }
 0x84f   : > { %v8523_v51 = vadd.f32 %v8522_v10, %v8511_v58  ;;  %v8365_v0 = vmul.f32 %v8352_v4, %v8352_v4  ;;  %v8414_v18 = vmul.f32 %v8401_v1, %v8401_v1  ;;  %v8460_v58 = vmul.f32 %v8447_v19, %v8447_v19 }
 0x850   : > { %v8425_v10 = vadd.f32 %v8424_v33, %v8413_v23  ;;  %v8366_v6 = vmul.f32 %v8353_v38, %v8353_v38  ;;  %v8461_v27 = vmul.f32 %v8448_v31, %v8448_v31  ;;  %v8462_v17 = vmul.f32 %v8449_v20, %v8449_v20 }
 0x851   : > { %v8524_v43 = vadd.f32 %v8523_v51, %v8512_v50  ;;  %v8471_v50 = vadd.f32 %v8470_v2, %v8459_v12  ;;  %v8377_v49 = vadd.f32 %v8365_v0, %v8364_v41  ;;  %v8415_v51 = vmul.f32 %v15357_v37, %v15357_v37  ;;  %v16062_v2 = vld [vmem:[#allocation38_spill] sm:$0xff] }
 0x852   : > { %v8426_v40 = vadd.f32 %v8425_v10, %v8414_v18  ;;  %v8368_v1 = vmul.f32 %v8355_v15, %v8355_v15  ;;  %v8417_v23 = vmul.f32 %v15365_v25, %v15365_v25  ;;  %v8463_v26 = vmul.f32 %v8450_v60, %v8450_v60 }
 0x853   : > { %v8525_v32 = vadd.f32 %v8524_v43, %v8513_v8  ;;  %v8472_v35 = vadd.f32 %v8471_v50, %v8460_v58  ;;  %v8367_v8 = vmul.f32 %v8354_v53, %v8354_v53  ;;  %v8378_v43 = vadd.f32 %v8377_v49, %v8366_v6 }
 0x854   : > { %v8369_v37 = vmul.f32 %v8356_v36, %v8356_v36  ;;  %v8418_v63 = vmul.f32 %v15369_v13, %v15369_v13  ;;  %v8464_v14 = vmul.f32 %v15401_v34, %v15401_v34  ;;  %v8409_v4 = vsub.f32 %v16061_v42, %v15295_v48 }
 0x855   : > { %v15424_v52 = vadd.f32 %v8526_v24, %v8525_v32  ;;  %v8416_v24 = vmul.f32 %v15361_v57, %v15361_v57  ;;  %v8427_v32 = vadd.f32 %v8426_v40, %v8415_v51  ;;  %v8473_v9 = vadd.f32 %v8472_v35, %v8461_v27 }
 0x856   : > { %v8379_v19 = vadd.f32 %v8378_v43, %v8367_v8  ;;  %v8455_v28 = vsub.f32 %v15290_v16, %v15295_v48  ;;  %v8370_v25 = vmul.f32 %v15323_v45, %v15323_v45  ;;  %v8419_v38 = vmul.f32 %v15373_v54, %v15373_v54 }
 0x857   : > { %v8428_v30 = vadd.f32 %v8427_v32, %v8416_v24  ;;  %v8474_v12 = vadd.f32 %v8473_v9, %v8462_v17  ;;  %v8465_v13 = vmul.f32 %v15405_v3, %v15405_v3  ;;  %v8363_v29 = vsub.f32 %v16062_v2, %v15295_v48 }
 0x858   : > { %v8380_v31 = vadd.f32 %v8379_v19, %v8368_v1  ;;  %v8371_v53 = vmul.f32 %v15327_v59, %v15327_v59  ;;  %v8420_v16 = vmul.f32 %v15377_v55, %v15377_v55  ;;  %v8466_v45 = vmul.f32 %v15409_v47, %v15409_v47 }
 0x859   : > { %v8429_v57 = vadd.f32 %v8428_v30, %v8417_v23  ;;  %v8475_v20 = vadd.f32 %v8474_v12, %v8463_v26  ;;  %v8372_v3 = vmul.f32 %v15331_v5, %v15331_v5  ;;  %v8422_v36 = vmul.f32 %v8409_v4, %v8409_v4 }
 0x85a   : > { %v8381_v60 = vadd.f32 %v8380_v31, %v8369_v37  ;;  %v8468_v41 = vmul.f32 %v8455_v28, %v8455_v28  ;;  %v8421_v18 = vmul.f32 %v15381_v21, %v15381_v21  ;;  %v8467_v59 = vmul.f32 %v15413_v61, %v15413_v61 }
 0x85b   : > { %v8430_v33 = vadd.f32 %v8429_v57, %v8418_v63  ;;  %v8476_v34 = vadd.f32 %v8475_v20, %v8464_v14  ;;  %v8373_v55 = vmul.f32 %v15335_v22, %v15335_v22  ;;  %v8374_v5 = vmul.f32 %v15339_v39, %v15339_v39 }
 0x85c   : > { %v8382_v46 = vadd.f32 %v8381_v60, %v8370_v25  ;;  %v8434_v49 = vsel %vm4678_vm3, %v8422_v36, 0.0  ;;  %v8480_v51 = vsel %vm4678_vm3, %v8468_v41, 0.0  ;;  %v8376_v21 = vmul.f32 %v8363_v29, %v8363_v29  ;;  %v8768_v41 = vld [vmem:[#allocation4 + $0x68] sm:$0xff] }
 0x85d   : > { %v8431_v15 = vadd.f32 %v8430_v33, %v8419_v38  ;;  %v8477_v54 = vadd.f32 %v8476_v34, %v8465_v13  ;;  %v8528_v61 = vrot.slane %v15424_v52, 4  ;;  %v8375_v8 = vmul.f32 %v15343_v7, %v15343_v7 }
 0x85e   : > { %v8383_v0 = vadd.f32 %v8382_v46, %v8371_v53  ;;  %v8388_v32 = vsel %vm4678_vm3, %v8376_v21, 0.0  ;;  %v8536_v46 = vld [vmem:[#allocation18] sm:$0x1] }
 0x85f   : > { %v8432_v58 = vadd.f32 %v8431_v15, %v8420_v16  ;;  %v8478_v10 = vadd.f32 %v8477_v54, %v8466_v45  ;;  %v8529_v1 = vadd.f32 %v8528_v61, %v15424_v52  ;;  %v8540_v15 = vld [vmem:[#allocation20] sm:$0x1] }
 0x860   : > { %v8384_v47 = vadd.f32 %v8383_v0, %v8372_v3  ;;  %v16063_v3 = vld [vmem:[#allocation30_spill] sm:$0xff] }
 0x861   : > { %v8433_v50 = vadd.f32 %v8432_v58, %v8421_v18  ;;  %v8479_v6 = vadd.f32 %v8478_v10, %v8467_v59  ;;  %v8530_v37 = vrot.slane %v8529_v1, 2  ;;  %v12893_v18 = vld [vmem:[#allocation4] sm:$0xff]  ;;  %v12894_v58 = vld [vmem:[#allocation4 + $0x8] sm:$0xff] }
 0x862   : > { %v8385_v27 = vadd.f32 %v8384_v47, %v8373_v55  ;;  %v8769_v55 = vld [vmem:[#allocation4 + $0x70] sm:$0xff]  ;;  %v12897_v61 = vld [vmem:[#allocation4 + $0x20] sm:$0xff] }
 0x863   : > { %v8435_v40 = vadd.f32 %v8434_v49, %v8433_v50  ;;  %v8481_v35 = vadd.f32 %v8480_v51, %v8479_v6  ;;  %v8531_v57 = vadd.f32 %v8530_v37, %v8529_v1  ;;  %v8770_v50 = vld [vmem:[#allocation4 + $0x78] sm:$0xff] }
 0x864   : > { %v8386_v22 = vadd.f32 %v8385_v27, %v8374_v5  ;;  %v12895_v5 = vld [vmem:[#allocation4 + $0x10] sm:$0xff]  ;;  %v12896_v49 = vld [vmem:[#allocation4 + $0x18] sm:$0xff]  ;;  %v8771_v27 = vld [vmem:[#allocation4 + $0x80] sm:$0xff] }
 0x865   : > { %v8436_v43 = vrot.slane %v8435_v40, 4  ;;  %v8482_v24 = vrot.slane %v8481_v35, 4  ;;  %v8532_v25 = vrot.slane %v8531_v57, 1 }
 0x866   : > { %v8387_v17 = vadd.f32 %v8386_v22, %v8375_v8 }
 0x867   : > { %v8437_v39 = vadd.f32 %v8436_v43, %v8435_v40  ;;  %v8483_v9 = vadd.f32 %v8482_v24, %v8481_v35  ;;  %v8533_v52 = vadd.f32 %v8532_v25, %v8531_v57  ;;  %v8772_v43 = vld [vmem:[#allocation4 + $0x88] sm:$0xff]  ;;  %v8773_v24 = vld [vmem:[#allocation4 + $0x90] sm:$0xff] }
 0x868   : > { %v8389_v19 = vadd.f32 %v8388_v32, %v8387_v17 }
 0x869   : > { %v8438_v23 = vrot.slane %v8437_v39, 2  ;;  %v8484_v26 = vrot.slane %v8483_v9, 2 }
 0x86a   : > { %v8390_v30 = vrot.slane %v8389_v19, 4 }
 0x86b   : > { %v8439_v12 = vadd.f32 %v8438_v23, %v8437_v39  ;;  %v8485_v14 = vadd.f32 %v8484_v26, %v8483_v9 }
 0x86c   : > { %v8391_v31 = vadd.f32 %v8390_v30, %v8389_v19 }
 0x86d   : > { %v8440_v63 = vrot.slane %v8439_v12, 1  ;;  %v8486_v4 = vrot.slane %v8485_v14, 1 }
 0x86e   : > { %v8392_v7 = vrot.slane %v8391_v31, 2 }
 0x86f   : > { %v8441_v42 = vadd.f32 %v8440_v63, %v8439_v12  ;;  %v8487_v38 = vadd.f32 %v8486_v4, %v8485_v14  ;;  %v12873_v14 = vld [vmem:[%s16054_s29] sm:$0xff]  }
 0x870   : > { %v8393_v20 = vadd.f32 %v8392_v7, %v8391_v31  ;;  %v12874_v7 = vld [vmem:[%s16054_s29] sm:$0xff]  }
 0x872   : > { %v8394_v28 = vrot.slane %v8393_v20, 1 }
 0x874   : > { %v8395_v60 = vadd.f32 %v8394_v28, %v8393_v20 }
 0x876   : > { %v8442_v13 = vadd.f32 %v8441_v42, %v8395_v60 }
 0x878   : > { %v8488_v33 = vadd.f32 %v8487_v38, %v8442_v13 }
 0x87a   : > { %v8534_v34 = vadd.f32 %v8533_v52, %v8488_v33 }
 0x87c   : > { %v8535_v29 = vmul.f32 0.0025510204, %v8534_v34 }
 0x87e   : > { %v8537_v53 = vadd.f32 1e-05, %v8535_v29 }
 0x880   : > { %12891 = vrsqrt.f32 %v8537_v53 }
 0x88a   : > { %v12892_v16 = vpop.eup %12891 }
 0x88b   : > { %v8539_v45 = vmul.f32 %v12892_v16, %v8536_v46 }
 0x88d   : > { %v8541_v54 = vmul.f32 %v8539_v45, %v15295_v48  ;;  %v15479_v36 = vrot.slane %v8539_v45, %v16063_v3  ;;  %v8774_v45 = vld [vmem:[#allocation4 + $0x98] sm:$0xff] }
 0x88f   : > { %v8542_v0 = vsub.f32 %v8540_v15, %v8541_v54  ;;  %v8549_v59 = vmul.f32 %v12893_v18, %v15479_v36  ;;  %v8550_v10 = vmul.f32 %v12894_v58, %v15479_v36  ;;  %v8781_v47 = vmul.f32 %v8768_v41, %v15479_v36  ;;  %v8775_v15 = vld [vmem:[#allocation4 + $0xa0] sm:$0xff]  ;;  %v12875_v54 = vld [vmem:[%s16054_s29 + $0x8] sm:$0xff]  }
 0x890   : > { %v8782_v6 = vmul.f32 %v8769_v55, %v15479_v36  ;;  %v8551_v48 = vmul.f32 %v12895_v5, %v15479_v36  ;;  %v8552_v51 = vmul.f32 %v12896_v49, %v15479_v36  ;;  %v8783_v21 = vmul.f32 %v8770_v50, %v15479_v36  ;;  %v12898_v50 = vld [vmem:[#allocation4 + $0x40] sm:$0xff] }
 0x891   : > { %v15489_v40 = vrot.slane %v8542_v0, %v16063_v3  ;;  %v8784_v35 = vmul.f32 %v8771_v27, %v15479_v36  ;;  %v8553_v8 = vmul.f32 %v12897_v61, %v15479_v36  ;;  %v8554_v22 = vmul.f32 %v15479_v36, %v16060_v56  ;;  %v12876_v3 = vld [vmem:[%s16054_s29 + $0x8] sm:$0xff]  }
 0x892   : > { %v8785_v17 = vmul.f32 %v8772_v43, %v15479_v36  ;;  %v8786_v32 = vmul.f32 %v8773_v24, %v15479_v36  ;;  %v8555_v39 = vmul.f32 %v15479_v36, %v15058_v11  ;;  %v8556_v9 = vmul.f32 %v15479_v36, %v15065_v62  ;;  %v12877_v43 = vld [vmem:[%s16054_s29 + $0x10] sm:$0xff]  }
 0x893   : > { %v8568_v1 = vadd.f32 %v15489_v40, %v8549_v59  ;;  %v8569_v19 = vadd.f32 %v15489_v40, %v8550_v10  ;;  %v8794_v23 = vadd.f32 %v8781_v47, %v15489_v40  ;;  %v8795_v56 = vadd.f32 %v8782_v6, %v15489_v40  ;;  %v12878_v24 = vld [vmem:[%s16054_s29 + $0x10] sm:$0xff]  }
 0x894   : > { %v8570_v26 = vadd.f32 %v15489_v40, %v8551_v48  ;;  %v8571_v30 = vadd.f32 %v15489_v40, %v8552_v51  ;;  %v8796_v12 = vadd.f32 %v8783_v21, %v15489_v40  ;;  %v8797_v37 = vadd.f32 %v8784_v35, %v15489_v40  ;;  %v8776_v51 = vld [vmem:[#allocation4 + $0xa8] sm:$0xff] }
 0x895   : > { %v8581_v11 = vmax.f32 %v8568_v1, 0.0  ;;  %v8582_v31 = vmax.f32 %v8569_v19, 0.0  ;;  %v8807_v63 = vmax.f32 %v8794_v23, 0.0  ;;  %v8808_v62 = vmax.f32 %v8795_v56, 0.0  ;;  %v12899_v21 = vld [vmem:[#allocation4 + $0x48] sm:$0xff] }
 0x896   : > { %v8583_v57 = vmax.f32 %v8570_v26, 0.0  ;;  %v8584_v20 = vmax.f32 %v8571_v30, 0.0  ;;  %v8809_v42 = vmax.f32 %v8796_v12, 0.0  ;;  %v8810_v4 = vmax.f32 %v8797_v37, 0.0  ;;  %v8778_v30 = vld [vmem:[#allocation4 + $0xb8] sm:$0xff] }
 0x897   : > { %v8594_v28 = vpack.c.bf16 %v8582_v31, %v8581_v11  ;;  %v8820_v25 = vpack.c.bf16 %v8808_v62, %v8807_v63  ;;  %v8572_v60 = vadd.f32 %v15489_v40, %v8553_v8  ;;  %v8573_v38 = vadd.f32 %v15489_v40, %v8554_v22  ;;  %v8777_v8 = vld [vmem:[#allocation4 + $0xb0] sm:$0xff]  ;;  %v8779_v31 = vld [vmem:[#allocation4 + $0xc0] sm:$0xff] }
 0x898   : > { %v8595_v13 = vpack.c.bf16 %v8584_v20, %v8583_v57  ;;  %v8821_v52 = vpack.c.bf16 %v8810_v4, %v8809_v42  ;;  %v8798_v33 = vadd.f32 %v8785_v17, %v15489_v40  ;;  %v8799_v34 = vadd.f32 %v8786_v32, %v15489_v40  ;;  %v12880_v20 = vld [vmem:[%s16054_s29 + $0x18] sm:$0xff]  }
 0x899   : > { %11386 = vmatmul.mubr.bf16.vlgmr.msra.gmra.mrb[56].mxu0 %v8594_v28  ;;  %11430 = vmatmul.mubr.bf16.vlgmr.msra.gmra.mrb[56].mxu1 %v8820_v25  ;;  %v8585_v29 = vmax.f32 %v8572_v60, 0.0  ;;  %v8586_v53 = vmax.f32 %v8573_v38, 0.0  ;;  %v8574_v46 = vadd.f32 %v15489_v40, %v8555_v39  ;;  %v8575_v16 = vadd.f32 %v15489_v40, %v8556_v9  ;;  %v12900_v9 = vld [vmem:[#allocation4 + $0x50] sm:$0xff]  ;;  %v8780_v60 = vld [vmem:[#allocation4 + $0xc8] sm:$0x3] }
 0x89a   : > { %11458 = vmatpush3.bf16.msra.mxu0 %v12873_v14  ;;  %11502 = vmatpush3.bf16.msra.mxu1 %v12874_v7  ;;  %v8811_v41 = vmax.f32 %v8798_v33, 0.0  ;;  %v8812_v0 = vmax.f32 %v8799_v34, 0.0  ;;  %v8787_v18 = vmul.f32 %v8774_v45, %v15479_v36  ;;  %v8788_v59 = vmul.f32 %v8775_v15, %v15479_v36  ;;  %v8993_v34 = vld [vmem:[#allocation4 + $0xd0] sm:$0xff] }
 0x89b   : > { %v16064_v58 = vmov 0.0   ;;  %v15531_v10 = vpack.c.bf16 %v8586_v53, %v8585_v29  ;;  %v8587_v55 = vmax.f32 %v8574_v46, 0.0  ;;  %v8588_v47 = vmax.f32 %v8575_v16, 0.0  ;;  %v8994_v46 = vld [vmem:[#allocation4 + $0xd8] sm:$0xff] }
 0x89c   : > { %11459 = vmatprep.subr.bf16.mxu0 %v16064_v58  ;;  %11503 = vmatprep.subr.bf16.mxu1 %v16064_v58  ;;  %v8557_v6 = vmul.f32 %v12898_v50, %v15479_v36  ;;  %v15538_v5 = vpack.c.bf16 %v8812_v0, %v8811_v41  ;;  %v8800_v48 = vadd.f32 %v8787_v18, %v15489_v40  ;;  %v9218_v41 = vld [vmem:[#allocation4 + $0x138] sm:$0xff]  ;;  %v9219_v0 = vld [vmem:[#allocation4 + $0x140] sm:$0xff] }
 0x89d   : > { %11389 = vmatprep.mubr.msk.bf16.mxu0 %vm13300_vm8, %v16064_v58  ;;  %11433 = vmatprep.mubr.msk.bf16.mxu1 %vm13300_vm8, %v16064_v58  ;;  %v8801_v49 = vadd.f32 %v8788_v59, %v15489_v40  ;;  %v15542_v27 = vpack.c.bf16 %v8588_v47, %v8587_v55  ;;  %v8558_v35 = vmul.f32 %v12899_v21, %v15479_v36  ;;  %v8995_v47 = vld [vmem:[#allocation4 + $0xe0] sm:$0xff] }
 0x89e   : > { %v8576_v61 = vadd.f32 %v15489_v40, %v8557_v6  ;;  %v8789_v22 = vmul.f32 %v8776_v51, %v15479_v36  ;;  %11460 = vmatpush3.bf16.msra.mxu0 %v12875_v54  ;;  %11504 = vmatpush3.bf16.msra.mxu1 %v12876_v3  ;;  %v8813_v17 = vmax.f32 %v8800_v48, 0.0  ;;  %v8790_v39 = vmul.f32 %v8777_v8, %v15479_v36  ;;  %v12881_v50 = vld [vmem:[%s16054_s29 + $0x20] sm:$0xff]   ;;  %v8996_v8 = vld [vmem:[#allocation4 + $0xe8] sm:$0xff] }
 0x89f   : > { %v8814_v32 = vmax.f32 %v8801_v49, 0.0  ;;  %v8559_v1 = vmul.f32 %v12900_v9, %v15479_v36  ;;  %11461 = vmatprep.subr.bf16.mxu0 %v16064_v58  ;;  %11505 = vmatprep.subr.bf16.mxu1 %v16064_v58  ;;  %v8577_v19 = vadd.f32 %v15489_v40, %v8558_v35  ;;  %v8560_v26 = vmul.f32 %v15479_v36, %v15102_v44  ;;  %v12879_v44 = vld [vmem:[%s16054_s29 + $0x18] sm:$0xff]   ;;  %v12882_v6 = vld [vmem:[%s16054_s29 + $0x20] sm:$0xff]  }
 0x8a0   : > { %v8589_v23 = vmax.f32 %v8576_v61, 0.0  ;;  %v8802_v56 = vadd.f32 %v8789_v22, %v15489_v40  ;;  %v8803_v37 = vadd.f32 %v8790_v39, %v15489_v40  ;;  %v8791_v63 = vmul.f32 %v8778_v30, %v15479_v36 }
 0x8a1   : > { %v15561_v12 = vpack.c.bf16 %v8814_v32, %v8813_v17  ;;  %v8578_v11 = vadd.f32 %v15489_v40, %v8559_v1  ;;  %11390 = vmatmul.mubr.bf16.gmra.mrb[60].mxu0 %v8595_v13  ;;  %11434 = vmatmul.mubr.bf16.gmra.mrb[60].mxu1 %v8821_v52  ;;  %v8590_v62 = vmax.f32 %v8577_v19, 0.0  ;;  %v8579_v7 = vadd.f32 %v15489_v40, %v8560_v26  ;;  %v9220_v17 = vld [vmem:[#allocation4 + $0x148] sm:$0xff]  ;;  %v9221_v32 = vld [vmem:[#allocation4 + $0x150] sm:$0xff] }
 0x8a2   : > { %v8815_v14 = vmax.f32 %v8802_v56, 0.0  ;;  %v8792_v57 = vmul.f32 %v8779_v31, %v15479_v36  ;;  %11462 = vmatpush3.bf16.msra.mxu0 %v12877_v43  ;;  %11506 = vmatpush3.bf16.msra.mxu1 %v12878_v24  ;;  %v8816_v42 = vmax.f32 %v8803_v37, 0.0  ;;  %v8804_v28 = vadd.f32 %v8791_v63, %v15489_v40  ;;  %v12883_v19 = vld [vmem:[%s16054_s29 + $0x28] sm:$0xff]  }
 0x8a3   : > { %v8591_v4 = vmax.f32 %v8578_v11, 0.0  ;;  %v8561_v25 = vmul.f32 %v15479_v36, %v16062_v2  ;;  %11393 = vmatprep.mubr.msk.bf16.mxu0 %vm13300_vm8, %v16064_v58  ;;  %11437 = vmatprep.mubr.msk.bf16.mxu1 %vm13300_vm8, %v16064_v58  ;;  %v15581_v38 = vpack.c.bf16 %v8590_v62, %v8589_v23  ;;  %v8592_v13 = vmax.f32 %v8579_v7, 0.0  ;;  %v12884_v23 = vld [vmem:[%s16054_s29 + $0x28] sm:$0xff]   ;;  %v8998_v62 = vld [vmem:[#allocation4 + $0xf8] sm:$0xff] }
 0x8a4   : > { %v8805_v52 = vadd.f32 %v8792_v57, %v15489_v40  ;;  %v8793_v33 = vmul.f32 %v8780_v60, %v15479_v36  ;;  %11463 = vmatprep.subr.bf16.mxu0 %v16064_v58  ;;  %11507 = vmatprep.subr.bf16.mxu1 %v16064_v58  ;;  %v15587_v2 = vpack.c.bf16 %v8816_v42, %v8815_v14  ;;  %v8817_v29 = vmax.f32 %v8804_v28, 0.0  ;;  %v9222_v14 = vld [vmem:[#allocation4 + $0x158] sm:$0xff] }
 0x8a5   : > { %v15590_v53 = vadd.f32 %v15489_v40, %v8561_v25  ;;  %v9006_v16 = vmul.f32 %v8993_v34, %v15479_v36  ;;  %v15593_v45 = vpack.c.bf16 %v8592_v13, %v8591_v4  ;;  %v9007_v3 = vmul.f32 %v8994_v46, %v15479_v36  ;;  %v8999_v4 = vld [vmem:[#allocation4 + $0x100] sm:$0xff] }
 0x8a6   : > { %v8818_v15 = vmax.f32 %v8805_v52, 0.0  ;;  %v15596_v54 = vadd.f32 %v8793_v33, %v15489_v40  ;;  %11464 = vmatpush3.bf16.msra.mxu0 %v12879_v44  ;;  %11508 = vmatpush3.bf16.msra.mxu1 %v12880_v20  ;;  %v9231_v59 = vmul.f32 %v9218_v41, %v15479_v36  ;;  %v9232_v55 = vmul.f32 %v9219_v0, %v15479_v36  ;;  %v9223_v20 = vld [vmem:[#allocation4 + $0x160] sm:$0xff]  ;;  %v12885_v52 = vld [vmem:[%s16054_s29 + $0x30] sm:$0xff]  }
 0x8a7   : > { %v9019_v18 = vadd.f32 %v9006_v16, %v15489_v40  ;;  %11465 = vmatprep.subr.bf16.mxu0 %v16064_v58  ;;  %11509 = vmatprep.subr.bf16.mxu1 %v16064_v58  ;;  %v9020_v49 = vadd.f32 %v9007_v3, %v15489_v40  ;;  %v9008_v51 = vmul.f32 %v8995_v47, %v15479_v36  ;;  %v12886_v33 = vld [vmem:[%s16054_s29 + $0x30] sm:$0xff]  }
 0x8a8   : > { %v15610_v48 = vpack.c.bf16 %v8818_v15, %v8817_v29  ;;  %v9244_v35 = vadd.f32 %v9231_v59, %v15489_v40  ;;  %v9245_v61 = vadd.f32 %v9232_v55, %v15489_v40  ;;  %v9009_v43 = vmul.f32 %v8996_v8, %v15479_v36  ;;  %v9000_v15 = vld [vmem:[#allocation4 + $0x108] sm:$0xff]  ;;  %v12888_v8 = vld [vmem:[%s16054_s29 + $0x38] sm:$0xff]  }
 0x8a9   : > { %v9032_v21 = vmax.f32 %v9019_v18, 0.0  ;;  %11394 = vmatmul.mubr.bf16.gmra.mrb[64].mxu0 %v15531_v10  ;;  %11438 = vmatmul.mubr.bf16.gmra.mrb[64].mxu1 %v15538_v5  ;;  %v9033_v22 = vmax.f32 %v9020_v49, 0.0  ;;  %v9021_v24 = vadd.f32 %v9008_v51, %v15489_v40  ;;  %v9233_v1 = vmul.f32 %v9220_v17, %v15479_v36  ;;  %v8997_v5 = vld [vmem:[#allocation4 + $0xf0] sm:$0xff]  ;;  %v9224_v18 = vld [vmem:[#allocation4 + $0x168] sm:$0xff] }
 0x8aa   : > { %11397 = vmatprep.mubr.msk.bf16.mxu0 %vm13300_vm8, %v16064_v58  ;;  %11441 = vmatprep.mubr.msk.bf16.mxu1 %vm13300_vm8, %v16064_v58  ;;  %v9257_v39 = vmax.f32 %v9244_v35, 0.0  ;;  %v9258_v9 = vmax.f32 %v9245_v61, 0.0  ;;  %v9234_v10 = vmul.f32 %v9221_v32, %v15479_v36  ;;  %v9022_v26 = vadd.f32 %v9009_v43, %v15489_v40  ;;  %v9001_v49 = vld [vmem:[#allocation4 + $0x110] sm:$0xff]  ;;  %v12887_v61 = vld [vmem:[%s16054_s29 + $0x38] sm:$0xff]  }
 0x8ab   : > { %11466 = vmatpush3.bf16.msra.mxu0 %v12881_v50  ;;  %11510 = vmatpush3.bf16.msra.mxu1 %v12882_v6  ;;  %v15632_v56 = vpack.c.bf16 %v9033_v22, %v9032_v21  ;;  %v9034_v30 = vmax.f32 %v9021_v24, 0.0  ;;  %v9010_v37 = vmul.f32 %v8997_v5, %v15479_v36  ;;  %v9246_v31 = vadd.f32 %v9233_v1, %v15489_v40  ;;  %v9225_v50 = vld [vmem:[#allocation4 + $0x170] sm:$0xff]  ;;  %v9227_v5 = vld [vmem:[#allocation4 + $0x180] sm:$0xff] }
 0x8ac   : > { %11467 = vmatprep.subr.bf16.mxu0 %v16064_v58  ;;  %11511 = vmatprep.subr.bf16.mxu1 %v16064_v58  ;;  %v15638_v11 = vpack.c.bf16 %v9258_v9, %v9257_v39  ;;  %v9247_v63 = vadd.f32 %v9234_v10, %v15489_v40  ;;  %v9035_v7 = vmax.f32 %v9022_v26, 0.0  ;;  %v9011_v57 = vmul.f32 %v8998_v62, %v15479_v36  ;;  %v9226_v10 = vld [vmem:[#allocation4 + $0x178] sm:$0xff] }
 0x8ad   : > { %v9023_v44 = vadd.f32 %v9010_v37, %v15489_v40  ;;  %v9235_v42 = vmul.f32 %v9222_v14, %v15479_v36  ;;  %v9259_v28 = vmax.f32 %v9246_v31, 0.0  ;;  %v9236_v60 = vmul.f32 %v9223_v20, %v15479_v36  ;;  %v9003_v37 = vld [vmem:[#allocation4 + $0x120] sm:$0xff]  ;;  %v9004_v14 = vld [vmem:[#allocation4 + $0x128] sm:$0xff] }
 0x8ae   : > { %v9260_v25 = vmax.f32 %v9247_v63, 0.0  ;;  %v9012_v13 = vmul.f32 %v8999_v4, %v15479_v36  ;;  %v15653_v34 = vpack.c.bf16 %v9035_v7, %v9034_v30  ;;  %v9024_v29 = vadd.f32 %v9011_v57, %v15489_v40  ;;  %v9228_v4 = vld [vmem:[#allocation4 + $0x188] sm:$0xff] }
 0x8af   : > { %11468 = vmatpush3.bf16.msra.mxu0 %v12883_v19  ;;  %11512 = vmatpush3.bf16.msra.mxu1 %v12884_v23  ;;  %v9036_v46 = vmax.f32 %v9023_v44, 0.0  ;;  %v9248_v16 = vadd.f32 %v9235_v42, %v15489_v40  ;;  %v9249_v41 = vadd.f32 %v9236_v60, %v15489_v40  ;;  %v9013_v0 = vmul.f32 %v9000_v15, %v15479_v36  ;;  %v9005_v15 = vld [vmem:[#allocation4 + $0x130] sm:$0x3] }
 0x8b0   : > { %11469 = vmatprep.subr.bf16.mxu0 %v16064_v58  ;;  %11513 = vmatprep.subr.bf16.mxu1 %v16064_v58  ;;  %v15659_v3 = vpack.c.bf16 %v9260_v25, %v9259_v28  ;;  %v9037_v59 = vmax.f32 %v9024_v29, 0.0  ;;  %v9025_v47 = vadd.f32 %v9012_v13, %v15489_v40  ;;  %v9237_v6 = vmul.f32 %v9224_v18, %v15479_v36  ;;  %v9229_v28 = vld [vmem:[#allocation4 + $0x190] sm:$0xff] }
 0x8b1   : > { %11398 = vmatmul.mubr.bf16.gmra.mrb[68].mxu0 %v15542_v27  ;;  %11442 = vmatmul.mubr.bf16.gmra.mrb[68].mxu1 %v15561_v12  ;;  %v9261_v55 = vmax.f32 %v9248_v16, 0.0  ;;  %v9262_v51 = vmax.f32 %v9249_v41, 0.0  ;;  %v9026_v21 = vadd.f32 %v9013_v0, %v15489_v40  ;;  %v9238_v27 = vmul.f32 %v9225_v50, %v15479_v36  ;;  %v9002_v12 = vld [vmem:[#allocation4 + $0x118] sm:$0xff] }
 0x8b2   : > { %11401 = vmatprep.mubr.msk.bf16.mxu0 %vm13300_vm8, %v16064_v58  ;;  %11445 = vmatprep.mubr.msk.bf16.mxu1 %vm13300_vm8, %v16064_v58  ;;  %v9014_v35 = vmul.f32 %v9001_v49, %v15479_v36  ;;  %v15680_v22 = vpack.c.bf16 %v9037_v59, %v9036_v46  ;;  %v9038_v43 = vmax.f32 %v9025_v47, 0.0  ;;  %v9250_v24 = vadd.f32 %v9237_v6, %v15489_v40 }
 0x8b3   : > { %11470 = vmatpush3.bf16.msra.mxu0 %v12885_v52  ;;  %11514 = vmatpush3.bf16.msra.mxu1 %v12886_v33  ;;  %v9015_v17 = vmul.f32 %v9002_v12, %v15479_v36  ;;  %v15686_v32 = vpack.c.bf16 %v9262_v51, %v9261_v55  ;;  %v9039_v39 = vmax.f32 %v9026_v21, 0.0  ;;  %v9251_v9 = vadd.f32 %v9238_v27, %v15489_v40 }
 0x8b4   : > { %11471 = vmatprep.subr.bf16.mxu0 %v16064_v58  ;;  %11515 = vmatprep.subr.bf16.mxu1 %v16064_v58  ;;  %v9027_v1 = vadd.f32 %v9014_v35, %v15489_v40  ;;  %v9263_v19 = vmax.f32 %v9250_v24, 0.0  ;;  %v9239_v26 = vmul.f32 %v9226_v10, %v15479_v36  ;;  %v9240_v30 = vmul.f32 %v9227_v5, %v15479_v36 }
 0x8b5   : > { %v9028_v23 = vadd.f32 %v9015_v17, %v15489_v40  ;;  %v15693_v31 = vpack.c.bf16 %v9039_v39, %v9038_v43  ;;  %v9264_v63 = vmax.f32 %v9251_v9, 0.0  ;;  %v9016_v7 = vmul.f32 %v9003_v37, %v15479_v36 }
 0x8b6   : > { %v9040_v62 = vmax.f32 %v9027_v1, 0.0  ;;  %v9252_v44 = vadd.f32 %v9239_v26, %v15489_v40  ;;  %v9253_v20 = vadd.f32 %v9240_v30, %v15489_v40  ;;  %v9017_v42 = vmul.f32 %v9004_v14, %v15479_v36 }
 0x8b7   : > { %11472 = vmatpush3.bf16.msra.mxu0 %v12887_v61  ;;  %11516 = vmatpush3.bf16.msra.mxu1 %v12888_v8  ;;  %v9041_v57 = vmax.f32 %v9028_v23, 0.0  ;;  %v9273_v25 = vpack.c.bf16 %v9264_v63, %v9263_v19  ;;  %v9029_v60 = vadd.f32 %v9016_v7, %v15489_v40  ;;  %v9241_v13 = vmul.f32 %v9228_v4, %v15479_v36 }
 0x8b8   : > { %v9242_v52 = vmul.f32 %v9229_v28, %v15479_v36  ;;  %v9265_v29 = vmax.f32 %v9252_v44, 0.0  ;;  %v9266_v46 = vmax.f32 %v9253_v20, 0.0  ;;  %v9030_v16 = vadd.f32 %v9017_v42, %v15489_v40 }
 0x8b9   : > { %11402 = vmatmul.mubr.bf16.gmra.mrb[72].mxu0 %v15581_v38  ;;  %11446 = vmatmul.mubr.bf16.gmra.mrb[72].mxu1 %v15587_v2  ;;  %v9049_v33 = vpack.c.bf16 %v9041_v57, %v9040_v62  ;;  %v9042_v41 = vmax.f32 %v9029_v60, 0.0  ;;  %v9254_v0 = vadd.f32 %v9241_v13, %v15489_v40  ;;  %v9018_v38 = vmul.f32 %v9005_v15, %v15479_v36  ;;  %v9230_v2 = vld [vmem:[#allocation4 + $0x198] sm:$0x3] }
 0x8ba   : > { %11405 = vmatprep.mubr.msk.bf16.mxu0 %vm13300_vm8, %v16064_v58  ;;  %11449 = vmatprep.mubr.msk.bf16.mxu1 %vm13300_vm8, %v16064_v58  ;;  %v9255_v18 = vadd.f32 %v9242_v52, %v15489_v40  ;;  %v9274_v59 = vpack.c.bf16 %v9266_v46, %v9265_v29  ;;  %v9043_v55 = vmax.f32 %v9030_v16, 0.0  ;;  %v9243_v47 = vmul.f32 %v9230_v2, %v15479_v36 }
 0x8bb   : > { %v9267_v50 = vmax.f32 %v9254_v0, 0.0  ;;  %v9031_v49 = vadd.f32 %v9018_v38, %v15489_v40  ;;  %v8593_v36 = vmax.f32 %v15590_v53, 0.0  ;;  %v8819_v12 = vmax.f32 %v15596_v54, 0.0 }
 0x8bc   : > { %v9268_v6 = vmax.f32 %v9255_v18, 0.0  ;;  %v9050_v51 = vpack.c.bf16 %v9043_v55, %v9042_v41  ;;  %v9256_v21 = vadd.f32 %v9243_v47, %v15489_v40 }
 0x8bd   : > { %v8600_v35 = vpack.c.bf16 %v8593_v36, %v8593_v36  ;;  %v8826_v61 = vpack.c.bf16 %v8819_v12, %v8819_v12  ;;  %v9044_v40 = vmax.f32 %v9031_v49, 0.0 }
 0x8be   : > { %v9275_v27 = vpack.c.bf16 %v9268_v6, %v9267_v50  ;;  %v9269_v53 = vmax.f32 %v9256_v21, 0.0 }
 0x8c0   : > { %v9276_v54 = vpack.c.bf16 %v9269_v53, %v9269_v53 }
 0x8c1   : > { %11406 = vmatmul.mubr.bf16.gmra.mrb[76].mxu0 %v15593_v45  ;;  %11450 = vmatmul.mubr.bf16.gmra.mrb[76].mxu1 %v15610_v48  ;;  %v9051_v45 = vpack.c.bf16 %v9044_v40, %v9044_v40 }
 0x8c2   : > { %11409 = vmatprep.mubr.msk.bf16.mxu0 %vm13300_vm8, %v16064_v58  ;;  %11453 = vmatprep.mubr.msk.bf16.mxu1 %vm13300_vm8, %v16064_v58 }
 0x8c9   : > { %11410 = vmatmul.mubr.bf16.gmra.mrb[80].mxu0 %v8600_v35  ;;  %11454 = vmatmul.mubr.bf16.gmra.mrb[80].mxu1 %v8826_v61 }
 0x8ca   : > { %11473 = vmatprep.mubr.msk.bf16.mxu0 %vm13300_vm8, %v16064_v58  ;;  %11517 = vmatprep.mubr.msk.bf16.mxu1 %vm13300_vm8, %v16064_v58 }
 0x8d1   : > { %11474 = vmatmul.mubr.bf16.vlgmr.msra.gmra.mrb[84].mxu0 %v15632_v56  ;;  %11518 = vmatmul.mubr.bf16.vlgmr.msra.gmra.mrb[84].mxu1 %v15638_v11 }
 0x8d2   : > { %11477 = vmatprep.mubr.msk.bf16.mxu0 %vm13300_vm8, %v16064_v58  ;;  %11521 = vmatprep.mubr.msk.bf16.mxu1 %vm13300_vm8, %v16064_v58 }
 0x8d9   : > { %11478 = vmatmul.mubr.bf16.gmra.mrb[88].mxu0 %v15653_v34  ;;  %11522 = vmatmul.mubr.bf16.gmra.mrb[88].mxu1 %v15659_v3 }
 0x8da   : > { %11481 = vmatprep.mubr.msk.bf16.mxu0 %vm13300_vm8, %v16064_v58  ;;  %11525 = vmatprep.mubr.msk.bf16.mxu1 %vm13300_vm8, %v16064_v58 }
 0x8e1   : > { %11482 = vmatmul.mubr.bf16.gmra.mrb[92].mxu0 %v15680_v22  ;;  %11526 = vmatmul.mubr.bf16.gmra.mrb[92].mxu1 %v15686_v32 }
 0x8e2   : > { %11485 = vmatprep.mubr.msk.bf16.mxu0 %vm13300_vm8, %v16064_v58  ;;  %11529 = vmatprep.mubr.msk.bf16.mxu1 %vm13300_vm8, %v16064_v58 }
 0x8e9   : > { %11486 = vmatmul.mubr.bf16.gmra.mrb[96].mxu0 %v15693_v31  ;;  %11530 = vmatmul.mubr.bf16.gmra.mrb[96].mxu1 %v9273_v25 }
 0x8ea   : > { %11489 = vmatprep.mubr.msk.bf16.mxu0 %vm13300_vm8, %v16064_v58  ;;  %11533 = vmatprep.mubr.msk.bf16.mxu1 %vm13300_vm8, %v16064_v58 }
 0x8f1   : > { %11490 = vmatmul.mubr.bf16.gmra.mrb[100].mxu0 %v9049_v33  ;;  %11534 = vmatmul.mubr.bf16.gmra.mrb[100].mxu1 %v9274_v59 }
 0x8f2   : > { %11493 = vmatprep.mubr.msk.bf16.mxu0 %vm13300_vm8, %v16064_v58  ;;  %11537 = vmatprep.mubr.msk.bf16.mxu1 %vm13300_vm8, %v16064_v58 }
 0x8f9   : > { %11494 = vmatmul.mubr.bf16.gmra.mrb[104].mxu0 %v9050_v51  ;;  %11538 = vmatmul.mubr.bf16.gmra.mrb[104].mxu1 %v9275_v27 }
 0x8fa   : > { %11497 = vmatprep.mubr.msk.bf16.mxu0 %vm13300_vm8, %v16064_v58  ;;  %11541 = vmatprep.mubr.msk.bf16.mxu1 %vm13300_vm8, %v16064_v58 }
 0x901   : > { %11498 = vmatmul.mubr.bf16.gmra.mrb[108].mxu0 %v9051_v45  ;;  %11542 = vmatmul.mubr.bf16.gmra.mrb[108].mxu1 %v9276_v54 }
 0x96c   : > { %v8699_v48 = vpop.f32.mrb[56].mxu0  ;;  %v8925_v56 = vpop.f32.mrb[56].mxu1 }
 0x96d   : > { %8754 = vst.msk [vmem:[%s16065_s28] sm:$0xff] %vm8753_vm9, %v8699_v48  ;;  %10219 = vst.msk [vmem:[%s16065_s28 + $0x68] sm:$0xff] %vm8753_vm9, %v8925_v56  ;;  %v11387_v58 = vpop.f32.mrb[57].mxu0  ;;  %v11431_v11 = vpop.f32.mrb[57].mxu1 }
 0x96e   : > { %v8702_v34 = vpop.f32.mrb[58].mxu0  ;;  %v8928_v3 = vpop.f32.mrb[58].mxu1 }
 0x96f   : > { %8755 = vst.msk [vmem:[%s16065_s28 + $0x8] sm:$0xff] %vm8753_vm9, %v8702_v34  ;;  %10220 = vst.msk [vmem:[%s16065_s28 + $0x70] sm:$0xff] %vm8753_vm9, %v8928_v3  ;;  %v11388_v8 = vpop.f32.mrb[59].mxu0  ;;  %v11432_v22 = vpop.f32.mrb[59].mxu1 }
 0x974   : > { %v8707_v43 = vpop.f32.mrb[60].mxu0  ;;  %v8933_v24 = vpop.f32.mrb[60].mxu1 }
 0x975   : > { %8756 = vst.msk [vmem:[%s16065_s28 + $0x10] sm:$0xff] %vm8753_vm9, %v8707_v43  ;;  %10221 = vst.msk [vmem:[%s16065_s28 + $0x78] sm:$0xff] %vm8753_vm9, %v8933_v24  ;;  %v11391_v17 = vpop.f32.mrb[61].mxu0  ;;  %v11435_v32 = vpop.f32.mrb[61].mxu1 }
 0x976   : > { %v8710_v39 = vpop.f32.mrb[62].mxu0  ;;  %v8936_v9 = vpop.f32.mrb[62].mxu1 }
 0x977   : > { %8757 = vst.msk [vmem:[%s16065_s28 + $0x18] sm:$0xff] %vm8753_vm9, %v8710_v39  ;;  %10222 = vst.msk [vmem:[%s16065_s28 + $0x80] sm:$0xff] %vm8753_vm9, %v8936_v9  ;;  %v11392_v1 = vpop.f32.mrb[63].mxu0  ;;  %v11436_v10 = vpop.f32.mrb[63].mxu1 }
 0x97c   : > { %v8715_v5 = vpop.f32.mrb[64].mxu0  ;;  %v8941_v19 = vpop.f32.mrb[64].mxu1 }
 0x97d   : > { %8758 = vst.msk [vmem:[%s16065_s28 + $0x20] sm:$0xff] %vm8753_vm9, %v8715_v5  ;;  %10223 = vst.msk [vmem:[%s16065_s28 + $0x88] sm:$0xff] %vm8753_vm9, %v8941_v19  ;;  %v11395_v23 = vpop.f32.mrb[65].mxu0  ;;  %v11439_v26 = vpop.f32.mrb[65].mxu1 }
 0x97e   : > { %v8718_v30 = vpop.f32.mrb[66].mxu0  ;;  %v8944_v37 = vpop.f32.mrb[66].mxu1 }
 0x97f   : > { %8759 = vst.msk [vmem:[%s16065_s28 + $0x28] sm:$0xff] %vm8753_vm9, %v8718_v30  ;;  %10224 = vst.msk [vmem:[%s16065_s28 + $0x90] sm:$0xff] %vm8753_vm9, %v8944_v37  ;;  %v11396_v31 = vpop.f32.mrb[67].mxu0  ;;  %v11440_v63 = vpop.f32.mrb[67].mxu1 }
 0x984   : > { %v8723_v62 = vpop.f32.mrb[68].mxu0  ;;  %v8949_v14 = vpop.f32.mrb[68].mxu1 }
 0x985   : > { %8760 = vst.msk [vmem:[%s16065_s28 + $0x30] sm:$0xff] %vm8753_vm9, %v8723_v62  ;;  %10225 = vst.msk [vmem:[%s16065_s28 + $0x98] sm:$0xff] %vm8753_vm9, %v8949_v14  ;;  %v11399_v7 = vpop.f32.mrb[69].mxu0  ;;  %v11443_v57 = vpop.f32.mrb[69].mxu1 }
 0x986   : > { %v8726_v44 = vpop.f32.mrb[70].mxu0  ;;  %v8952_v20 = vpop.f32.mrb[70].mxu1 }
 0x987   : > { %8761 = vst.msk [vmem:[%s16065_s28 + $0x38] sm:$0xff] %vm8753_vm9, %v8726_v44  ;;  %10226 = vst.msk [vmem:[%s16065_s28 + $0xa0] sm:$0xff] %vm8753_vm9, %v8952_v20  ;;  %v11400_v42 = vpop.f32.mrb[71].mxu0  ;;  %v11444_v4 = vpop.f32.mrb[71].mxu1 }
 0x98c   : > { %v8731_v28 = vpop.f32.mrb[72].mxu0  ;;  %v8957_v25 = vpop.f32.mrb[72].mxu1 }
 0x98d   : > { %8762 = vst.msk [vmem:[%s16065_s28 + $0x40] sm:$0xff] %vm8753_vm9, %v8731_v28  ;;  %10227 = vst.msk [vmem:[%s16065_s28 + $0xa8] sm:$0xff] %vm8753_vm9, %v8957_v25  ;;  %v11403_v60 = vpop.f32.mrb[73].mxu0  ;;  %v11447_v13 = vpop.f32.mrb[73].mxu1 }
 0x98e   : > { %v8734_v52 = vpop.f32.mrb[74].mxu0  ;;  %v8960_v33 = vpop.f32.mrb[74].mxu1 }
 0x98f   : > { %8763 = vst.msk [vmem:[%s16065_s28 + $0x48] sm:$0xff] %vm8753_vm9, %v8734_v52  ;;  %10228 = vst.msk [vmem:[%s16065_s28 + $0xb0] sm:$0xff] %vm8753_vm9, %v8960_v33  ;;  %v11404_v29 = vpop.f32.mrb[75].mxu0  ;;  %v11448_v46 = vpop.f32.mrb[75].mxu1 }
 0x994   : > { %v8739_v16 = vpop.f32.mrb[76].mxu0  ;;  %v8965_v15 = vpop.f32.mrb[76].mxu1 }
 0x995   : > { %8764 = vst.msk [vmem:[%s16065_s28 + $0x50] sm:$0xff] %vm8753_vm9, %v8739_v16  ;;  %10229 = vst.msk [vmem:[%s16065_s28 + $0xb8] sm:$0xff] %vm8753_vm9, %v8965_v15  ;;  %v11407_v41 = vpop.f32.mrb[77].mxu0  ;;  %v11451_v0 = vpop.f32.mrb[77].mxu1 }
 0x996   : > { %v8742_v18 = vpop.f32.mrb[78].mxu0  ;;  %v8968_v38 = vpop.f32.mrb[78].mxu1 }
 0x997   : > { %8765 = vst.msk [vmem:[%s16065_s28 + $0x58] sm:$0xff] %vm8753_vm9, %v8742_v18  ;;  %10230 = vst.msk [vmem:[%s16065_s28 + $0xc0] sm:$0xff] %vm8753_vm9, %v8968_v38  ;;  %v11408_v2 = vpop.f32.mrb[79].mxu0  ;;  %v11452_v59 = vpop.f32.mrb[79].mxu1 }
 0x99c   : > { %v8747_v55 = vpop.f32.mrb[80].mxu0  ;;  %v8973_v47 = vpop.f32.mrb[80].mxu1 }
 0x99d   : > { %8767 = vst.msk [vmem:[%s16065_s28 + $0x60] sm:$0x3] %vm8766_vm10, %v8747_v55  ;;  %10231 = vst.msk [vmem:[%s16065_s28 + $0xc8] sm:$0x3] %vm8766_vm10, %v8973_v47  ;;  %v11411_v50 = vpop.f32.mrb[81].mxu0  ;;  %v11455_v6 = vpop.f32.mrb[81].mxu1 }
 0x99e   : > { %v8750_v49 = vpop.f32.mrb[82].mxu0  ;;  %v8976_v51 = vpop.f32.mrb[82].mxu1 }
 0x99f   : > { %v11412_v21 = vpop.f32.mrb[83].mxu0  ;;  %v11456_v27 = vpop.f32.mrb[83].mxu1 }
 0x9a4   : > { %v9150_v36 = vpop.f32.mrb[84].mxu0  ;;  %v9375_v12 = vpop.f32.mrb[84].mxu1 }
 0x9a5   : > { %10240 = vst.msk [vmem:[%s16065_s28 + $0xd0] sm:$0xff] %vm8753_vm9, %v9150_v36  ;;  %10261 = vst.msk [vmem:[%s16065_s28 + $0x138] sm:$0xff] %vm8753_vm9, %v9375_v12  ;;  %v11475_v35 = vpop.f32.mrb[85].mxu0  ;;  %v11519_v61 = vpop.f32.mrb[85].mxu1 }
 0x9a6   : > { %v9153_v40 = vpop.f32.mrb[86].mxu0  ;;  %v9378_v53 = vpop.f32.mrb[86].mxu1 }
 0x9a7   : > { %10241 = vst.msk [vmem:[%s16065_s28 + $0xd8] sm:$0xff] %vm8753_vm9, %v9153_v40  ;;  %10262 = vst.msk [vmem:[%s16065_s28 + $0x140] sm:$0xff] %vm8753_vm9, %v9378_v53  ;;  %v11476_v45 = vpop.f32.mrb[87].mxu0  ;;  %v11520_v54 = vpop.f32.mrb[87].mxu1 }
 0x9ac   : > { %v9158_v48 = vpop.f32.mrb[88].mxu0  ;;  %v9383_v56 = vpop.f32.mrb[88].mxu1 }
 0x9ad   : > { %10242 = vst.msk [vmem:[%s16065_s28 + $0xe0] sm:$0xff] %vm8753_vm9, %v9158_v48  ;;  %10263 = vst.msk [vmem:[%s16065_s28 + $0x148] sm:$0xff] %vm8753_vm9, %v9383_v56  ;;  %v11479_v58 = vpop.f32.mrb[89].mxu0  ;;  %v11523_v11 = vpop.f32.mrb[89].mxu1 }
 0x9ae   : > { %v9161_v34 = vpop.f32.mrb[90].mxu0  ;;  %v9386_v3 = vpop.f32.mrb[90].mxu1 }
 0x9af   : > { %10243 = vst.msk [vmem:[%s16065_s28 + $0xe8] sm:$0xff] %vm8753_vm9, %v9161_v34  ;;  %10264 = vst.msk [vmem:[%s16065_s28 + $0x150] sm:$0xff] %vm8753_vm9, %v9386_v3  ;;  %v11480_v8 = vpop.f32.mrb[91].mxu0  ;;  %v11524_v22 = vpop.f32.mrb[91].mxu1 }
 0x9b4   : > { %v9166_v43 = vpop.f32.mrb[92].mxu0  ;;  %v9391_v24 = vpop.f32.mrb[92].mxu1 }
 0x9b5   : > { %10244 = vst.msk [vmem:[%s16065_s28 + $0xf0] sm:$0xff] %vm8753_vm9, %v9166_v43  ;;  %10265 = vst.msk [vmem:[%s16065_s28 + $0x158] sm:$0xff] %vm8753_vm9, %v9391_v24  ;;  %v11483_v17 = vpop.f32.mrb[93].mxu0  ;;  %v11527_v32 = vpop.f32.mrb[93].mxu1 }
 0x9b6   : > { %v9169_v39 = vpop.f32.mrb[94].mxu0  ;;  %v9394_v9 = vpop.f32.mrb[94].mxu1 }
 0x9b7   : > { %10245 = vst.msk [vmem:[%s16065_s28 + $0xf8] sm:$0xff] %vm8753_vm9, %v9169_v39  ;;  %10266 = vst.msk [vmem:[%s16065_s28 + $0x160] sm:$0xff] %vm8753_vm9, %v9394_v9  ;;  %v11484_v1 = vpop.f32.mrb[95].mxu0  ;;  %v11528_v10 = vpop.f32.mrb[95].mxu1 }
 0x9bc   : > { %v9174_v5 = vpop.f32.mrb[96].mxu0  ;;  %v9399_v19 = vpop.f32.mrb[96].mxu1 }
 0x9bd   : > { %10246 = vst.msk [vmem:[%s16065_s28 + $0x100] sm:$0xff] %vm8753_vm9, %v9174_v5  ;;  %10267 = vst.msk [vmem:[%s16065_s28 + $0x168] sm:$0xff] %vm8753_vm9, %v9399_v19  ;;  %v11487_v23 = vpop.f32.mrb[97].mxu0  ;;  %v11531_v26 = vpop.f32.mrb[97].mxu1 }
 0x9be   : > { %v9177_v30 = vpop.f32.mrb[98].mxu0  ;;  %v9402_v37 = vpop.f32.mrb[98].mxu1 }
 0x9bf   : > { %10247 = vst.msk [vmem:[%s16065_s28 + $0x108] sm:$0xff] %vm8753_vm9, %v9177_v30  ;;  %10268 = vst.msk [vmem:[%s16065_s28 + $0x170] sm:$0xff] %vm8753_vm9, %v9402_v37  ;;  %v11488_v31 = vpop.f32.mrb[99].mxu0  ;;  %v11532_v63 = vpop.f32.mrb[99].mxu1 }
 0x9c4   : > { %v9182_v62 = vpop.f32.mrb[100].mxu0  ;;  %v9407_v14 = vpop.f32.mrb[100].mxu1 }
 0x9c5   : > { %10248 = vst.msk [vmem:[%s16065_s28 + $0x110] sm:$0xff] %vm8753_vm9, %v9182_v62  ;;  %10269 = vst.msk [vmem:[%s16065_s28 + $0x178] sm:$0xff] %vm8753_vm9, %v9407_v14  ;;  %v11491_v7 = vpop.f32.mrb[101].mxu0  ;;  %v11535_v57 = vpop.f32.mrb[101].mxu1 }
 0x9c6   : > { %v9185_v44 = vpop.f32.mrb[102].mxu0  ;;  %v9410_v20 = vpop.f32.mrb[102].mxu1 }
 0x9c7   : > { %10249 = vst.msk [vmem:[%s16065_s28 + $0x118] sm:$0xff] %vm8753_vm9, %v9185_v44  ;;  %10270 = vst.msk [vmem:[%s16065_s28 + $0x180] sm:$0xff] %vm8753_vm9, %v9410_v20  ;;  %v11492_v42 = vpop.f32.mrb[103].mxu0  ;;  %v11536_v4 = vpop.f32.mrb[103].mxu1 }
 0x9cc   : > { %v9190_v28 = vpop.f32.mrb[104].mxu0  ;;  %v9415_v25 = vpop.f32.mrb[104].mxu1 }
 0x9cd   : > { %10250 = vst.msk [vmem:[%s16065_s28 + $0x120] sm:$0xff] %vm8753_vm9, %v9190_v28  ;;  %10271 = vst.msk [vmem:[%s16065_s28 + $0x188] sm:$0xff] %vm8753_vm9, %v9415_v25  ;;  %v11495_v60 = vpop.f32.mrb[105].mxu0  ;;  %v11539_v13 = vpop.f32.mrb[105].mxu1 }
 0x9ce   : > { %v9193_v52 = vpop.f32.mrb[106].mxu0  ;;  %v9418_v33 = vpop.f32.mrb[106].mxu1 }
 0x9cf   : > { %10251 = vst.msk [vmem:[%s16065_s28 + $0x128] sm:$0xff] %vm8753_vm9, %v9193_v52  ;;  %10272 = vst.msk [vmem:[%s16065_s28 + $0x190] sm:$0xff] %vm8753_vm9, %v9418_v33  ;;  %v11496_v29 = vpop.f32.mrb[107].mxu0  ;;  %v11540_v46 = vpop.f32.mrb[107].mxu1 }
 0x9d4   : > { %v9198_v16 = vpop.f32.mrb[108].mxu0  ;;  %v9423_v15 = vpop.f32.mrb[108].mxu1 }
 0x9d5   : > { %10252 = vst.msk [vmem:[%s16065_s28 + $0x130] sm:$0x3] %vm8766_vm10, %v9198_v16  ;;  %10273 = vst.msk [vmem:[%s16065_s28 + $0x198] sm:$0x3] %vm8766_vm10, %v9423_v15  ;;  %v11499_v41 = vpop.f32.mrb[109].mxu0  ;;  %v11543_v0 = vpop.f32.mrb[109].mxu1 }
 0x9d6   : > { %v9201_v18 = vpop.f32.mrb[110].mxu0  ;;  %v9426_v38 = vpop.f32.mrb[110].mxu1 }
 0x9d7   : > { %v11500_v2 = vpop.f32.mrb[111].mxu0  ;;  %v11544_v59 = vpop.f32.mrb[111].mxu1 }
 0x9d8 PF: > { %p24_p1 = scmp.ge.s32.totalorder %s13613_s25, 9   ;;  %s16066_s21 = smov %s13265_s22 }
 0x9d9   : > { %s16067_s22 = smov %s13269_s23  ;;  %s16068_s23 = smov %s13625_s18 }
 0x9da   : > { %s16069_s24 = smov %s13613_s25  ;;  %26 = sbr.rel (!%p24_p1) target bundleno = 12 (0xc), region = 182 }
 0x9e1   :  { %9454 = vsyncpa [#allocation6], 1 }
 0x9e2   :  { %9456 = vsyncpa [#allocation6 + $0x1], 1 }
 0x9e3   :  { %9457 = vsyncpa [#allocation8], 1 }
 0x9e4   :  { %9458 = vsyncpa [#allocation11], 1 }
 0x9e5   :  { %9459 = vsyncpa [#allocation16], 1 }
 0x9e6   :  { %9460 = vsyncpa [#allocation19], 1 }

</bundles_post_ra>
